<compile_context>
chip_gen: v7x
topology: tpu7x:2x2x1
jax: 0.10.0
libtpu: 0.0.40
codegen_flags: <defaults>
</compile_context>

<pallas_src>
import functools

import jax
import jax.numpy as jnp
from jax.experimental import pallas as pl
from jax.experimental.pallas import tpu as pltpu

EPS = 1e-5
_PAD_OFF = 8   # sublane-aligned column offset of the image inside the padded scratch


# ----------------------------------------------------------------------------
# Fused InceptionBlock kernel
# ----------------------------------------------------------------------------
def _pad_store(pad_ref, img, H, W):
    """Zero the padded scratch, then write img at (row 1, col _PAD_OFF) — aligned."""
    pad_ref[...] = jnp.zeros_like(pad_ref)
    pad_ref[1:H + 1, _PAD_OFF:_PAD_OFF + W, :] = img


def _conv3x3(pad_ref, w_ref, shift_ref, H, W):
    """3x3 SAME conv + folded-BN shift + ReLU as a single im2col matmul."""
    C = pad_ref.shape[-1]
    cols = []
    for dy in range(3):
        for dx in range(3):
            c0 = _PAD_OFF - 1 + dx
            cols.append(pad_ref[dy:dy + H, c0:c0 + W, :].reshape(H * W, C))
    patch = jnp.concatenate(cols, axis=-1)                      # (HW, 9*C)
    y = jnp.dot(patch, w_ref[...], preferred_element_type=jnp.float32)
    return jnp.maximum(y + shift_ref[...], 0.0)


def _inception_kernel(x_ref,
                      w0_ref, s0_ref,
                      w1a_ref, s1a_ref, w1b_ref, s1b_ref,
                      w2a_ref, s2a_ref, w2b_ref, s2b_ref, w2c_ref, s2c_ref,
                      wc_ref, sc_ref,
                      ws_ref, bs_ref,
                      o_ref,
                      pad1_ref, pad2_ref, pad3_ref,
                      *, H, W):
    x = x_ref[0]                                                # (HW, Cin)

    def conv1x1(a, w_r, sh_r):
        y = jnp.dot(a, w_r[...], preferred_element_type=jnp.float32)
        return jnp.maximum(y + sh_r[...], 0.0)

    # path 0: 1x1 -> 64
    a0 = conv1x1(x, w0_ref, s0_ref)

    # path 1: 1x1 -> 3x3
    a1 = conv1x1(x, w1a_ref, s1a_ref)
    _pad_store(pad1_ref, a1.reshape(H, W, a1.shape[-1]), H, W)
    p1 = _conv3x3(pad1_ref, w1b_ref, s1b_ref, H, W)

    # path 2: 1x1 -> 3x3 -> 3x3
    a2 = conv1x1(x, w2a_ref, s2a_ref)
    _pad_store(pad2_ref, a2.reshape(H, W, a2.shape[-1]), H, W)
    b2 = _conv3x3(pad2_ref, w2b_ref, s2b_ref, H, W)
    _pad_store(pad3_ref, b2.reshape(H, W, b2.shape[-1]), H, W)
    c2 = _conv3x3(pad3_ref, w2c_ref, s2c_ref, H, W)

    # torch.cat(dim=1) + cat_conv(1x1) + BN + ReLU: single 120-wide contraction
    cat = jnp.concatenate([a0, p1, c2], axis=-1)                # (HW, 120)
    y = jnp.dot(cat, wc_ref[...], preferred_element_type=jnp.float32)
    y = jnp.maximum(y + sc_ref[...], 0.0)

    # skip_adaptive (1x1 conv with bias) + residual add
    y = y + jnp.dot(x, ws_ref[...], preferred_element_type=jnp.float32) + bs_ref[...]

    o_ref[0] = y                                                # (HW, Cout)


def inception_block(x, params):
    """x: (N, H, W, Cin) float32 NHWC. Returns (N, H, W, out[-1])."""
    N, H, W, Cin = x.shape
    p = params
    Cout = p["cat"]["wf"].shape[-1]
    C1a = p["p1a"]["wf"].shape[-1]
    C2a = p["p2a"]["wf"].shape[-1]
    C2b = p["p2b"]["wf"].shape[-1]

    x2 = x.reshape(N, H * W, Cin)

    operands = [x2,
                p["p0"]["wf"], p["p0"]["shift"],
                p["p1a"]["wf"], p["p1a"]["shift"],
                p["p1b"]["wf"], p["p1b"]["shift"],
                p["p2a"]["wf"], p["p2a"]["shift"],
                p["p2b"]["wf"], p["p2b"]["shift"],
                p["p2c"]["wf"], p["p2c"]["shift"],
                p["cat"]["wf"], p["cat"]["shift"],
                p["skip"]["wm"], p["skip"]["bv"]]

    def _const_spec(a):
        # full-array block, constant index map -> loaded once / revisited
        return pl.BlockSpec(a.shape, lambda n: (0,) * a.ndim)

    in_specs = ([pl.BlockSpec((1, H * W, Cin), lambda n: (n, 0, 0))]
                + [_const_spec(a) for a in operands[1:]])

    Wp = W + 2 * _PAD_OFF
    kernel = functools.partial(_inception_kernel, H=H, W=W)
    out = pl.pallas_call(
        kernel,
        out_shape=jax.ShapeDtypeStruct((N, H * W, Cout), jnp.float32),
        grid_spec=pltpu.PrefetchScalarGridSpec(
            num_scalar_prefetch=0,
            grid=(N,),
            in_specs=in_specs,
            out_specs=pl.BlockSpec((1, H * W, Cout), lambda n: (n, 0, 0)),
            scratch_shapes=[
                pltpu.VMEM((H + 2, Wp, C1a), jnp.float32),
                pltpu.VMEM((H + 2, Wp, C2a), jnp.float32),
                pltpu.VMEM((H + 2, Wp, C2b), jnp.float32),
            ]),
        compiler_params=pltpu.CompilerParams(
            dimension_semantics=("parallel",)),
    )(*operands)
    return out.reshape(N, H, W, Cout)


# ----------------------------------------------------------------------------
# Parameter construction (deterministic, synthetic) + plain-JAX reference
# ----------------------------------------------------------------------------
def init_conv_bn(key, Cin, Cout, K):
    ks = jax.random.split(key, 6)
    w = jax.random.normal(ks[0], (Cout, Cin, K, K), jnp.float32) / jnp.sqrt(Cin * K * K)
    b = 0.05 * jax.random.normal(ks[1], (Cout,), jnp.float32)
    gamma = jax.random.uniform(ks[2], (Cout,), jnp.float32, 0.5, 1.5)
    beta = 0.1 * jax.random.normal(ks[3], (Cout,), jnp.float32)
    mean = 0.1 * jax.random.normal(ks[4], (Cout,), jnp.float32)
    var = jax.random.uniform(ks[5], (Cout,), jnp.float32, 0.5, 1.5)
    scale = gamma / jnp.sqrt(var + EPS)
    shift = beta + (b - mean) * scale
    # OIHW -> (KH*KW*Cin, Cout), with the BN scale folded into the weight.
    wf = jnp.transpose(w, (2, 3, 1, 0)).reshape(K * K * Cin, Cout) * scale[None, :]
    return dict(w=w, b=b, gamma=gamma, beta=beta, mean=mean, var=var,
                wf=wf, shift=shift.reshape(1, Cout))


def init_conv(key, Cin, Cout):
    k1, k2 = jax.random.split(key)
    w = jax.random.normal(k1, (Cout, Cin, 1, 1), jnp.float32) / jnp.sqrt(Cin)
    b = 0.05 * jax.random.normal(k2, (Cout,), jnp.float32)
    wm = jnp.transpose(w, (2, 3, 1, 0)).reshape(Cin, Cout)
    return dict(w=w, b=b, wm=wm, bv=b.reshape(1, Cout))


# plain-JAX reference (for correctness check only)
def _ref_conv(x, w, b, stride=1):
    w_hwio = jnp.transpose(w, (2, 3, 1, 0))
    y = jax.lax.conv_general_dilated(
        x, w_hwio, window_strides=(stride, stride), padding="SAME",
        dimension_numbers=("NHWC", "HWIO", "NHWC"),
        precision=jax.lax.Precision.HIGHEST)
    return y + b


def _ref_conv_bn_relu(x, p):
    y = _ref_conv(x, p["w"], p["b"])
    y = (y - p["mean"]) / jnp.sqrt(p["var"] + EPS) * p["gamma"] + p["beta"]
    return jnp.maximum(y, 0.0)


def ref_inception_block(x, params):
    p0 = _ref_conv_bn_relu(x, params["p0"])
    p1 = _ref_conv_bn_relu(_ref_conv_bn_relu(x, params["p1a"]), params["p1b"])
    t2 = _ref_conv_bn_relu(x, params["p2a"])
    p2 = _ref_conv_bn_relu(_ref_conv_bn_relu(t2, params["p2b"]), params["p2c"])
    cat = jnp.concatenate([p0, p1, p2], axis=-1)
    y = _ref_conv_bn_relu(cat, params["cat"])
    skip = _ref_conv(x, params["skip"]["w"], params["skip"]["b"])
    return y + skip


if __name__ == "__main__":
    key = jax.random.PRNGKey(0)
    keys = jax.random.split(key, 9)

    N, H, W = 2, 16, 16
    in_c = 16
    out = (24, 32, 16, 24, 64)       # InceptionBlock(in_c=16, out=out, stride=1)

    params = {
        "p0":  init_conv_bn(keys[0], in_c, 64, 1),
        "p1a": init_conv_bn(keys[1], in_c, out[0], 1),
        "p1b": init_conv_bn(keys[2], out[0], out[1], 3),
        "p2a": init_conv_bn(keys[3], in_c, out[2], 1),
        "p2b": init_conv_bn(keys[4], out[2], out[3], 3),
        "p2c": init_conv_bn(keys[5], out[3], out[3], 3),
        "cat": init_conv_bn(keys[6], 64 + out[1] + out[3], out[4], 1),
        # in_c (16) != out[-1] (64) -> skip_adaptive is a 1x1 conv with bias
        "skip": init_conv(keys[7], in_c, out[4]),
    }

    x_nchw = jax.random.normal(keys[8], (N, in_c, H, W), jnp.float32)
    x = jnp.transpose(x_nchw, (0, 2, 3, 1))   # NCHW -> NHWC (kernel layout)

    y = inception_block(x, params)
    y = jax.block_until_ready(y)

    y_ref = ref_inception_block(x, params)
    err = float(jnp.max(jnp.abs(y - y_ref)))
    assert y.shape == (N, H, W, out[4]), y.shape
    assert err < 5e-2, f"mismatch vs reference: max abs err = {err}"

    print("KERNEL_OK")
</pallas_src>

<mosaic_0001>
module attributes {stable_mosaic.version = 11 : i64} {
  func.func @_inception_kernel(%arg0: i32, %arg1: memref<1x256x16xf32, #tpu.memory_space<vmem>>, %arg2: memref<16x64xf32, #tpu.memory_space<vmem>>, %arg3: memref<1x64xf32, #tpu.memory_space<vmem>>, %arg4: memref<16x24xf32, #tpu.memory_space<vmem>>, %arg5: memref<1x24xf32, #tpu.memory_space<vmem>>, %arg6: memref<216x32xf32, #tpu.memory_space<vmem>>, %arg7: memref<1x32xf32, #tpu.memory_space<vmem>>, %arg8: memref<16x16xf32, #tpu.memory_space<vmem>>, %arg9: memref<1x16xf32, #tpu.memory_space<vmem>>, %arg10: memref<144x24xf32, #tpu.memory_space<vmem>>, %arg11: memref<1x24xf32, #tpu.memory_space<vmem>>, %arg12: memref<216x24xf32, #tpu.memory_space<vmem>>, %arg13: memref<1x24xf32, #tpu.memory_space<vmem>>, %arg14: memref<120x64xf32, #tpu.memory_space<vmem>>, %arg15: memref<1x64xf32, #tpu.memory_space<vmem>>, %arg16: memref<16x64xf32, #tpu.memory_space<vmem>>, %arg17: memref<1x64xf32, #tpu.memory_space<vmem>>, %arg18: memref<1x256x64xf32, #tpu.memory_space<vmem>>, %arg19: memref<18x32x24xf32, #tpu.memory_space<vmem>>, %arg20: memref<18x32x16xf32, #tpu.memory_space<vmem>>, %arg21: memref<18x32x24xf32, #tpu.memory_space<vmem>>) attributes {dimension_semantics = [#tpu.dimension_semantics<parallel>], iteration_bounds = array<i64: 2>, scalar_prefetch = 0 : i64, scratch_operands = 3 : i64, tpu.core_type = #tpu.core_type<tc>, window_params = [{transform_indices = @transform_0, window_bounds = array<i64: 1, 256, 16>}, {pipeline_mode = #tpu.pipeline_mode<synchronous>, transform_indices = @transform_1, window_bounds = array<i64: 16, 64>}, {pipeline_mode = #tpu.pipeline_mode<synchronous>, transform_indices = @transform_2, window_bounds = array<i64: 1, 64>}, {pipeline_mode = #tpu.pipeline_mode<synchronous>, transform_indices = @transform_3, window_bounds = array<i64: 16, 24>}, {pipeline_mode = #tpu.pipeline_mode<synchronous>, transform_indices = @transform_4, window_bounds = array<i64: 1, 24>}, {pipeline_mode = #tpu.pipeline_mode<synchronous>, transform_indices = @transform_5, window_bounds = array<i64: 216, 32>}, {pipeline_mode = #tpu.pipeline_mode<synchronous>, transform_indices = @transform_6, window_bounds = array<i64: 1, 32>}, {pipeline_mode = #tpu.pipeline_mode<synchronous>, transform_indices = @transform_7, window_bounds = array<i64: 16, 16>}, {pipeline_mode = #tpu.pipeline_mode<synchronous>, transform_indices = @transform_8, window_bounds = array<i64: 1, 16>}, {pipeline_mode = #tpu.pipeline_mode<synchronous>, transform_indices = @transform_9, window_bounds = array<i64: 144, 24>}, {pipeline_mode = #tpu.pipeline_mode<synchronous>, transform_indices = @transform_10, window_bounds = array<i64: 1, 24>}, {pipeline_mode = #tpu.pipeline_mode<synchronous>, transform_indices = @transform_11, window_bounds = array<i64: 216, 24>}, {pipeline_mode = #tpu.pipeline_mode<synchronous>, transform_indices = @transform_12, window_bounds = array<i64: 1, 24>}, {pipeline_mode = #tpu.pipeline_mode<synchronous>, transform_indices = @transform_13, window_bounds = array<i64: 120, 64>}, {pipeline_mode = #tpu.pipeline_mode<synchronous>, transform_indices = @transform_14, window_bounds = array<i64: 1, 64>}, {pipeline_mode = #tpu.pipeline_mode<synchronous>, transform_indices = @transform_15, window_bounds = array<i64: 16, 64>}, {pipeline_mode = #tpu.pipeline_mode<synchronous>, transform_indices = @transform_16, window_bounds = array<i64: 1, 64>}, {transform_indices = @transform_17, window_bounds = array<i64: 1, 256, 64>}]} {
    %c0 = arith.constant 0 : index
    %c0_0 = arith.constant 0 : index
    %c0_1 = arith.constant 0 : index
    %0 = vector.load %arg1[%c0, %c0_0, %c0_1] : memref<1x256x16xf32, #tpu.memory_space<vmem>>, vector<1x256x16xf32>
    %1 = vector.shape_cast %0 : vector<1x256x16xf32> to vector<256x16xf32>
    %c0_2 = arith.constant 0 : index
    %c0_3 = arith.constant 0 : index
    %2 = vector.load %arg2[%c0_2, %c0_3] : memref<16x64xf32, #tpu.memory_space<vmem>>, vector<16x64xf32>
    %cst = arith.constant dense<0.000000e+00> : vector<256x64xf32>
    %3 = tpu.matmul %1, %2, %cst {dimension_numbers = #tpu.dot_dimension_numbers<[1], [0], [0], [1], [0, 0, 1, 1], [], []>} : vector<256x16xf32>, vector<16x64xf32>, vector<256x64xf32> -> vector<256x64xf32>
    %c0_4 = arith.constant 0 : index
    %c0_5 = arith.constant 0 : index
    %4 = vector.load %arg3[%c0_4, %c0_5] : memref<1x64xf32, #tpu.memory_space<vmem>>, vector<1x64xf32>
    %5 = vector.broadcast %4 : vector<1x64xf32> to vector<256x64xf32>
    %6 = arith.addf %3, %5 : vector<256x64xf32>
    %cst_6 = arith.constant 0.000000e+00 : f32
    %7 = vector.broadcast %cst_6 : f32 to vector<256x64xf32>
    %8 = arith.maximumf %6, %7 : vector<256x64xf32>
    %c0_7 = arith.constant 0 : index
    %c0_8 = arith.constant 0 : index
    %9 = vector.load %arg4[%c0_7, %c0_8] : memref<16x24xf32, #tpu.memory_space<vmem>>, vector<16x24xf32>
    %cst_9 = arith.constant dense<0.000000e+00> : vector<256x24xf32>
    %10 = tpu.matmul %1, %9, %cst_9 {dimension_numbers = #tpu.dot_dimension_numbers<[1], [0], [0], [1], [0, 0, 1, 1], [], []>} : vector<256x16xf32>, vector<16x24xf32>, vector<256x24xf32> -> vector<256x24xf32>
    %c0_10 = arith.constant 0 : index
    %c0_11 = arith.constant 0 : index
    %11 = vector.load %arg5[%c0_10, %c0_11] : memref<1x24xf32, #tpu.memory_space<vmem>>, vector<1x24xf32>
    %12 = vector.broadcast %11 : vector<1x24xf32> to vector<256x24xf32>
    %13 = arith.addf %10, %12 : vector<256x24xf32>
    %cst_12 = arith.constant 0.000000e+00 : f32
    %14 = vector.broadcast %cst_12 : f32 to vector<256x24xf32>
    %15 = arith.maximumf %13, %14 : vector<256x24xf32>
    %16 = vector.shape_cast %15 : vector<256x24xf32> to vector<16x16x24xf32>
    %cst_13 = arith.constant 0.000000e+00 : f32
    %17 = vector.broadcast %cst_13 : f32 to vector<18x32x24xf32>
    %c0_14 = arith.constant 0 : index
    %c0_15 = arith.constant 0 : index
    %c0_16 = arith.constant 0 : index
    %18 = vector.load %arg19[%c0_14, %c0_15, %c0_16] : memref<18x32x24xf32, #tpu.memory_space<vmem>>, vector<18x32x24xf32>
    tpu.vector_store %arg19[%c0_14, %c0_15, %c0_16], %17 {strides = array<i32>} : memref<18x32x24xf32, #tpu.memory_space<vmem>>, vector<18x32x24xf32>,
    %c1 = arith.constant 1 : index
    %c8 = arith.constant 8 : index
    %c0_17 = arith.constant 0 : index
    %19 = vector.load %arg19[%c1, %c8, %c0_17] : memref<18x32x24xf32, #tpu.memory_space<vmem>>, vector<16x16x24xf32>
    tpu.vector_store %arg19[%c1, %c8, %c0_17], %16 {strides = array<i32>} : memref<18x32x24xf32, #tpu.memory_space<vmem>>, vector<16x16x24xf32>,
    %c0_18 = arith.constant 0 : index
    %c7 = arith.constant 7 : index
    %c0_19 = arith.constant 0 : index
    %20 = vector.load %arg19[%c0_18, %c7, %c0_19] : memref<18x32x24xf32, #tpu.memory_space<vmem>>, vector<16x16x24xf32>
    %21 = vector.shape_cast %20 : vector<16x16x24xf32> to vector<256x24xf32>
    %c0_20 = arith.constant 0 : index
    %c8_21 = arith.constant 8 : index
    %c0_22 = arith.constant 0 : index
    %22 = vector.load %arg19[%c0_20, %c8_21, %c0_22] : memref<18x32x24xf32, #tpu.memory_space<vmem>>, vector<16x16x24xf32>
    %23 = vector.shape_cast %22 : vector<16x16x24xf32> to vector<256x24xf32>
    %c0_23 = arith.constant 0 : index
    %c9 = arith.constant 9 : index
    %c0_24 = arith.constant 0 : index
    %24 = vector.load %arg19[%c0_23, %c9, %c0_24] : memref<18x32x24xf32, #tpu.memory_space<vmem>>, vector<16x16x24xf32>
    %25 = vector.shape_cast %24 : vector<16x16x24xf32> to vector<256x24xf32>
    %c1_25 = arith.constant 1 : index
    %c7_26 = arith.constant 7 : index
    %c0_27 = arith.constant 0 : index
    %26 = vector.load %arg19[%c1_25, %c7_26, %c0_27] : memref<18x32x24xf32, #tpu.memory_space<vmem>>, vector<16x16x24xf32>
    %27 = vector.shape_cast %26 : vector<16x16x24xf32> to vector<256x24xf32>
    %c1_28 = arith.constant 1 : index
    %c8_29 = arith.constant 8 : index
    %c0_30 = arith.constant 0 : index
    %28 = vector.load %arg19[%c1_28, %c8_29, %c0_30] : memref<18x32x24xf32, #tpu.memory_space<vmem>>, vector<16x16x24xf32>
    %29 = vector.shape_cast %28 : vector<16x16x24xf32> to vector<256x24xf32>
    %c1_31 = arith.constant 1 : index
    %c9_32 = arith.constant 9 : index
    %c0_33 = arith.constant 0 : index
    %30 = vector.load %arg19[%c1_31, %c9_32, %c0_33] : memref<18x32x24xf32, #tpu.memory_space<vmem>>, vector<16x16x24xf32>
    %31 = vector.shape_cast %30 : vector<16x16x24xf32> to vector<256x24xf32>
    %c2 = arith.constant 2 : index
    %c7_34 = arith.constant 7 : index
    %c0_35 = arith.constant 0 : index
    %32 = vector.load %arg19[%c2, %c7_34, %c0_35] : memref<18x32x24xf32, #tpu.memory_space<vmem>>, vector<16x16x24xf32>
    %33 = vector.shape_cast %32 : vector<16x16x24xf32> to vector<256x24xf32>
    %c2_36 = arith.constant 2 : index
    %c8_37 = arith.constant 8 : index
    %c0_38 = arith.constant 0 : index
    %34 = vector.load %arg19[%c2_36, %c8_37, %c0_38] : memref<18x32x24xf32, #tpu.memory_space<vmem>>, vector<16x16x24xf32>
    %35 = vector.shape_cast %34 : vector<16x16x24xf32> to vector<256x24xf32>
    %c2_39 = arith.constant 2 : index
    %c9_40 = arith.constant 9 : index
    %c0_41 = arith.constant 0 : index
    %36 = vector.load %arg19[%c2_39, %c9_40, %c0_41] : memref<18x32x24xf32, #tpu.memory_space<vmem>>, vector<16x16x24xf32>
    %37 = vector.shape_cast %36 : vector<16x16x24xf32> to vector<256x24xf32>
    %38 = tpu.concatenate %21, %23, %25, %27, %29, %31, %33, %35, %37 in 1 : vector<256x24xf32>, vector<256x24xf32>, vector<256x24xf32>, vector<256x24xf32>, vector<256x24xf32>, vector<256x24xf32>, vector<256x24xf32>, vector<256x24xf32>, vector<256x24xf32> -> vector<256x216xf32>
    %c0_42 = arith.constant 0 : index
    %c0_43 = arith.constant 0 : index
    %39 = vector.load %arg6[%c0_42, %c0_43] : memref<216x32xf32, #tpu.memory_space<vmem>>, vector<216x32xf32>
    %cst_44 = arith.constant dense<0.000000e+00> : vector<256x32xf32>
    %40 = tpu.matmul %38, %39, %cst_44 {dimension_numbers = #tpu.dot_dimension_numbers<[1], [0], [0], [1], [0, 0, 1, 1], [], []>} : vector<256x216xf32>, vector<216x32xf32>, vector<256x32xf32> -> vector<256x32xf32>
    %c0_45 = arith.constant 0 : index
    %c0_46 = arith.constant 0 : index
    %41 = vector.load %arg7[%c0_45, %c0_46] : memref<1x32xf32, #tpu.memory_space<vmem>>, vector<1x32xf32>
    %42 = vector.broadcast %41 : vector<1x32xf32> to vector<256x32xf32>
    %43 = arith.addf %40, %42 : vector<256x32xf32>
    %cst_47 = arith.constant 0.000000e+00 : f32
    %44 = vector.broadcast %cst_47 : f32 to vector<256x32xf32>
    %45 = arith.maximumf %43, %44 : vector<256x32xf32>
    %c0_48 = arith.constant 0 : index
    %c0_49 = arith.constant 0 : index
    %46 = vector.load %arg8[%c0_48, %c0_49] : memref<16x16xf32, #tpu.memory_space<vmem>>, vector<16x16xf32>
    %cst_50 = arith.constant dense<0.000000e+00> : vector<256x16xf32>
    %47 = tpu.matmul %1, %46, %cst_50 {dimension_numbers = #tpu.dot_dimension_numbers<[1], [0], [0], [1], [0, 0, 1, 1], [], []>} : vector<256x16xf32>, vector<16x16xf32>, vector<256x16xf32> -> vector<256x16xf32>
    %c0_51 = arith.constant 0 : index
    %c0_52 = arith.constant 0 : index
    %48 = vector.load %arg9[%c0_51, %c0_52] : memref<1x16xf32, #tpu.memory_space<vmem>>, vector<1x16xf32>
    %49 = vector.broadcast %48 : vector<1x16xf32> to vector<256x16xf32>
    %50 = arith.addf %47, %49 : vector<256x16xf32>
    %cst_53 = arith.constant 0.000000e+00 : f32
    %51 = vector.broadcast %cst_53 : f32 to vector<256x16xf32>
    %52 = arith.maximumf %50, %51 : vector<256x16xf32>
    %53 = vector.shape_cast %52 : vector<256x16xf32> to vector<16x16x16xf32>
    %cst_54 = arith.constant 0.000000e+00 : f32
    %54 = vector.broadcast %cst_54 : f32 to vector<18x32x16xf32>
    %c0_55 = arith.constant 0 : index
    %c0_56 = arith.constant 0 : index
    %c0_57 = arith.constant 0 : index
    %55 = vector.load %arg20[%c0_55, %c0_56, %c0_57] : memref<18x32x16xf32, #tpu.memory_space<vmem>>, vector<18x32x16xf32>
    tpu.vector_store %arg20[%c0_55, %c0_56, %c0_57], %54 {strides = array<i32>} : memref<18x32x16xf32, #tpu.memory_space<vmem>>, vector<18x32x16xf32>,
    %c1_58 = arith.constant 1 : index
    %c8_59 = arith.constant 8 : index
    %c0_60 = arith.constant 0 : index
    %56 = vector.load %arg20[%c1_58, %c8_59, %c0_60] : memref<18x32x16xf32, #tpu.memory_space<vmem>>, vector<16x16x16xf32>
    tpu.vector_store %arg20[%c1_58, %c8_59, %c0_60], %53 {strides = array<i32>} : memref<18x32x16xf32, #tpu.memory_space<vmem>>, vector<16x16x16xf32>,
    %c0_61 = arith.constant 0 : index
    %c7_62 = arith.constant 7 : index
    %c0_63 = arith.constant 0 : index
    %57 = vector.load %arg20[%c0_61, %c7_62, %c0_63] : memref<18x32x16xf32, #tpu.memory_space<vmem>>, vector<16x16x16xf32>
    %58 = vector.shape_cast %57 : vector<16x16x16xf32> to vector<256x16xf32>
    %c0_64 = arith.constant 0 : index
    %c8_65 = arith.constant 8 : index
    %c0_66 = arith.constant 0 : index
    %59 = vector.load %arg20[%c0_64, %c8_65, %c0_66] : memref<18x32x16xf32, #tpu.memory_space<vmem>>, vector<16x16x16xf32>
    %60 = vector.shape_cast %59 : vector<16x16x16xf32> to vector<256x16xf32>
    %c0_67 = arith.constant 0 : index
    %c9_68 = arith.constant 9 : index
    %c0_69 = arith.constant 0 : index
    %61 = vector.load %arg20[%c0_67, %c9_68, %c0_69] : memref<18x32x16xf32, #tpu.memory_space<vmem>>, vector<16x16x16xf32>
    %62 = vector.shape_cast %61 : vector<16x16x16xf32> to vector<256x16xf32>
    %c1_70 = arith.constant 1 : index
    %c7_71 = arith.constant 7 : index
    %c0_72 = arith.constant 0 : index
    %63 = vector.load %arg20[%c1_70, %c7_71, %c0_72] : memref<18x32x16xf32, #tpu.memory_space<vmem>>, vector<16x16x16xf32>
    %64 = vector.shape_cast %63 : vector<16x16x16xf32> to vector<256x16xf32>
    %c1_73 = arith.constant 1 : index
    %c8_74 = arith.constant 8 : index
    %c0_75 = arith.constant 0 : index
    %65 = vector.load %arg20[%c1_73, %c8_74, %c0_75] : memref<18x32x16xf32, #tpu.memory_space<vmem>>, vector<16x16x16xf32>
    %66 = vector.shape_cast %65 : vector<16x16x16xf32> to vector<256x16xf32>
    %c1_76 = arith.constant 1 : index
    %c9_77 = arith.constant 9 : index
    %c0_78 = arith.constant 0 : index
    %67 = vector.load %arg20[%c1_76, %c9_77, %c0_78] : memref<18x32x16xf32, #tpu.memory_space<vmem>>, vector<16x16x16xf32>
    %68 = vector.shape_cast %67 : vector<16x16x16xf32> to vector<256x16xf32>
    %c2_79 = arith.constant 2 : index
    %c7_80 = arith.constant 7 : index
    %c0_81 = arith.constant 0 : index
    %69 = vector.load %arg20[%c2_79, %c7_80, %c0_81] : memref<18x32x16xf32, #tpu.memory_space<vmem>>, vector<16x16x16xf32>
    %70 = vector.shape_cast %69 : vector<16x16x16xf32> to vector<256x16xf32>
    %c2_82 = arith.constant 2 : index
    %c8_83 = arith.constant 8 : index
    %c0_84 = arith.constant 0 : index
    %71 = vector.load %arg20[%c2_82, %c8_83, %c0_84] : memref<18x32x16xf32, #tpu.memory_space<vmem>>, vector<16x16x16xf32>
    %72 = vector.shape_cast %71 : vector<16x16x16xf32> to vector<256x16xf32>
    %c2_85 = arith.constant 2 : index
    %c9_86 = arith.constant 9 : index
    %c0_87 = arith.constant 0 : index
    %73 = vector.load %arg20[%c2_85, %c9_86, %c0_87] : memref<18x32x16xf32, #tpu.memory_space<vmem>>, vector<16x16x16xf32>
    %74 = vector.shape_cast %73 : vector<16x16x16xf32> to vector<256x16xf32>
    %75 = tpu.concatenate %58, %60, %62, %64, %66, %68, %70, %72, %74 in 1 : vector<256x16xf32>, vector<256x16xf32>, vector<256x16xf32>, vector<256x16xf32>, vector<256x16xf32>, vector<256x16xf32>, vector<256x16xf32>, vector<256x16xf32>, vector<256x16xf32> -> vector<256x144xf32>
    %c0_88 = arith.constant 0 : index
    %c0_89 = arith.constant 0 : index
    %76 = vector.load %arg10[%c0_88, %c0_89] : memref<144x24xf32, #tpu.memory_space<vmem>>, vector<144x24xf32>
    %cst_90 = arith.constant dense<0.000000e+00> : vector<256x24xf32>
    %77 = tpu.matmul %75, %76, %cst_90 {dimension_numbers = #tpu.dot_dimension_numbers<[1], [0], [0], [1], [0, 0, 1, 1], [], []>} : vector<256x144xf32>, vector<144x24xf32>, vector<256x24xf32> -> vector<256x24xf32>
    %c0_91 = arith.constant 0 : index
    %c0_92 = arith.constant 0 : index
    %78 = vector.load %arg11[%c0_91, %c0_92] : memref<1x24xf32, #tpu.memory_space<vmem>>, vector<1x24xf32>
    %79 = vector.broadcast %78 : vector<1x24xf32> to vector<256x24xf32>
    %80 = arith.addf %77, %79 : vector<256x24xf32>
    %cst_93 = arith.constant 0.000000e+00 : f32
    %81 = vector.broadcast %cst_93 : f32 to vector<256x24xf32>
    %82 = arith.maximumf %80, %81 : vector<256x24xf32>
    %83 = vector.shape_cast %82 : vector<256x24xf32> to vector<16x16x24xf32>
    %cst_94 = arith.constant 0.000000e+00 : f32
    %84 = vector.broadcast %cst_94 : f32 to vector<18x32x24xf32>
    %c0_95 = arith.constant 0 : index
    %c0_96 = arith.constant 0 : index
    %c0_97 = arith.constant 0 : index
    %85 = vector.load %arg21[%c0_95, %c0_96, %c0_97] : memref<18x32x24xf32, #tpu.memory_space<vmem>>, vector<18x32x24xf32>
    tpu.vector_store %arg21[%c0_95, %c0_96, %c0_97], %84 {strides = array<i32>} : memref<18x32x24xf32, #tpu.memory_space<vmem>>, vector<18x32x24xf32>,
    %c1_98 = arith.constant 1 : index
    %c8_99 = arith.constant 8 : index
    %c0_100 = arith.constant 0 : index
    %86 = vector.load %arg21[%c1_98, %c8_99, %c0_100] : memref<18x32x24xf32, #tpu.memory_space<vmem>>, vector<16x16x24xf32>
    tpu.vector_store %arg21[%c1_98, %c8_99, %c0_100], %83 {strides = array<i32>} : memref<18x32x24xf32, #tpu.memory_space<vmem>>, vector<16x16x24xf32>,
    %c0_101 = arith.constant 0 : index
    %c7_102 = arith.constant 7 : index
    %c0_103 = arith.constant 0 : index
    %87 = vector.load %arg21[%c0_101, %c7_102, %c0_103] : memref<18x32x24xf32, #tpu.memory_space<vmem>>, vector<16x16x24xf32>
    %88 = vector.shape_cast %87 : vector<16x16x24xf32> to vector<256x24xf32>
    %c0_104 = arith.constant 0 : index
    %c8_105 = arith.constant 8 : index
    %c0_106 = arith.constant 0 : index
    %89 = vector.load %arg21[%c0_104, %c8_105, %c0_106] : memref<18x32x24xf32, #tpu.memory_space<vmem>>, vector<16x16x24xf32>
    %90 = vector.shape_cast %89 : vector<16x16x24xf32> to vector<256x24xf32>
    %c0_107 = arith.constant 0 : index
    %c9_108 = arith.constant 9 : index
    %c0_109 = arith.constant 0 : index
    %91 = vector.load %arg21[%c0_107, %c9_108, %c0_109] : memref<18x32x24xf32, #tpu.memory_space<vmem>>, vector<16x16x24xf32>
    %92 = vector.shape_cast %91 : vector<16x16x24xf32> to vector<256x24xf32>
    %c1_110 = arith.constant 1 : index
    %c7_111 = arith.constant 7 : index
    %c0_112 = arith.constant 0 : index
    %93 = vector.load %arg21[%c1_110, %c7_111, %c0_112] : memref<18x32x24xf32, #tpu.memory_space<vmem>>, vector<16x16x24xf32>
    %94 = vector.shape_cast %93 : vector<16x16x24xf32> to vector<256x24xf32>
    %c1_113 = arith.constant 1 : index
    %c8_114 = arith.constant 8 : index
    %c0_115 = arith.constant 0 : index
    %95 = vector.load %arg21[%c1_113, %c8_114, %c0_115] : memref<18x32x24xf32, #tpu.memory_space<vmem>>, vector<16x16x24xf32>
    %96 = vector.shape_cast %95 : vector<16x16x24xf32> to vector<256x24xf32>
    %c1_116 = arith.constant 1 : index
    %c9_117 = arith.constant 9 : index
    %c0_118 = arith.constant 0 : index
    %97 = vector.load %arg21[%c1_116, %c9_117, %c0_118] : memref<18x32x24xf32, #tpu.memory_space<vmem>>, vector<16x16x24xf32>
    %98 = vector.shape_cast %97 : vector<16x16x24xf32> to vector<256x24xf32>
    %c2_119 = arith.constant 2 : index
    %c7_120 = arith.constant 7 : index
    %c0_121 = arith.constant 0 : index
    %99 = vector.load %arg21[%c2_119, %c7_120, %c0_121] : memref<18x32x24xf32, #tpu.memory_space<vmem>>, vector<16x16x24xf32>
    %100 = vector.shape_cast %99 : vector<16x16x24xf32> to vector<256x24xf32>
    %c2_122 = arith.constant 2 : index
    %c8_123 = arith.constant 8 : index
    %c0_124 = arith.constant 0 : index
    %101 = vector.load %arg21[%c2_122, %c8_123, %c0_124] : memref<18x32x24xf32, #tpu.memory_space<vmem>>, vector<16x16x24xf32>
    %102 = vector.shape_cast %101 : vector<16x16x24xf32> to vector<256x24xf32>
    %c2_125 = arith.constant 2 : index
    %c9_126 = arith.constant 9 : index
    %c0_127 = arith.constant 0 : index
    %103 = vector.load %arg21[%c2_125, %c9_126, %c0_127] : memref<18x32x24xf32, #tpu.memory_space<vmem>>, vector<16x16x24xf32>
    %104 = vector.shape_cast %103 : vector<16x16x24xf32> to vector<256x24xf32>
    %105 = tpu.concatenate %88, %90, %92, %94, %96, %98, %100, %102, %104 in 1 : vector<256x24xf32>, vector<256x24xf32>, vector<256x24xf32>, vector<256x24xf32>, vector<256x24xf32>, vector<256x24xf32>, vector<256x24xf32>, vector<256x24xf32>, vector<256x24xf32> -> vector<256x216xf32>
    %c0_128 = arith.constant 0 : index
    %c0_129 = arith.constant 0 : index
    %106 = vector.load %arg12[%c0_128, %c0_129] : memref<216x24xf32, #tpu.memory_space<vmem>>, vector<216x24xf32>
    %cst_130 = arith.constant dense<0.000000e+00> : vector<256x24xf32>
    %107 = tpu.matmul %105, %106, %cst_130 {dimension_numbers = #tpu.dot_dimension_numbers<[1], [0], [0], [1], [0, 0, 1, 1], [], []>} : vector<256x216xf32>, vector<216x24xf32>, vector<256x24xf32> -> vector<256x24xf32>
    %c0_131 = arith.constant 0 : index
    %c0_132 = arith.constant 0 : index
    %108 = vector.load %arg13[%c0_131, %c0_132] : memref<1x24xf32, #tpu.memory_space<vmem>>, vector<1x24xf32>
    %109 = vector.broadcast %108 : vector<1x24xf32> to vector<256x24xf32>
    %110 = arith.addf %107, %109 : vector<256x24xf32>
    %cst_133 = arith.constant 0.000000e+00 : f32
    %111 = vector.broadcast %cst_133 : f32 to vector<256x24xf32>
    %112 = arith.maximumf %110, %111 : vector<256x24xf32>
    %113 = tpu.concatenate %8, %45, %112 in 1 : vector<256x64xf32>, vector<256x32xf32>, vector<256x24xf32> -> vector<256x120xf32>
    %c0_134 = arith.constant 0 : index
    %c0_135 = arith.constant 0 : index
    %114 = vector.load %arg14[%c0_134, %c0_135] : memref<120x64xf32, #tpu.memory_space<vmem>>, vector<120x64xf32>
    %cst_136 = arith.constant dense<0.000000e+00> : vector<256x64xf32>
    %115 = tpu.matmul %113, %114, %cst_136 {dimension_numbers = #tpu.dot_dimension_numbers<[1], [0], [0], [1], [0, 0, 1, 1], [], []>} : vector<256x120xf32>, vector<120x64xf32>, vector<256x64xf32> -> vector<256x64xf32>
    %c0_137 = arith.constant 0 : index
    %c0_138 = arith.constant 0 : index
    %116 = vector.load %arg15[%c0_137, %c0_138] : memref<1x64xf32, #tpu.memory_space<vmem>>, vector<1x64xf32>
    %117 = vector.broadcast %116 : vector<1x64xf32> to vector<256x64xf32>
    %118 = arith.addf %115, %117 : vector<256x64xf32>
    %cst_139 = arith.constant 0.000000e+00 : f32
    %119 = vector.broadcast %cst_139 : f32 to vector<256x64xf32>
    %120 = arith.maximumf %118, %119 : vector<256x64xf32>
    %c0_140 = arith.constant 0 : index
    %c0_141 = arith.constant 0 : index
    %121 = vector.load %arg16[%c0_140, %c0_141] : memref<16x64xf32, #tpu.memory_space<vmem>>, vector<16x64xf32>
    %cst_142 = arith.constant dense<0.000000e+00> : vector<256x64xf32>
    %122 = tpu.matmul %1, %121, %cst_142 {dimension_numbers = #tpu.dot_dimension_numbers<[1], [0], [0], [1], [0, 0, 1, 1], [], []>} : vector<256x16xf32>, vector<16x64xf32>, vector<256x64xf32> -> vector<256x64xf32>
    %123 = arith.addf %120, %122 : vector<256x64xf32>
    %c0_143 = arith.constant 0 : index
    %c0_144 = arith.constant 0 : index
    %124 = vector.load %arg17[%c0_143, %c0_144] : memref<1x64xf32, #tpu.memory_space<vmem>>, vector<1x64xf32>
    %125 = vector.broadcast %124 : vector<1x64xf32> to vector<256x64xf32>
    %126 = arith.addf %123, %125 : vector<256x64xf32>
    %c0_145 = arith.constant 0 : index
    %c0_146 = arith.constant 0 : index
    %c0_147 = arith.constant 0 : index
    %127 = vector.load %arg18[%c0_145, %c0_146, %c0_147] : memref<1x256x64xf32, #tpu.memory_space<vmem>>, vector<1x256x64xf32>
    %128 = vector.shape_cast %127 : vector<1x256x64xf32> to vector<256x64xf32>
    %129 = vector.shape_cast %126 : vector<256x64xf32> to vector<1x256x64xf32>
    tpu.vector_store %arg18[%c0_145, %c0_146, %c0_147], %129 {strides = array<i32>} : memref<1x256x64xf32, #tpu.memory_space<vmem>>, vector<1x256x64xf32>,
    return
  }
  func.func @transform_0(%arg0: i32) -> (i32, i32, i32) {
    %c0_i32 = arith.constant 0 : i32
    %c0_i32_0 = arith.constant 0 : i32
    %c0_i32_1 = arith.constant 0 : i32
    return %arg0, %c0_i32, %c0_i32_0 : i32, i32, i32
  }
  func.func @transform_1(%arg0: i32) -> (i32, i32) {
    %c0_i32 = arith.constant 0 : i32
    %c0_i32_0 = arith.constant 0 : i32
    %c0_i32_1 = arith.constant 0 : i32
    return %c0_i32, %c0_i32_0 : i32, i32
  }
  func.func @transform_2(%arg0: i32) -> (i32, i32) {
    %c0_i32 = arith.constant 0 : i32
    %c0_i32_0 = arith.constant 0 : i32
    %c0_i32_1 = arith.constant 0 : i32
    return %c0_i32, %c0_i32_0 : i32, i32
  }
  func.func @transform_3(%arg0: i32) -> (i32, i32) {
    %c0_i32 = arith.constant 0 : i32
    %c0_i32_0 = arith.constant 0 : i32
    %c0_i32_1 = arith.constant 0 : i32
    return %c0_i32, %c0_i32_0 : i32, i32
  }
  func.func @transform_4(%arg0: i32) -> (i32, i32) {
    %c0_i32 = arith.constant 0 : i32
    %c0_i32_0 = arith.constant 0 : i32
    %c0_i32_1 = arith.constant 0 : i32
    return %c0_i32, %c0_i32_0 : i32, i32
  }
  func.func @transform_5(%arg0: i32) -> (i32, i32) {
    %c0_i32 = arith.constant 0 : i32
    %c0_i32_0 = arith.constant 0 : i32
    %c0_i32_1 = arith.constant 0 : i32
    return %c0_i32, %c0_i32_0 : i32, i32
  }
  func.func @transform_6(%arg0: i32) -> (i32, i32) {
    %c0_i32 = arith.constant 0 : i32
    %c0_i32_0 = arith.constant 0 : i32
    %c0_i32_1 = arith.constant 0 : i32
    return %c0_i32, %c0_i32_0 : i32, i32
  }
  func.func @transform_7(%arg0: i32) -> (i32, i32) {
    %c0_i32 = arith.constant 0 : i32
    %c0_i32_0 = arith.constant 0 : i32
    %c0_i32_1 = arith.constant 0 : i32
    return %c0_i32, %c0_i32_0 : i32, i32
  }
  func.func @transform_8(%arg0: i32) -> (i32, i32) {
    %c0_i32 = arith.constant 0 : i32
    %c0_i32_0 = arith.constant 0 : i32
    %c0_i32_1 = arith.constant 0 : i32
    return %c0_i32, %c0_i32_0 : i32, i32
  }
  func.func @transform_9(%arg0: i32) -> (i32, i32) {
    %c0_i32 = arith.constant 0 : i32
    %c0_i32_0 = arith.constant 0 : i32
    %c0_i32_1 = arith.constant 0 : i32
    return %c0_i32, %c0_i32_0 : i32, i32
  }
  func.func @transform_10(%arg0: i32) -> (i32, i32) {
    %c0_i32 = arith.constant 0 : i32
    %c0_i32_0 = arith.constant 0 : i32
    %c0_i32_1 = arith.constant 0 : i32
    return %c0_i32, %c0_i32_0 : i32, i32
  }
  func.func @transform_11(%arg0: i32) -> (i32, i32) {
    %c0_i32 = arith.constant 0 : i32
    %c0_i32_0 = arith.constant 0 : i32
    %c0_i32_1 = arith.constant 0 : i32
    return %c0_i32, %c0_i32_0 : i32, i32
  }
  func.func @transform_12(%arg0: i32) -> (i32, i32) {
    %c0_i32 = arith.constant 0 : i32
    %c0_i32_0 = arith.constant 0 : i32
    %c0_i32_1 = arith.constant 0 : i32
    return %c0_i32, %c0_i32_0 : i32, i32
  }
  func.func @transform_13(%arg0: i32) -> (i32, i32) {
    %c0_i32 = arith.constant 0 : i32
    %c0_i32_0 = arith.constant 0 : i32
    %c0_i32_1 = arith.constant 0 : i32
    return %c0_i32, %c0_i32_0 : i32, i32
  }
  func.func @transform_14(%arg0: i32) -> (i32, i32) {
    %c0_i32 = arith.constant 0 : i32
    %c0_i32_0 = arith.constant 0 : i32
    %c0_i32_1 = arith.constant 0 : i32
    return %c0_i32, %c0_i32_0 : i32, i32
  }
  func.func @transform_15(%arg0: i32) -> (i32, i32) {
    %c0_i32 = arith.constant 0 : i32
    %c0_i32_0 = arith.constant 0 : i32
    %c0_i32_1 = arith.constant 0 : i32
    return %c0_i32, %c0_i32_0 : i32, i32
  }
  func.func @transform_16(%arg0: i32) -> (i32, i32) {
    %c0_i32 = arith.constant 0 : i32
    %c0_i32_0 = arith.constant 0 : i32
    %c0_i32_1 = arith.constant 0 : i32
    return %c0_i32, %c0_i32_0 : i32, i32
  }
  func.func @transform_17(%arg0: i32) -> (i32, i32, i32) {
    %c0_i32 = arith.constant 0 : i32
    %c0_i32_0 = arith.constant 0 : i32
    %c0_i32_1 = arith.constant 0 : i32
    return %arg0, %c0_i32, %c0_i32_0 : i32, i32, i32
  }
}

</mosaic_0001>

<bundles_post_ra>
// kernel: tpu_custom_call.1
= control target key start
LH: loop header
LB: loop body
LE: loop exit
PB: predicated region body
PF: predicated region fallthrough
CT: control target
= control target key end

     0   :  { %s10927_s24 = smov 0   ;;  %s15710_s0 = inlined_call_operand.vmem [shape: f32[2,256,16], index: 0, kind: input, shape index: {}]   ;;  %s15711_s1 = inlined_call_operand.vmem [shape: f32[16,64], index: 1, kind: input, shape index: {}]   ;;  %s15712_s2 = inlined_call_operand.vmem [shape: f32[1,64], index: 2, kind: input, shape index: {}]   ;;  %s15713_s3 = inlined_call_operand.vmem [shape: f32[16,24], index: 3, kind: input, shape index: {}]   ;;  %s15714_s4 = inlined_call_operand.vmem [shape: f32[1,24], index: 4, kind: input, shape index: {}]   ;;  %s15715_s5 = inlined_call_operand.vmem [shape: f32[216,32], index: 5, kind: input, shape index: {}]   ;;  %s15716_s6 = inlined_call_operand.vmem [shape: f32[1,32], index: 6, kind: input, shape index: {}]   ;;  %s15717_s7 = inlined_call_operand.vmem [shape: f32[16,16], index: 7, kind: input, shape index: {}]   ;;  %s15718_s8 = inlined_call_operand.vmem [shape: f32[1,16], index: 8, kind: input, shape index: {}]   ;;  %s15719_s9 = inlined_call_operand.vmem [shape: f32[144,24], index: 9, kind: input, shape index: {}]   ;;  %s15720_s10 = inlined_call_operand.vmem [shape: f32[1,24], index: 10, kind: input, shape index: {}]   ;;  %s15721_s11 = inlined_call_operand.vmem [shape: f32[216,24], index: 11, kind: input, shape index: {}]   ;;  %s15722_s12 = inlined_call_operand.vmem [shape: f32[1,24], index: 12, kind: input, shape index: {}]   ;;  %s15723_s13 = inlined_call_operand.vmem [shape: f32[120,64], index: 13, kind: input, shape index: {}]   ;;  %s15724_s14 = inlined_call_operand.vmem [shape: f32[1,64], index: 14, kind: input, shape index: {}]   ;;  %s15725_s15 = inlined_call_operand.vmem [shape: f32[16,64], index: 15, kind: input, shape index: {}]   ;;  %s15726_s16 = inlined_call_operand.vmem [shape: f32[1,64], index: 16, kind: input, shape index: {}]   ;;  %s15727_s17 = inlined_call_operand.vmem [shape: f32[2,256,64], index: 17, kind: output, shape index: {}]  }
   0x1   :  { %15841 = sst [smem:[#allocation106_spill]] %s15710_s0 }
   0x2   :  { %15842 = sst [smem:[#allocation107_spill]] %s15711_s1 }
   0x3   :  { %15843 = sst [smem:[#allocation108_spill]] %s15713_s3 }
   0x4 LB: > { %s8581_s25 = sadd.s32 4294967295, %s10822_s24   ;;  %p8585_p0 = scmp.ge.s32.totalorder %s10822_s24, 1  ;;  %s10822_s24 = sphi %s10927_s24, %s27_s24  }
   0x5   : > { %p487_p1 = scmp.lt.s32.totalorder %s10822_s24, 3 }
   0x7   : > { %p488_p2 = pnand %p8585_p0, %p487_p1 }
   0x9   : > { %491 = sbr.rel (%p488_p2) target bundleno = 2280 (0x8e8), region = 88 }
  0x10   : > { %s15844_s3 = sld [smem:[#allocation108_spill]]  ;;  %p10943_p3 = scmp.lt.s32.totalorder %s8581_s25, 1  ;;  %vm590_vm0 = vcmask 130048   ;;  %vm1210_vm1 = vcmask 195584   ;;  %v15730_v3 = vmov 0.0   ;;  %vm2661_vm2 = vcmask 392192  }
  0x11   : > { %1212 = vst.msk [vmem:[#allocation2 + $0x8] sm:$0xff] %vm1210_vm1, %v15730_v3  ;;  %1213 = vst.msk [vmem:[#allocation2 + $0x10] sm:$0xff] %vm1210_vm1, %v15730_v3  ;;  %s15846_s1 = sld [smem:[#allocation106_spill]]  ;;  %s15771_s21 = smov 24   ;;  %v11473_v48 = vld [vmem:[%s15714_s4] ss:$0 sm:$0xff] }
  0x12   : > { %1211 = vst.msk [vmem:[#allocation2] sm:$0xff] %vm1210_vm1, %v15730_v3  ;;  %1214 = vst.msk [vmem:[#allocation2 + $0x18] sm:$0xff] %vm1210_vm1, %v15730_v3  ;;  %s16171_s25 = smov (!%p10943_p3, %s8581_s25), 1  ;;  %s15839_s22 = smov 48   ;;  %vm2694_vm3 = vcmask 588800   ;;  %vm2825_vm4 = vcmask 326656  }
  0x13   : > { %1215 = vst.msk [vmem:[#allocation2 + $0x20] sm:$0xff] %vm1210_vm1, %v15730_v3  ;;  %1216 = vst.msk [vmem:[#allocation2 + $0x28] sm:$0xff] %vm1210_vm1, %v15730_v3  ;;  %s15729_s30 = sshll.u32 %s16171_s25, 8  ;;  %s15837_s23 = smov 16   ;;  %vm2727_vm5 = vcmask 785408   ;;  %vm2858_vm6 = vcmask 523264  }
  0x14   : > { %1217 = vst.msk [vmem:[#allocation2 + $0x30] sm:$0xff] %vm1210_vm1, %v15730_v3  ;;  %1218 = vst.msk [vmem:[#allocation2 + $0x38] sm:$0xff] %vm1210_vm1, %v15730_v3  ;;  %s15833_s26 = smov 64   ;;  %s15823_s27 = smov 40   ;;  %vm2925_vm7 = vcmask 719872   ;;  %vm2760_vm8 = vcmask 982016  }
  0x15   : > { %1219 = vst.msk [vmem:[#allocation2 + $0x40] sm:$0xff] %vm1210_vm1, %v15730_v3  ;;  %1220 = vst.msk [vmem:[#allocation2 + $0x48] sm:$0xff] %vm1210_vm1, %v15730_v3  ;;  %s15827_s0 = smov 120   ;;  %s15825_s18 = smov 72   ;;  %vm4867_vm9 = vcmask 261120   ;;  %vm4964_vm10 = vcmask 654336  }
  0x16   : > { %v944_v0 = vld [vmem:[%s15844_s3] sm:$0xff]  ;;  %v945_v1 = vld [vmem:[%s15844_s3 + $0x8] sm:$0xff]  ;;  %1221 = vst.msk [vmem:[#allocation2 + $0x50] sm:$0xff] %vm1210_vm1, %v15730_v3  ;;  %1222 = vst.msk [vmem:[#allocation2 + $0x58] sm:$0xff] %vm1210_vm1, %v15730_v3  ;;  %s15831_s19 = smov 96   ;;  %s15829_s28 = smov 112  }
  0x17   : > { %v10947_v2 = vpack.c.bf16 %v945_v1, %v944_v0  ;;  %1223 = vst.msk [vmem:[#allocation2 + $0x60] sm:$0xff] %vm1210_vm1, %v15730_v3  ;;  %1224 = vst.msk [vmem:[#allocation2 + $0x68] sm:$0xff] %vm1210_vm1, %v15730_v3  ;;  %s11395_s20 = scalar_lea.vmem %s15846_s1, %s15729_s30  ;;  %s15911_s30 = sld [smem:[#allocation107_spill]]  ;;  %vm5029_vm11 = vcmask 916480  }
  0x18   : > { %1225 = vst.msk [vmem:[#allocation2 + $0x70] sm:$0xff] %vm1210_vm1, %v15730_v3  ;;  %1226 = vst.msk [vmem:[#allocation2 + $0x78] sm:$0xff] %vm1210_vm1, %v15730_v3  ;;  %v549_v4 = vld [vmem:[%s11395_s20] sm:$0xff]  ;;  %v550_v5 = vld [vmem:[%s11395_s20 + $0x8] sm:$0xff]  ;;  %s16009_s29 = smov 24   ;;  %s16111_s1 = smov 48  }
  0x19   : > { %1227 = vst.msk [vmem:[#allocation2 + $0x80] sm:$0xff] %vm1210_vm1, %v15730_v3  ;;  %1228 = vst.msk [vmem:[#allocation2 + $0x88] sm:$0xff] %vm1210_vm1, %v15730_v3  ;;  %9332 = vmatprep.subr.bf16.mxu1 %v10947_v2  ;;  %v551_v6 = vld [vmem:[%s11395_s20 + $0x10] sm:$0xff]  ;;  %9097 = vmatprep.mubr.msk.f32.mxu1 %vm590_vm0, %v549_v4  ;;  %v552_v7 = vld [vmem:[%s11395_s20 + $0x18] sm:$0xff]  ;;  %s16112_s3 = smov 72  }
  0x1a   : > { %1229 = vst.msk [vmem:[#allocation2 + $0x90] sm:$0xff] %vm1210_vm1, %v15730_v3  ;;  %1230 = vst.msk [vmem:[#allocation2 + $0x98] sm:$0xff] %vm1210_vm1, %v15730_v3  ;;  %9334 = vmatpush3.bf16.msra.mxu1 %v10947_v2  ;;  %9045 = vmatprep.mubr.msk.f32.mxu0 %vm590_vm0, %v549_v4  ;;  %v553_v8 = vld [vmem:[%s11395_s20 + $0x20] sm:$0xff]  ;;  %v554_v9 = vld [vmem:[%s11395_s20 + $0x28] sm:$0xff] }
  0x1b   : > { %1231 = vst.msk [vmem:[#allocation2 + $0xa0] sm:$0xff] %vm1210_vm1, %v15730_v3  ;;  %1232 = vst.msk [vmem:[#allocation2 + $0xa8] sm:$0xff] %vm1210_vm1, %v15730_v3  ;;  %v555_v10 = vld [vmem:[%s11395_s20 + $0x30] sm:$0xff]  ;;  %v1348_v11 = vld [vmem:[#allocation2 + $0x8] sm:$0xff] }
  0x1c   : > { %1233 = vst.msk [vmem:[#allocation2 + $0xb0] sm:$0xff] %vm1210_vm1, %v15730_v3  ;;  %1234 = vst.msk [vmem:[#allocation2 + $0xb8] sm:$0xff] %vm1210_vm1, %v15730_v3  ;;  %v1349_v12 = vld [vmem:[#allocation2 + $0x10] sm:$0xff]  ;;  %v556_v16 = vld [vmem:[%s11395_s20 + $0x38] sm:$0xff] }
  0x1d   : > { %1235 = vst.msk [vmem:[#allocation2 + $0xc0] sm:$0xff] %vm1210_vm1, %v15730_v3  ;;  %1236 = vst.msk [vmem:[#allocation2 + $0xc8] sm:$0xff] %vm1210_vm1, %v15730_v3  ;;  %9098 = vmatmul.mubr.msk.f32.vlgmr.msra.gmra.mrb[0].mxu1 %vm590_vm0, %v550_v5  ;;  %v9525_v13 = vpack.i.bf16 %v1349_v12, %v1348_v11  ;;  %v1380_v14 = vld [vmem:[#allocation2 + $0x9] sm:$0xff]  ;;  %v1381_v15 = vld [vmem:[#allocation2 + $0x11] sm:$0xff] }
  0x1e   : > { %1237 = vst.msk [vmem:[#allocation2 + $0xd0] sm:$0xff] %vm1210_vm1, %v15730_v3  ;;  %1238 = vst.msk [vmem:[#allocation2 + $0xd8] sm:$0xff] %vm1210_vm1, %v15730_v3  ;;  %9100 = vmatprep.mubr.msk.f32.mxu1 %vm590_vm0, %v551_v6  ;;  %v557_v17 = vld [vmem:[%s11395_s20 + $0x40] sm:$0xff]  ;;  %v9530_v18 = vpack.i.bf16 %v1381_v15, %v1380_v14  ;;  %v558_v19 = vld [vmem:[%s11395_s20 + $0x48] sm:$0xff] }
  0x1f   : > { %1239 = vst.msk [vmem:[#allocation2 + $0xe0] sm:$0xff] %vm1210_vm1, %v15730_v3  ;;  %1240 = vst.msk [vmem:[#allocation2 + $0xe8] sm:$0xff] %vm1210_vm1, %v15730_v3  ;;  %9526 = vrot.lane.b32.xlu0 %v9525_v13, %s15771_s21  ;;  %v559_v20 = vld [vmem:[%s11395_s20 + $0x50] sm:$0xff]  ;;  %v560_v22 = vld [vmem:[%s11395_s20 + $0x58] sm:$0xff] }
  0x20   : > { %1241 = vst.msk [vmem:[#allocation2 + $0xf0] sm:$0xff] %vm1210_vm1, %v15730_v3  ;;  %1242 = vst.msk [vmem:[#allocation2 + $0xf8] sm:$0xff] %vm1210_vm1, %v15730_v3  ;;  %v561_v23 = vld [vmem:[%s11395_s20 + $0x60] sm:$0xff]  ;;  %v562_v24 = vld [vmem:[%s11395_s20 + $0x68] sm:$0xff] }
  0x21   : > { %1243 = vst.msk [vmem:[#allocation2 + $0x100] sm:$0xff] %vm1210_vm1, %v15730_v3  ;;  %1244 = vst.msk [vmem:[#allocation2 + $0x108] sm:$0xff] %vm1210_vm1, %v15730_v3  ;;  %9101 = vmatmul.mubr.msk.f32.gmra.mrb[2].mxu1 %vm590_vm0, %v552_v7  ;;  %v563_v25 = vld [vmem:[%s11395_s20 + $0x70] sm:$0xff]  ;;  %v564_v26 = vld [vmem:[%s11395_s20 + $0x78] sm:$0xff] }
  0x22   : > { %1245 = vst.msk [vmem:[#allocation2 + $0x110] sm:$0xff] %vm1210_vm1, %v15730_v3  ;;  %1246 = vst.msk [vmem:[#allocation2 + $0x118] sm:$0xff] %vm1210_vm1, %v15730_v3  ;;  %9103 = vmatprep.mubr.msk.f32.mxu1 %vm590_vm0, %v553_v8  ;;  %v565_v27 = vld [vmem:[%s11395_s20 + $0x80] sm:$0xff]  ;;  %v566_v28 = vld [vmem:[%s11395_s20 + $0x88] sm:$0xff] }
  0x23   : > { %1247 = vst.msk [vmem:[#allocation2 + $0x120] sm:$0xff] %vm1210_vm1, %v15730_v3  ;;  %1248 = vst.msk [vmem:[#allocation2 + $0x128] sm:$0xff] %vm1210_vm1, %v15730_v3  ;;  %9531 = vrot.lane.b32.xlu0 %v9530_v18, %s15839_s22  ;;  %v567_v29 = vld [vmem:[%s11395_s20 + $0x90] sm:$0xff]  ;;  %v568_v30 = vld [vmem:[%s11395_s20 + $0x98] sm:$0xff] }
  0x24   : > { %1249 = vst.msk [vmem:[#allocation2 + $0x130] sm:$0xff] %vm1210_vm1, %v15730_v3  ;;  %1250 = vst.msk [vmem:[#allocation2 + $0x138] sm:$0xff] %vm1210_vm1, %v15730_v3  ;;  %v569_v31 = vld [vmem:[%s11395_s20 + $0xa0] sm:$0xff]  ;;  %v570_v32 = vld [vmem:[%s11395_s20 + $0xa8] sm:$0xff] }
  0x25   : > { %1251 = vst.msk [vmem:[#allocation2 + $0x140] sm:$0xff] %vm1210_vm1, %v15730_v3  ;;  %1252 = vst.msk [vmem:[#allocation2 + $0x148] sm:$0xff] %vm1210_vm1, %v15730_v3  ;;  %9104 = vmatmul.mubr.msk.f32.gmra.mrb[4].mxu1 %vm590_vm0, %v554_v9  ;;  %v571_v33 = vld [vmem:[%s11395_s20 + $0xb0] sm:$0xff]  ;;  %v572_v34 = vld [vmem:[%s11395_s20 + $0xb8] sm:$0xff] }
  0x26   : > { %1253 = vst.msk [vmem:[#allocation2 + $0x150] sm:$0xff] %vm1210_vm1, %v15730_v3  ;;  %1254 = vst.msk [vmem:[#allocation2 + $0x158] sm:$0xff] %vm1210_vm1, %v15730_v3  ;;  %9106 = vmatprep.mubr.msk.f32.mxu1 %vm590_vm0, %v555_v10  ;;  %v573_v35 = vld [vmem:[%s11395_s20 + $0xc0] sm:$0xff]  ;;  %v574_v36 = vld [vmem:[%s11395_s20 + $0xc8] sm:$0xff] }
  0x27   : > { %1255 = vst.msk [vmem:[#allocation2 + $0x160] sm:$0xff] %vm1210_vm1, %v15730_v3  ;;  %1256 = vst.msk [vmem:[#allocation2 + $0x168] sm:$0xff] %vm1210_vm1, %v15730_v3  ;;  %v575_v37 = vld [vmem:[%s11395_s20 + $0xd0] sm:$0xff]  ;;  %v576_v38 = vld [vmem:[%s11395_s20 + $0xd8] sm:$0xff] }
  0x28   : > { %1257 = vst.msk [vmem:[#allocation2 + $0x170] sm:$0xff] %vm1210_vm1, %v15730_v3  ;;  %1258 = vst.msk [vmem:[#allocation2 + $0x178] sm:$0xff] %vm1210_vm1, %v15730_v3  ;;  %v577_v39 = vld [vmem:[%s11395_s20 + $0xe0] sm:$0xff]  ;;  %v578_v40 = vld [vmem:[%s11395_s20 + $0xe8] sm:$0xff] }
  0x29   : > { %1259 = vst.msk [vmem:[#allocation2 + $0x180] sm:$0xff] %vm1210_vm1, %v15730_v3  ;;  %1260 = vst.msk [vmem:[#allocation2 + $0x188] sm:$0xff] %vm1210_vm1, %v15730_v3  ;;  %9107 = vmatmul.mubr.msk.f32.gmra.mrb[6].mxu1 %vm590_vm0, %v556_v16  ;;  %v579_v46 = vld [vmem:[%s11395_s20 + $0xf0] sm:$0xff]  ;;  %v580_v47 = vld [vmem:[%s11395_s20 + $0xf8] sm:$0xff] }
  0x2a   : > { %1261 = vst.msk [vmem:[#allocation2 + $0x190] sm:$0xff] %vm1210_vm1, %v15730_v3  ;;  %1262 = vst.msk [vmem:[#allocation2 + $0x198] sm:$0xff] %vm1210_vm1, %v15730_v3  ;;  %9109 = vmatprep.mubr.msk.f32.mxu1 %vm590_vm0, %v557_v17 }
  0x2b   : > { %1263 = vst.msk [vmem:[#allocation2 + $0x1a0] sm:$0xff] %vm1210_vm1, %v15730_v3  ;;  %1264 = vst.msk [vmem:[#allocation2 + $0x1a8] sm:$0xff] %vm1210_vm1, %v15730_v3 }
  0x2c   : > { %1265 = vst.msk [vmem:[#allocation2 + $0x1b0] sm:$0xff] %vm1210_vm1, %v15730_v3  ;;  %1266 = vst.msk [vmem:[#allocation2 + $0x1b8] sm:$0xff] %vm1210_vm1, %v15730_v3 }
  0x2d   : > { %1267 = vst.msk [vmem:[#allocation2 + $0x1c0] sm:$0xff] %vm1210_vm1, %v15730_v3  ;;  %1268 = vst.msk [vmem:[#allocation2 + $0x1c8] sm:$0xff] %vm1210_vm1, %v15730_v3  ;;  %9110 = vmatmul.mubr.msk.f32.gmra.mrb[8].mxu1 %vm590_vm0, %v558_v19 }
  0x2e   : > { %1269 = vst.msk [vmem:[#allocation2 + $0x1d0] sm:$0xff] %vm1210_vm1, %v15730_v3  ;;  %1270 = vst.msk [vmem:[#allocation2 + $0x1d8] sm:$0xff] %vm1210_vm1, %v15730_v3  ;;  %9112 = vmatprep.mubr.msk.f32.mxu1 %vm590_vm0, %v559_v20 }
  0x2f   : > { %1271 = vst.msk [vmem:[#allocation2 + $0x1e0] sm:$0xff] %vm1210_vm1, %v15730_v3  ;;  %1272 = vst.msk [vmem:[#allocation2 + $0x1e8] sm:$0xff] %vm1210_vm1, %v15730_v3 }
  0x30   : > { %1273 = vst.msk [vmem:[#allocation2 + $0x1f0] sm:$0xff] %vm1210_vm1, %v15730_v3  ;;  %1274 = vst.msk [vmem:[#allocation2 + $0x1f8] sm:$0xff] %vm1210_vm1, %v15730_v3 }
  0x31   : > { %1275 = vst.msk [vmem:[#allocation2 + $0x200] sm:$0xff] %vm1210_vm1, %v15730_v3  ;;  %1276 = vst.msk [vmem:[#allocation2 + $0x208] sm:$0xff] %vm1210_vm1, %v15730_v3  ;;  %9113 = vmatmul.mubr.msk.f32.gmra.mrb[10].mxu1 %vm590_vm0, %v560_v22 }
  0x32   : > { %1277 = vst.msk [vmem:[#allocation2 + $0x210] sm:$0xff] %vm1210_vm1, %v15730_v3  ;;  %1278 = vst.msk [vmem:[#allocation2 + $0x218] sm:$0xff] %vm1210_vm1, %v15730_v3  ;;  %9115 = vmatprep.mubr.msk.f32.mxu1 %vm590_vm0, %v561_v23 }
  0x33   : > { %1279 = vst.msk [vmem:[#allocation2 + $0x220] sm:$0xff] %vm1210_vm1, %v15730_v3  ;;  %1280 = vst.msk [vmem:[#allocation2 + $0x228] sm:$0xff] %vm1210_vm1, %v15730_v3 }
  0x34   : > { %1281 = vst.msk [vmem:[#allocation2 + $0x230] sm:$0xff] %vm1210_vm1, %v15730_v3  ;;  %1282 = vst.msk [vmem:[#allocation2 + $0x238] sm:$0xff] %vm1210_vm1, %v15730_v3 }
  0x35   : > { %3545 = vst.msk [vmem:[#allocation3] sm:$0xff] %vm590_vm0, %v15730_v3  ;;  %3546 = vst.msk [vmem:[#allocation3 + $0x8] sm:$0xff] %vm590_vm0, %v15730_v3  ;;  %9116 = vmatmul.mubr.msk.f32.gmra.mrb[12].mxu1 %vm590_vm0, %v562_v24 }
  0x36   : > { %3547 = vst.msk [vmem:[#allocation3 + $0x10] sm:$0xff] %vm590_vm0, %v15730_v3  ;;  %3548 = vst.msk [vmem:[#allocation3 + $0x18] sm:$0xff] %vm590_vm0, %v15730_v3  ;;  %9118 = vmatprep.mubr.msk.f32.mxu1 %vm590_vm0, %v563_v25 }
  0x37   : > { %3549 = vst.msk [vmem:[#allocation3 + $0x20] sm:$0xff] %vm590_vm0, %v15730_v3  ;;  %3550 = vst.msk [vmem:[#allocation3 + $0x28] sm:$0xff] %vm590_vm0, %v15730_v3 }
  0x38   : > { %3551 = vst.msk [vmem:[#allocation3 + $0x30] sm:$0xff] %vm590_vm0, %v15730_v3  ;;  %3552 = vst.msk [vmem:[#allocation3 + $0x38] sm:$0xff] %vm590_vm0, %v15730_v3 }
  0x39   : > { %3553 = vst.msk [vmem:[#allocation3 + $0x40] sm:$0xff] %vm590_vm0, %v15730_v3  ;;  %3554 = vst.msk [vmem:[#allocation3 + $0x48] sm:$0xff] %vm590_vm0, %v15730_v3  ;;  %9119 = vmatmul.mubr.msk.f32.gmra.mrb[14].mxu1 %vm590_vm0, %v564_v26 }
  0x3a   : > { %3555 = vst.msk [vmem:[#allocation3 + $0x50] sm:$0xff] %vm590_vm0, %v15730_v3  ;;  %3556 = vst.msk [vmem:[#allocation3 + $0x58] sm:$0xff] %vm590_vm0, %v15730_v3  ;;  %v1539_v21 = vld [vmem:[#allocation2 + $0x227] sm:$0xff]  ;;  %9121 = vmatprep.mubr.msk.f32.mxu1 %vm590_vm0, %v565_v27 }
  0x3b   : > { %3557 = vst.msk [vmem:[#allocation3 + $0x60] sm:$0xff] %vm590_vm0, %v15730_v3  ;;  %3558 = vst.msk [vmem:[#allocation3 + $0x68] sm:$0xff] %vm590_vm0, %v15730_v3  ;;  %2337 = vrot.lane.b32.xlu0 %v1539_v21, %s15837_s23  ;;  %v1603_v41 = vld [vmem:[#allocation2 + $0x229] sm:$0xff]  ;;  %v1604_v45 = vld [vmem:[#allocation2 + $0x231] sm:$0xff] }
  0x3c   : > { %3559 = vst.msk [vmem:[#allocation3 + $0x70] sm:$0xff] %vm590_vm0, %v15730_v3  ;;  %3560 = vst.msk [vmem:[#allocation3 + $0x78] sm:$0xff] %vm590_vm0, %v15730_v3  ;;  %v1571_v42 = vld [vmem:[#allocation2 + $0x228] sm:$0xff]  ;;  %v1572_v44 = vld [vmem:[#allocation2 + $0x230] sm:$0xff] }
  0x3d   : > { %3561 = vst.msk [vmem:[#allocation3 + $0x80] sm:$0xff] %vm590_vm0, %v15730_v3  ;;  %3562 = vst.msk [vmem:[#allocation3 + $0x88] sm:$0xff] %vm590_vm0, %v15730_v3  ;;  %9122 = vmatmul.mubr.msk.f32.gmra.mrb[16].mxu1 %vm590_vm0, %v566_v28  ;;  %2465 = vrot.lane.b32.xlu1 %v1571_v42, %s15823_s27  ;;  %v1540_v43 = vld [vmem:[#allocation2 + $0x22f] sm:$0xff] }
  0x3e   : > { %3563 = vst.msk [vmem:[#allocation3 + $0x90] sm:$0xff] %vm590_vm0, %v15730_v3  ;;  %3564 = vst.msk [vmem:[#allocation3 + $0x98] sm:$0xff] %vm590_vm0, %v15730_v3  ;;  %9124 = vmatprep.mubr.msk.f32.mxu1 %vm590_vm0, %v567_v29 }
  0x3f   : > { %3565 = vst.msk [vmem:[#allocation3 + $0xa0] sm:$0xff] %vm590_vm0, %v15730_v3  ;;  %3566 = vst.msk [vmem:[#allocation3 + $0xa8] sm:$0xff] %vm590_vm0, %v15730_v3  ;;  %2593 = vrot.lane.b32.xlu0 %v1603_v41, %s15833_s26 }
  0x40   : > { %3567 = vst.msk [vmem:[#allocation3 + $0xb0] sm:$0xff] %vm590_vm0, %v15730_v3  ;;  %3568 = vst.msk [vmem:[#allocation3 + $0xb8] sm:$0xff] %vm590_vm0, %v15730_v3 }
  0x41   : > { %3569 = vst.msk [vmem:[#allocation3 + $0xc0] sm:$0xff] %vm590_vm0, %v15730_v3  ;;  %3570 = vst.msk [vmem:[#allocation3 + $0xc8] sm:$0xff] %vm590_vm0, %v15730_v3  ;;  %9125 = vmatmul.mubr.msk.f32.gmra.mrb[18].mxu1 %vm590_vm0, %v568_v30  ;;  %2467 = vrot.lane.b32.xlu1 %v1572_v44, %s15823_s27 }
  0x42   : > { %3571 = vst.msk [vmem:[#allocation3 + $0xd0] sm:$0xff] %vm590_vm0, %v15730_v3  ;;  %3572 = vst.msk [vmem:[#allocation3 + $0xd8] sm:$0xff] %vm590_vm0, %v15730_v3  ;;  %9127 = vmatprep.mubr.msk.f32.mxu1 %vm590_vm0, %v569_v31 }
  0x43   : > { %3573 = vst.msk [vmem:[#allocation3 + $0xe0] sm:$0xff] %vm590_vm0, %v15730_v3  ;;  %3574 = vst.msk [vmem:[#allocation3 + $0xe8] sm:$0xff] %vm590_vm0, %v15730_v3  ;;  %2339 = vrot.lane.b32.xlu0 %v1540_v43, %s15837_s23 }
  0x44   : > { %3575 = vst.msk [vmem:[#allocation3 + $0xf0] sm:$0xff] %vm590_vm0, %v15730_v3  ;;  %3576 = vst.msk [vmem:[#allocation3 + $0xf8] sm:$0xff] %vm590_vm0, %v15730_v3 }
  0x45   : > { %3577 = vst.msk [vmem:[#allocation3 + $0x100] sm:$0xff] %vm590_vm0, %v15730_v3  ;;  %3578 = vst.msk [vmem:[#allocation3 + $0x108] sm:$0xff] %vm590_vm0, %v15730_v3  ;;  %9128 = vmatmul.mubr.msk.f32.gmra.mrb[20].mxu1 %vm590_vm0, %v570_v32 }
  0x46   : > { %3579 = vst.msk [vmem:[#allocation3 + $0x110] sm:$0xff] %vm590_vm0, %v15730_v3  ;;  %3580 = vst.msk [vmem:[#allocation3 + $0x118] sm:$0xff] %vm590_vm0, %v15730_v3  ;;  %9130 = vmatprep.mubr.msk.f32.mxu1 %vm590_vm0, %v571_v33 }
  0x47   : > { %3581 = vst.msk [vmem:[#allocation3 + $0x120] sm:$0xff] %vm590_vm0, %v15730_v3  ;;  %3582 = vst.msk [vmem:[#allocation3 + $0x128] sm:$0xff] %vm590_vm0, %v15730_v3  ;;  %2595 = vrot.lane.b32.xlu0 %v1604_v45, %s15833_s26 }
  0x48   : > { %3583 = vst.msk [vmem:[#allocation3 + $0x130] sm:$0xff] %vm590_vm0, %v15730_v3  ;;  %3584 = vst.msk [vmem:[#allocation3 + $0x138] sm:$0xff] %vm590_vm0, %v15730_v3 }
  0x49   : > { %3585 = vst.msk [vmem:[#allocation3 + $0x140] sm:$0xff] %vm590_vm0, %v15730_v3  ;;  %3586 = vst.msk [vmem:[#allocation3 + $0x148] sm:$0xff] %vm590_vm0, %v15730_v3  ;;  %9131 = vmatmul.mubr.msk.f32.gmra.mrb[22].mxu1 %vm590_vm0, %v572_v34 }
  0x4a   : > { %3587 = vst.msk [vmem:[#allocation3 + $0x150] sm:$0xff] %vm590_vm0, %v15730_v3  ;;  %3588 = vst.msk [vmem:[#allocation3 + $0x158] sm:$0xff] %vm590_vm0, %v15730_v3  ;;  %9133 = vmatprep.mubr.msk.f32.mxu1 %vm590_vm0, %v573_v35 }
  0x4b   : > { %3589 = vst.msk [vmem:[#allocation3 + $0x160] sm:$0xff] %vm590_vm0, %v15730_v3  ;;  %3590 = vst.msk [vmem:[#allocation3 + $0x168] sm:$0xff] %vm590_vm0, %v15730_v3 }
  0x4c   : > { %3591 = vst.msk [vmem:[#allocation3 + $0x170] sm:$0xff] %vm590_vm0, %v15730_v3  ;;  %3592 = vst.msk [vmem:[#allocation3 + $0x178] sm:$0xff] %vm590_vm0, %v15730_v3 }
  0x4d   : > { %3593 = vst.msk [vmem:[#allocation3 + $0x180] sm:$0xff] %vm590_vm0, %v15730_v3  ;;  %3594 = vst.msk [vmem:[#allocation3 + $0x188] sm:$0xff] %vm590_vm0, %v15730_v3  ;;  %9134 = vmatmul.mubr.msk.f32.gmra.mrb[24].mxu1 %vm590_vm0, %v574_v36 }
  0x4e   : > { %3595 = vst.msk [vmem:[#allocation3 + $0x190] sm:$0xff] %vm590_vm0, %v15730_v3  ;;  %3596 = vst.msk [vmem:[#allocation3 + $0x198] sm:$0xff] %vm590_vm0, %v15730_v3  ;;  %9136 = vmatprep.mubr.msk.f32.mxu1 %vm590_vm0, %v575_v37 }
  0x4f   : > { %3597 = vst.msk [vmem:[#allocation3 + $0x1a0] sm:$0xff] %vm590_vm0, %v15730_v3  ;;  %3598 = vst.msk [vmem:[#allocation3 + $0x1a8] sm:$0xff] %vm590_vm0, %v15730_v3 }
  0x50   : > { %3599 = vst.msk [vmem:[#allocation3 + $0x1b0] sm:$0xff] %vm590_vm0, %v15730_v3  ;;  %3600 = vst.msk [vmem:[#allocation3 + $0x1b8] sm:$0xff] %vm590_vm0, %v15730_v3 }
  0x51   : > { %3601 = vst.msk [vmem:[#allocation3 + $0x1c0] sm:$0xff] %vm590_vm0, %v15730_v3  ;;  %3602 = vst.msk [vmem:[#allocation3 + $0x1c8] sm:$0xff] %vm590_vm0, %v15730_v3  ;;  %9137 = vmatmul.mubr.msk.f32.gmra.mrb[26].mxu1 %vm590_vm0, %v576_v38 }
  0x52   : > { %3603 = vst.msk [vmem:[#allocation3 + $0x1d0] sm:$0xff] %vm590_vm0, %v15730_v3  ;;  %3604 = vst.msk [vmem:[#allocation3 + $0x1d8] sm:$0xff] %vm590_vm0, %v15730_v3  ;;  %9139 = vmatprep.mubr.msk.f32.mxu1 %vm590_vm0, %v577_v39 }
  0x53   : > { %3605 = vst.msk [vmem:[#allocation3 + $0x1e0] sm:$0xff] %vm590_vm0, %v15730_v3  ;;  %3606 = vst.msk [vmem:[#allocation3 + $0x1e8] sm:$0xff] %vm590_vm0, %v15730_v3 }
  0x54   : > { %3607 = vst.msk [vmem:[#allocation3 + $0x1f0] sm:$0xff] %vm590_vm0, %v15730_v3  ;;  %3608 = vst.msk [vmem:[#allocation3 + $0x1f8] sm:$0xff] %vm590_vm0, %v15730_v3 }
  0x55   : > { %3609 = vst.msk [vmem:[#allocation3 + $0x200] sm:$0xff] %vm590_vm0, %v15730_v3  ;;  %3610 = vst.msk [vmem:[#allocation3 + $0x208] sm:$0xff] %vm590_vm0, %v15730_v3  ;;  %9140 = vmatmul.mubr.msk.f32.gmra.mrb[28].mxu1 %vm590_vm0, %v578_v40 }
  0x56   : > { %3611 = vst.msk [vmem:[#allocation3 + $0x210] sm:$0xff] %vm590_vm0, %v15730_v3  ;;  %3612 = vst.msk [vmem:[#allocation3 + $0x218] sm:$0xff] %vm590_vm0, %v15730_v3  ;;  %9142 = vmatprep.mubr.msk.f32.mxu1 %vm590_vm0, %v579_v46 }
  0x57   : > { %3613 = vst.msk [vmem:[#allocation3 + $0x220] sm:$0xff] %vm590_vm0, %v15730_v3  ;;  %3614 = vst.msk [vmem:[#allocation3 + $0x228] sm:$0xff] %vm590_vm0, %v15730_v3 }
  0x58   : > { %3615 = vst.msk [vmem:[#allocation3 + $0x230] sm:$0xff] %vm590_vm0, %v15730_v3  ;;  %3616 = vst.msk [vmem:[#allocation3 + $0x238] sm:$0xff] %vm590_vm0, %v15730_v3 }
  0x59   : > { %5440 = vst.msk [vmem:[#allocation4] sm:$0xff] %vm1210_vm1, %v15730_v3  ;;  %5441 = vst.msk [vmem:[#allocation4 + $0x8] sm:$0xff] %vm1210_vm1, %v15730_v3  ;;  %9143 = vmatmul.mubr.msk.f32.gmra.mrb[30].mxu1 %vm590_vm0, %v580_v47 }
  0x5a   : > { %5442 = vst.msk [vmem:[#allocation4 + $0x10] sm:$0xff] %vm1210_vm1, %v15730_v3  ;;  %5443 = vst.msk [vmem:[#allocation4 + $0x18] sm:$0xff] %vm1210_vm1, %v15730_v3 }
  0x5b   : > { %5444 = vst.msk [vmem:[#allocation4 + $0x20] sm:$0xff] %vm1210_vm1, %v15730_v3  ;;  %5445 = vst.msk [vmem:[#allocation4 + $0x28] sm:$0xff] %vm1210_vm1, %v15730_v3 }
  0x5c   : > { %5446 = vst.msk [vmem:[#allocation4 + $0x30] sm:$0xff] %vm1210_vm1, %v15730_v3  ;;  %5447 = vst.msk [vmem:[#allocation4 + $0x38] sm:$0xff] %vm1210_vm1, %v15730_v3 }
  0x5d   : > { %5448 = vst.msk [vmem:[#allocation4 + $0x40] sm:$0xff] %vm1210_vm1, %v15730_v3  ;;  %5449 = vst.msk [vmem:[#allocation4 + $0x48] sm:$0xff] %vm1210_vm1, %v15730_v3 }
  0x5e   : > { %5450 = vst.msk [vmem:[#allocation4 + $0x50] sm:$0xff] %vm1210_vm1, %v15730_v3  ;;  %5451 = vst.msk [vmem:[#allocation4 + $0x58] sm:$0xff] %vm1210_vm1, %v15730_v3 }
  0x5f   : > { %5452 = vst.msk [vmem:[#allocation4 + $0x60] sm:$0xff] %vm1210_vm1, %v15730_v3  ;;  %5453 = vst.msk [vmem:[#allocation4 + $0x68] sm:$0xff] %vm1210_vm1, %v15730_v3 }
  0x60   : > { %5454 = vst.msk [vmem:[#allocation4 + $0x70] sm:$0xff] %vm1210_vm1, %v15730_v3  ;;  %5455 = vst.msk [vmem:[#allocation4 + $0x78] sm:$0xff] %vm1210_vm1, %v15730_v3 }
  0x61   : > { %5456 = vst.msk [vmem:[#allocation4 + $0x80] sm:$0xff] %vm1210_vm1, %v15730_v3  ;;  %5457 = vst.msk [vmem:[#allocation4 + $0x88] sm:$0xff] %vm1210_vm1, %v15730_v3 }
  0x62   : > { %5458 = vst.msk [vmem:[#allocation4 + $0x90] sm:$0xff] %vm1210_vm1, %v15730_v3  ;;  %5459 = vst.msk [vmem:[#allocation4 + $0x98] sm:$0xff] %vm1210_vm1, %v15730_v3 }
  0x63   : > { %5460 = vst.msk [vmem:[#allocation4 + $0xa0] sm:$0xff] %vm1210_vm1, %v15730_v3  ;;  %5461 = vst.msk [vmem:[#allocation4 + $0xa8] sm:$0xff] %vm1210_vm1, %v15730_v3 }
  0x64   : > { %5462 = vst.msk [vmem:[#allocation4 + $0xb0] sm:$0xff] %vm1210_vm1, %v15730_v3  ;;  %5463 = vst.msk [vmem:[#allocation4 + $0xb8] sm:$0xff] %vm1210_vm1, %v15730_v3 }
  0x65   : > { %5464 = vst.msk [vmem:[#allocation4 + $0xc0] sm:$0xff] %vm1210_vm1, %v15730_v3  ;;  %5465 = vst.msk [vmem:[#allocation4 + $0xc8] sm:$0xff] %vm1210_vm1, %v15730_v3 }
  0x66   : > { %5466 = vst.msk [vmem:[#allocation4 + $0xd0] sm:$0xff] %vm1210_vm1, %v15730_v3  ;;  %5467 = vst.msk [vmem:[#allocation4 + $0xd8] sm:$0xff] %vm1210_vm1, %v15730_v3 }
  0x67   : > { %5468 = vst.msk [vmem:[#allocation4 + $0xe0] sm:$0xff] %vm1210_vm1, %v15730_v3  ;;  %5469 = vst.msk [vmem:[#allocation4 + $0xe8] sm:$0xff] %vm1210_vm1, %v15730_v3 }
  0x68   : > { %5470 = vst.msk [vmem:[#allocation4 + $0xf0] sm:$0xff] %vm1210_vm1, %v15730_v3  ;;  %5471 = vst.msk [vmem:[#allocation4 + $0xf8] sm:$0xff] %vm1210_vm1, %v15730_v3 }
  0x69   : > { %5472 = vst.msk [vmem:[#allocation4 + $0x100] sm:$0xff] %vm1210_vm1, %v15730_v3  ;;  %5473 = vst.msk [vmem:[#allocation4 + $0x108] sm:$0xff] %vm1210_vm1, %v15730_v3 }
  0x6a   : > { %5474 = vst.msk [vmem:[#allocation4 + $0x110] sm:$0xff] %vm1210_vm1, %v15730_v3  ;;  %5475 = vst.msk [vmem:[#allocation4 + $0x118] sm:$0xff] %vm1210_vm1, %v15730_v3 }
  0x6b   : > { %5476 = vst.msk [vmem:[#allocation4 + $0x120] sm:$0xff] %vm1210_vm1, %v15730_v3  ;;  %5477 = vst.msk [vmem:[#allocation4 + $0x128] sm:$0xff] %vm1210_vm1, %v15730_v3 }
  0x6c   : > { %5478 = vst.msk [vmem:[#allocation4 + $0x130] sm:$0xff] %vm1210_vm1, %v15730_v3  ;;  %5479 = vst.msk [vmem:[#allocation4 + $0x138] sm:$0xff] %vm1210_vm1, %v15730_v3 }
  0x6d   : > { %5480 = vst.msk [vmem:[#allocation4 + $0x140] sm:$0xff] %vm1210_vm1, %v15730_v3  ;;  %5481 = vst.msk [vmem:[#allocation4 + $0x148] sm:$0xff] %vm1210_vm1, %v15730_v3 }
  0x6e   : > { %5482 = vst.msk [vmem:[#allocation4 + $0x150] sm:$0xff] %vm1210_vm1, %v15730_v3  ;;  %5483 = vst.msk [vmem:[#allocation4 + $0x158] sm:$0xff] %vm1210_vm1, %v15730_v3 }
  0x6f   : > { %5484 = vst.msk [vmem:[#allocation4 + $0x160] sm:$0xff] %vm1210_vm1, %v15730_v3  ;;  %5485 = vst.msk [vmem:[#allocation4 + $0x168] sm:$0xff] %vm1210_vm1, %v15730_v3 }
  0x70   : > { %5486 = vst.msk [vmem:[#allocation4 + $0x170] sm:$0xff] %vm1210_vm1, %v15730_v3  ;;  %5487 = vst.msk [vmem:[#allocation4 + $0x178] sm:$0xff] %vm1210_vm1, %v15730_v3 }
  0x71   : > { %5488 = vst.msk [vmem:[#allocation4 + $0x180] sm:$0xff] %vm1210_vm1, %v15730_v3  ;;  %5489 = vst.msk [vmem:[#allocation4 + $0x188] sm:$0xff] %vm1210_vm1, %v15730_v3 }
  0x72   : > { %5490 = vst.msk [vmem:[#allocation4 + $0x190] sm:$0xff] %vm1210_vm1, %v15730_v3  ;;  %5491 = vst.msk [vmem:[#allocation4 + $0x198] sm:$0xff] %vm1210_vm1, %v15730_v3 }
  0x73   : > { %5492 = vst.msk [vmem:[#allocation4 + $0x1a0] sm:$0xff] %vm1210_vm1, %v15730_v3  ;;  %5493 = vst.msk [vmem:[#allocation4 + $0x1a8] sm:$0xff] %vm1210_vm1, %v15730_v3 }
  0x74   : > { %5494 = vst.msk [vmem:[#allocation4 + $0x1b0] sm:$0xff] %vm1210_vm1, %v15730_v3  ;;  %5495 = vst.msk [vmem:[#allocation4 + $0x1b8] sm:$0xff] %vm1210_vm1, %v15730_v3 }
  0x75   : > { %5496 = vst.msk [vmem:[#allocation4 + $0x1c0] sm:$0xff] %vm1210_vm1, %v15730_v3  ;;  %5497 = vst.msk [vmem:[#allocation4 + $0x1c8] sm:$0xff] %vm1210_vm1, %v15730_v3 }
  0x76   : > { %5498 = vst.msk [vmem:[#allocation4 + $0x1d0] sm:$0xff] %vm1210_vm1, %v15730_v3  ;;  %5499 = vst.msk [vmem:[#allocation4 + $0x1d8] sm:$0xff] %vm1210_vm1, %v15730_v3 }
  0x77   : > { %5500 = vst.msk [vmem:[#allocation4 + $0x1e0] sm:$0xff] %vm1210_vm1, %v15730_v3  ;;  %5501 = vst.msk [vmem:[#allocation4 + $0x1e8] sm:$0xff] %vm1210_vm1, %v15730_v3 }
  0x78   : > { %5502 = vst.msk [vmem:[#allocation4 + $0x1f0] sm:$0xff] %vm1210_vm1, %v15730_v3  ;;  %5503 = vst.msk [vmem:[#allocation4 + $0x1f8] sm:$0xff] %vm1210_vm1, %v15730_v3 }
  0x79   : > { %5504 = vst.msk [vmem:[#allocation4 + $0x200] sm:$0xff] %vm1210_vm1, %v15730_v3  ;;  %5505 = vst.msk [vmem:[#allocation4 + $0x208] sm:$0xff] %vm1210_vm1, %v15730_v3 }
  0x7a   : > { %5506 = vst.msk [vmem:[#allocation4 + $0x210] sm:$0xff] %vm1210_vm1, %v15730_v3  ;;  %5507 = vst.msk [vmem:[#allocation4 + $0x218] sm:$0xff] %vm1210_vm1, %v15730_v3 }
  0x7b   : > { %5508 = vst.msk [vmem:[#allocation4 + $0x220] sm:$0xff] %vm1210_vm1, %v15730_v3  ;;  %5509 = vst.msk [vmem:[#allocation4 + $0x228] sm:$0xff] %vm1210_vm1, %v15730_v3 }
  0x7c   : > { %5510 = vst.msk [vmem:[#allocation4 + $0x230] sm:$0xff] %vm1210_vm1, %v15730_v3  ;;  %5511 = vst.msk [vmem:[#allocation4 + $0x238] sm:$0xff] %vm1210_vm1, %v15730_v3 }
  0xf0   : > { %v9099_v49 = vpop.f32.mrb[0].mxu1 }
  0xf1   : > { %v1025_v50 = vadd.f32 %v9099_v49, %v11473_v48  ;;  %v1019_v51 = vpop.f32.mrb[1].mxu1 }
  0xf2   : > { %v1020_v52 = vadd.f32 %v11473_v48, %v1019_v51 }
  0xf3   : > { %v1179_v53 = vmax.f32 %v1025_v50, 0.0 }
  0xf4   : > { %v1178_v54 = vmax.f32 %v1020_v52, 0.0  ;;  %v9102_v55 = vpop.f32.mrb[2].mxu1 }
  0xf5   : > { %1285 = vst.msk [vmem:[#allocation2 + $0x30] sm:$0xff] %vm1210_vm1, %v1179_v53  ;;  %v1035_v56 = vadd.f32 %v9102_v55, %v11473_v48  ;;  %v1029_v57 = vpop.f32.mrb[3].mxu1 }
  0xf6   : > { %1284 = vst.msk [vmem:[#allocation2 + $0x28] sm:$0xff] %vm1210_vm1, %v1178_v54  ;;  %v1030_v58 = vadd.f32 %v11473_v48, %v1029_v57 }
  0xf7   : > { %v1181_v59 = vmax.f32 %v1035_v56, 0.0 }
  0xf8   : > { %v1180_v60 = vmax.f32 %v1030_v58, 0.0  ;;  %v9105_v61 = vpop.f32.mrb[4].mxu1 }
  0xf9   : > { %1287 = vst.msk [vmem:[#allocation2 + $0x50] sm:$0xff] %vm1210_vm1, %v1181_v59  ;;  %v1045_v62 = vadd.f32 %v9105_v61, %v11473_v48  ;;  %v1039_v63 = vpop.f32.mrb[5].mxu1 }
  0xfa   : > { %1286 = vst.msk [vmem:[#allocation2 + $0x48] sm:$0xff] %vm1210_vm1, %v1180_v60  ;;  %v1040_v0 = vadd.f32 %v11473_v48, %v1039_v63 }
  0xfb   : > { %v1183_v1 = vmax.f32 %v1045_v62, 0.0 }
  0xfc   : > { %v1477_v2 = vld [vmem:[#allocation2 + $0x31] sm:$0xff]  ;;  %v1182_v5 = vmax.f32 %v1040_v0, 0.0  ;;  %v9108_v6 = vpop.f32.mrb[6].mxu1 }
  0xfd   : > { %v1351_v4 = vld [vmem:[#allocation2 + $0x30] sm:$0xff]  ;;  %2151 = vrot.lane.b32.xlu1 %v1477_v2, %s15827_s0  ;;  %v1350_v7 = vld [vmem:[#allocation2 + $0x28] sm:$0xff]  ;;  %1289 = vst.msk [vmem:[#allocation2 + $0x70] sm:$0xff] %vm1210_vm1, %v1183_v1  ;;  %v1055_v9 = vadd.f32 %v9108_v6, %v11473_v48  ;;  %v1049_v10 = vpop.f32.mrb[7].mxu1 }
  0xfe   : > { %v1382_v8 = vld [vmem:[#allocation2 + $0x29] sm:$0xff]  ;;  %v9535_v11 = vpack.i.bf16 %v1351_v4, %v1350_v7  ;;  %1288 = vst.msk [vmem:[#allocation2 + $0x68] sm:$0xff] %vm1210_vm1, %v1182_v5  ;;  %v1050_v13 = vadd.f32 %v11473_v48, %v1049_v10 }
  0xff   : > { %v9540_v12 = vpack.i.bf16 %v1477_v2, %v1382_v8  ;;  %v1412_v14 = vld [vmem:[#allocation2 + $0x27] sm:$0xff]  ;;  %v1413_v15 = vld [vmem:[#allocation2 + $0x2f] sm:$0xff]  ;;  %v1185_v16 = vmax.f32 %v1055_v9, 0.0 }
 0x100   : > { %9536 = vrot.lane.b32.xlu0 %v9535_v11, %s15771_s21  ;;  %v1184_v17 = vmax.f32 %v1050_v13, 0.0  ;;  %v9111_v18 = vpop.f32.mrb[8].mxu1  ;;  %v9545_v21 = vpack.i.bf16 %v1413_v15, %v1412_v14  ;;  %v1479_v22 = vld [vmem:[#allocation2 + $0x51] sm:$0xff] }
 0x101   : > { %9541 = vrot.lane.b32.xlu1 %v9540_v12, %s15839_s22  ;;  %1291 = vst.msk [vmem:[#allocation2 + $0x90] sm:$0xff] %vm1210_vm1, %v1185_v16  ;;  %v1065_v19 = vadd.f32 %v9111_v18, %v11473_v48  ;;  %v1059_v20 = vpop.f32.mrb[9].mxu1  ;;  %v1352_v25 = vld [vmem:[#allocation2 + $0x48] sm:$0xff]  ;;  %v1353_v26 = vld [vmem:[#allocation2 + $0x50] sm:$0xff] }
 0x102   : > { %1290 = vst.msk [vmem:[#allocation2 + $0x88] sm:$0xff] %vm1210_vm1, %v1184_v17  ;;  %v1060_v23 = vadd.f32 %v11473_v48, %v1059_v20  ;;  %v9555_v32 = vpack.i.bf16 %v1353_v26, %v1352_v25  ;;  %v1414_v34 = vld [vmem:[#allocation2 + $0x47] sm:$0xff]  ;;  %v1415_v35 = vld [vmem:[#allocation2 + $0x4f] sm:$0xff] }
 0x103   : > { %v1187_v24 = vmax.f32 %v1065_v19, 0.0  ;;  %v9565_v41 = vpack.i.bf16 %v1415_v35, %v1414_v34  ;;  %v1384_v42 = vld [vmem:[#allocation2 + $0x49] sm:$0xff] }
 0x104   : > { %9546 = vrot.lane.b32.xlu0 %v9545_v21, %s15825_s18  ;;  %v1186_v27 = vmax.f32 %v1060_v23, 0.0  ;;  %v9114_v28 = vpop.f32.mrb[10].mxu1  ;;  %v9560_v49 = vpack.i.bf16 %v1479_v22, %v1384_v42  ;;  %v1481_v0 = vld [vmem:[#allocation2 + $0x71] sm:$0xff] }
 0x105   : > { %2155 = vrot.lane.b32.xlu1 %v1479_v22, %s15827_s0  ;;  %1293 = vst.msk [vmem:[#allocation2 + $0xb0] sm:$0xff] %vm1210_vm1, %v1187_v24  ;;  %v1075_v29 = vadd.f32 %v9114_v28, %v11473_v48  ;;  %v1069_v30 = vpop.f32.mrb[11].mxu1  ;;  %v1416_v60 = vld [vmem:[#allocation2 + $0x67] sm:$0xff]  ;;  %v1417_v61 = vld [vmem:[#allocation2 + $0x6f] sm:$0xff] }
 0x106   : > { %1292 = vst.msk [vmem:[#allocation2 + $0xa8] sm:$0xff] %vm1210_vm1, %v1186_v27  ;;  %v1070_v31 = vadd.f32 %v11473_v48, %v1069_v30  ;;  %v9585_v4 = vpack.i.bf16 %v1417_v61, %v1416_v60  ;;  %v1354_v5 = vld [vmem:[#allocation2 + $0x68] sm:$0xff]  ;;  %v1355_v6 = vld [vmem:[#allocation2 + $0x70] sm:$0xff] }
 0x107   : > { %v1189_v33 = vmax.f32 %v1075_v29, 0.0  ;;  %v9575_v12 = vpack.i.bf16 %v1355_v6, %v1354_v5  ;;  %v1386_v14 = vld [vmem:[#allocation2 + $0x69] sm:$0xff]  ;;  %v11576_v6 = vpop.permute.xlu0 %9526 }
 0x108   : > { %9551 = vrot.lane.b32.xlu0 %v9535_v11, %s15831_s19  ;;  %v1188_v36 = vmax.f32 %v1070_v31, 0.0  ;;  %v9117_v37 = vpop.f32.mrb[12].mxu1  ;;  %v9580_v20 = vpack.i.bf16 %v1481_v0, %v1386_v14  ;;  %v1357_v30 = vld [vmem:[#allocation2 + $0x90] sm:$0xff] }
 0x109   : > { %9556 = vrot.lane.b32.xlu1 %v9555_v32, %s15771_s21  ;;  %1295 = vst.msk [vmem:[#allocation2 + $0xd0] sm:$0xff] %vm1210_vm1, %v1189_v33  ;;  %v1085_v38 = vadd.f32 %v9117_v37, %v11473_v48  ;;  %v1079_v39 = vpop.f32.mrb[13].mxu1  ;;  %v1356_v29 = vld [vmem:[#allocation2 + $0x88] sm:$0xff]  ;;  %v1483_v31 = vld [vmem:[#allocation2 + $0x91] sm:$0xff] }
 0x10a   : > { %1294 = vst.msk [vmem:[#allocation2 + $0xc8] sm:$0xff] %vm1210_vm1, %v1188_v36  ;;  %v1080_v40 = vadd.f32 %v11473_v48, %v1079_v39  ;;  %v1418_v33 = vld [vmem:[#allocation2 + $0x87] sm:$0xff] }
 0x10b   : > { %v1191_v43 = vmax.f32 %v1085_v38, 0.0  ;;  %v1388_v36 = vld [vmem:[#allocation2 + $0x89] sm:$0xff] }
 0x10c   : > { %2149 = vrot.lane.b32.xlu0 %v1382_v8, %s15827_s0  ;;  %v1190_v44 = vmax.f32 %v1080_v40, 0.0  ;;  %v9120_v45 = vpop.f32.mrb[14].mxu1 }
 0x10d   : > { %9566 = vrot.lane.b32.xlu1 %v9565_v41, %s15825_s18  ;;  %1297 = vst.msk [vmem:[#allocation2 + $0xf0] sm:$0xff] %vm1210_vm1, %v1191_v43  ;;  %v1095_v46 = vadd.f32 %v9120_v45, %v11473_v48  ;;  %v1089_v47 = vpop.f32.mrb[15].mxu1  ;;  %v9600_v41 = vpack.i.bf16 %v1483_v31, %v1388_v36  ;;  %v1421_v45 = vld [vmem:[#allocation2 + $0xaf] sm:$0xff] }
 0x10e   : > { %1296 = vst.msk [vmem:[#allocation2 + $0xe8] sm:$0xff] %vm1210_vm1, %v1190_v44  ;;  %v1090_v50 = vadd.f32 %v11473_v48, %v1089_v47  ;;  %v1420_v44 = vld [vmem:[#allocation2 + $0xa7] sm:$0xff] }
 0x10f   : > { %v1193_v51 = vmax.f32 %v1095_v46, 0.0  ;;  %v1485_v46 = vld [vmem:[#allocation2 + $0xb1] sm:$0xff]  ;;  %v9625_v47 = vpack.i.bf16 %v1421_v45, %v1420_v44 }
 0x110   : > { %9561 = vrot.lane.b32.xlu0 %v9560_v49, %s15839_s22  ;;  %v1192_v52 = vmax.f32 %v1090_v50, 0.0  ;;  %v9123_v53 = vpop.f32.mrb[16].mxu1  ;;  %v1358_v49 = vld [vmem:[#allocation2 + $0xa8] sm:$0xff]  ;;  %v1359_v50 = vld [vmem:[#allocation2 + $0xb0] sm:$0xff] }
 0x111   : > { %9571 = vrot.lane.b32.xlu1 %v9555_v32, %s15831_s19  ;;  %1299 = vst.msk [vmem:[#allocation2 + $0x110] sm:$0xff] %vm1210_vm1, %v1193_v51  ;;  %v1105_v54 = vadd.f32 %v9123_v53, %v11473_v48  ;;  %v1099_v55 = vpop.f32.mrb[17].mxu1  ;;  %v9595_v32 = vpack.i.bf16 %v1357_v30, %v1356_v29  ;;  %v9615_v51 = vpack.i.bf16 %v1359_v50, %v1358_v49 }
 0x112   : > { %1298 = vst.msk [vmem:[#allocation2 + $0x108] sm:$0xff] %vm1210_vm1, %v1192_v52  ;;  %v1100_v56 = vadd.f32 %v11473_v48, %v1099_v55  ;;  %v1390_v52 = vld [vmem:[#allocation2 + $0xa9] sm:$0xff] }
 0x113   : > { %v1195_v57 = vmax.f32 %v1105_v54, 0.0  ;;  %v9620_v53 = vpack.i.bf16 %v1485_v46, %v1390_v52  ;;  %v1360_v55 = vld [vmem:[#allocation2 + $0xc8] sm:$0xff] }
 0x114   : > { %2153 = vrot.lane.b32.xlu0 %v1384_v42, %s15827_s0  ;;  %v1194_v58 = vmax.f32 %v1100_v56, 0.0  ;;  %v9126_v59 = vpop.f32.mrb[18].mxu1  ;;  %v1361_v56 = vld [vmem:[#allocation2 + $0xd0] sm:$0xff] }
 0x115   : > { %2279 = vrot.lane.b32.xlu1 %v1415_v35, %s15837_s23  ;;  %1301 = vst.msk [vmem:[#allocation2 + $0x130] sm:$0xff] %vm1210_vm1, %v1195_v57  ;;  %v1115_v62 = vadd.f32 %v9126_v59, %v11473_v48  ;;  %v1109_v63 = vpop.f32.mrb[19].mxu1  ;;  %v1487_v59 = vld [vmem:[#allocation2 + $0xd1] sm:$0xff] }
 0x116   : > { %1300 = vst.msk [vmem:[#allocation2 + $0x128] sm:$0xff] %vm1210_vm1, %v1194_v58  ;;  %v1110_v1 = vadd.f32 %v11473_v48, %v1109_v63  ;;  %v1422_v63 = vld [vmem:[#allocation2 + $0xc7] sm:$0xff] }
 0x117   : > { %v1197_v2 = vmax.f32 %v1115_v62, 0.0  ;;  %v9635_v62 = vpack.i.bf16 %v1361_v56, %v1360_v55 }
 0x118   : > { %2277 = vrot.lane.b32.xlu0 %v1414_v34, %s15837_s23  ;;  %v1196_v7 = vmax.f32 %v1110_v1, 0.0  ;;  %v9129_v8 = vpop.f32.mrb[20].mxu1  ;;  %v1419_v34 = vld [vmem:[#allocation2 + $0x8f] sm:$0xff] }
 0x119   : > { %2159 = vrot.lane.b32.xlu1 %v1481_v0, %s15827_s0  ;;  %1303 = vst.msk [vmem:[#allocation2 + $0x150] sm:$0xff] %vm1210_vm1, %v1197_v2  ;;  %v1125_v9 = vadd.f32 %v9129_v8, %v11473_v48  ;;  %v1119_v10 = vpop.f32.mrb[21].mxu1  ;;  %v9605_v35 = vpack.i.bf16 %v1419_v34, %v1418_v33  ;;  %v1423_v0 = vld [vmem:[#allocation2 + $0xcf] sm:$0xff]  ;;  %v1424_v8 = vld [vmem:[#allocation2 + $0xe7] sm:$0xff] }
 0x11a   : > { %1302 = vst.msk [vmem:[#allocation2 + $0x148] sm:$0xff] %vm1210_vm1, %v1196_v7  ;;  %v1120_v11 = vadd.f32 %v11473_v48, %v1119_v10  ;;  %v9645_v2 = vpack.i.bf16 %v1423_v0, %v1422_v63  ;;  %v11581_v7 = vpop.permute.xlu0 %9531  ;;  %v1489_v10 = vld [vmem:[#allocation2 + $0xf1] sm:$0xff]  ;;  %v1426_v30 = vld [vmem:[#allocation2 + $0x107] sm:$0xff] }
 0x11b   : > { %v1199_v13 = vmax.f32 %v1125_v9, 0.0  ;;  %15847 = vst [vmem:[#allocation5_spill] sm:$0xff] %v11581_v7  ;;  %v1425_v9 = vld [vmem:[#allocation2 + $0xef] sm:$0xff] }
 0x11c   : > { %9586 = vrot.lane.b32.xlu0 %v9585_v4, %s15825_s18  ;;  %v1198_v15 = vmax.f32 %v1120_v11, 0.0  ;;  %v9132_v16 = vpop.f32.mrb[22].mxu1  ;;  %v1392_v4 = vld [vmem:[#allocation2 + $0xc9] sm:$0xff]  ;;  %v9665_v11 = vpack.i.bf16 %v1425_v9, %v1424_v8 }
 0x11d   : > { %9576 = vrot.lane.b32.xlu1 %v9575_v12, %s15771_s21  ;;  %1305 = vst.msk [vmem:[#allocation2 + $0x170] sm:$0xff] %vm1210_vm1, %v1199_v13  ;;  %v1135_v17 = vadd.f32 %v9132_v16, %v11473_v48  ;;  %v1129_v18 = vpop.f32.mrb[23].mxu1  ;;  %v9640_v5 = vpack.i.bf16 %v1487_v59, %v1392_v4  ;;  %v1363_v13 = vld [vmem:[#allocation2 + $0xf0] sm:$0xff] }
 0x11e   : > { %1304 = vst.msk [vmem:[#allocation2 + $0x168] sm:$0xff] %vm1210_vm1, %v1198_v15  ;;  %v1130_v19 = vadd.f32 %v11473_v48, %v1129_v18 }
 0x11f   : > { %v1201_v21 = vmax.f32 %v1135_v17, 0.0  ;;  %v1394_v17 = vld [vmem:[#allocation2 + $0xe9] sm:$0xff] }
 0x120   : > { %9591 = vrot.lane.b32.xlu0 %v9575_v12, %s15831_s19  ;;  %v1200_v22 = vmax.f32 %v1130_v19, 0.0  ;;  %v9135_v23 = vpop.f32.mrb[24].mxu1  ;;  %v1362_v12 = vld [vmem:[#allocation2 + $0xe8] sm:$0xff] }
 0x121   : > { %9581 = vrot.lane.b32.xlu1 %v9580_v20, %s15839_s22  ;;  %1307 = vst.msk [vmem:[#allocation2 + $0x190] sm:$0xff] %vm1210_vm1, %v1201_v21  ;;  %v1145_v24 = vadd.f32 %v9135_v23, %v11473_v48  ;;  %v1139_v25 = vpop.f32.mrb[25].mxu1  ;;  %v9655_v15 = vpack.i.bf16 %v1363_v13, %v1362_v12  ;;  %v1400_v12 = vld [vmem:[#allocation2 + $0x149] sm:$0xff] }
 0x122   : > { %1306 = vst.msk [vmem:[#allocation2 + $0x188] sm:$0xff] %vm1210_vm1, %v1200_v22  ;;  %v1140_v26 = vadd.f32 %v11473_v48, %v1139_v25  ;;  %v9660_v22 = vpack.i.bf16 %v1489_v10, %v1394_v17  ;;  %v11598_v25 = vpop.permute.xlu1 %2465  ;;  %v2893_v13 = vld [vmem:[%s15715_s5 + $0x10] sm:$0xff] }
 0x123   : > { %v1203_v27 = vmax.f32 %v1145_v24, 0.0 }
 0x124   : > { %2157 = vrot.lane.b32.xlu0 %v1386_v14, %s15827_s0  ;;  %v1202_v28 = vmax.f32 %v1140_v26, 0.0  ;;  %v9138_v37 = vpop.f32.mrb[26].mxu1  ;;  %v11586_v14 = vpop.permute.xlu0 %2337  ;;  %v1365_v26 = vld [vmem:[#allocation2 + $0x110] sm:$0xff] }
 0x125   : > { %2283 = vrot.lane.b32.xlu1 %v1417_v61, %s15837_s23  ;;  %1309 = vst.msk [vmem:[#allocation2 + $0x1b0] sm:$0xff] %vm1210_vm1, %v1203_v27  ;;  %v1155_v38 = vadd.f32 %v9138_v37, %v11473_v48  ;;  %v1149_v39 = vpop.f32.mrb[27].mxu1  ;;  %v1491_v27 = vld [vmem:[#allocation2 + $0x111] sm:$0xff] }
 0x126   : > { %1308 = vst.msk [vmem:[#allocation2 + $0x1a8] sm:$0xff] %vm1210_vm1, %v1202_v28  ;;  %v1150_v40 = vadd.f32 %v11473_v48, %v1149_v39 }
 0x127   : > { %v1205_v42 = vmax.f32 %v1155_v38, 0.0 }
 0x128   : > { %2281 = vrot.lane.b32.xlu0 %v1416_v60, %s15837_s23  ;;  %v1204_v43 = vmax.f32 %v1150_v40, 0.0  ;;  %v9141_v54 = vpop.f32.mrb[28].mxu1  ;;  %v11593_v24 = vpop.permute.xlu0 %2593  ;;  %v1428_v40 = vld [vmem:[#allocation2 + $0x127] sm:$0xff] }
 0x129   : > { %2163 = vrot.lane.b32.xlu1 %v1483_v31, %s15827_s0  ;;  %1311 = vst.msk [vmem:[#allocation2 + $0x1d0] sm:$0xff] %vm1210_vm1, %v1205_v42  ;;  %v1165_v57 = vadd.f32 %v9141_v54, %v11473_v48  ;;  %v1159_v58 = vpop.f32.mrb[29].mxu1  ;;  %v1427_v31 = vld [vmem:[#allocation2 + $0x10f] sm:$0xff] }
 0x12a   : > { %1310 = vst.msk [vmem:[#allocation2 + $0x1c8] sm:$0xff] %vm1210_vm1, %v1204_v43  ;;  %v1160_v60 = vadd.f32 %v11473_v48, %v1159_v58  ;;  %v1493_v43 = vld [vmem:[#allocation2 + $0x131] sm:$0xff] }
 0x12b   : > { %v1207_v61 = vmax.f32 %v1165_v57, 0.0  ;;  %v1495_v57 = vld [vmem:[#allocation2 + $0x151] sm:$0xff] }
 0x12c   : > { %9596 = vrot.lane.b32.xlu0 %v9595_v32, %s15771_s21  ;;  %v1206_v1 = vmax.f32 %v1160_v60, 0.0  ;;  %v9144_v16 = vpop.f32.mrb[30].mxu1  ;;  %v11602_v28 = vpop.permute.xlu0 %2339  ;;  %v11650_v60 = vld [vmem:[#allocation2 + $0x14f] sm:$0xff] }
 0x12d   : > { %9606 = vrot.lane.b32.xlu1 %v9605_v35, %s15825_s18  ;;  %1313 = vst.msk [vmem:[#allocation2 + $0x1f0] sm:$0xff] %vm1210_vm1, %v1207_v61  ;;  %v1175_v18 = vadd.f32 %v9144_v16, %v11473_v48  ;;  %v1169_v19 = vpop.f32.mrb[31].mxu1  ;;  %v11807_v3 = vld [vmem:[#allocation2 + $0x1b0] sm:$0xff] }
 0x12e   : > { %1312 = vst.msk [vmem:[#allocation2 + $0x1e8] sm:$0xff] %vm1210_vm1, %v1206_v1  ;;  %v1170_v20 = vadd.f32 %v11473_v48, %v1169_v19  ;;  %v1364_v48 = vld [vmem:[#allocation2 + $0x108] sm:$0xff]  ;;  %v1369_v1 = vld [vmem:[#allocation2 + $0x150] sm:$0xff] }
 0x12f   : > { %v1209_v21 = vmax.f32 %v1175_v18, 0.0  ;;  %v9675_v29 = vpack.i.bf16 %v1365_v26, %v1364_v48  ;;  %v9720_v18 = vpack.i.bf16 %v1495_v57, %v1400_v12  ;;  %v1497_v19 = vld [vmem:[#allocation2 + $0x171] sm:$0xff]  ;;  %v2896_v48 = vld [vmem:[%s15715_s5 + $0x28] sm:$0xff] }
 0x130   : > { %9601 = vrot.lane.b32.xlu0 %v9600_v41, %s15839_s22  ;;  %v1208_v23 = vmax.f32 %v1170_v20, 0.0  ;;  %v11609_v35 = vpop.permute.xlu0 %2595  ;;  %v11622_v41 = vld [vmem:[#allocation2 + $0x12f] sm:$0xff] }
 0x131   : > { %9611 = vrot.lane.b32.xlu1 %v9595_v32, %s15831_s19  ;;  %1315 = vst.msk [vmem:[#allocation2 + $0x210] sm:$0xff] %vm1210_vm1, %v1209_v21  ;;  %v11606_v32 = vpop.permute.xlu1 %2467  ;;  %v1371_v21 = vld [vmem:[#allocation2 + $0x170] sm:$0xff] }
 0x132   : > { %1314 = vst.msk [vmem:[#allocation2 + $0x208] sm:$0xff] %vm1210_vm1, %v1208_v23  ;;  %v2895_v23 = vld [vmem:[%s15715_s5 + $0x20] sm:$0xff] }
 0x133   : > { %v11702_v26 = vpack.c.bf16 %v2896_v48, %v2895_v23  ;;  %v11771_v23 = vld [vmem:[#allocation2 + $0x190] sm:$0xff]  ;;  %v2903_v48 = vld [vmem:[%s15715_s5 + $0x60] sm:$0xff] }
 0x134   : > { %2161 = vrot.lane.b32.xlu0 %v1388_v36, %s15827_s0 }
 0x135   : > { %2287 = vrot.lane.b32.xlu1 %v1419_v34, %s15837_s23  ;;  %v1396_v34 = vld [vmem:[#allocation2 + $0x109] sm:$0xff] }
 0x136   : > { %v9680_v36 = vpack.i.bf16 %v1491_v27, %v1396_v34 }
 0x138   : > { %2285 = vrot.lane.b32.xlu0 %v1418_v33, %s15837_s23  ;;  %v9685_v33 = vpack.i.bf16 %v1427_v31, %v1426_v30 }
 0x139   : > { %2167 = vrot.lane.b32.xlu1 %v1485_v46, %s15827_s0  ;;  %v1366_v46 = vld [vmem:[#allocation2 + $0x128] sm:$0xff] }
 0x13c   : > { %9626 = vrot.lane.b32.xlu0 %v9625_v47, %s15825_s18  ;;  %v1367_v47 = vld [vmem:[#allocation2 + $0x130] sm:$0xff] }
 0x13d   : > { %9616 = vrot.lane.b32.xlu1 %v9615_v51, %s15771_s21 }
 0x140   : > { %9631 = vrot.lane.b32.xlu0 %v9615_v51, %s15831_s19  ;;  %v9695_v51 = vpack.i.bf16 %v1367_v47, %v1366_v46 }
 0x141   : > { %9621 = vrot.lane.b32.xlu1 %v9620_v53, %s15839_s22 }
 0x144   : > { %2165 = vrot.lane.b32.xlu0 %v1390_v52, %s15827_s0  ;;  %v1398_v52 = vld [vmem:[#allocation2 + $0x129] sm:$0xff] }
 0x145   : > { %2291 = vrot.lane.b32.xlu1 %v1421_v45, %s15837_s23  ;;  %v9705_v45 = vpack.i.bf16 %v11622_v41, %v1428_v40  ;;  %v9700_v55 = vpack.i.bf16 %v1493_v43, %v1398_v52 }
 0x148   : > { %2289 = vrot.lane.b32.xlu0 %v1420_v44, %s15837_s23 }
 0x149   : > { %2171 = vrot.lane.b32.xlu1 %v1487_v59, %s15827_s0  ;;  %v11648_v59 = vld [vmem:[#allocation2 + $0x147] sm:$0xff] }
 0x14c   : > { %9636 = vrot.lane.b32.xlu0 %v9635_v62, %s15771_s21 }
 0x14d   : > { %9646 = vrot.lane.b32.xlu1 %v9645_v2, %s15825_s18  ;;  %v2891_v2 = vld [vmem:[%s15715_s5] sm:$0xff] }
 0x150   : > { %9641 = vrot.lane.b32.xlu0 %v9640_v5, %s15839_s22 }
 0x151   : > { %9651 = vrot.lane.b32.xlu1 %v9635_v62, %s15831_s19 }
 0x154   : > { %2169 = vrot.lane.b32.xlu0 %v1392_v4, %s15827_s0  ;;  %v2892_v4 = vld [vmem:[%s15715_s5 + $0x8] sm:$0xff] }
 0x155   : > { %2295 = vrot.lane.b32.xlu1 %v1423_v0, %s15837_s23  ;;  %v1368_v0 = vld [vmem:[#allocation2 + $0x148] sm:$0xff]  ;;  %v11667_v5 = vpack.c.bf16 %v2892_v4, %v2891_v2 }
 0x156   : > { %v11747_v2 = vld [vmem:[#allocation2 + $0x187] sm:$0xff]  ;;  %v11751_v4 = vld [vmem:[#allocation2 + $0x18f] sm:$0xff] }
 0x158   : > { %2293 = vrot.lane.b32.xlu0 %v1422_v63, %s15837_s23  ;;  %v9725_v63 = vpack.i.bf16 %v11650_v60, %v11648_v59 }
 0x159   : > { %2175 = vrot.lane.b32.xlu1 %v1489_v10, %s15827_s0  ;;  %v15732_v10 = vmov 0.0|0.0  }
 0x15a   : > { %9476 = vmatprep.subr.bf16.mxu1 %v15732_v10 }
 0x15b   : > { %9490 = vmatpush1.bf16.msra.mxu1 %v11667_v5 }
 0x15c   : > { %9666 = vrot.lane.b32.xlu0 %v9665_v11, %s15825_s18  ;;  %9477 = vmatprep.subr.bf16.mxu1 %v15732_v10 }
 0x15d   : > { %9656 = vrot.lane.b32.xlu1 %v9655_v15, %s15771_s21 }
 0x160   : > { %9671 = vrot.lane.b32.xlu0 %v9655_v15, %s15831_s19  ;;  %v2894_v15 = vld [vmem:[%s15715_s5 + $0x18] sm:$0xff] }
 0x161   : > { %9661 = vrot.lane.b32.xlu1 %v9660_v22, %s15839_s22  ;;  %v11684_v16 = vpack.c.bf16 %v2894_v15, %v2893_v13  ;;  %v11692_v22 = vld [vmem:[#allocation2 + $0x168] sm:$0xff] }
 0x163   : > { %9491 = vmatpush1.bf16.msra.mxu1 %v11684_v16 }
 0x164   : > { %2173 = vrot.lane.b32.xlu0 %v1394_v17, %s15827_s0  ;;  %9478 = vmatprep.subr.bf16.mxu1 %v15732_v10 }
 0x165   : > { %2299 = vrot.lane.b32.xlu1 %v1425_v9, %s15837_s23  ;;  %v9715_v9 = vpack.i.bf16 %v1369_v1, %v1368_v0  ;;  %v1499_v0 = vld [vmem:[#allocation2 + $0x191] sm:$0xff] }
 0x167   : > { %9492 = vmatpush1.bf16.msra.mxu1 %v11702_v26 }
 0x168   : > { %2297 = vrot.lane.b32.xlu0 %v1424_v8, %s15837_s23  ;;  %9479 = vmatprep.subr.bf16.mxu1 %v15732_v10 }
 0x169   : > { %2179 = vrot.lane.b32.xlu1 %v1491_v27, %s15827_s0 }
 0x16c   : > { %9676 = vrot.lane.b32.xlu0 %v9675_v29, %s15771_s21 }
 0x16d   : > { %9686 = vrot.lane.b32.xlu1 %v9685_v33, %s15825_s18  ;;  %v11711_v33 = vld [vmem:[#allocation2 + $0x16f] sm:$0xff] }
 0x16f   : > { %v11612_v37 = vpop.permute.xlu1 %2151 }
 0x170   : > { %15848 = vst [vmem:[#allocation6_spill] sm:$0xff] %v11612_v37  ;;  %9681 = vrot.lane.b32.xlu0 %v9680_v36, %s15839_s22  ;;  %v2897_v36 = vld [vmem:[%s15715_s5 + $0x30] sm:$0xff]  ;;  %v1549_v37 = vld [vmem:[#allocation2 + $0xc8] sm:$0xff] }
 0x171   : > { %9691 = vrot.lane.b32.xlu1 %v9675_v29, %s15831_s19 }
 0x172   : > { %v11616_v38 = vpop.permute.xlu0 %9536 }
 0x173   : > { %15849 = vst [vmem:[#allocation7_spill] sm:$0xff] %v11616_v38  ;;  %v11618_v39 = vpop.permute.xlu1 %9541  ;;  %v1553_v38 = vld [vmem:[#allocation2 + $0x108] sm:$0xff] }
 0x174   : > { %15850 = vst [vmem:[#allocation8_spill] sm:$0xff] %v11618_v39  ;;  %2177 = vrot.lane.b32.xlu0 %v1396_v34, %s15827_s0  ;;  %v1402_v34 = vld [vmem:[#allocation2 + $0x169] sm:$0xff] }
 0x175   : > { %2303 = vrot.lane.b32.xlu1 %v1427_v31, %s15837_s23  ;;  %v11709_v31 = vld [vmem:[#allocation2 + $0x167] sm:$0xff] }
 0x176   : > { %v11624_v42 = vpop.permute.xlu0 %9546  ;;  %v9745_v46 = vpack.i.bf16 %v11711_v33, %v11709_v31 }
 0x177   : > { %15851 = vst [vmem:[#allocation9_spill] sm:$0xff] %v11624_v42  ;;  %v11626_v44 = vpop.permute.xlu1 %2155 }
 0x178   : > { %15852 = vst [vmem:[#allocation10_spill] sm:$0xff] %v11626_v44  ;;  %2301 = vrot.lane.b32.xlu0 %v1426_v30, %s15837_s23  ;;  %v9735_v30 = vpack.i.bf16 %v1371_v21, %v11692_v22  ;;  %v11769_v21 = vld [vmem:[#allocation2 + $0x188] sm:$0xff] }
 0x179   : > { %2183 = vrot.lane.b32.xlu1 %v1493_v43, %s15827_s0 }
 0x17a   : > { %v11631_v49 = vpop.permute.xlu0 %9551 }
 0x17b   : > { %15853 = vst [vmem:[#allocation11_spill] sm:$0xff] %v11631_v49  ;;  %v11633_v50 = vpop.permute.xlu1 %9556 }
 0x17c   : > { %15854 = vst [vmem:[#allocation12_spill] sm:$0xff] %v11633_v50  ;;  %9706 = vrot.lane.b32.xlu0 %v9705_v45, %s15825_s18  ;;  %v1410_v50 = vld [vmem:[#allocation2 + $0x1e9] sm:$0xff] }
 0x17d   : > { %9696 = vrot.lane.b32.xlu1 %v9695_v51, %s15771_s21 }
 0x17e   : > { %v11637_v53 = vpop.permute.xlu0 %2149 }
 0x17f   : > { %15855 = vst [vmem:[#allocation13_spill] sm:$0xff] %v11637_v53  ;;  %v11639_v54 = vpop.permute.xlu1 %9566 }
 0x180   : > { %15856 = vst [vmem:[#allocation14_spill] sm:$0xff] %v11639_v54  ;;  %9711 = vrot.lane.b32.xlu0 %v9695_v51, %s15831_s19  ;;  %v9740_v51 = vpack.i.bf16 %v1497_v19, %v1402_v34  ;;  %v12241_v54 = vld [vmem:[%s11395_s20 + $0xc8] sm:$0xff] }
 0x181   : > { %9701 = vrot.lane.b32.xlu1 %v9700_v55, %s15839_s22  ;;  %v2900_v55 = vld [vmem:[%s15715_s5 + $0x48] sm:$0xff]  ;;  %15944 = vst [vmem:[#allocation99_spill] sm:$0xff] %v12241_v54 }
 0x182   : > { %v11643_v56 = vpop.permute.xlu0 %9561 }
 0x183   : > { %15857 = vst [vmem:[#allocation15_spill] sm:$0xff] %v11643_v56  ;;  %v11645_v58 = vpop.permute.xlu1 %9571 }
 0x184   : > { %15858 = vst [vmem:[#allocation16_spill] sm:$0xff] %v11645_v58  ;;  %2181 = vrot.lane.b32.xlu0 %v1398_v52, %s15827_s0  ;;  %v2899_v52 = vld [vmem:[%s15715_s5 + $0x40] sm:$0xff]  ;;  %v1551_v58 = vld [vmem:[#allocation2 + $0xe8] sm:$0xff] }
 0x185   : > { %2187 = vrot.lane.b32.xlu1 %v1495_v57, %s15827_s0  ;;  %v11741_v57 = vpack.c.bf16 %v2900_v55, %v2899_v52  ;;  %v2905_v52 = vld [vmem:[%s15715_s5 + $0x70] sm:$0xff]  ;;  %v2906_v55 = vld [vmem:[%s15715_s5 + $0x78] sm:$0xff] }
 0x186   : > { %v11653_v61 = vpop.permute.xlu0 %2153 }
 0x187   : > { %15859 = vst [vmem:[#allocation17_spill] sm:$0xff] %v11653_v61  ;;  %v11655_v62 = vpop.permute.xlu1 %2279 }
 0x188   : > { %15860 = vst [vmem:[#allocation18_spill] sm:$0xff] %v11655_v62  ;;  %2305 = vrot.lane.b32.xlu0 %v1428_v40, %s15837_s23  ;;  %v2898_v40 = vld [vmem:[%s15715_s5 + $0x38] sm:$0xff] }
 0x189   : > { %9726 = vrot.lane.b32.xlu1 %v9725_v63, %s15825_s18  ;;  %v11723_v43 = vpack.c.bf16 %v2898_v40, %v2897_v36  ;;  %v12223_v62 = vld [vmem:[%s11395_s20 + $0xb8] sm:$0xff] }
 0x18a   : > { %v11669_v8 = vpop.permute.xlu0 %2277  ;;  %15941 = vst [vmem:[#allocation96_spill] sm:$0xff] %v12223_v62 }
 0x18b   : > { %15861 = vst [vmem:[#allocation19_spill] sm:$0xff] %v11669_v8  ;;  %v11672_v11 = vpop.permute.xlu1 %2159  ;;  %9493 = vmatpush1.bf16.msra.mxu1 %v11723_v43 }
 0x18c   : > { %15862 = vst [vmem:[#allocation20_spill] sm:$0xff] %v11672_v11  ;;  %9716 = vrot.lane.b32.xlu0 %v9715_v9, %s15771_s21  ;;  %9480 = vmatprep.subr.bf16.mxu1 %v15732_v10 }
 0x18d   : > { %9731 = vrot.lane.b32.xlu1 %v9715_v9, %s15831_s19  ;;  %v2901_v9 = vld [vmem:[%s15715_s5 + $0x50] sm:$0xff] }
 0x18e   : > { %v11686_v17 = vpop.permute.xlu0 %9586 }
 0x18f   : > { %15863 = vst [vmem:[#allocation21_spill] sm:$0xff] %v11686_v17  ;;  %v11688_v20 = vpop.permute.xlu1 %9576  ;;  %9494 = vmatpush1.bf16.msra.mxu1 %v11741_v57  ;;  %v15888_v17 = vmov 0.0  }
 0x190   : > { %15864 = vst [vmem:[#allocation22_spill] sm:$0xff] %v11688_v20  ;;  %9721 = vrot.lane.b32.xlu0 %v9720_v18, %s15839_s22  ;;  %9481 = vmatprep.subr.bf16.mxu1 %v15732_v10 }
 0x191   : > { %2191 = vrot.lane.b32.xlu1 %v1497_v19, %s15827_s0  ;;  %v9765_v19 = vpack.i.bf16 %v11751_v4, %v11747_v2 }
 0x192   : > { %v11704_v27 = vpop.permute.xlu0 %9591 }
 0x193   : > { %15865 = vst [vmem:[#allocation23_spill] sm:$0xff] %v11704_v27  ;;  %v11706_v29 = vpop.permute.xlu1 %9581  ;;  %v11903_v27 = vld [vmem:[#allocation2 + $0x1cf] sm:$0xff] }
 0x194   : > { %15866 = vst [vmem:[#allocation24_spill] sm:$0xff] %v11706_v29  ;;  %2185 = vrot.lane.b32.xlu0 %v1400_v12, %s15827_s0  ;;  %v2902_v12 = vld [vmem:[%s15715_s5 + $0x58] sm:$0xff]  ;;  %v2911_v29 = vld [vmem:[%s15715_s5 + $0xa0] sm:$0xff] }
 0x195   : > { %9736 = vrot.lane.b32.xlu1 %v9735_v30, %s15771_s21  ;;  %v11761_v13 = vpack.c.bf16 %v2902_v12, %v2901_v9  ;;  %v11801_v9 = vpack.c.bf16 %v2906_v55, %v2905_v52 }
 0x196   : > { %v11725_v45 = vpop.permute.xlu0 %2157 }
 0x197   : > { %15867 = vst [vmem:[#allocation25_spill] sm:$0xff] %v11725_v45  ;;  %v11729_v47 = vpop.permute.xlu1 %2283  ;;  %9495 = vmatpush1.bf16.msra.mxu1 %v11761_v13  ;;  %v1408_v45 = vld [vmem:[#allocation2 + $0x1c9] sm:$0xff] }
 0x198   : > { %15868 = vst [vmem:[#allocation26_spill] sm:$0xff] %v11729_v47  ;;  %9746 = vrot.lane.b32.xlu0 %v9745_v46, %s15825_s18  ;;  %9482 = vmatprep.subr.bf16.mxu1 %v15732_v10  ;;  %v9755_v46 = vpack.i.bf16 %v11771_v23, %v11769_v21 }
 0x199   : > { %9741 = vrot.lane.b32.xlu1 %v9740_v51, %s15839_s22  ;;  %v1404_v51 = vld [vmem:[#allocation2 + $0x189] sm:$0xff] }
 0x19a   : > { %v11743_v63 = vpop.permute.xlu0 %2281 }
 0x19b   : > { %15869 = vst [vmem:[#allocation27_spill] sm:$0xff] %v11743_v63  ;;  %v11745_v1 = vpop.permute.xlu1 %2163 }
 0x19c   : > { %15870 = vst [vmem:[#allocation28_spill] sm:$0xff] %v11745_v1  ;;  %9751 = vrot.lane.b32.xlu0 %v9735_v30, %s15831_s19  ;;  %v2904_v30 = vld [vmem:[%s15715_s5 + $0x68] sm:$0xff]  ;;  %v15877_v1 = vmov 0.0|0.0  }
 0x19d   : > { %2195 = vrot.lane.b32.xlu1 %v1499_v0, %s15827_s0  ;;  %v11783_v36 = vpack.c.bf16 %v2904_v30, %v2903_v48  ;;  %v1501_v48 = vld [vmem:[#allocation2 + $0x1b1] sm:$0xff] }
 0x19e   : > { %v11763_v15 = vpop.permute.xlu0 %9596 }
 0x19f   : > { %15871 = vst [vmem:[#allocation29_spill] sm:$0xff] %v11763_v15  ;;  %v11765_v18 = vpop.permute.xlu1 %9606  ;;  %9496 = vmatpush1.bf16.msra.mxu1 %v11783_v36  ;;  %v11829_v15 = vld [vmem:[#allocation2 + $0x1a7] sm:$0xff] }
 0x1a0   : > { %15872 = vst [vmem:[#allocation30_spill] sm:$0xff] %v11765_v18  ;;  %2189 = vrot.lane.b32.xlu0 %v1402_v34, %s15827_s0  ;;  %9483 = vmatprep.subr.bf16.mxu1 %v15732_v10  ;;  %v11811_v10 = vld [vmem:[#allocation2 + $0x1a8] sm:$0xff] }
 0x1a1   : > { %9766 = vrot.lane.b32.xlu1 %v9765_v19, %s15825_s18  ;;  %v9760_v19 = vpack.i.bf16 %v1499_v0, %v1404_v51  ;;  %v2908_v0 = vld [vmem:[%s15715_s5 + $0x88] sm:$0xff] }
 0x1a2   : > { %v11785_v40 = vpop.permute.xlu0 %9601 }
 0x1a3   : > { %15873 = vst [vmem:[#allocation31_spill] sm:$0xff] %v11785_v40  ;;  %v11789_v34 = vpop.permute.xlu1 %9611  ;;  %9497 = vmatpush1.bf16.msra.mxu1 %v11801_v9 }
 0x1a4   : > { %15874 = vst [vmem:[#allocation32_spill] sm:$0xff] %v11789_v34  ;;  %9756 = vrot.lane.b32.xlu0 %v9755_v46, %s15771_s21  ;;  %9484 = vmatprep.subr.bf16.mxu1 %v15877_v1  ;;  %v1406_v34 = vld [vmem:[#allocation2 + $0x1a9] sm:$0xff] }
 0x1a5   : > { %9771 = vrot.lane.b32.xlu1 %v9755_v46, %s15831_s19  ;;  %v2907_v46 = vld [vmem:[%s15715_s5 + $0x80] sm:$0xff] }
 0x1a6   : > { %v11803_v12 = vpop.permute.xlu0 %2161  ;;  %v11821_v52 = vpack.c.bf16 %v2908_v0, %v2907_v46  ;;  %v2909_v46 = vld [vmem:[%s15715_s5 + $0x90] sm:$0xff]  ;;  %v2910_v0 = vld [vmem:[%s15715_s5 + $0x98] sm:$0xff] }
 0x1a7   : > { %15875 = vst [vmem:[#allocation33_spill] sm:$0xff] %v11803_v12  ;;  %v11805_v30 = vpop.permute.xlu1 %2287  ;;  %v11831_v12 = vld [vmem:[#allocation2 + $0x1af] sm:$0xff] }
 0x1a8   : > { %15876 = vst [vmem:[#allocation34_spill] sm:$0xff] %v11805_v30  ;;  %9761 = vrot.lane.b32.xlu0 %v9760_v19, %s15839_s22  ;;  %v9775_v19 = vpack.i.bf16 %v11807_v3, %v11811_v10  ;;  %9498 = vmatpush1.bf16.msra.mxu1 %v11821_v52  ;;  %v9780_v30 = vpack.i.bf16 %v1501_v48, %v1406_v34 }
 0x1a9   : > { %2199 = vrot.lane.b32.xlu1 %v1501_v48, %s15827_s0  ;;  %9485 = vmatprep.subr.bf16.mxu1 %v15877_v1 }
 0x1aa   : > { %v11823_v55 = vpop.permute.xlu0 %2285 }
 0x1ab   : > { %15878 = vst [vmem:[#allocation35_spill] sm:$0xff] %v11823_v55  ;;  %v11825_v40 = vpop.permute.xlu1 %2167  ;;  %v11901_v55 = vld [vmem:[#allocation2 + $0x1c7] sm:$0xff] }
 0x1ac   : > { %15879 = vst [vmem:[#allocation36_spill] sm:$0xff] %v11825_v40  ;;  %2193 = vrot.lane.b32.xlu0 %v1404_v51, %s15827_s0  ;;  %v11843_v40 = vpack.c.bf16 %v2910_v0, %v2909_v46  ;;  %v9785_v51 = vpack.i.bf16 %v11831_v12, %v11829_v15  ;;  %v2912_v46 = vld [vmem:[%s15715_s5 + $0xa8] sm:$0xff] }
 0x1ad   : > { %9776 = vrot.lane.b32.xlu1 %v9775_v19, %s15771_s21  ;;  %v11861_v0 = vpack.c.bf16 %v2912_v46, %v2911_v29  ;;  %v1598_v29 = vld [vmem:[#allocation2 + $0x1d1] sm:$0xff] }
 0x1ae   : > { %v11845_v18 = vpop.permute.xlu0 %9626  ;;  %9499 = vmatpush1.bf16.msra.mxu1 %v11843_v40  ;;  %v1566_v46 = vld [vmem:[#allocation2 + $0x1d0] sm:$0xff] }
 0x1af   : > { %15880 = vst [vmem:[#allocation37_spill] sm:$0xff] %v11845_v18  ;;  %v11849_v11 = vpop.permute.xlu1 %9616  ;;  %9486 = vmatprep.subr.bf16.mxu1 %v15877_v1 }
 0x1b0   : > { %15881 = vst [vmem:[#allocation38_spill] sm:$0xff] %v11849_v11  ;;  %9786 = vrot.lane.b32.xlu0 %v9785_v51, %s15825_s18  ;;  %v2913_v51 = vld [vmem:[%s15715_s5 + $0xb0] sm:$0xff] }
 0x1b1   : > { %9781 = vrot.lane.b32.xlu1 %v9780_v30, %s15839_s22  ;;  %v2914_v30 = vld [vmem:[%s15715_s5 + $0xb8] sm:$0xff] }
 0x1b2   : > { %v11863_v11 = vpop.permute.xlu0 %9631  ;;  %9500 = vmatpush1.bf16.msra.mxu1 %v11861_v0 }
 0x1b3   : > { %15882 = vst [vmem:[#allocation39_spill] sm:$0xff] %v11863_v11  ;;  %v11865_v48 = vpop.permute.xlu1 %9621  ;;  %9487 = vmatprep.subr.bf16.mxu1 %v15877_v1  ;;  %v1376_v11 = vld [vmem:[#allocation2 + $0x1c8] sm:$0xff] }
 0x1b4   : > { %15883 = vst [vmem:[#allocation40_spill] sm:$0xff] %v11865_v48  ;;  %9791 = vrot.lane.b32.xlu0 %v9775_v19, %s15831_s19  ;;  %v11877_v48 = vpack.c.bf16 %v2914_v30, %v2913_v51  ;;  %v9795_v20 = vpack.i.bf16 %v1566_v46, %v1376_v11  ;;  %v2916_v51 = vld [vmem:[%s15715_s5 + $0xc8] sm:$0xff] }
 0x1b5   : > { %2197 = vrot.lane.b32.xlu1 %v1406_v34, %s15827_s0  ;;  %v2915_v34 = vld [vmem:[%s15715_s5 + $0xc0] sm:$0xff] }
 0x1b6   : > { %v11879_v18 = vpop.permute.xlu0 %2165  ;;  %9501 = vmatpush1.bf16.msra.mxu1 %v11877_v48  ;;  %v11893_v30 = vpack.c.bf16 %v2916_v51, %v2915_v34  ;;  %v9800_v51 = vpack.i.bf16 %v1598_v29, %v1408_v45 }
 0x1b7   : > { %15884 = vst [vmem:[#allocation41_spill] sm:$0xff] %v11879_v18  ;;  %v11881_v19 = vpop.permute.xlu1 %2291  ;;  %9488 = vmatprep.subr.bf16.mxu1 %v15877_v1 }
 0x1b8   : > { %15885 = vst [vmem:[#allocation42_spill] sm:$0xff] %v11881_v19  ;;  %2583 = vrot.lane.b32.xlu0 %v1598_v29, %s15833_s26 }
 0x1b9   : > { %2455 = vrot.lane.b32.xlu1 %v1566_v46, %s15823_s27  ;;  %v11910_v46 = vld [vmem:[%s15715_s5 + $0xd0] sm:$0xff] }
 0x1ba   : > { %v11895_v18 = vpop.permute.xlu0 %2289  ;;  %9502 = vmatpush1.bf16.msra.mxu1 %v11893_v30 }
 0x1bb   : > { %15886 = vst [vmem:[#allocation43_spill] sm:$0xff] %v11895_v18  ;;  %v11897_v19 = vpop.permute.xlu1 %2171  ;;  %9489 = vmatprep.subr.mxu1 %v15888_v17  ;;  %v9805_v18 = vpack.i.bf16 %v11903_v27, %v11901_v55 }
 0x1bc   : > { %15887 = vst [vmem:[#allocation44_spill] sm:$0xff] %v11897_v19  ;;  %9796 = vrot.lane.b32.xlu0 %v9795_v20, %s15771_s21 }
 0x1bd   : > { %2203 = vrot.lane.b32.xlu1 %v1598_v29, %s15827_s0 }
 0x1be   : > { %v11912_v34 = vpop.permute.xlu0 %9636  ;;  %9503 = vmatpush1.msra.mxu1 %v11910_v46 }
 0x1bf   : > { %15889 = vst [vmem:[#allocation45_spill] sm:$0xff] %v11912_v34  ;;  %v11914_v19 = vpop.permute.xlu1 %9646 }
 0x1c0   : > { %15890 = vst [vmem:[#allocation46_spill] sm:$0xff] %v11914_v19  ;;  %9801 = vrot.lane.b32.xlu0 %v9800_v51, %s15839_s22  ;;  %v1568_v19 = vld [vmem:[#allocation2 + $0x1f0] sm:$0xff] }
 0x1c1   : > { %9806 = vrot.lane.b32.xlu1 %v9805_v18, %s15825_s18 }
 0x1c2   : > { %v11921_v44 = vpop.permute.xlu0 %9641 }
 0x1c3   : > { %15891 = vst [vmem:[#allocation47_spill] sm:$0xff] %v11921_v44  ;;  %v11923_v47 = vpop.permute.xlu1 %9651  ;;  %v1600_v44 = vld [vmem:[#allocation2 + $0x1f1] sm:$0xff] }
 0x1c4   : > { %15892 = vst [vmem:[#allocation48_spill] sm:$0xff] %v11923_v47  ;;  %2325 = vrot.lane.b32.xlu0 %v11901_v55, %s15837_s23  ;;  %v11941_v47 = vld [vmem:[#allocation2 + $0x1e7] sm:$0xff] }
 0x1c5   : > { %9811 = vrot.lane.b32.xlu1 %v9795_v20, %s15831_s19  ;;  %v11943_v20 = vld [vmem:[#allocation2 + $0x1ef] sm:$0xff] }
 0x1c6   : > { %v11928_v29 = vpop.permute.xlu0 %2169 }
 0x1c7   : > { %15893 = vst [vmem:[#allocation49_spill] sm:$0xff] %v11928_v29  ;;  %v11930_v34 = vpop.permute.xlu1 %2295 }
 0x1c8   : > { %15894 = vst [vmem:[#allocation50_spill] sm:$0xff] %v11930_v34  ;;  %2581 = vrot.lane.b32.xlu0 %v1408_v45, %s15833_s26 }
 0x1c9   : > { %2453 = vrot.lane.b32.xlu1 %v1376_v11, %s15823_s27  ;;  %v9825_v11 = vpack.i.bf16 %v11943_v20, %v11941_v47 }
 0x1ca   : > { %v11934_v51 = vpop.permute.xlu0 %2293 }
 0x1cb   : > { %15895 = vst [vmem:[#allocation51_spill] sm:$0xff] %v11934_v51  ;;  %v11936_v18 = vpop.permute.xlu1 %2175  ;;  %v1472_v51 = vld [vmem:[#allocation2 + $0x1e8] sm:$0xff] }
 0x1cc   : > { %15896 = vst [vmem:[#allocation52_spill] sm:$0xff] %v11936_v18  ;;  %2327 = vrot.lane.b32.xlu0 %v11903_v27, %s15837_s23  ;;  %v9830_v56 = vpack.i.bf16 %v1568_v19, %v1472_v51 }
 0x1cd   : > { %2201 = vrot.lane.b32.xlu1 %v1408_v45, %s15827_s0 }
 0x1ce   : > { %v11945_v29 = vpop.permute.xlu0 %9666 }
 0x1cf   : > { %15897 = vst [vmem:[#allocation53_spill] sm:$0xff] %v11945_v29  ;;  %v11947_v34 = vpop.permute.xlu1 %9656 }
 0x1d0   : > { %15898 = vst [vmem:[#allocation54_spill] sm:$0xff] %v11947_v34  ;;  %2587 = vrot.lane.b32.xlu0 %v1600_v44, %s15833_s26 }
 0x1d1   : > { %2459 = vrot.lane.b32.xlu1 %v1568_v19, %s15823_s27 }
 0x1d2   : > { %v11953_v18 = vpop.permute.xlu0 %9671 }
 0x1d3   : > { %15899 = vst [vmem:[#allocation55_spill] sm:$0xff] %v11953_v18  ;;  %v11955_v45 = vpop.permute.xlu1 %9661 }
 0x1d4   : > { %15900 = vst [vmem:[#allocation56_spill] sm:$0xff] %v11955_v45  ;;  %9826 = vrot.lane.b32.xlu0 %v9825_v11, %s15825_s18  ;;  %v9820_v45 = vpack.i.bf16 %v1600_v44, %v1410_v50 }
 0x1d5   : > { %2207 = vrot.lane.b32.xlu1 %v1600_v44, %s15827_s0 }
 0x1d6   : > { %v11959_v29 = vpop.permute.xlu0 %2173 }
 0x1d7   : > { %15901 = vst [vmem:[#allocation57_spill] sm:$0xff] %v11959_v29  ;;  %v11961_v34 = vpop.permute.xlu1 %2299  ;;  %v3279_v29 = vld [vmem:[%s15717_s7] sm:$0xff] }
 0x1d8   : > { %15902 = vst [vmem:[#allocation58_spill] sm:$0xff] %v11961_v34  ;;  %9831 = vrot.lane.b32.xlu0 %v9830_v56, %s15831_s19  ;;  %v1570_v34 = vld [vmem:[#allocation2 + $0x210] sm:$0xff] }
 0x1d9   : > { %9816 = vrot.lane.b32.xlu1 %v9830_v56, %s15771_s21  ;;  %v3280_v56 = vld [vmem:[%s15717_s7 + $0x8] sm:$0xff]  ;;  %s15835_s21 = smov 32  }
 0x1da   : > { %v11965_v61 = vpop.permute.xlu0 %2297  ;;  %v11983_v44 = vpack.c.bf16 %v3280_v56, %v3279_v29  ;;  %v581_v29 = vld [vmem:[%s15911_s30] sm:$0xff] }
 0x1db   : > { %15903 = vst [vmem:[#allocation59_spill] sm:$0xff] %v11965_v61  ;;  %v11967_v18 = vpop.permute.xlu1 %2179 }
 0x1dc   : > { %15904 = vst [vmem:[#allocation60_spill] sm:$0xff] %v11967_v18  ;;  %2329 = vrot.lane.b32.xlu0 %v11941_v47, %s15837_s23  ;;  %9375 = vmatprep.subr.bf16.mxu1 %v11983_v44 }
 0x1dd   : > { %9821 = vrot.lane.b32.xlu1 %v9820_v45, %s15839_s22 }
 0x1de   : > { %v11972_v11 = vpop.permute.xlu0 %9676 }
 0x1df   : > { %15905 = vst [vmem:[#allocation61_spill] sm:$0xff] %v11972_v11  ;;  %v11974_v19 = vpop.permute.xlu1 %9686  ;;  %v1602_v11 = vld [vmem:[#allocation2 + $0x211] sm:$0xff] }
 0x1e0   : > { %15906 = vst [vmem:[#allocation62_spill] sm:$0xff] %v11974_v19  ;;  %2585 = vrot.lane.b32.xlu0 %v1410_v50, %s15833_s26 }
 0x1e1   : > { %2457 = vrot.lane.b32.xlu1 %v1472_v51, %s15823_s27  ;;  %v582_v51 = vld [vmem:[%s15911_s30 + $0x8] sm:$0xff] }
 0x1e2   : > { %v11986_v18 = vpop.permute.xlu0 %9681  ;;  %v9327_v56 = vpack.c.bf16 %v582_v51, %v581_v29  ;;  %v12016_v29 = vld [vmem:[%s11395_s20 + $0x8] sm:$0xff] }
 0x1e3   : > { %15907 = vst [vmem:[#allocation63_spill] sm:$0xff] %v11986_v18  ;;  %v11989_v45 = vpop.permute.xlu1 %9691 }
 0x1e4   : > { %15908 = vst [vmem:[#allocation64_spill] sm:$0xff] %v11989_v45  ;;  %2331 = vrot.lane.b32.xlu0 %v11943_v20, %s15837_s23  ;;  %9328 = vmatprep.subr.bf16.mxu0 %v9327_v56  ;;  %v1443_v45 = vld [vmem:[#allocation2 + $0x20f] sm:$0xff] }
 0x1e5   : > { %2205 = vrot.lane.b32.xlu1 %v1410_v50, %s15827_s0  ;;  %9330 = vmatpush3.bf16.msra.mxu0 %v9327_v56 }
 0x1e6   : > { %v11994_v19 = vpop.permute.xlu0 %2177  ;;  %9335 = vmatprep.subr.bf16.mxu0 %v15877_v1 }
 0x1e7   : > { %15909 = vst [vmem:[#allocation65_spill] sm:$0xff] %v11994_v19  ;;  %v11996_v61 = vpop.permute.xlu1 %2303  ;;  %v1537_v19 = vld [vmem:[#allocation2 + $0x207] sm:$0xff] }
 0x1e8   : > { %15910 = vst [vmem:[#allocation66_spill] sm:$0xff] %v11996_v61  ;;  %2591 = vrot.lane.b32.xlu0 %v1602_v11, %s15833_s26  ;;  %9046 = vmatmul.mubr.msk.f32.vlgmr.msra.gmra.mrb[0].mxu0 %vm590_vm0, %v12016_v29  ;;  %v9835_v56 = vpack.i.bf16 %v1443_v45, %v1537_v19 }
 0x1e9   : > { %2463 = vrot.lane.b32.xlu1 %v1570_v34, %s15823_s27  ;;  %9337 = vmatpush1.bf16.msra.mxu0 %v11667_v5  ;;  %v12041_v5 = vld [vmem:[%s11395_s20 + $0x20] sm:$0xff] }
 0x1ea   : > { %v12006_v50 = vpop.permute.xlu0 %2301  ;;  %9338 = vmatprep.subr.bf16.mxu0 %v15877_v1 }
 0x1eb   : > { %15912 = vst [vmem:[#allocation67_spill] sm:$0xff] %v12006_v50  ;;  %v12008_v18 = vpop.permute.xlu1 %2183  ;;  %v12023_v50 = vld [vmem:[%s11395_s20 + $0x10] sm:$0xff] }
 0x1ec   : > { %15913 = vst [vmem:[#allocation68_spill] sm:$0xff] %v12008_v18  ;;  %2333 = vrot.lane.b32.xlu0 %v1537_v19, %s15837_s23  ;;  %v1601_v18 = vld [vmem:[#allocation2 + $0x209] sm:$0xff]  ;;  %9048 = vmatprep.mubr.msk.f32.mxu0 %vm590_vm0, %v12023_v50 }
 0x1ed   : > { %2211 = vrot.lane.b32.xlu1 %v1602_v11, %s15827_s0  ;;  %v1474_v11 = vld [vmem:[#allocation2 + $0x208] sm:$0xff]  ;;  %9340 = vmatpush1.bf16.msra.mxu0 %v11684_v16 }
 0x1ee   : > { %v12013_v61 = vpop.permute.xlu0 %9706  ;;  %v9840_v63 = vpack.i.bf16 %v1570_v34, %v1474_v11  ;;  %9341 = vmatprep.subr.bf16.mxu0 %v15877_v1 }
 0x1ef   : > { %15914 = vst [vmem:[#allocation69_spill] sm:$0xff] %v12013_v61  ;;  %v12020_v51 = vpop.permute.xlu1 %9696 }
 0x1f0   : > { %15915 = vst [vmem:[#allocation70_spill] sm:$0xff] %v12020_v51  ;;  %2589 = vrot.lane.b32.xlu0 %v1601_v18, %s15833_s26  ;;  %v12034_v51 = vld [vmem:[%s11395_s20 + $0x18] sm:$0xff] }
 0x1f1   : > { %9836 = vrot.lane.b32.xlu1 %v9835_v56, %s15825_s18  ;;  %9049 = vmatmul.mubr.msk.f32.gmra.mrb[2].mxu0 %vm590_vm0, %v12034_v51  ;;  %s16095_s18 = smov 96  }
 0x1f2   : > { %v12031_v61 = vpop.permute.xlu0 %9711  ;;  %9051 = vmatprep.mubr.msk.f32.mxu0 %vm590_vm0, %v12041_v5  ;;  %9343 = vmatpush1.bf16.msra.mxu0 %v11702_v26  ;;  %v12091_v26 = vld [vmem:[%s11395_s20 + $0x48] sm:$0xff] }
 0x1f3   : > { %15916 = vst [vmem:[#allocation71_spill] sm:$0xff] %v12031_v61  ;;  %v12038_v19 = vpop.permute.xlu1 %9701  ;;  %v12052_v61 = vld [vmem:[%s11395_s20 + $0x28] sm:$0xff]  ;;  %9344 = vmatprep.subr.bf16.mxu0 %v15877_v1 }
 0x1f4   : > { %15917 = vst [vmem:[#allocation72_spill] sm:$0xff] %v12038_v19  ;;  %2335 = vrot.lane.b32.xlu0 %v1443_v45, %s15837_s23  ;;  %v12059_v19 = vld [vmem:[%s11395_s20 + $0x30] sm:$0xff] }
 0x1f5   : > { %9841 = vrot.lane.b32.xlu1 %v9840_v63, %s15831_s19  ;;  %9052 = vmatmul.mubr.msk.f32.gmra.mrb[4].mxu0 %vm590_vm0, %v12052_v61  ;;  %v12071_v63 = vld [vmem:[%s11395_s20 + $0x38] sm:$0xff] }
 0x1f6   : > { %v12049_v56 = vpop.permute.xlu0 %2181  ;;  %9054 = vmatprep.mubr.msk.f32.mxu0 %vm590_vm0, %v12059_v19  ;;  %9346 = vmatpush1.bf16.msra.mxu0 %v11723_v43 }
 0x1f7   : > { %15918 = vst [vmem:[#allocation73_spill] sm:$0xff] %v12049_v56  ;;  %v12056_v34 = vpop.permute.xlu1 %2187  ;;  %9347 = vmatprep.subr.bf16.mxu0 %v15877_v1  ;;  %v1547_v56 = vld [vmem:[#allocation2 + $0xa8] sm:$0xff] }
 0x1f8   : > { %15919 = vst [vmem:[#allocation74_spill] sm:$0xff] %v12056_v34  ;;  %2309 = vrot.lane.b32.xlu0 %v11648_v59, %s15837_s23  ;;  %v12078_v34 = vld [vmem:[%s11395_s20 + $0x40] sm:$0xff] }
 0x1f9   : > { %2461 = vrot.lane.b32.xlu1 %v1474_v11, %s15823_s27  ;;  %9055 = vmatmul.mubr.msk.f32.gmra.mrb[6].mxu0 %vm590_vm0, %v12071_v63 }
 0x1fa   : > { %v12068_v16 = vpop.permute.xlu0 %2305  ;;  %9057 = vmatprep.mubr.msk.f32.mxu0 %vm590_vm0, %v12078_v34  ;;  %9349 = vmatpush1.bf16.msra.mxu0 %v11741_v57 }
 0x1fb   : > { %15920 = vst [vmem:[#allocation75_spill] sm:$0xff] %v12068_v16  ;;  %v12075_v45 = vpop.permute.xlu1 %9726  ;;  %9350 = vmatprep.subr.bf16.mxu0 %v15877_v1  ;;  %v12205_v16 = vld [vmem:[%s11395_s20 + $0xa8] sm:$0xff] }
 0x1fc   : > { %15921 = vst [vmem:[#allocation76_spill] sm:$0xff] %v12075_v45  ;;  %2313 = vrot.lane.b32.xlu0 %v11709_v31, %s15837_s23  ;;  %v12098_v45 = vld [vmem:[%s11395_s20 + $0x50] sm:$0xff]  ;;  %v12110_v31 = vld [vmem:[%s11395_s20 + $0x58] sm:$0xff]  ;;  %15938 = vst [vmem:[#allocation93_spill] sm:$0xff] %v12205_v16 }
 0x1fd   : > { %2307 = vrot.lane.b32.xlu1 %v11622_v41, %s15837_s23  ;;  %9058 = vmatmul.mubr.msk.f32.gmra.mrb[8].mxu0 %vm590_vm0, %v12091_v26 }
 0x1fe   : > { %v12088_v59 = vpop.permute.xlu0 %9716  ;;  %9060 = vmatprep.mubr.msk.f32.mxu0 %vm590_vm0, %v12098_v45  ;;  %9352 = vmatpush1.bf16.msra.mxu0 %v11761_v13  ;;  %v1541_v13 = vld [vmem:[#allocation2 + $0x48] sm:$0xff] }
 0x1ff   : > { %15922 = vst [vmem:[#allocation77_spill] sm:$0xff] %v12088_v59  ;;  %v12095_v11 = vpop.permute.xlu1 %9731  ;;  %v12117_v59 = vld [vmem:[%s11395_s20 + $0x60] sm:$0xff]  ;;  %9353 = vmatprep.subr.bf16.mxu0 %v15877_v1 }
 0x200   : > { %15923 = vst [vmem:[#allocation78_spill] sm:$0xff] %v12095_v11  ;;  %2317 = vrot.lane.b32.xlu0 %v11747_v2, %s15837_s23  ;;  %v1543_v11 = vld [vmem:[#allocation2 + $0x68] sm:$0xff] }
 0x201   : > { %2209 = vrot.lane.b32.xlu1 %v1601_v18, %s15827_s0  ;;  %9061 = vmatmul.mubr.msk.f32.gmra.mrb[10].mxu0 %vm590_vm0, %v12110_v31  ;;  %v12130_v18 = vld [vmem:[%s11395_s20 + $0x68] sm:$0xff]  ;;  %s16094_s0 = smov 64  }
 0x202   : > { %v12107_v41 = vpop.permute.xlu0 %9721  ;;  %9063 = vmatprep.mubr.msk.f32.mxu0 %vm590_vm0, %v12117_v59  ;;  %9355 = vmatpush1.bf16.msra.mxu0 %v11783_v36  ;;  %v12156_v36 = vld [vmem:[%s11395_s20 + $0x80] sm:$0xff] }
 0x203   : > { %15924 = vst [vmem:[#allocation79_spill] sm:$0xff] %v12107_v41  ;;  %v12114_v43 = vpop.permute.xlu1 %2191  ;;  %v12137_v41 = vld [vmem:[%s11395_s20 + $0x70] sm:$0xff]  ;;  %9356 = vmatprep.subr.bf16.mxu0 %v15877_v1 }
 0x204   : > { %15925 = vst [vmem:[#allocation80_spill] sm:$0xff] %v12114_v43  ;;  %2321 = vrot.lane.b32.xlu0 %v11829_v15, %s15837_s23 }
 0x205   : > { %2311 = vrot.lane.b32.xlu1 %v11650_v60, %s15837_s23  ;;  %9064 = vmatmul.mubr.msk.f32.gmra.mrb[12].mxu0 %vm590_vm0, %v12130_v18 }
 0x206   : > { %v12127_v57 = vpop.permute.xlu0 %2185  ;;  %9066 = vmatprep.mubr.msk.f32.mxu0 %vm590_vm0, %v12137_v41  ;;  %9358 = vmatpush1.bf16.msra.mxu0 %v11801_v9  ;;  %v12175_v9 = vld [vmem:[%s11395_s20 + $0x90] sm:$0xff] }
 0x207   : > { %15926 = vst [vmem:[#allocation81_spill] sm:$0xff] %v12127_v57  ;;  %v12134_v43 = vpop.permute.xlu1 %9736  ;;  %9359 = vmatprep.subr.bf16.mxu0 %v15877_v1  ;;  %15933 = vst [vmem:[#allocation88_spill] sm:$0xff] %v12175_v9 }
 0x208   : > { %15927 = vst [vmem:[#allocation82_spill] sm:$0xff] %v12134_v43  ;;  %2405 = vrot.lane.b32.xlu0 %v1541_v13, %s15823_s27  ;;  %v12149_v43 = vld [vmem:[%s11395_s20 + $0x78] sm:$0xff]  ;;  %v12168_v13 = vld [vmem:[%s11395_s20 + $0x88] sm:$0xff] }
 0x209   : > { %2315 = vrot.lane.b32.xlu1 %v11711_v33, %s15837_s23  ;;  %9067 = vmatmul.mubr.msk.f32.gmra.mrb[14].mxu0 %vm590_vm0, %v12149_v43  ;;  %15931 = vst [vmem:[#allocation86_spill] sm:$0xff] %v12168_v13 }
 0x20a   : > { %v12146_v60 = vpop.permute.xlu0 %9746  ;;  %9069 = vmatprep.mubr.msk.f32.mxu0 %vm590_vm0, %v12156_v36  ;;  %9361 = vmatpush1.bf16.msra.mxu0 %v11821_v52  ;;  %v12194_v52 = vld [vmem:[%s11395_s20 + $0xa0] sm:$0xff] }
 0x20b   : > { %15928 = vst [vmem:[#allocation83_spill] sm:$0xff] %v12146_v60  ;;  %v12153_v57 = vpop.permute.xlu1 %9741  ;;  %v1545_v60 = vld [vmem:[#allocation2 + $0x88] sm:$0xff]  ;;  %9362 = vmatprep.subr.bf16.mxu0 %v15877_v1  ;;  %15937 = vst [vmem:[#allocation92_spill] sm:$0xff] %v12194_v52 }
 0x20c   : > { %15929 = vst [vmem:[#allocation84_spill] sm:$0xff] %v12153_v57  ;;  %2409 = vrot.lane.b32.xlu0 %v1543_v11, %s15823_s27 }
 0x20d   : > { %2319 = vrot.lane.b32.xlu1 %v11751_v4, %s15837_s23  ;;  %9070 = vmatmul.mubr.msk.f32.gmra.mrb[16].mxu0 %vm590_vm0, %v12168_v13 }
 0x20e   : > { %v12165_v33 = vpop.permute.xlu0 %9751  ;;  %9072 = vmatprep.mubr.msk.f32.mxu0 %vm590_vm0, %v12175_v9  ;;  %9364 = vmatpush1.bf16.msra.mxu0 %v11843_v40  ;;  %v12212_v40 = vld [vmem:[%s11395_s20 + $0xb0] sm:$0xff] }
 0x20f   : > { %15930 = vst [vmem:[#allocation85_spill] sm:$0xff] %v12165_v33  ;;  %v12172_v57 = vpop.permute.xlu1 %2195  ;;  %v12187_v33 = vld [vmem:[%s11395_s20 + $0x98] sm:$0xff]  ;;  %9365 = vmatprep.subr.bf16.mxu0 %v15877_v1  ;;  %15940 = vst [vmem:[#allocation95_spill] sm:$0xff] %v12212_v40 }
 0x210   : > { %15932 = vst [vmem:[#allocation87_spill] sm:$0xff] %v12172_v57  ;;  %2413 = vrot.lane.b32.xlu0 %v1545_v60, %s15823_s27  ;;  %15935 = vst [vmem:[#allocation90_spill] sm:$0xff] %v12187_v33  ;;  %v1542_v60 = vld [vmem:[#allocation2 + $0x50] sm:$0xff] }
 0x211   : > { %2323 = vrot.lane.b32.xlu1 %v11831_v12, %s15837_s23  ;;  %9073 = vmatmul.mubr.msk.f32.gmra.mrb[18].mxu0 %vm590_vm0, %v12187_v33 }
 0x212   : > { %v12184_v11 = vpop.permute.xlu0 %2189  ;;  %9075 = vmatprep.mubr.msk.f32.mxu0 %vm590_vm0, %v12194_v52  ;;  %9367 = vmatpush1.bf16.msra.mxu0 %v11861_v0  ;;  %v12230_v0 = vld [vmem:[%s11395_s20 + $0xc0] sm:$0xff]  ;;  %v1573_v52 = vld [vmem:[#allocation2 + $0x49] sm:$0xff] }
 0x213   : > { %15934 = vst [vmem:[#allocation89_spill] sm:$0xff] %v12184_v11  ;;  %v12191_v57 = vpop.permute.xlu1 %9766  ;;  %9368 = vmatprep.subr.bf16.mxu0 %v15877_v1  ;;  %15942 = vst [vmem:[#allocation97_spill] sm:$0xff] %v12230_v0 }
 0x214   : > { %15936 = vst [vmem:[#allocation91_spill] sm:$0xff] %v12191_v57  ;;  %2417 = vrot.lane.b32.xlu0 %v1547_v56, %s15823_s27  ;;  %v1544_v56 = vld [vmem:[#allocation2 + $0x70] sm:$0xff] }
 0x215   : > { %2407 = vrot.lane.b32.xlu1 %v1542_v60, %s15823_s27  ;;  %9076 = vmatmul.mubr.msk.f32.gmra.mrb[20].mxu0 %vm590_vm0, %v12205_v16 }
 0x216   : > { %v12202_v11 = vpop.permute.xlu0 %9756  ;;  %9078 = vmatprep.mubr.msk.f32.mxu0 %vm590_vm0, %v12212_v40  ;;  %9370 = vmatpush1.bf16.msra.mxu0 %v11877_v48  ;;  %v12248_v48 = vld [vmem:[%s11395_s20 + $0xd0] sm:$0xff] }
 0x217   : > { %v12209_v57 = vpop.permute.xlu1 %9771  ;;  %9371 = vmatprep.subr.bf16.mxu0 %v15877_v1  ;;  %15945 = vst [vmem:[#allocation100_spill] sm:$0xff] %v12248_v48  ;;  %v9758_v53 = vunpack.i.l.bf16 %v12202_v11  ;;  %v9759_v49 = vunpack.i.h.bf16 %v12202_v11 }
 0x218   : > { %15939 = vst [vmem:[#allocation94_spill] sm:$0xff] %v12209_v57  ;;  %2421 = vrot.lane.b32.xlu0 %v1549_v37, %s15823_s27  ;;  %v1546_v37 = vld [vmem:[#allocation2 + $0x90] sm:$0xff] }
 0x219   : > { %2411 = vrot.lane.b32.xlu1 %v1544_v56, %s15823_s27  ;;  %9079 = vmatmul.mubr.msk.f32.gmra.mrb[22].mxu0 %vm590_vm0, %v12223_v62  ;;  %v1554_v62 = vld [vmem:[#allocation2 + $0x110] sm:$0xff]  ;;  %v2653_v33 = vsel %vm1210_vm1, %v11747_v2, %v9758_v53 }
 0x21a   : > { %v12220_v60 = vpop.permute.xlu0 %9761  ;;  %9081 = vmatprep.mubr.msk.f32.mxu0 %vm590_vm0, %v12230_v0  ;;  %9373 = vmatpush1.bf16.msra.mxu0 %v11893_v30  ;;  %v12266_v30 = vld [vmem:[%s11395_s20 + $0xe0] sm:$0xff]  ;;  %v1557_v0 = vld [vmem:[#allocation2 + $0x148] sm:$0xff] }
 0x21b   : > { %v12227_v57 = vpop.permute.xlu1 %2199  ;;  %3074 = vmatprep.subr.mxu0 %v15888_v17  ;;  %15947 = vst [vmem:[#allocation102_spill] sm:$0xff] %v12266_v30  ;;  %v12277_v17 = vld [vmem:[%s11395_s20 + $0xe8] sm:$0xff] }
 0x21c   : > { %2425 = vrot.lane.b32.xlu0 %v1551_v58, %s15823_s27  ;;  %v1548_v58 = vld [vmem:[#allocation2 + $0xb0] sm:$0xff]  ;;  %15948 = vst [vmem:[#allocation103_spill] sm:$0xff] %v12277_v17 }
 0x21d   : > { %2415 = vrot.lane.b32.xlu1 %v1546_v37, %s15823_s27  ;;  %9082 = vmatmul.mubr.msk.f32.gmra.mrb[24].mxu0 %vm590_vm0, %v12241_v54 }
 0x21e   : > { %v12238_v56 = vpop.permute.xlu0 %2193  ;;  %9084 = vmatprep.mubr.msk.f32.mxu0 %vm590_vm0, %v12248_v48  ;;  %v1555_v48 = vld [vmem:[#allocation2 + $0x128] sm:$0xff]  ;;  %3075 = vmatpush1.msra.mxu0 %v11910_v46  ;;  %v1552_v46 = vld [vmem:[#allocation2 + $0xf0] sm:$0xff] }
 0x21f   : > { %15943 = vst [vmem:[#allocation98_spill] sm:$0xff] %v12238_v56  ;;  %v12245_v39 = vpop.permute.xlu1 %9776  ;;  %v12259_v56 = vld [vmem:[%s11395_s20 + $0xd8] sm:$0xff]  ;;  %9405 = vmatprep.subr.bf16.mxu0 %v15877_v1 }
 0x220   : > { %2429 = vrot.lane.b32.xlu0 %v1553_v38, %s15823_s27  ;;  %15946 = vst [vmem:[#allocation101_spill] sm:$0xff] %v12259_v56  ;;  %v1550_v38 = vld [vmem:[#allocation2 + $0xd0] sm:$0xff] }
 0x221   : > { %2419 = vrot.lane.b32.xlu1 %v1548_v58, %s15823_s27  ;;  %9085 = vmatmul.mubr.msk.f32.gmra.mrb[26].mxu0 %vm590_vm0, %v12259_v56 }
 0x222   : > { %v12256_v37 = vpop.permute.xlu0 %9786  ;;  %9087 = vmatprep.mubr.msk.f32.mxu0 %vm590_vm0, %v12266_v30  ;;  %v12282_v30 = vld [vmem:[%s11395_s20 + $0xf0] sm:$0xff] }
 0x223   : > { %v12263_v54 = vpop.permute.xlu1 %9781  ;;  %15949 = vst [vmem:[#allocation104_spill] sm:$0xff] %v12282_v30  ;;  %v9788_v8 = vunpack.i.l.bf16 %v12256_v37  ;;  %v9789_v7 = vunpack.i.h.bf16 %v12256_v37 }
 0x224   : > { %2433 = vrot.lane.b32.xlu0 %v1555_v48, %s15823_s27 }
 0x225   : > { %2423 = vrot.lane.b32.xlu1 %v1550_v38, %s15823_s27  ;;  %9088 = vmatmul.mubr.msk.f32.gmra.mrb[28].mxu0 %vm590_vm0, %v12277_v17  ;;  %v12291_v38 = vld [vmem:[%s11395_s20 + $0xf8] sm:$0xff] }
 0x226   : > { %v12274_v58 = vpop.permute.xlu0 %9791  ;;  %9090 = vmatprep.mubr.msk.f32.mxu0 %vm590_vm0, %v12282_v30  ;;  %15950 = vst [vmem:[#allocation105_spill] sm:$0xff] %v12291_v38 }
 0x227   : > { %v2198_v56 = vpop.permute.xlu1 %2197  ;;  %v9793_v16 = vunpack.i.l.bf16 %v12274_v58  ;;  %v9794_v53 = vunpack.i.h.bf16 %v12274_v58 }
 0x228   : > { %2437 = vrot.lane.b32.xlu0 %v1557_v0, %s15823_s27 }
 0x229   : > { %2427 = vrot.lane.b32.xlu1 %v1552_v46, %s15823_s27  ;;  %9091 = vmatmul.mubr.msk.f32.gmra.mrb[30].mxu0 %vm590_vm0, %v12291_v38  ;;  %v1556_v46 = vld [vmem:[#allocation2 + $0x130] sm:$0xff] }
 0x22a   : > { %v12288_v48 = vpop.permute.xlu0 %2583 }
 0x22b   : > { %v2456_v17 = vpop.permute.xlu1 %2455 }
 0x22c   : > { %2441 = vrot.lane.b32.xlu0 %v11692_v22, %s15823_s27  ;;  %v9763_v22 = vunpack.i.l.bf16 %v12220_v60 }
 0x22d   : > { %2431 = vrot.lane.b32.xlu1 %v1554_v62, %s15823_s27  ;;  %v1558_v62 = vld [vmem:[#allocation2 + $0x150] sm:$0xff] }
 0x22e   : > { %v12298_v30 = vpop.permute.xlu0 %9796  ;;  %v2686_v42 = vsel %vm2661_vm2, %v2653_v33, %v9763_v22  ;;  %v2654_v33 = vsel %vm1210_vm1, %v11751_v4, %v9759_v49 }
 0x22f   : > { %v12300_v0 = vpop.permute.xlu1 %2203  ;;  %v2719_v9 = vsel %vm2694_vm3, %v2686_v42, %v9788_v8 }
 0x230   : > { %2445 = vrot.lane.b32.xlu0 %v11769_v21, %s15823_s27  ;;  %v2752_v2 = vsel %vm2727_vm5, %v2719_v9, %v9793_v16 }
 0x231   : > { %2435 = vrot.lane.b32.xlu1 %v1556_v46, %s15823_s27  ;;  %v2785_v16 = vsel %vm2760_vm8, %v2752_v2, %v2198_v56  ;;  %v1583_v2 = vld [vmem:[#allocation2 + $0xe9] sm:$0xff] }
 0x232   : > { %v12305_v40 = vpop.permute.xlu0 %9801 }
 0x233   : > { %v12307_v38 = vpop.permute.xlu1 %9806 }
 0x234   : > { %2449 = vrot.lane.b32.xlu0 %v11811_v10, %s15823_s27  ;;  %v1560_v10 = vld [vmem:[#allocation2 + $0x170] sm:$0xff] }
 0x235   : > { %2439 = vrot.lane.b32.xlu1 %v1558_v62, %s15823_s27  ;;  %v9764_v62 = vunpack.i.h.bf16 %v12220_v60  ;;  %v1575_v60 = vld [vmem:[#allocation2 + $0x69] sm:$0xff] }
 0x236   : > { %v2326_v21 = vpop.permute.xlu0 %2325 }
 0x237   : > { %v12316_v46 = vpop.permute.xlu1 %9811  ;;  %v2687_v42 = vsel %vm2661_vm2, %v2654_v33, %v9764_v62  ;;  %v1581_v62 = vld [vmem:[#allocation2 + $0xc9] sm:$0xff] }
 0x238   : > { %2533 = vrot.lane.b32.xlu0 %v1573_v52, %s15833_s26  ;;  %v2817_v52 = vsel %vm590_vm0, %v2198_v56, %v2326_v21  ;;  %v2720_v37 = vsel %vm2694_vm3, %v2687_v42, %v9789_v7 }
 0x239   : > { %2443 = vrot.lane.b32.xlu1 %v1560_v10, %s15823_s27  ;;  %v2753_v58 = vsel %vm2727_vm5, %v2720_v37, %v9794_v53  ;;  %v1579_v10 = vld [vmem:[#allocation2 + $0xa9] sm:$0xff]  ;;  %v1580_v37 = vld [vmem:[#allocation2 + $0xb1] sm:$0xff] }
 0x23a   : > { %v2582_v11 = vpop.permute.xlu0 %2581  ;;  %v2786_v21 = vsel %vm2760_vm8, %v2753_v58, %v12227_v57 }
 0x23b   : > { %v2454_v13 = vpop.permute.xlu1 %2453 }
 0x23c   : > { %v2850_v22 = vsel %vm2825_vm4, %v2817_v52, %v2454_v13  ;;  %2537 = vrot.lane.b32.xlu0 %v1575_v60, %s15833_s26  ;;  %v1577_v13 = vld [vmem:[#allocation2 + $0x89] sm:$0xff]  ;;  %v1578_v52 = vld [vmem:[#allocation2 + $0x91] sm:$0xff]  ;;  %v9778_v60 = vunpack.i.l.bf16 %v12245_v39 }
 0x23d   : > { %2447 = vrot.lane.b32.xlu1 %v11771_v23, %s15823_s27  ;;  %v2883_v8 = vsel %vm2858_vm6, %v2850_v22, %v2582_v11  ;;  %v1576_v11 = vld [vmem:[#allocation2 + $0x71] sm:$0xff]  ;;  %v9783_v22 = vunpack.i.l.bf16 %v12263_v54 }
 0x23e   : > { %8681 = vmatprep.mubr.msk.f32.mxu1 %vm2925_vm7, %v2883_v8  ;;  %v2328_v9 = vpop.permute.xlu0 %2327  ;;  %v1585_v8 = vld [vmem:[#allocation2 + $0x109] sm:$0xff]  ;;  %v2655_v58 = vsel %vm1210_vm1, %v11829_v15, %v9778_v60  ;;  %v1582_v15 = vld [vmem:[#allocation2 + $0xd1] sm:$0xff] }
 0x23f   : > { %v2818_v49 = vsel %vm590_vm0, %v12227_v57, %v2328_v9  ;;  %v12343_v4 = vpop.permute.xlu1 %2201  ;;  %3207 = vmatmul.mubr.f32.vlgmr.msra.gmra.mrb[32].mxu1 %v2785_v16  ;;  %v9779_v16 = vunpack.i.h.bf16 %v12245_v39  ;;  %v9808_v9 = vunpack.i.l.bf16 %v12307_v38  ;;  %v9814_v39 = vunpack.i.h.bf16 %v12316_v46 }
 0x240   : > { %v2851_v23 = vsel %vm2825_vm4, %v2818_v49, %v2456_v17  ;;  %2541 = vrot.lane.b32.xlu0 %v1577_v13, %s15833_s26  ;;  %9377 = vmatpush3.bf16.msra.mxu1 %v11983_v44  ;;  %v1574_v44 = vld [vmem:[#allocation2 + $0x51] sm:$0xff]  ;;  %v9784_v49 = vunpack.i.h.bf16 %v12263_v54  ;;  %v9813_v13 = vunpack.i.l.bf16 %v12316_v46 }
 0x241   : > { %2451 = vrot.lane.b32.xlu1 %v11807_v3, %s15823_s27  ;;  %v2884_v7 = vsel %vm2858_vm6, %v2851_v23, %v12288_v48  ;;  %9378 = vmatprep.subr.bf16.mxu1 %v15877_v1  ;;  %v9809_v23 = vunpack.i.h.bf16 %v12307_v38  ;;  %v2656_v54 = vsel %vm1210_vm1, %v11831_v12, %v9779_v16  ;;  %v1589_v16 = vld [vmem:[#allocation2 + $0x149] sm:$0xff] }
 0x242   : > { %v12354_v56 = vpop.permute.xlu0 %2587  ;;  %8682 = vmatprep.mubr.msk.f32.mxu1 %vm2925_vm7, %v2884_v7 }
 0x243   : > { %v2460_v17 = vpop.permute.xlu1 %2459  ;;  %3212 = vmatmul.mubr.f32.gmra.mrb[34].mxu1 %v2786_v21  ;;  %v2688_v21 = vsel %vm2661_vm2, %v2655_v58, %v9783_v22 }
 0x244   : > { %2545 = vrot.lane.b32.xlu0 %v1579_v10, %s15833_s26  ;;  %v2721_v38 = vsel %vm2694_vm3, %v2688_v21, %v9808_v9 }
 0x245   : > { %2535 = vrot.lane.b32.xlu1 %v1574_v44, %s15833_s26 }
 0x246   : > { %v12361_v3 = vpop.permute.xlu0 %9826 }
 0x247   : > { %v12363_v48 = vpop.permute.xlu1 %2207 }
 0x248   : > { %2549 = vrot.lane.b32.xlu0 %v1581_v62, %s15833_s26  ;;  %v1587_v62 = vld [vmem:[#allocation2 + $0x129] sm:$0xff] }
 0x249   : > { %2539 = vrot.lane.b32.xlu1 %v1576_v11, %s15833_s26 }
 0x24a   : > { %v12367_v53 = vpop.permute.xlu0 %9831 }
 0x24b   : > { %v12369_v57 = vpop.permute.xlu1 %9816 }
 0x24c   : > { %2553 = vrot.lane.b32.xlu0 %v1583_v2, %s15833_s26  ;;  %v2689_v2 = vsel %vm2661_vm2, %v2656_v54, %v9784_v49  ;;  %v1584_v49 = vld [vmem:[#allocation2 + $0xf1] sm:$0xff] }
 0x24d   : > { %2543 = vrot.lane.b32.xlu1 %v1578_v52, %s15833_s26  ;;  %v2754_v52 = vsel %vm2727_vm5, %v2721_v38, %v9813_v13  ;;  %v1590_v54 = vld [vmem:[#allocation2 + $0x151] sm:$0xff]  ;;  %v9803_v38 = vunpack.i.l.bf16 %v12305_v40 }
 0x24e   : > { %v2330_v33 = vpop.permute.xlu0 %2329  ;;  %v2787_v12 = vsel %vm2760_vm8, %v2754_v52, %v12343_v4  ;;  %v9828_v52 = vunpack.i.l.bf16 %v12361_v3 }
 0x24f   : > { %v12375_v42 = vpop.permute.xlu1 %9821  ;;  %v2819_v10 = vsel %vm590_vm0, %v12343_v4, %v2330_v33  ;;  %v2722_v33 = vsel %vm2694_vm3, %v2689_v2, %v9809_v23 }
 0x250   : > { %2557 = vrot.lane.b32.xlu0 %v1585_v8, %s15833_s26  ;;  %v2755_v9 = vsel %vm2727_vm5, %v2722_v33, %v9814_v39  ;;  %v9833_v33 = vunpack.i.l.bf16 %v12367_v53 }
 0x251   : > { %2547 = vrot.lane.b32.xlu1 %v1580_v37, %s15833_s26  ;;  %v2788_v58 = vsel %vm2760_vm8, %v2755_v9, %v12300_v0  ;;  %v9829_v9 = vunpack.i.h.bf16 %v12361_v3 }
 0x252   : > { %v2586_v7 = vpop.permute.xlu0 %2585 }
 0x253   : > { %v2458_v44 = vpop.permute.xlu1 %2457 }
 0x254   : > { %v2852_v11 = vsel %vm2825_vm4, %v2819_v10, %v2458_v44  ;;  %2561 = vrot.lane.b32.xlu0 %v1587_v62, %s15833_s26  ;;  %v1593_v10 = vld [vmem:[#allocation2 + $0x189] sm:$0xff] }
 0x255   : > { %2551 = vrot.lane.b32.xlu1 %v1582_v15, %s15833_s26  ;;  %v2885_v46 = vsel %vm2858_vm6, %v2852_v11, %v2586_v7  ;;  %v1591_v7 = vld [vmem:[#allocation2 + $0x169] sm:$0xff]  ;;  %v9798_v11 = vunpack.i.l.bf16 %v12298_v30 }
 0x256   : > { %v2332_v60 = vpop.permute.xlu0 %2331  ;;  %8683 = vmatprep.mubr.msk.f32.mxu1 %vm2925_vm7, %v2885_v46  ;;  %v9799_v46 = vunpack.i.h.bf16 %v12298_v30 }
 0x257   : > { %v2820_v22 = vsel %vm590_vm0, %v12300_v0, %v2332_v60  ;;  %v2206_v8 = vpop.permute.xlu1 %2205  ;;  %3217 = vmatmul.mubr.f32.gmra.mrb[36].mxu1 %v2787_v12  ;;  %v1595_v0 = vld [vmem:[#allocation2 + $0x1a9] sm:$0xff]  ;;  %v1592_v60 = vld [vmem:[#allocation2 + $0x171] sm:$0xff]  ;;  %v9804_v12 = vunpack.i.h.bf16 %v12305_v40 }
 0x258   : > { %v2853_v37 = vsel %vm2825_vm4, %v2820_v22, %v2460_v17  ;;  %2565 = vrot.lane.b32.xlu0 %v1589_v16, %s15833_s26  ;;  %v1586_v17 = vld [vmem:[#allocation2 + $0x111] sm:$0xff]  ;;  %v2657_v16 = vsel %vm1210_vm1, %v11901_v55, %v9798_v11 }
 0x259   : > { %2555 = vrot.lane.b32.xlu1 %v1584_v49, %s15833_s26  ;;  %v2886_v4 = vsel %vm2858_vm6, %v2853_v37, %v12354_v56  ;;  %v1588_v56 = vld [vmem:[#allocation2 + $0x131] sm:$0xff]  ;;  %v2690_v30 = vsel %vm2661_vm2, %v2657_v16, %v9803_v38  ;;  %v9834_v49 = vunpack.i.h.bf16 %v12367_v53 }
 0x25a   : > { %v2592_v13 = vpop.permute.xlu0 %2591  ;;  %8684 = vmatprep.mubr.msk.f32.mxu1 %vm2925_vm7, %v2886_v4  ;;  %v2723_v55 = vsel %vm2694_vm3, %v2690_v30, %v9828_v52  ;;  %v1596_v38 = vld [vmem:[#allocation2 + $0x1b1] sm:$0xff]  ;;  %v9824_v52 = vunpack.i.h.bf16 %v12375_v42 }
 0x25b   : > { %v2464_v23 = vpop.permute.xlu1 %2463  ;;  %3222 = vmatmul.mubr.f32.gmra.mrb[38].mxu1 %v2788_v58  ;;  %v2658_v58 = vsel %vm1210_vm1, %v11903_v27, %v9799_v46  ;;  %v2756_v53 = vsel %vm2727_vm5, %v2723_v55, %v9833_v33  ;;  %v9819_v46 = vunpack.i.h.bf16 %v12369_v57 }
 0x25c   : > { %2569 = vrot.lane.b32.xlu0 %v1591_v7, %s15833_s26  ;;  %v2691_v3 = vsel %vm2661_vm2, %v2658_v58, %v9804_v12  ;;  %v2789_v27 = vsel %vm2760_vm8, %v2756_v53, %v2206_v8 }
 0x25d   : > { %2559 = vrot.lane.b32.xlu1 %v1586_v17, %s15833_s26  ;;  %v2660_v30 = vsel %vm1210_vm1, %v11943_v20, %v9819_v46  ;;  %v15955_v46 = vld [vmem:[#allocation90_spill] sm:$0xff] }
 0x25e   : > { %v2334_v21 = vpop.permute.xlu0 %2333 }
 0x25f   : > { %v12416_v39 = vpop.permute.xlu1 %2211  ;;  %v2821_v40 = vsel %vm590_vm0, %v2206_v8, %v2334_v21 }
 0x260   : > { %2573 = vrot.lane.b32.xlu0 %v1593_v10, %s15833_s26  ;;  %v1594_v10 = vld [vmem:[#allocation2 + $0x191] sm:$0xff] }
 0x261   : > { %2563 = vrot.lane.b32.xlu1 %v1588_v56, %s15833_s26 }
 0x262   : > { %v2590_v44 = vpop.permute.xlu0 %2589 }
 0x263   : > { %v12420_v62 = vpop.permute.xlu1 %9836 }
 0x264   : > { %2577 = vrot.lane.b32.xlu0 %v1595_v0, %s15833_s26  ;;  %v9818_v0 = vunpack.i.l.bf16 %v12369_v57  ;;  %v9838_v8 = vunpack.i.l.bf16 %v12420_v62 }
 0x265   : > { %2567 = vrot.lane.b32.xlu1 %v1590_v54, %s15833_s26 }
 0x266   : > { %v2336_v15 = vpop.permute.xlu0 %2335  ;;  %v2659_v57 = vsel %vm1210_vm1, %v11941_v47, %v9818_v0 }
 0x267   : > { %v12426_v2 = vpop.permute.xlu1 %9841  ;;  %v2822_v22 = vsel %vm590_vm0, %v12363_v48, %v2336_v15 }
 0x268   : > { %v2855_v7 = vsel %vm2825_vm4, %v2822_v22, %v2464_v23  ;;  %v2724_v23 = vsel %vm2694_vm3, %v2691_v3, %v9829_v9  ;;  %v9839_v22 = vunpack.i.h.bf16 %v12420_v62  ;;  %v9844_v9 = vunpack.i.h.bf16 %v12426_v2 }
 0x269   : > { %2571 = vrot.lane.b32.xlu1 %v1592_v60, %s15833_s26  ;;  %v2888_v11 = vsel %vm2858_vm6, %v2855_v7, %v2592_v13  ;;  %v2757_v15 = vsel %vm2727_vm5, %v2724_v23, %v9834_v49  ;;  %v2824_v60 = vsel %vm590_vm0, %v12416_v39, %v11602_v28  ;;  %v9843_v13 = vunpack.i.l.bf16 %v12426_v2  ;;  %v15952_v23 = vld [vmem:[#allocation88_spill] sm:$0xff] }
 0x26a   : > { %v12438_v37 = vpop.permute.xlu0 %2309  ;;  %v2790_v33 = vsel %vm2760_vm8, %v2757_v15, %v12363_v48  ;;  %v2857_v47 = vsel %vm2825_vm4, %v2824_v60, %v11606_v32  ;;  %v2693_v62 = vsel %vm2661_vm2, %v2660_v30, %v9824_v52  ;;  %v15957_v60 = vld [vmem:[#allocation92_spill] sm:$0xff] }
 0x26b   : > { %v2462_v4 = vpop.permute.xlu1 %2461  ;;  %v2726_v20 = vsel %vm2694_vm3, %v2693_v62, %v9839_v22  ;;  %v2890_v32 = vsel %vm2858_vm6, %v2857_v47, %v11609_v35 }
 0x26c   : > { %v2854_v17 = vsel %vm2825_vm4, %v2821_v40, %v2462_v4  ;;  %v2759_v58 = vsel %vm2727_vm5, %v2726_v20, %v9844_v9  ;;  %v15959_v9 = vld [vmem:[#allocation19_spill] sm:$0xff]  ;;  %v9529_v20 = vunpack.i.h.bf16 %v11576_v6 }
 0x26d   : > { %2575 = vrot.lane.b32.xlu1 %v1594_v10, %s15833_s26  ;;  %v2887_v56 = vsel %vm2858_vm6, %v2854_v17, %v2590_v44  ;;  %v9823_v44 = vunpack.i.l.bf16 %v12375_v42  ;;  %v2792_v17 = vsel %vm2760_vm8, %v2759_v58, %v12416_v39  ;;  %v10751_v10 = vld [vmem:[%s11395_s20] sm:$0xff]  ;;  %v1317_v58 = vld [vmem:[#allocation2 + $0xf] sm:$0xff] }
 0x26e   : > { %v12452_v21 = vpop.permute.xlu0 %2313  ;;  %8685 = vmatprep.mubr.msk.f32.mxu1 %vm2925_vm7, %v2887_v56 }
 0x26f   : > { %v12458_v54 = vpop.permute.xlu1 %2307  ;;  %3227 = vmatmul.mubr.f32.gmra.mrb[40].mxu1 %v2789_v27  ;;  %v2692_v42 = vsel %vm2661_vm2, %v2659_v57, %v9823_v44  ;;  %v9528_v27 = vunpack.i.l.bf16 %v11576_v6  ;;  %v15954_v44 = vld [vmem:[#allocation9_spill] sm:$0xff] }
 0x270   : > { %8686 = vmatprep.mubr.msk.f32.mxu1 %vm2925_vm7, %v2888_v11  ;;  %v2725_v49 = vsel %vm2694_vm3, %v2692_v42, %v9838_v8  ;;  %v15953_v11 = vld [vmem:[#allocation5_spill] sm:$0xff]  ;;  %v15956_v8 = vld [vmem:[#allocation11_spill] sm:$0xff] }
 0x271   : > { %2579 = vrot.lane.b32.xlu1 %v1596_v38, %s15833_s26  ;;  %v9548_v38 = vunpack.i.l.bf16 %v15954_v44  ;;  %v9553_v52 = vunpack.i.l.bf16 %v15956_v8  ;;  %v9554_v6 = vunpack.i.h.bf16 %v15956_v8  ;;  %v15971_v8 = vld [vmem:[#allocation16_spill] sm:$0xff] }
 0x272   : > { %v12472_v12 = vpop.permute.xlu0 %2317 }
 0x273   : > { %v2210_v16 = vpop.permute.xlu1 %2209  ;;  %3232 = vmatmul.mubr.f32.gmra.mrb[42].mxu1 %v2790_v33 }
 0x274   : > { %v2823_v28 = vsel %vm590_vm0, %v2210_v16, %v11586_v14  ;;  %v2758_v14 = vsel %vm2727_vm5, %v2725_v49, %v9843_v13 }
 0x275   : > { %v2856_v48 = vsel %vm2825_vm4, %v2823_v28, %v11598_v25  ;;  %v2791_v25 = vsel %vm2760_vm8, %v2758_v14, %v2210_v16  ;;  %v15958_v16 = vld [vmem:[#allocation93_spill] sm:$0xff] }
 0x276   : > { %v12491_v40 = vpop.permute.xlu0 %2321  ;;  %v2889_v2 = vsel %vm2858_vm6, %v2856_v48, %v11593_v24  ;;  %v15960_v28 = vld [vmem:[#allocation13_spill] sm:$0xff]  ;;  %v15961_v48 = vld [vmem:[#allocation95_spill] sm:$0xff] }
 0x277   : > { %v12496_v4 = vpop.permute.xlu1 %2311  ;;  %8687 = vmatprep.mubr.msk.f32.mxu1 %vm2925_vm7, %v2889_v2  ;;  %v2793_v30 = vsel %vm590_vm0, %v15960_v28, %v15959_v9  ;;  %v15970_v9 = vld [vmem:[#allocation102_spill] sm:$0xff] }
 0x278   : > { %3237 = vmatmul.mubr.f32.gmra.mrb[44].mxu1 %v2791_v25  ;;  %v15962_v25 = vld [vmem:[#allocation96_spill] sm:$0xff] }
 0x279   : > { %8688 = vmatprep.mubr.msk.f32.mxu1 %vm2925_vm7, %v2890_v32  ;;  %v15963_v32 = vld [vmem:[#allocation97_spill] sm:$0xff] }
 0x27a   : > { %v2406_v7 = vpop.permute.xlu0 %2405 }
 0x27b   : > { %v12505_v24 = vpop.permute.xlu1 %2315  ;;  %v2826_v49 = vsel %vm2825_vm4, %v2793_v30, %v2406_v7  ;;  %v15972_v30 = vld [vmem:[#allocation18_spill] sm:$0xff] }
 0x27c   : > { %3242 = vmatmul.mubr.f32.gmra.mrb[46].mxu1 %v2792_v17  ;;  %v9534_v17 = vunpack.i.h.bf16 %v15953_v11 }
 0x27d   : > { %9149 = vmatprep.mubr.msk.f32.mxu1 %vm590_vm0, %v10751_v10  ;;  %v15964_v10 = vld [vmem:[#allocation99_spill] sm:$0xff] }
 0x27e   : > { %v12511_v55 = vpop.permute.xlu0 %2409 }
 0x27f   : > { %v12513_v3 = vpop.permute.xlu1 %2319 }
 0x280   : > { %9150 = vmatmul.mubr.msk.f32.vlgmr.msra.gmra.mrb[48].mxu1 %vm590_vm0, %v12016_v29 }
 0x281   : > { %9152 = vmatprep.mubr.msk.f32.mxu1 %vm590_vm0, %v12023_v50 }
 0x282   : > { %v12519_v35 = vpop.permute.xlu0 %2413 }
 0x283   : > { %v12521_v56 = vpop.permute.xlu1 %2323 }
 0x284   : > { %9153 = vmatmul.mubr.msk.f32.gmra.mrb[50].mxu1 %vm590_vm0, %v12034_v51 }
 0x285   : > { %9155 = vmatprep.mubr.msk.f32.mxu1 %vm590_vm0, %v12041_v5 }
 0x286   : > { %v12527_v39 = vpop.permute.xlu0 %2417 }
 0x287   : > { %v12529_v53 = vpop.permute.xlu1 %2407 }
 0x288   : > { %9156 = vmatmul.mubr.msk.f32.gmra.mrb[52].mxu1 %vm590_vm0, %v12052_v61 }
 0x289   : > { %9158 = vmatprep.mubr.msk.f32.mxu1 %vm590_vm0, %v12059_v19 }
 0x28a   : > { %v12535_v50 = vpop.permute.xlu0 %2421 }
 0x28b   : > { %v12537_v29 = vpop.permute.xlu1 %2411 }
 0x28c   : > { %9159 = vmatmul.mubr.msk.f32.gmra.mrb[54].mxu1 %vm590_vm0, %v12071_v63 }
 0x28d   : > { %9161 = vmatprep.mubr.msk.f32.mxu1 %vm590_vm0, %v12078_v34 }
 0x28e   : > { %v12543_v51 = vpop.permute.xlu0 %2425 }
 0x28f   : > { %v12545_v5 = vpop.permute.xlu1 %2415 }
 0x290   : > { %9162 = vmatmul.mubr.msk.f32.gmra.mrb[56].mxu1 %vm590_vm0, %v12091_v26 }
 0x291   : > { %9164 = vmatprep.mubr.msk.f32.mxu1 %vm590_vm0, %v12098_v45 }
 0x292   : > { %v12551_v61 = vpop.permute.xlu0 %2429 }
 0x293   : > { %v12553_v19 = vpop.permute.xlu1 %2419 }
 0x294   : > { %9165 = vmatmul.mubr.msk.f32.gmra.mrb[58].mxu1 %vm590_vm0, %v12110_v31 }
 0x295   : > { %9167 = vmatprep.mubr.msk.f32.mxu1 %vm590_vm0, %v12117_v59 }
 0x296   : > { %v12559_v34 = vpop.permute.xlu0 %2433 }
 0x297   : > { %v12561_v63 = vpop.permute.xlu1 %2423 }
 0x298   : > { %9168 = vmatmul.mubr.msk.f32.gmra.mrb[60].mxu1 %vm590_vm0, %v12130_v18  ;;  %v15951_v18 = vld [vmem:[#allocation86_spill] sm:$0xff] }
 0x299   : > { %9170 = vmatprep.mubr.msk.f32.mxu1 %vm590_vm0, %v12137_v41  ;;  %v1316_v41 = vld [vmem:[#allocation2 + $0x7] sm:$0xff] }
 0x29a   : > { %v12567_v45 = vpop.permute.xlu0 %2437 }
 0x29b   : > { %v12569_v26 = vpop.permute.xlu1 %2427 }
 0x29c   : > { %9171 = vmatmul.mubr.msk.f32.gmra.mrb[62].mxu1 %vm590_vm0, %v12149_v43  ;;  %v9533_v43 = vunpack.i.l.bf16 %v15953_v11 }
 0x29d   : > { %9173 = vmatprep.mubr.msk.f32.mxu1 %vm590_vm0, %v12156_v36  ;;  %v2629_v36 = vsel %vm1210_vm1, %v1316_v41, %v9528_v27  ;;  %v2630_v27 = vsel %vm1210_vm1, %v1317_v58, %v9529_v20 }
 0x29e   : > { %v12575_v59 = vpop.permute.xlu0 %2441  ;;  %v2662_v33 = vsel %vm2661_vm2, %v2629_v36, %v9533_v43  ;;  %v15966_v43 = vld [vmem:[#allocation100_spill] sm:$0xff] }
 0x29f   : > { %v12577_v31 = vpop.permute.xlu1 %2431  ;;  %v2695_v22 = vsel %vm2694_vm3, %v2662_v33, %v9548_v38  ;;  %v2663_v38 = vsel %vm2661_vm2, %v2630_v27, %v9534_v17  ;;  %v10752_v33 = vld [vmem:[#allocation2 + $0x27] sm:$0xff] }
 0x2a0   : > { %9174 = vmatmul.mubr.msk.f32.gmra.mrb[64].mxu1 %vm590_vm0, %v15951_v18  ;;  %v2728_v42 = vsel %vm2727_vm5, %v2695_v22, %v9553_v52  ;;  %v15965_v18 = vld [vmem:[#allocation7_spill] sm:$0xff]  ;;  %v15975_v27 = vld [vmem:[#allocation17_spill] sm:$0xff] }
 0x2a1   : > { %9176 = vmatprep.mubr.msk.f32.mxu1 %vm590_vm0, %v15952_v23  ;;  %v2761_v14 = vsel %vm2760_vm8, %v2728_v42, %v15960_v28  ;;  %v9538_v41 = vunpack.i.l.bf16 %v15965_v18  ;;  %v9549_v23 = vunpack.i.h.bf16 %v15954_v44  ;;  %v9539_v11 = vunpack.i.h.bf16 %v15965_v18  ;;  %v15969_v44 = vld [vmem:[#allocation14_spill] sm:$0xff] }
 0x2a2   : > { %v12584_v0 = vpop.permute.xlu0 %2445  ;;  %v9573_v28 = vunpack.i.l.bf16 %v15971_v8 }
 0x2a3   : > { %v12587_v15 = vpop.permute.xlu1 %2435  ;;  %v2631_v22 = vsel %vm1210_vm1, %v10752_v33, %v9538_v41  ;;  %v2696_v42 = vsel %vm2694_vm3, %v2663_v38, %v9549_v23  ;;  %v15976_v23 = vld [vmem:[#allocation103_spill] sm:$0xff]  ;;  %v15978_v33 = vld [vmem:[#allocation12_spill] sm:$0xff] }
 0x2a4   : > { %9177 = vmatmul.mubr.msk.f32.gmra.mrb[66].mxu1 %vm590_vm0, %v15955_v46  ;;  %v15967_v46 = vld [vmem:[#allocation8_spill] sm:$0xff] }
 0x2a5   : > { %9179 = vmatprep.mubr.msk.f32.mxu1 %vm590_vm0, %v15957_v60  ;;  %v9543_v52 = vunpack.i.l.bf16 %v15967_v46  ;;  %v15968_v60 = vld [vmem:[#allocation101_spill] sm:$0xff] }
 0x2a6   : > { %v12596_v13 = vpop.permute.xlu0 %2449 }
 0x2a7   : > { %v12599_v57 = vpop.permute.xlu1 %2439  ;;  %v2664_v17 = vsel %vm2661_vm2, %v2631_v22, %v9543_v52  ;;  %v9558_v22 = vunpack.i.l.bf16 %v15978_v33 }
 0x2a8   : > { %9180 = vmatmul.mubr.msk.f32.gmra.mrb[68].mxu1 %vm590_vm0, %v15958_v16  ;;  %v9568_v16 = vunpack.i.l.bf16 %v15969_v44 }
 0x2a9   : > { %9182 = vmatprep.mubr.msk.f32.mxu1 %vm590_vm0, %v15961_v48  ;;  %v15973_v48 = vld [vmem:[#allocation6_spill] sm:$0xff] }
 0x2aa   : > { %v2534_v47 = vpop.permute.xlu0 %2533  ;;  %v2697_v38 = vsel %vm2694_vm3, %v2664_v17, %v9568_v16  ;;  %v15980_v16 = vld [vmem:[#allocation26_spill] sm:$0xff]  ;;  %v9559_v17 = vunpack.i.h.bf16 %v15978_v33 }
 0x2ab   : > { %v2859_v62 = vsel %vm2858_vm6, %v2826_v49, %v2534_v47  ;;  %v12612_v2 = vpop.permute.xlu1 %2443  ;;  %v2794_v49 = vsel %vm590_vm0, %v15973_v48, %v15972_v30  ;;  %v2729_v47 = vsel %vm2727_vm5, %v2696_v42, %v9554_v6  ;;  %v15979_v42 = vld [vmem:[#allocation15_spill] sm:$0xff]  ;;  %v15981_v30 = vld [vmem:[#allocation10_spill] sm:$0xff] }
 0x2ac   : > { %8657 = vmatprep.mubr.msk.f32.mxu0 %vm2925_vm7, %v2859_v62  ;;  %9183 = vmatmul.mubr.msk.f32.gmra.mrb[70].mxu1 %vm590_vm0, %v15962_v25  ;;  %v9544_v62 = vunpack.i.h.bf16 %v15967_v46  ;;  %v2762_v6 = vsel %vm2760_vm8, %v2729_v47, %v15973_v48  ;;  %v9574_v46 = vunpack.i.h.bf16 %v15971_v8  ;;  %v2796_v48 = vsel %vm590_vm0, %v15981_v30, %v15980_v16  ;;  %v15983_v8 = vld [vmem:[#allocation21_spill] sm:$0xff]  ;;  %v15988_v16 = vld [vmem:[#allocation24_spill] sm:$0xff] }
 0x2ad   : > { %3087 = vmatmul.mubr.f32.vlgmr.msra.gmra.mrb[32].mxu0 %v2761_v14  ;;  %9185 = vmatprep.mubr.msk.f32.mxu1 %vm590_vm0, %v15963_v32  ;;  %v2827_v14 = vsel %vm2825_vm4, %v2794_v49, %v12529_v53  ;;  %v10753_v32 = vld [vmem:[#allocation2 + $0x2f] sm:$0xff]  ;;  %v15982_v49 = vld [vmem:[#allocation105_spill] sm:$0xff]  ;;  %v9588_v47 = vunpack.i.l.bf16 %v15983_v8 }
 0x2ae   : > { %v2538_v25 = vpop.permute.xlu0 %2537  ;;  %v2632_v58 = vsel %vm1210_vm1, %v10753_v32, %v9539_v11  ;;  %v15977_v11 = vld [vmem:[#allocation104_spill] sm:$0xff] }
 0x2af   : > { %v12622_v7 = vpop.permute.xlu1 %2447 }
 0x2b0   : > { %9186 = vmatmul.mubr.msk.f32.gmra.mrb[72].mxu1 %vm590_vm0, %v15964_v10  ;;  %v15974_v10 = vld [vmem:[#allocation27_spill] sm:$0xff] }
 0x2b1   : > { %9188 = vmatprep.mubr.msk.f32.mxu1 %vm590_vm0, %v15966_v43  ;;  %v2795_v18 = vsel %vm590_vm0, %v15975_v27, %v15974_v10  ;;  %v9569_v43 = vunpack.i.h.bf16 %v15969_v44  ;;  %v2665_v44 = vsel %vm2661_vm2, %v2632_v58, %v9544_v62  ;;  %v15984_v62 = vld [vmem:[#allocation23_spill] sm:$0xff]  ;;  %v10754_v10 = vld [vmem:[#allocation2 + $0x47] sm:$0xff] }
 0x2b2   : > { %v2828_v53 = vsel %vm2825_vm4, %v2795_v18, %v12511_v55  ;;  %v2633_v18 = vsel %vm1210_vm1, %v10754_v10, %v9558_v22  ;;  %v10755_v22 = vld [vmem:[#allocation2 + $0x4f] sm:$0xff] }
 0x2b3   : > { %v12633_v36 = vpop.permute.xlu1 %2451  ;;  %v2861_v52 = vsel %vm2858_vm6, %v2828_v53, %v2538_v25  ;;  %v2698_v25 = vsel %vm2694_vm3, %v2665_v44, %v9569_v43  ;;  %v15986_v43 = vld [vmem:[#allocation25_spill] sm:$0xff]  ;;  %v15987_v44 = vld [vmem:[#allocation22_spill] sm:$0xff] }
 0x2b4   : > { %9189 = vmatmul.mubr.msk.f32.gmra.mrb[74].mxu1 %vm590_vm0, %v15968_v60  ;;  %v2730_v60 = vsel %vm2727_vm5, %v2697_v38, %v9573_v28  ;;  %v2829_v28 = vsel %vm2825_vm4, %v2796_v48, %v12537_v29  ;;  %v2731_v58 = vsel %vm2727_vm5, %v2698_v25, %v9574_v46  ;;  %v9564_v29 = vunpack.i.h.bf16 %v15979_v42  ;;  %v15989_v48 = vld [vmem:[#allocation34_spill] sm:$0xff] }
 0x2b5   : > { %9191 = vmatprep.mubr.msk.f32.mxu1 %vm590_vm0, %v15970_v9  ;;  %v9563_v9 = vunpack.i.l.bf16 %v15979_v42  ;;  %v9578_v42 = vunpack.i.l.bf16 %v15987_v44  ;;  %v9579_v10 = vunpack.i.h.bf16 %v15987_v44 }
 0x2b7   : > { %v2536_v20 = vpop.permute.xlu1 %2535 }
 0x2b8   : > { %v2860_v41 = vsel %vm2858_vm6, %v2827_v14, %v2536_v20  ;;  %9192 = vmatmul.mubr.msk.f32.gmra.mrb[76].mxu1 %vm590_vm0, %v15976_v23  ;;  %v2763_v14 = vsel %vm2760_vm8, %v2730_v60, %v15975_v27  ;;  %v9593_v20 = vunpack.i.l.bf16 %v15984_v62  ;;  %v2666_v27 = vsel %vm2661_vm2, %v2633_v18, %v9563_v9  ;;  %v15985_v23 = vld [vmem:[#allocation35_spill] sm:$0xff]  ;;  %v10756_v18 = vld [vmem:[#allocation2 + $0x67] sm:$0xff] }
 0x2b9   : > { %8658 = vmatprep.mubr.msk.f32.mxu0 %vm2925_vm7, %v2860_v41  ;;  %9194 = vmatprep.mubr.msk.f32.mxu1 %vm590_vm0, %v15977_v11  ;;  %v2542_v41 = vpop.permute.xlu0 %2541  ;;  %v2797_v53 = vsel %vm590_vm0, %v15986_v43, %v15985_v23  ;;  %v2764_v11 = vsel %vm2760_vm8, %v2731_v58, %v15981_v30  ;;  %v2699_v46 = vsel %vm2694_vm3, %v2666_v27, %v9588_v47  ;;  %v9583_v30 = vunpack.i.l.bf16 %v15988_v16  ;;  %v15991_v47 = vld [vmem:[#allocation30_spill] sm:$0xff]  ;;  %v3683_v27 = vld [vmem:[#allocation3 + $0x10] sm:$0xff] }
 0x2ba   : > { %3092 = vmatmul.mubr.f32.gmra.mrb[34].mxu0 %v2762_v6  ;;  %v9589_v6 = vunpack.i.h.bf16 %v15983_v8  ;;  %v2830_v38 = vsel %vm2825_vm4, %v2797_v53, %v12519_v35  ;;  %v2732_v33 = vsel %vm2727_vm5, %v2699_v46, %v9593_v20  ;;  %v15992_v20 = vld [vmem:[#allocation32_spill] sm:$0xff]  ;;  %v9584_v23 = vunpack.i.h.bf16 %v15988_v16  ;;  %v15993_v53 = vld [vmem:[#allocation43_spill] sm:$0xff] }
 0x2bb   : > { %v2540_v55 = vpop.permute.xlu1 %2539  ;;  %8659 = vmatprep.mubr.msk.f32.mxu0 %vm2925_vm7, %v2861_v52  ;;  %v9594_v52 = vunpack.i.h.bf16 %v15984_v62  ;;  %v2863_v60 = vsel %vm2858_vm6, %v2830_v38, %v2542_v41  ;;  %v2765_v25 = vsel %vm2760_vm8, %v2732_v33, %v15986_v43  ;;  %v2635_v41 = vsel %vm1210_vm1, %v10756_v18, %v9578_v42  ;;  %v10757_v42 = vld [vmem:[#allocation2 + $0x6f] sm:$0xff] }
 0x2bc   : > { %9195 = vmatmul.mubr.msk.f32.gmra.mrb[78].mxu1 %vm590_vm0, %v15982_v49  ;;  %v2862_v32 = vsel %vm2858_vm6, %v2829_v28, %v2540_v55  ;;  %v2634_v55 = vsel %vm1210_vm1, %v10755_v22, %v9559_v17  ;;  %v15990_v49 = vld [vmem:[#allocation20_spill] sm:$0xff]  ;;  %v9608_v28 = vunpack.i.l.bf16 %v15991_v47  ;;  %v2668_v43 = vsel %vm2661_vm2, %v2635_v41, %v9583_v30  ;;  %v3714_v30 = vld [vmem:[#allocation3 + $0x9] sm:$0xff] }
 0x2bd   : > { %v2667_v35 = vsel %vm2661_vm2, %v2634_v55, %v9564_v29  ;;  %v2798_v8 = vsel %vm590_vm0, %v15990_v49, %v15989_v48  ;;  %v2546_v29 = vpop.permute.xlu0 %2545  ;;  %v9609_v46 = vunpack.i.h.bf16 %v15991_v47  ;;  %v9614_v22 = vunpack.i.h.bf16 %v15992_v20  ;;  %v3715_v48 = vld [vmem:[#allocation3 + $0x11] sm:$0xff]  ;;  %v3905_v18 = vld [vmem:[#allocation3 + $0x228] sm:$0xff] }
 0x2be   : > { %3097 = vmatmul.mubr.f32.gmra.mrb[36].mxu0 %v2763_v14  ;;  %v2831_v14 = vsel %vm2825_vm4, %v2798_v8, %v12545_v5  ;;  %v2700_v62 = vsel %vm2694_vm3, %v2667_v35, %v9589_v6  ;;  %v3682_v5 = vld [vmem:[#allocation3 + $0x8] sm:$0xff]  ;;  %v15994_v6 = vld [vmem:[#allocation33_spill] sm:$0xff]  ;;  %v2701_v33 = vsel %vm2694_vm3, %v2668_v43, %v9608_v28  ;;  %v15996_v8 = vld [vmem:[#allocation31_spill] sm:$0xff] }
 0x2bf   : > { %8660 = vmatprep.mubr.msk.f32.mxu0 %vm2925_vm7, %v2862_v32  ;;  %v2544_v9 = vpop.permute.xlu1 %2543  ;;  %v9613_v32 = vunpack.i.l.bf16 %v15992_v20  ;;  %v2733_v17 = vsel %vm2727_vm5, %v2700_v62, %v9594_v52  ;;  %v2799_v38 = vsel %vm590_vm0, %v15994_v6, %v15993_v53  ;;  %v15995_v35 = vld [vmem:[#allocation29_spill] sm:$0xff]  ;;  %v9603_v47 = vunpack.i.l.bf16 %v15996_v8  ;;  %v15997_v28 = vld [vmem:[#allocation42_spill] sm:$0xff]  ;;  %v3906_v41 = vld [vmem:[#allocation3 + $0x230] sm:$0xff] }
 0x2c0   : > { %v2864_v58 = vsel %vm2858_vm6, %v2831_v14, %v2544_v9  ;;  %v2832_v52 = vsel %vm2825_vm4, %v2799_v38, %v12527_v39  ;;  %v2636_v9 = vsel %vm1210_vm1, %v10757_v42, %v9579_v10  ;;  %v9598_v16 = vunpack.i.l.bf16 %v15995_v35  ;;  %v15998_v14 = vld [vmem:[#allocation28_spill] sm:$0xff]  ;;  %v15999_v20 = vld [vmem:[#allocation37_spill] sm:$0xff] }
 0x2c1   : > { %v2865_v55 = vsel %vm2858_vm6, %v2832_v52, %v2546_v29  ;;  %v2734_v44 = vsel %vm2727_vm5, %v2701_v33, %v9613_v32  ;;  %v9850_v62 = vpack.i.bf16 %v3715_v48, %v3714_v30  ;;  %v9628_v32 = vunpack.i.l.bf16 %v15999_v20  ;;  %v16000_v29 = vld [vmem:[#allocation39_spill] sm:$0xff]  ;;  %v10758_v53 = vld [vmem:[#allocation2 + $0x87] sm:$0xff]  ;;  %v2550_v38 = vpop.permute.xlu0 %2549 }
 0x2c2   : > { %3102 = vmatmul.mubr.f32.gmra.mrb[38].mxu0 %v2764_v11  ;;  %v9845_v11 = vpack.i.bf16 %v3683_v27, %v3682_v5  ;;  %v9633_v5 = vunpack.i.l.bf16 %v16000_v29  ;;  %v9860_v43 = vpack.i.bf16 %v3906_v41, %v3905_v18  ;;  %v9604_v52 = vunpack.i.h.bf16 %v15996_v8  ;;  %v16001_v33 = vld [vmem:[#allocation51_spill] sm:$0xff]  ;;  %v16005_v18 = vld [vmem:[#allocation50_spill] sm:$0xff]  ;;  %v16006_v41 = vld [vmem:[#allocation36_spill] sm:$0xff] }
 0x2c3   : > { %8661 = vmatprep.mubr.msk.f32.mxu0 %vm2925_vm7, %v2863_v60  ;;  %v2766_v60 = vsel %vm2760_vm8, %v2733_v17, %v15990_v49  ;;  %v2548_v39 = vpop.permute.xlu1 %2547  ;;  %v2669_v49 = vsel %vm2661_vm2, %v2636_v9, %v9584_v23  ;;  %v2767_v17 = vsel %vm2760_vm8, %v2734_v44, %v15994_v6  ;;  %v2637_v6 = vsel %vm1210_vm1, %v10758_v53, %v9598_v16  ;;  %v5610_v30 = vld [vmem:[#allocation4 + $0x11] sm:$0xff] }
 0x2c4   : > { %9846 = vrot.lane.b32.xlu0 %v9845_v11, %s15837_s23  ;;  %v2702_v10 = vsel %vm2694_vm3, %v2669_v49, %v9609_v46  ;;  %v3873_v11 = vld [vmem:[#allocation3 + $0x227] sm:$0xff]  ;;  %v3874_v46 = vld [vmem:[#allocation3 + $0x22f] sm:$0xff]  ;;  %9861 = vrot.lane.b32.xlu1 %v9860_v43, %s15829_s28  ;;  %v9629_v42 = vunpack.i.h.bf16 %v15999_v20  ;;  %v9634_v48 = vunpack.i.h.bf16 %v16000_v29  ;;  %v2802_v29 = vsel %vm590_vm0, %v16006_v41, %v16005_v18  ;;  %s16115_s28 = smov 40  }
 0x2c5   : > { %v2735_v23 = vsel %vm2727_vm5, %v2702_v10, %v9614_v22  ;;  %v16002_v22 = vld [vmem:[#allocation41_spill] sm:$0xff]  ;;  %v9855_v44 = vpack.i.bf16 %v3874_v46, %v3873_v11  ;;  %v5577_v20 = vld [vmem:[#allocation4 + $0x8] sm:$0xff]  ;;  %v2835_v43 = vsel %vm2825_vm4, %v2802_v29, %v12561_v63  ;;  %v2554_v63 = vpop.permute.xlu0 %2553 }
 0x2c6   : > { %3107 = vmatmul.mubr.f32.gmra.mrb[40].mxu0 %v2765_v25  ;;  %v2800_v25 = vsel %vm590_vm0, %v15998_v14, %v15997_v28  ;;  %v10759_v28 = vld [vmem:[#allocation2 + $0x8f] sm:$0xff] }
 0x2c7   : > { %8662 = vmatprep.mubr.msk.f32.mxu0 %vm2925_vm7, %v2864_v58  ;;  %v2833_v58 = vsel %vm2825_vm4, %v2800_v25, %v12553_v19  ;;  %v9599_v19 = vunpack.i.h.bf16 %v15995_v35  ;;  %v2768_v35 = vsel %vm2760_vm8, %v2735_v23, %v15998_v14  ;;  %v16003_v25 = vld [vmem:[#allocation38_spill] sm:$0xff]  ;;  %v2552_v14 = vpop.permute.xlu1 %2551 }
 0x2c8   : > { %v2866_v27 = vsel %vm2858_vm6, %v2833_v58, %v2548_v39  ;;  %9851 = vrot.lane.b32.xlu0 %v9850_v62, %s15835_s21  ;;  %v5609_v39 = vld [vmem:[#allocation4 + $0x9] sm:$0xff]  ;;  %v9618_v62 = vunpack.i.l.bf16 %v16003_v25  ;;  %v2868_v11 = vsel %vm2858_vm6, %v2835_v43, %v2552_v14  ;;  %s16093_s21 = smov 32  }
 0x2c9   : > { %v5832_v43 = vld [vmem:[#allocation4 + $0x229] sm:$0xff] }
 0x2ca   : > { %3112 = vmatmul.mubr.f32.gmra.mrb[42].mxu0 %v2766_v60  ;;  %v2670_v60 = vsel %vm2661_vm2, %v2637_v6, %v9603_v47  ;;  %v9870_v47 = vpack.i.bf16 %v5610_v30, %v5609_v39  ;;  %v16008_v6 = vld [vmem:[#allocation48_spill] sm:$0xff] }
 0x2cb   : > { %8663 = vmatprep.mubr.msk.f32.mxu0 %vm2925_vm7, %v2865_v55  ;;  %v2801_v55 = vsel %vm590_vm0, %v16002_v22, %v16001_v33  ;;  %v2703_v16 = vsel %vm2694_vm3, %v2670_v60, %v9628_v32  ;;  %v5578_v32 = vld [vmem:[#allocation4 + $0x10] sm:$0xff]  ;;  %v10760_v60 = vld [vmem:[#allocation2 + $0xa7] sm:$0xff]  ;;  %v2556_v14 = vpop.permute.xlu1 %2555 }
 0x2cc   : > { %v2834_v9 = vsel %vm2825_vm4, %v2801_v55, %v12535_v50  ;;  %v2736_v8 = vsel %vm2727_vm5, %v2703_v16, %v9633_v5  ;;  %9856 = vrot.lane.b32.xlu0 %v9855_v44, %s15831_s19  ;;  %v2638_v50 = vsel %vm1210_vm1, %v10759_v28, %v9599_v19  ;;  %9871 = vrot.lane.b32.xlu1 %v9870_v47, %s15839_s22  ;;  %v10761_v28 = vld [vmem:[#allocation2 + $0xaf] sm:$0xff]  ;;  %s16114_s19 = smov 16  }
 0x2cd   : > { %v2867_v49 = vsel %vm2858_vm6, %v2834_v9, %v2550_v38  ;;  %v2671_v58 = vsel %vm2661_vm2, %v2638_v50, %v9604_v52  ;;  %v9865_v5 = vpack.i.bf16 %v5578_v32, %v5577_v20  ;;  %v2769_v19 = vsel %vm2760_vm8, %v2736_v8, %v16002_v22  ;;  %v5768_v22 = vld [vmem:[#allocation4 + $0x227] sm:$0xff]  ;;  %v16013_v32 = vld [vmem:[#allocation47_spill] sm:$0xff] }
 0x2ce   : > { %3117 = vmatmul.mubr.f32.gmra.mrb[44].mxu0 %v2767_v17  ;;  %v16004_v17 = vld [vmem:[#allocation40_spill] sm:$0xff]  ;;  %v2704_v53 = vsel %vm2694_vm3, %v2671_v58, %v9629_v42  ;;  %v9653_v38 = vunpack.i.l.bf16 %v16008_v6  ;;  %v9619_v52 = vunpack.i.h.bf16 %v16003_v25  ;;  %v2639_v33 = vsel %vm1210_vm1, %v10760_v60, %v9618_v62  ;;  %v16010_v42 = vld [vmem:[#allocation59_spill] sm:$0xff]  ;;  %v16011_v9 = vld [vmem:[#allocation49_spill] sm:$0xff] }
 0x2cf   : > { %8664 = vmatprep.mubr.msk.f32.mxu0 %vm2925_vm7, %v2866_v27  ;;  %v9623_v10 = vunpack.i.l.bf16 %v16004_v17  ;;  %v16007_v27 = vld [vmem:[#allocation46_spill] sm:$0xff]  ;;  %v2737_v46 = vsel %vm2727_vm5, %v2704_v53, %v9634_v48  ;;  %v9624_v55 = vunpack.i.h.bf16 %v16004_v17  ;;  %v16012_v25 = vld [vmem:[#allocation45_spill] sm:$0xff]  ;;  %v9643_v58 = vunpack.i.l.bf16 %v16013_v32  ;;  %v16018_v53 = vld [vmem:[#allocation55_spill] sm:$0xff] }
 0x2d0   : > { %v9648_v23 = vunpack.i.l.bf16 %v16007_v27  ;;  %9866 = vrot.lane.b32.xlu0 %v9865_v5, %s16009_s29  ;;  %6566 = vrot.lane.b32.xlu1 %v5768_v22, %s15837_s23  ;;  %v9649_v16 = vunpack.i.h.bf16 %v16007_v27  ;;  %v2770_v30 = vsel %vm2760_vm8, %v2737_v46, %v16006_v41  ;;  %v2640_v50 = vsel %vm1210_vm1, %v10761_v28, %v9619_v52  ;;  %v16014_v17 = vld [vmem:[#allocation58_spill] sm:$0xff]  ;;  %v16016_v41 = vld [vmem:[#allocation53_spill] sm:$0xff] }
 0x2d1   : > { %v2672_v44 = vsel %vm2661_vm2, %v2639_v33, %v9623_v10  ;;  %v9638_v62 = vunpack.i.l.bf16 %v16012_v25  ;;  %v2673_v20 = vsel %vm2661_vm2, %v2640_v50, %v9624_v55  ;;  %v16015_v10 = vld [vmem:[#allocation44_spill] sm:$0xff]  ;;  %v9668_v29 = vunpack.i.l.bf16 %v16016_v41  ;;  %v2558_v33 = vpop.permute.xlu0 %2557  ;;  %v16023_v50 = vld [vmem:[#allocation54_spill] sm:$0xff] }
 0x2d2   : > { %3122 = vmatmul.mubr.f32.gmra.mrb[46].mxu0 %v2768_v35  ;;  %v2803_v35 = vsel %vm590_vm0, %v16011_v9, %v16010_v42  ;;  %v2705_v48 = vsel %vm2694_vm3, %v2672_v44, %v9648_v23  ;;  %v2804_v18 = vsel %vm590_vm0, %v16015_v10, %v16014_v17  ;;  %v2706_v23 = vsel %vm2694_vm3, %v2673_v20, %v9649_v16  ;;  %v16021_v44 = vld [vmem:[#allocation67_spill] sm:$0xff]  ;;  %v16022_v42 = vld [vmem:[#allocation57_spill] sm:$0xff] }
 0x2d3   : > { %8665 = vmatprep.mubr.msk.f32.mxu0 %vm2925_vm7, %v2867_v49  ;;  %v2836_v39 = vsel %vm2825_vm4, %v2803_v35, %v12543_v51  ;;  %v9654_v49 = vunpack.i.h.bf16 %v16008_v6  ;;  %v2738_v47 = vsel %vm2727_vm5, %v2705_v48, %v9653_v38  ;;  %v5800_v51 = vld [vmem:[#allocation4 + $0x228] sm:$0xff]  ;;  %v2837_v5 = vsel %vm2825_vm4, %v2804_v18, %v12569_v26 }
 0x2d4   : > { %v2869_v8 = vsel %vm2858_vm6, %v2836_v39, %v2554_v63  ;;  %6694 = vrot.lane.b32.xlu1 %v5800_v51, %s15823_s27  ;;  %v2771_v27 = vsel %vm2760_vm8, %v2738_v47, %v16011_v9  ;;  %v9673_v6 = vunpack.i.l.bf16 %v16018_v53  ;;  %v2870_v38 = vsel %vm2858_vm6, %v2837_v5, %v2556_v14  ;;  %v10762_v26 = vld [vmem:[#allocation2 + $0xc7] sm:$0xff]  ;;  %v10763_v47 = vld [vmem:[#allocation2 + $0xcf] sm:$0xff]  ;;  %v16025_v51 = vld [vmem:[#allocation56_spill] sm:$0xff]  ;;  %s16096_s27 = smov 112  }
 0x2d5   : > { %v9639_v52 = vunpack.i.h.bf16 %v16012_v25  ;;  %v2641_v60 = vsel %vm1210_vm1, %v10762_v26, %v9638_v62  ;;  %v9644_v22 = vunpack.i.h.bf16 %v16013_v32  ;;  %v2805_v9 = vsel %vm590_vm0, %v16022_v42, %v16021_v44  ;;  %v2560_v62 = vpop.permute.xlu1 %2559  ;;  %v16026_v32 = vld [vmem:[#allocation66_spill] sm:$0xff] }
 0x2d6   : > { %3127 = vmatmul.mubr.f32.gmra.mrb[48].mxu0 %v2769_v19  ;;  %v12832_v19 = vpop.f32.mrb[0].mxu0  ;;  %v2674_v55 = vsel %vm2661_vm2, %v2641_v60, %v9643_v58  ;;  %v9669_v35 = vunpack.i.h.bf16 %v16016_v41  ;;  %v2838_v16 = vsel %vm2825_vm4, %v2805_v9, %v12551_v61  ;;  %v9674_v48 = vunpack.i.h.bf16 %v16018_v53  ;;  %v16027_v58 = vld [vmem:[#allocation52_spill] sm:$0xff]  ;;  %v16029_v18 = vld [vmem:[#allocation62_spill] sm:$0xff]  ;;  %v16035_v9 = vld [vmem:[#allocation65_spill] sm:$0xff] }
 0x2d7   : > { %8666 = vmatprep.mubr.msk.f32.mxu0 %vm2925_vm7, %v2868_v11  ;;  %16017 = vst [vmem:[#allocation86_spill] sm:$0xff] %v12832_v19  ;;  %v2739_v11 = vsel %vm2727_vm5, %v2706_v23, %v9654_v49  ;;  %v12837_v46 = vpop.f32.mrb[1].mxu0  ;;  %v2871_v49 = vsel %vm2858_vm6, %v2838_v16, %v2558_v33  ;;  %v2642_v28 = vsel %vm1210_vm1, %v10763_v47, %v9639_v52  ;;  %v9658_v25 = vunpack.i.l.bf16 %v16023_v50  ;;  %v16031_v53 = vld [vmem:[#allocation64_spill] sm:$0xff]  ;;  %v10764_v26 = vld [vmem:[#allocation2 + $0xe7] sm:$0xff]  ;;  %v2562_v33 = vpop.permute.xlu0 %2561 }
 0x2d8   : > { %16019 = vst [vmem:[#allocation88_spill] sm:$0xff] %v12837_v46  ;;  %v12842_v63 = vpop.f32.mrb[2].mxu0  ;;  %6822 = vrot.lane.b32.xlu1 %v5832_v43, %s15833_s26  ;;  %v2772_v39 = vsel %vm2760_vm8, %v2739_v11, %v16015_v10  ;;  %v2675_v14 = vsel %vm2661_vm2, %v2642_v28, %v9644_v22  ;;  %v9663_v20 = vunpack.i.l.bf16 %v16025_v51  ;;  %v2806_v17 = vsel %vm590_vm0, %v16027_v58, %v16026_v32  ;;  %s10836_s26 = smov 80  }
 0x2d9   : > { %16020 = vst [vmem:[#allocation5_spill] sm:$0xff] %v12842_v63  ;;  %v12862_v61 = vpop.f32.mrb[3].mxu0  ;;  %v9688_v41 = vunpack.i.l.bf16 %v16029_v18  ;;  %v9659_v43 = vunpack.i.h.bf16 %v16023_v50  ;;  %v9664_v60 = vunpack.i.h.bf16 %v16025_v51  ;;  %v9689_v44 = vunpack.i.h.bf16 %v16029_v18  ;;  %v2564_v32 = vpop.permute.xlu1 %2563 }
 0x2da   : > { %3132 = vmatmul.mubr.f32.gmra.mrb[50].mxu0 %v2770_v30  ;;  %v2707_v30 = vsel %vm2694_vm3, %v2674_v55, %v9668_v29  ;;  %16024 = vst [vmem:[#allocation9_spill] sm:$0xff] %v12862_v61  ;;  %v12869_v10 = vpop.f32.mrb[4].mxu0  ;;  %v2839_v29 = vsel %vm2825_vm4, %v2806_v17, %v12577_v31  ;;  %v2643_v31 = vsel %vm1210_vm1, %v10764_v26, %v9658_v25  ;;  %v9694_v28 = vunpack.i.h.bf16 %v16031_v53  ;;  %v16041_v17 = vld [vmem:[#allocation63_spill] sm:$0xff] }
 0x2db   : > { %8667 = vmatprep.mubr.msk.f32.mxu0 %vm2925_vm7, %v2869_v8  ;;  %v2740_v8 = vsel %vm2727_vm5, %v2707_v30, %v9673_v6  ;;  %16028 = vst [vmem:[#allocation90_spill] sm:$0xff] %v12869_v10  ;;  %v12877_v23 = vpop.f32.mrb[5].mxu0  ;;  %v9693_v6 = vunpack.i.l.bf16 %v16031_v53  ;;  %v2676_v55 = vsel %vm2661_vm2, %v2643_v31, %v9663_v20  ;;  %v9683_v18 = vunpack.i.l.bf16 %v16041_v17  ;;  %v16043_v53 = vld [vmem:[#allocation69_spill] sm:$0xff]  ;;  %v16046_v31 = vld [vmem:[#allocation71_spill] sm:$0xff] }
 0x2dc   : > { %v2773_v5 = vsel %vm2760_vm8, %v2740_v8, %v16022_v42  ;;  %16030 = vst [vmem:[#allocation11_spill] sm:$0xff] %v12877_v23  ;;  %v12883_v52 = vpop.f32.mrb[6].mxu0  ;;  %v16034_v42 = vld [vmem:[#allocation75_spill] sm:$0xff] }
 0x2dd   : > { %16032 = vst [vmem:[#allocation92_spill] sm:$0xff] %v12883_v52  ;;  %v12888_v22 = vpop.f32.mrb[7].mxu0  ;;  %v10765_v8 = vld [vmem:[#allocation2 + $0xef] sm:$0xff] }
 0x2de   : > { %3137 = vmatmul.mubr.f32.gmra.mrb[52].mxu0 %v2771_v27  ;;  %v2708_v27 = vsel %vm2694_vm3, %v2675_v14, %v9669_v35  ;;  %16033 = vst [vmem:[#allocation93_spill] sm:$0xff] %v12888_v22  ;;  %v2807_v35 = vsel %vm590_vm0, %v16035_v9, %v16034_v42  ;;  %v12895_v16 = vpop.f32.mrb[8].mxu0  ;;  %v2644_v47 = vsel %vm1210_vm1, %v10765_v8, %v9659_v43  ;;  %v16039_v14 = vld [vmem:[#allocation61_spill] sm:$0xff]  ;;  %v10766_v42 = vld [vmem:[#allocation2 + $0x10f] sm:$0xff] }
 0x2df   : > { %8668 = vmatprep.mubr.msk.f32.mxu0 %vm2925_vm7, %v2870_v38  ;;  %v2872_v38 = vsel %vm2858_vm6, %v2839_v29, %v2560_v62  ;;  %v2741_v11 = vsel %vm2727_vm5, %v2708_v27, %v9674_v48  ;;  %16036 = vst [vmem:[#allocation19_spill] sm:$0xff] %v12895_v16  ;;  %v2709_v48 = vsel %vm2694_vm3, %v2676_v55, %v9688_v41  ;;  %v9679_v51 = vunpack.i.h.bf16 %v16039_v14  ;;  %v16042_v41 = vld [vmem:[#allocation60_spill] sm:$0xff]  ;;  %v12924_v27 = vld [vmem:[%s15712_s2] ss:$0 sm:$0xff] }
 0x2e0   : > { %v2774_v30 = vsel %vm2760_vm8, %v2741_v11, %v16027_v58  ;;  %v2742_v25 = vsel %vm2727_vm5, %v2709_v48, %v9693_v6  ;;  %v9678_v20 = vunpack.i.l.bf16 %v16039_v14  ;;  %v2808_v29 = vsel %vm590_vm0, %v16042_v41, %v12458_v54 }
 0x2e1   : > { %v9708_v6 = vunpack.i.l.bf16 %v16043_v53  ;;  %v2775_v11 = vsel %vm2760_vm8, %v2742_v25, %v16035_v9  ;;  %v9684_v9 = vunpack.i.h.bf16 %v16041_v17 }
 0x2e2   : > { %3142 = vmatmul.mubr.f32.gmra.mrb[54].mxu0 %v2772_v39  ;;  %v2840_v39 = vsel %vm2825_vm4, %v2807_v35, %v12559_v34  ;;  %v2677_v34 = vsel %vm2661_vm2, %v2644_v47, %v9664_v60  ;;  %v9713_v60 = vunpack.i.l.bf16 %v16046_v31  ;;  %v2646_v35 = vsel %vm1210_vm1, %v10766_v42, %v9679_v51 }
 0x2e3   : > { %8669 = vmatprep.mubr.msk.f32.mxu0 %vm2925_vm7, %v2871_v49  ;;  %v12902_v49 = vpop.f32.mrb[9].mxu0  ;;  %v2873_v50 = vsel %vm2858_vm6, %v2840_v39, %v2562_v33 }
 0x2e4   : > { %16037 = vst [vmem:[#allocation13_spill] sm:$0xff] %v12902_v49  ;;  %v12908_v62 = vpop.f32.mrb[10].mxu0 }
 0x2e5   : > { %16038 = vst [vmem:[#allocation95_spill] sm:$0xff] %v12908_v62  ;;  %v12914_v58 = vpop.f32.mrb[11].mxu0 }
 0x2e6   : > { %3147 = vmatmul.mubr.f32.gmra.mrb[56].mxu0 %v2773_v5  ;;  %16040 = vst [vmem:[#allocation96_spill] sm:$0xff] %v12914_v58  ;;  %v2710_v5 = vsel %vm2694_vm3, %v2677_v34, %v9689_v44  ;;  %v9065_v43 = vpop.f32.mrb[12].mxu0 }
 0x2e7   : > { %8670 = vmatprep.mubr.msk.f32.mxu0 %vm2925_vm7, %v2872_v38  ;;  %v2841_v38 = vsel %vm2825_vm4, %v2808_v29, %v12587_v15  ;;  %v12932_v26 = vadd.f32 %v9065_v43, %v12924_v27  ;;  %v12934_v54 = vpop.f32.mrb[13].mxu0  ;;  %v2743_v55 = vsel %vm2727_vm5, %v2710_v5, %v9694_v28  ;;  %v10767_v15 = vld [vmem:[#allocation2 + $0x107] sm:$0xff]  ;;  %v9709_v28 = vunpack.i.h.bf16 %v16043_v53 }
 0x2e8   : > { %16045 = vst [vmem:[#allocation99_spill] sm:$0xff] %v12934_v54  ;;  %v2874_v33 = vsel %vm2858_vm6, %v2841_v38, %v2564_v32  ;;  %v9068_v44 = vpop.f32.mrb[14].mxu0  ;;  %v2645_v39 = vsel %vm1210_vm1, %v10767_v15, %v9678_v20  ;;  %v2776_v20 = vsel %vm2760_vm8, %v2743_v55, %v16042_v41  ;;  %v9714_v29 = vunpack.i.h.bf16 %v16046_v31  ;;  %v16052_v41 = vld [vmem:[#allocation70_spill] sm:$0xff]  ;;  %v16054_v55 = vld [vmem:[#allocation68_spill] sm:$0xff] }
 0x2e9   : > { %16044 = vst [vmem:[#allocation97_spill] sm:$0xff] %v12932_v26  ;;  %v12944_v48 = vadd.f32 %v9068_v44, %v12924_v27  ;;  %v823_v8 = vpop.f32.mrb[15].mxu0  ;;  %v2678_v47 = vsel %vm2661_vm2, %v2645_v39, %v9683_v18  ;;  %v2679_v53 = vsel %vm2661_vm2, %v2646_v35, %v9684_v9  ;;  %v9699_v38 = vunpack.i.h.bf16 %v16052_v41  ;;  %v16056_v15 = vld [vmem:[#allocation72_spill] sm:$0xff] }
 0x2ea   : > { %3152 = vmatmul.mubr.f32.gmra.mrb[58].mxu0 %v2774_v30  ;;  %v2566_v30 = vpop.permute.xlu0 %2565  ;;  %v12952_v34 = vadd.f32 %v12924_v27, %v823_v8  ;;  %v9071_v14 = vpop.f32.mrb[16].mxu0  ;;  %v2711_v32 = vsel %vm2694_vm3, %v2678_v47, %v9708_v6  ;;  %v2712_v44 = vsel %vm2694_vm3, %v2679_v53, %v9709_v28  ;;  %v9703_v39 = vunpack.i.l.bf16 %v16056_v15  ;;  %v10769_v53 = vld [vmem:[#allocation2 + $0x127] sm:$0xff] }
 0x2eb   : > { %8671 = vmatprep.mubr.msk.f32.mxu0 %vm2925_vm7, %v2873_v50  ;;  %16047 = vst [vmem:[#allocation7_spill] sm:$0xff] %v12944_v48  ;;  %v16048_v50 = vld [vmem:[#allocation73_spill] sm:$0xff]  ;;  %v12960_v17 = vadd.f32 %v9071_v14, %v12924_v27  ;;  %v833_v18 = vpop.f32.mrb[17].mxu0  ;;  %v2744_v5 = vsel %vm2727_vm5, %v2711_v32, %v9713_v60  ;;  %v2568_v6 = vpop.permute.xlu1 %2567  ;;  %v2810_v60 = vsel %vm590_vm0, %v16054_v55, %v12496_v4  ;;  %v9704_v4 = vunpack.i.h.bf16 %v16056_v15  ;;  %v16059_v32 = vld [vmem:[#allocation76_spill] sm:$0xff] }
 0x2ec   : > { %v2809_v25 = vsel %vm590_vm0, %v16048_v50, %v12438_v37  ;;  %16049 = vst [vmem:[#allocation100_spill] sm:$0xff] %v12952_v34  ;;  %v12966_v43 = vadd.f32 %v12924_v27, %v833_v18  ;;  %v2843_v9 = vsel %vm2825_vm4, %v2810_v60, %v12599_v57  ;;  %v9728_v18 = vunpack.i.l.bf16 %v16059_v32  ;;  %v3650_v34 = vld [vmem:[#allocation3 + $0x7] sm:$0xff] }
 0x2ed   : > { %v2842_v51 = vsel %vm2825_vm4, %v2809_v25, %v12567_v45  ;;  %16050 = vst [vmem:[#allocation8_spill] sm:$0xff] %v12960_v17  ;;  %v9074_v45 = vpop.f32.mrb[18].mxu0  ;;  %v2876_v28 = vsel %vm2858_vm6, %v2843_v9, %v2568_v6  ;;  %v2745_v25 = vsel %vm2727_vm5, %v2712_v44, %v9714_v29 }
 0x2ee   : > { %3157 = vmatmul.mubr.f32.gmra.mrb[60].mxu0 %v2775_v11  ;;  %v2875_v37 = vsel %vm2858_vm6, %v2842_v51, %v2566_v30  ;;  %16051 = vst [vmem:[#allocation101_spill] sm:$0xff] %v12966_v43  ;;  %v12972_v11 = vadd.f32 %v9074_v45, %v12924_v27  ;;  %v843_v31 = vpop.f32.mrb[19].mxu0  ;;  %v2777_v30 = vsel %vm2760_vm8, %v2744_v5, %v16048_v50  ;;  %v9729_v50 = vunpack.i.h.bf16 %v16059_v32 }
 0x2ef   : > { %8672 = vmatprep.mubr.msk.f32.mxu0 %vm2925_vm7, %v2874_v33  ;;  %v9698_v33 = vunpack.i.l.bf16 %v16052_v41  ;;  %v12980_v42 = vadd.f32 %v12924_v27, %v843_v31  ;;  %v9077_v35 = vpop.f32.mrb[20].mxu0  ;;  %v16061_v41 = vld [vmem:[#allocation78_spill] sm:$0xff]  ;;  %v16062_v31 = vld [vmem:[#allocation81_spill] sm:$0xff]  ;;  %v2778_v9 = vsel %vm2760_vm8, %v2745_v25, %v16054_v55  ;;  %v2572_v32 = vpop.permute.xlu1 %2571 }
 0x2f0   : > { %16053 = vst [vmem:[#allocation14_spill] sm:$0xff] %v12972_v11  ;;  %v12988_v8 = vadd.f32 %v9077_v35, %v12924_v27  ;;  %v853_v47 = vpop.f32.mrb[21].mxu0  ;;  %v9733_v6 = vunpack.i.l.bf16 %v16061_v41 }
 0x2f1   : > { %16055 = vst [vmem:[#allocation102_spill] sm:$0xff] %v12980_v42  ;;  %v12994_v14 = vadd.f32 %v12924_v27, %v853_v47  ;;  %v9080_v51 = vpop.f32.mrb[22].mxu0  ;;  %v2647_v29 = vsel %vm1210_vm1, %v10769_v53, %v9698_v33  ;;  %v16069_v53 = vld [vmem:[#allocation74_spill] sm:$0xff] }
 0x2f2   : > { %3162 = vmatmul.mubr.f32.gmra.mrb[62].mxu0 %v2776_v20  ;;  %16057 = vst [vmem:[#allocation16_spill] sm:$0xff] %v12988_v8  ;;  %v10768_v20 = vld [vmem:[#allocation2 + $0x12f] sm:$0xff]  ;;  %v13001_v5 = vadd.f32 %v9080_v51, %v12924_v27  ;;  %v863_v45 = vpop.f32.mrb[23].mxu0  ;;  %v2680_v35 = vsel %vm2661_vm2, %v2647_v29, %v9703_v39  ;;  %v2812_v29 = vsel %vm590_vm0, %v16069_v53, %v12505_v24 }
 0x2f3   : > { %8673 = vmatprep.mubr.msk.f32.mxu0 %vm2925_vm7, %v2875_v37  ;;  %16058 = vst [vmem:[#allocation18_spill] sm:$0xff] %v12994_v14  ;;  %v2648_v57 = vsel %vm1210_vm1, %v10768_v20, %v9699_v38  ;;  %v2570_v37 = vpop.permute.xlu0 %2569  ;;  %v2811_v38 = vsel %vm590_vm0, %v16062_v31, %v12452_v21  ;;  %v13009_v60 = vadd.f32 %v12924_v27, %v863_v45  ;;  %v9083_v44 = vpop.f32.mrb[24].mxu0  ;;  %v9734_v21 = vunpack.i.h.bf16 %v16061_v41  ;;  %v16066_v20 = vld [vmem:[#allocation77_spill] sm:$0xff]  ;;  %v16068_v45 = vld [vmem:[#allocation79_spill] sm:$0xff] }
 0x2f4   : > { %16060 = vst [vmem:[#allocation6_spill] sm:$0xff] %v13001_v5  ;;  %v2844_v15 = vsel %vm2825_vm4, %v2811_v38, %v12575_v59  ;;  %v13017_v33 = vadd.f32 %v9083_v44, %v12924_v27  ;;  %v2681_v47 = vsel %vm2661_vm2, %v2648_v57, %v9704_v4  ;;  %v9718_v59 = vunpack.i.l.bf16 %v16066_v20 }
 0x2f5   : > { %16063 = vst [vmem:[#allocation27_spill] sm:$0xff] %v13009_v60  ;;  %v2713_v55 = vsel %vm2694_vm3, %v2680_v35, %v9728_v18  ;;  %v2714_v25 = vsel %vm2694_vm3, %v2681_v47, %v9729_v50  ;;  %v2845_v50 = vsel %vm2825_vm4, %v2812_v29, %v12612_v2  ;;  %v16073_v47 = vld [vmem:[#allocation85_spill] sm:$0xff]  ;;  %v9719_v2 = vunpack.i.h.bf16 %v16066_v20 }
 0x2f6   : > { %3167 = vmatmul.mubr.f32.gmra.mrb[64].mxu0 %v2777_v30  ;;  %16064 = vst [vmem:[#allocation17_spill] sm:$0xff] %v13017_v33  ;;  %v873_v30 = vpop.f32.mrb[25].mxu0  ;;  %v2746_v41 = vsel %vm2727_vm5, %v2713_v55, %v9733_v6  ;;  %v9753_v24 = vunpack.i.l.bf16 %v16073_v47  ;;  %v2878_v6 = vsel %vm2858_vm6, %v2845_v50, %v2572_v32  ;;  %v9724_v32 = vunpack.i.h.bf16 %v16068_v45 }
 0x2f7   : > { %8674 = vmatprep.mubr.msk.f32.mxu0 %vm2925_vm7, %v2876_v28  ;;  %v2877_v28 = vsel %vm2858_vm6, %v2844_v15, %v2570_v37  ;;  %v13023_v51 = vadd.f32 %v12924_v27, %v873_v30  ;;  %v9086_v39 = vpop.f32.mrb[26].mxu0  ;;  %v9723_v37 = vunpack.i.l.bf16 %v16068_v45  ;;  %v16071_v15 = vld [vmem:[#allocation83_spill] sm:$0xff]  ;;  %v2779_v35 = vsel %vm2760_vm8, %v2746_v41, %v16062_v31  ;;  %v2574_v29 = vpop.permute.xlu0 %2573 }
 0x2f8   : > { %v13030_v4 = vadd.f32 %v9086_v39, %v12924_v27  ;;  %v883_v57 = vpop.f32.mrb[27].mxu0  ;;  %v9748_v18 = vunpack.i.l.bf16 %v16071_v15  ;;  %v9754_v45 = vunpack.i.h.bf16 %v16073_v47 }
 0x2f9   : > { %16065 = vst [vmem:[#allocation103_spill] sm:$0xff] %v13023_v51  ;;  %v13038_v38 = vadd.f32 %v12924_v27, %v883_v57  ;;  %v9089_v44 = vpop.f32.mrb[28].mxu0  ;;  %v10770_v57 = vld [vmem:[#allocation2 + $0x147] sm:$0xff] }
 0x2fa   : > { %3172 = vmatmul.mubr.f32.gmra.mrb[66].mxu0 %v2778_v9  ;;  %16067 = vst [vmem:[#allocation104_spill] sm:$0xff] %v13030_v4  ;;  %v13046_v9 = vadd.f32 %v9089_v44, %v12924_v27  ;;  %v893_v30 = vpop.f32.mrb[29].mxu0  ;;  %v2649_v31 = vsel %vm1210_vm1, %v10770_v57, %v9718_v59  ;;  %v9749_v59 = vunpack.i.h.bf16 %v16071_v15  ;;  %v2576_v57 = vpop.permute.xlu1 %2575  ;;  %v16078_v15 = vld [vmem:[#allocation80_spill] sm:$0xff] }
 0x2fb   : > { %8675 = vmatprep.mubr.msk.f32.mxu0 %vm2925_vm7, %v2877_v28  ;;  %16070 = vst [vmem:[#allocation12_spill] sm:$0xff] %v13038_v38  ;;  %v2747_v28 = vsel %vm2727_vm5, %v2714_v25, %v9734_v21  ;;  %v13052_v39 = vadd.f32 %v12924_v27, %v893_v30  ;;  %v2682_v21 = vsel %vm2661_vm2, %v2649_v31, %v9723_v37  ;;  %v16076_v25 = vld [vmem:[#allocation89_spill] sm:$0xff] }
 0x2fc   : > { %16072 = vst [vmem:[#allocation15_spill] sm:$0xff] %v13046_v9  ;;  %v9092_v55 = vpop.f32.mrb[30].mxu0  ;;  %v2813_v50 = vsel %vm590_vm0, %v16076_v25, %v12472_v12  ;;  %v2780_v30 = vsel %vm2760_vm8, %v2747_v28, %v16069_v53  ;;  %v2814_v53 = vsel %vm590_vm0, %v16078_v15, %v12513_v3  ;;  %v16081_v3 = vld [vmem:[#allocation91_spill] sm:$0xff] }
 0x2fd   : > { %16074 = vst [vmem:[#allocation26_spill] sm:$0xff] %v13052_v39  ;;  %v13058_v41 = vadd.f32 %v9092_v55, %v12924_v27  ;;  %v903_v44 = vpop.f32.mrb[31].mxu0  ;;  %v10771_v55 = vld [vmem:[#allocation2 + $0x14f] sm:$0xff]  ;;  %v2847_v47 = vsel %vm2825_vm4, %v2814_v53, %v12622_v7 }
 0x2fe   : > { %3177 = vmatmul.mubr.f32.gmra.mrb[68].mxu0 %v2779_v35  ;;  %v13066_v20 = vadd.f32 %v12924_v27, %v903_v44  ;;  %v2846_v35 = vsel %vm2825_vm4, %v2813_v50, %v12584_v0  ;;  %v2650_v27 = vsel %vm1210_vm1, %v10771_v55, %v9719_v2  ;;  %v16080_v2 = vld [vmem:[#allocation84_spill] sm:$0xff]  ;;  %v2880_v44 = vsel %vm2858_vm6, %v2847_v47, %v2576_v57  ;;  %v2580_v47 = vpop.permute.xlu1 %2579 }
 0x2ff   : > { %8676 = vmatprep.mubr.msk.f32.mxu0 %vm2925_vm7, %v2878_v6  ;;  %16075 = vst [vmem:[#allocation10_spill] sm:$0xff] %v13058_v41  ;;  %v2715_v6 = vsel %vm2694_vm3, %v2682_v21, %v9748_v18  ;;  %v2879_v37 = vsel %vm2858_vm6, %v2846_v35, %v2574_v29  ;;  %v2683_v0 = vsel %vm2661_vm2, %v2650_v27, %v9724_v32  ;;  %v16079_v18 = vld [vmem:[#allocation82_spill] sm:$0xff]  ;;  %v9743_v29 = vunpack.i.l.bf16 %v16080_v2  ;;  %v2578_v35 = vpop.permute.xlu0 %2577 }
 0x300   : > { %16077 = vst [vmem:[#allocation105_spill] sm:$0xff] %v13066_v20  ;;  %v2748_v12 = vsel %vm2727_vm5, %v2715_v6, %v9753_v24  ;;  %v9738_v28 = vunpack.i.l.bf16 %v16079_v18  ;;  %v2716_v31 = vsel %vm2694_vm3, %v2683_v0, %v9749_v59  ;;  %v9739_v21 = vunpack.i.h.bf16 %v16079_v18  ;;  %v16083_v59 = vld [vmem:[#allocation98_spill] sm:$0xff] }
 0x301   : > { %v2781_v24 = vsel %vm2760_vm8, %v2748_v12, %v16076_v25  ;;  %v2749_v32 = vsel %vm2727_vm5, %v2716_v31, %v9754_v45  ;;  %v9768_v50 = vunpack.i.l.bf16 %v16081_v3  ;;  %v9744_v7 = vunpack.i.h.bf16 %v16080_v2  ;;  %v10773_v18 = vld [vmem:[#allocation2 + $0x16f] sm:$0xff] }
 0x302   : > { %3182 = vmatmul.mubr.f32.gmra.mrb[70].mxu0 %v2780_v30  ;;  %v16082_v30 = vld [vmem:[#allocation94_spill] sm:$0xff]  ;;  %v2815_v6 = vsel %vm590_vm0, %v16083_v59, %v12491_v40  ;;  %v9769_v45 = vunpack.i.h.bf16 %v16081_v3  ;;  %v2782_v27 = vsel %vm2760_vm8, %v2749_v32, %v16078_v15  ;;  %v2652_v40 = vsel %vm1210_vm1, %v10773_v18, %v9739_v21  ;;  %v5068_v18 = vld [vmem:[%s15719_s9 + $0x30] sm:$0xff] }
 0x303   : > { %8677 = vmatprep.mubr.msk.f32.mxu0 %vm2925_vm7, %v2879_v37  ;;  %v9773_v25 = vunpack.i.l.bf16 %v16082_v30  ;;  %v10772_v37 = vld [vmem:[#allocation2 + $0x167] sm:$0xff]  ;;  %v2848_v55 = vsel %vm2825_vm4, %v2815_v6, %v12596_v13  ;;  %v9774_v0 = vunpack.i.h.bf16 %v16082_v30  ;;  %v2685_v13 = vsel %vm2661_vm2, %v2652_v40, %v9744_v7  ;;  %v5069_v40 = vld [vmem:[%s15719_s9 + $0x38] sm:$0xff] }
 0x304   : > { %v2651_v12 = vsel %vm1210_vm1, %v10772_v37, %v9738_v28  ;;  %v2881_v53 = vsel %vm2858_vm6, %v2848_v55, %v2578_v35  ;;  %v5065_v55 = vld [vmem:[%s15719_s9 + $0x18] sm:$0xff] }
 0x305   : > { %v2684_v57 = vsel %vm2661_vm2, %v2651_v12, %v9743_v29 }
 0x306   : > { %3187 = vmatmul.mubr.f32.gmra.mrb[72].mxu0 %v2781_v24  ;;  %v2717_v28 = vsel %vm2694_vm3, %v2684_v57, %v9768_v50  ;;  %v16084_v24 = vld [vmem:[#allocation87_spill] sm:$0xff]  ;;  %v5066_v57 = vld [vmem:[%s15719_s9 + $0x20] sm:$0xff] }
 0x307   : > { %8678 = vmatprep.mubr.msk.f32.mxu0 %vm2925_vm7, %v2880_v44  ;;  %v2816_v15 = vsel %vm590_vm0, %v16084_v24, %v12521_v56  ;;  %v2750_v31 = vsel %vm2727_vm5, %v2717_v28, %v9773_v25  ;;  %v2718_v44 = vsel %vm2694_vm3, %v2685_v13, %v9769_v45  ;;  %v5062_v25 = vld [vmem:[%s15719_s9] sm:$0xff]  ;;  %v5064_v45 = vld [vmem:[%s15719_s9 + $0x10] sm:$0xff] }
 0x308   : > { %v2849_v2 = vsel %vm2825_vm4, %v2816_v15, %v12633_v36  ;;  %v2783_v29 = vsel %vm2760_vm8, %v2750_v31, %v16083_v59  ;;  %v2751_v21 = vsel %vm2727_vm5, %v2718_v44, %v9774_v0  ;;  %v5063_v59 = vld [vmem:[%s15719_s9 + $0x8] sm:$0xff]  ;;  %v5070_v31 = vld [vmem:[%s15719_s9 + $0x40] sm:$0xff] }
 0x309   : > { %v2882_v32 = vsel %vm2858_vm6, %v2849_v2, %v2580_v47  ;;  %v2784_v56 = vsel %vm2760_vm8, %v2751_v21, %v16084_v24  ;;  %v9379_v6 = vpack.c.bf16 %v5063_v59, %v5062_v25  ;;  %v5067_v0 = vld [vmem:[%s15719_s9 + $0x28] sm:$0xff]  ;;  %v9388_v47 = vpack.c.bf16 %v5069_v40, %v5068_v18 }
 0x30a   : > { %3192 = vmatmul.mubr.f32.gmra.mrb[74].mxu0 %v2782_v27  ;;  %v9382_v27 = vpack.c.bf16 %v5065_v55, %v5064_v45  ;;  %v5071_v2 = vld [vmem:[%s15719_s9 + $0x48] sm:$0xff]  ;;  %v5074_v45 = vld [vmem:[%s15719_s9 + $0x60] sm:$0xff] }
 0x30b   : > { %8679 = vmatprep.mubr.msk.f32.mxu0 %vm2925_vm7, %v2881_v53  ;;  %9380 = vmatpush1.bf16.msra.mxu1 %v9379_v6  ;;  %v9385_v53 = vpack.c.bf16 %v5067_v0, %v5066_v57  ;;  %v5075_v55 = vld [vmem:[%s15719_s9 + $0x68] sm:$0xff] }
 0x30c   : > { %9381 = vmatprep.subr.bf16.mxu1 %v15877_v1  ;;  %v9397_v57 = vpack.c.bf16 %v5075_v55, %v5074_v45 }
 0x30e   : > { %3197 = vmatmul.mubr.f32.gmra.mrb[76].mxu0 %v2783_v29  ;;  %v9391_v29 = vpack.c.bf16 %v5071_v2, %v5070_v31 }
 0x30f   : > { %8680 = vmatprep.mubr.msk.f32.mxu0 %vm2925_vm7, %v2882_v32  ;;  %9383 = vmatpush1.bf16.msra.mxu1 %v9382_v27 }
 0x310   : > { %9384 = vmatprep.subr.bf16.mxu1 %v15877_v1 }
 0x312   : > { %3202 = vmatmul.mubr.f32.gmra.mrb[78].mxu0 %v2784_v56  ;;  %v13127_v3 = vpop.f32.mrb[32].mxu1 }
 0x313   : > { %16085 = vst [vmem:[#allocation21_spill] sm:$0xff] %v13127_v3  ;;  %v3210_v50 = vpop.f32.mrb[33].mxu1  ;;  %9386 = vmatpush1.bf16.msra.mxu1 %v9385_v53 }
 0x314   : > { %9387 = vmatprep.subr.bf16.mxu1 %v15877_v1  ;;  %v5072_v50 = vld [vmem:[%s15719_s9 + $0x50] sm:$0xff] }
 0x316   : > { %v13129_v36 = vpop.f32.mrb[34].mxu1 }
 0x317   : > { %16086 = vst [vmem:[#allocation23_spill] sm:$0xff] %v13129_v36  ;;  %v3215_v35 = vpop.f32.mrb[35].mxu1  ;;  %9389 = vmatpush1.bf16.msra.mxu1 %v9388_v47 }
 0x318   : > { %9390 = vmatprep.subr.bf16.mxu1 %v15877_v1  ;;  %v5073_v35 = vld [vmem:[%s15719_s9 + $0x58] sm:$0xff] }
 0x319   : > { %v9394_v25 = vpack.c.bf16 %v5073_v35, %v5072_v50  ;;  %v5076_v50 = vld [vmem:[%s15719_s9 + $0x70] sm:$0xff]  ;;  %v5077_v35 = vld [vmem:[%s15719_s9 + $0x78] sm:$0xff] }
 0x31b   : > { %9392 = vmatpush1.bf16.msra.mxu1 %v9391_v29 }
 0x31c   : > { %9393 = vmatprep.subr.bf16.mxu1 %v15877_v1 }
 0x31f   : > { %9395 = vmatpush1.bf16.msra.mxu1 %v9394_v25 }
 0x320   : > { %9396 = vmatprep.subr.bf16.mxu1 %v15877_v1 }
 0x323   : > { %9398 = vmatpush1.bf16.msra.mxu1 %v9397_v57 }
 0x324   : > { %9399 = vmatprep.subr.bf16.mxu1 %v15877_v1 }
 0x32a   : > { %v13131_v7 = vpop.f32.mrb[36].mxu1 }
 0x32b   : > { %16087 = vst [vmem:[#allocation35_spill] sm:$0xff] %v13131_v7  ;;  %v3220_v30 = vpop.f32.mrb[37].mxu1 }
 0x32c   : > { %v13187_v30 = vld [vmem:[%s15718_s8] ss:$0 sm:$0xff] }
 0x32e   : > { %v13139_v37 = vpop.f32.mrb[38].mxu1 }
 0x32f   : > { %16088 = vst [vmem:[#allocation25_spill] sm:$0xff] %v13139_v37  ;;  %v3225_v12 = vpop.f32.mrb[39].mxu1 }
 0x336   : > { %v13359_v9 = vpop.permute.xlu0 %9846 }
 0x337   : > { %v9848_v43 = vunpack.i.l.bf16 %v13359_v9  ;;  %v9849_v58 = vunpack.i.h.bf16 %v13359_v9 }
 0x339   : > { %v4835_v49 = vsel %vm590_vm0, %v3650_v34, %v9848_v43 }
 0x33a   : > { %v13369_v4 = vpop.permute.xlu0 %9851 }
 0x33e   : > { %v13379_v33 = vpop.permute.xlu0 %9856 }
 0x342   : > { %v13162_v28 = vpop.f32.mrb[40].mxu1  ;;  %v13389_v11 = vpop.permute.xlu0 %9866 }
 0x343   : > { %16089 = vst [vmem:[#allocation22_spill] sm:$0xff] %v13162_v28  ;;  %v3230_v13 = vpop.f32.mrb[41].mxu1 }
 0x346   : > { %v13165_v24 = vpop.f32.mrb[42].mxu1 }
 0x347   : > { %16090 = vst [vmem:[#allocation24_spill] sm:$0xff] %v13165_v24  ;;  %v3235_v15 = vpop.f32.mrb[43].mxu1 }
 0x34b   : > { %v13173_v44 = vpop.f32.mrb[44].mxu1 }
 0x34c   : > { %16091 = vst [vmem:[#allocation34_spill] sm:$0xff] %v13173_v44  ;;  %v3240_v32 = vpop.f32.mrb[45].mxu1 }
 0x34f   : > { %v13176_v21 = vpop.f32.mrb[46].mxu1 }
 0x350   : > { %16092 = vst [vmem:[#allocation20_spill] sm:$0xff] %v13176_v21  ;;  %v3245_v56 = vpop.f32.mrb[47].mxu1 }
 0x353   : > { %v9151_v59 = vpop.f32.mrb[48].mxu1 }
 0x354   : > { %v3360_v6 = vadd.f32 %v9151_v59, %v13187_v30  ;;  %v3354_v12 = vpop.f32.mrb[49].mxu1  ;;  %v9400_v59 = vpack.c.bf16 %v5077_v35, %v5076_v50 }
 0x355   : > { %v3355_v27 = vadd.f32 %v13187_v30, %v3354_v12 }
 0x356   : > { %v3514_v0 = vmax.f32 %v3360_v6, 0.0  ;;  %9401 = vmatpush1.bf16.msra.mxu1 %v9400_v59 }
 0x357   : > { %v3513_v53 = vmax.f32 %v3355_v27, 0.0  ;;  %v9154_v18 = vpop.f32.mrb[50].mxu1  ;;  %9402 = vmatprep.subr.bf16.mxu1 %v15877_v1 }
 0x358   : > { %3619 = vst.msk [vmem:[#allocation3 + $0x30] sm:$0xff] %vm590_vm0, %v3514_v0  ;;  %v3370_v40 = vadd.f32 %v9154_v18, %v13187_v30  ;;  %v3364_v47 = vpop.f32.mrb[51].mxu1 }
 0x359   : > { %3618 = vst.msk [vmem:[#allocation3 + $0x28] sm:$0xff] %vm590_vm0, %v3513_v53  ;;  %v3365_v13 = vadd.f32 %v13187_v30, %v3364_v47 }
 0x35a   : > { %v3516_v15 = vmax.f32 %v3370_v40, 0.0 }
 0x35b   : > { %v3515_v31 = vmax.f32 %v3365_v13, 0.0  ;;  %v9157_v2 = vpop.f32.mrb[52].mxu1 }
 0x35c   : > { %3621 = vst.msk [vmem:[#allocation3 + $0x50] sm:$0xff] %vm590_vm0, %v3516_v15  ;;  %v3380_v29 = vadd.f32 %v9157_v2, %v13187_v30  ;;  %v3374_v32 = vpop.f32.mrb[53].mxu1 }
 0x35d   : > { %3620 = vst.msk [vmem:[#allocation3 + $0x48] sm:$0xff] %vm590_vm0, %v3515_v31  ;;  %v3375_v56 = vadd.f32 %v13187_v30, %v3374_v32 }
 0x35e   : > { %v3518_v25 = vmax.f32 %v3380_v29, 0.0 }
 0x35f   : > { %v3685_v6 = vld [vmem:[#allocation3 + $0x30] sm:$0xff]  ;;  %v3517_v12 = vmax.f32 %v3375_v56, 0.0  ;;  %v9160_v45 = vpop.f32.mrb[54].mxu1 }
 0x360   : > { %v3746_v55 = vld [vmem:[#allocation3 + $0x27] sm:$0xff]  ;;  %v3747_v27 = vld [vmem:[#allocation3 + $0x2f] sm:$0xff]  ;;  %3623 = vst.msk [vmem:[#allocation3 + $0x70] sm:$0xff] %vm590_vm0, %v3518_v25  ;;  %v3390_v0 = vadd.f32 %v9160_v45, %v13187_v30  ;;  %v3384_v53 = vpop.f32.mrb[55].mxu1 }
 0x361   : > { %v3684_v57 = vld [vmem:[#allocation3 + $0x28] sm:$0xff]  ;;  %v9885_v18 = vpack.i.bf16 %v3747_v27, %v3746_v55  ;;  %3622 = vst.msk [vmem:[#allocation3 + $0x68] sm:$0xff] %vm590_vm0, %v3517_v12  ;;  %v3385_v47 = vadd.f32 %v13187_v30, %v3384_v53  ;;  %v3811_v15 = vld [vmem:[#allocation3 + $0x31] sm:$0xff]  ;;  %v5078_v12 = vld [vmem:[%s15719_s9 + $0x80] sm:$0xff] }
 0x362   : > { %v9875_v40 = vpack.i.bf16 %v3685_v6, %v3684_v57  ;;  %v3810_v13 = vld [vmem:[#allocation3 + $0x29] sm:$0xff]  ;;  %v3520_v31 = vmax.f32 %v3390_v0, 0.0 }
 0x363   : > { %9886 = vrot.lane.b32.xlu0 %v9885_v18, %s15839_s22  ;;  %v3519_v2 = vmax.f32 %v3385_v47, 0.0  ;;  %v9163_v29 = vpop.f32.mrb[56].mxu1  ;;  %v3687_v50 = vld [vmem:[#allocation3 + $0x50] sm:$0xff]  ;;  %v9895_v59 = vpack.i.bf16 %v3811_v15, %v3810_v13  ;;  %v5079_v45 = vld [vmem:[%s15719_s9 + $0x88] sm:$0xff] }
 0x364   : > { %9876 = vrot.lane.b32.xlu1 %v9875_v40, %s15837_s23  ;;  %v3907_v32 = vld [vmem:[#allocation3 + $0x49] sm:$0xff]  ;;  %3625 = vst.msk [vmem:[#allocation3 + $0x90] sm:$0xff] %vm590_vm0, %v3520_v31  ;;  %v3400_v35 = vadd.f32 %v9163_v29, %v13187_v30  ;;  %v3394_v25 = vpop.f32.mrb[57].mxu1  ;;  %v9403_v27 = vpack.c.bf16 %v5079_v45, %v5078_v12  ;;  %v3719_v15 = vld [vmem:[#allocation3 + $0x51] sm:$0xff] }
 0x365   : > { %v3686_v56 = vld [vmem:[#allocation3 + $0x48] sm:$0xff]  ;;  %8723 = vmatprep.mubr.msk.f32.mxu1 %vm590_vm0, %v3907_v32  ;;  %3624 = vst.msk [vmem:[#allocation3 + $0x88] sm:$0xff] %vm590_vm0, %v3519_v2  ;;  %v3395_v6 = vadd.f32 %v13187_v30, %v3394_v25 }
 0x366   : > { %v3522_v55 = vmax.f32 %v3400_v35, 0.0  ;;  %v9900_v57 = vpack.i.bf16 %v3687_v50, %v3686_v56  ;;  %9404 = vmatpush1.bf16.msra.mxu1 %v9403_v27  ;;  %v13237_v31 = vld [vmem:[#allocation3 + $0x47] sm:$0xff]  ;;  %v13239_v2 = vld [vmem:[#allocation3 + $0x4f] sm:$0xff] }
 0x367   : > { %9896 = vrot.lane.b32.xlu0 %v9895_v59, %s10836_s26  ;;  %v3521_v0 = vmax.f32 %v3395_v6, 0.0  ;;  %v9166_v53 = vpop.f32.mrb[58].mxu1  ;;  %v9910_v6 = vpack.i.bf16 %v13239_v2, %v13237_v31 }
 0x368   : > { %9881 = vrot.lane.b32.xlu1 %v9895_v59, %s16093_s21  ;;  %3627 = vst.msk [vmem:[#allocation3 + $0xb0] sm:$0xff] %vm590_vm0, %v3522_v55  ;;  %v3410_v18 = vadd.f32 %v9166_v53, %v13187_v30  ;;  %v3404_v47 = vpop.f32.mrb[59].mxu1  ;;  %v9905_v59 = vpack.i.bf16 %v3719_v15, %v3907_v32  ;;  %v3845_v15 = vld [vmem:[#allocation3 + $0x67] sm:$0xff] }
 0x369   : > { %3626 = vst.msk [vmem:[#allocation3 + $0xa8] sm:$0xff] %vm590_vm0, %v3521_v0  ;;  %v3405_v13 = vadd.f32 %v13187_v30, %v3404_v47 }
 0x36a   : > { %v3524_v29 = vmax.f32 %v3410_v18, 0.0  ;;  %v3689_v18 = vld [vmem:[#allocation3 + $0x70] sm:$0xff] }
 0x36b   : > { %9901 = vrot.lane.b32.xlu0 %v9900_v57, %s15837_s23  ;;  %v3523_v56 = vmax.f32 %v3405_v13, 0.0  ;;  %v9169_v50 = vpop.f32.mrb[60].mxu1 }
 0x36c   : > { %9891 = vrot.lane.b32.xlu1 %v9875_v40, %s16094_s0  ;;  %3629 = vst.msk [vmem:[#allocation3 + $0xd0] sm:$0xff] %vm590_vm0, %v3524_v29  ;;  %v3420_v35 = vadd.f32 %v9169_v50, %v13187_v30  ;;  %v3414_v25 = vpop.f32.mrb[61].mxu1  ;;  %v3846_v29 = vld [vmem:[#allocation3 + $0x6f] sm:$0xff] }
 0x36d   : > { %3628 = vst.msk [vmem:[#allocation3 + $0xc8] sm:$0xff] %vm590_vm0, %v3523_v56  ;;  %v3415_v12 = vadd.f32 %v13187_v30, %v3414_v25  ;;  %v3688_v56 = vld [vmem:[#allocation3 + $0x68] sm:$0xff] }
 0x36e   : > { %v3526_v45 = vmax.f32 %v3420_v35, 0.0 }
 0x36f   : > { %9906 = vrot.lane.b32.xlu0 %v9905_v59, %s16093_s21  ;;  %v3525_v40 = vmax.f32 %v3415_v12, 0.0  ;;  %v9172_v55 = vpop.f32.mrb[62].mxu1 }
 0x370   : > { %9911 = vrot.lane.b32.xlu1 %v9910_v6, %s16095_s18  ;;  %3631 = vst.msk [vmem:[#allocation3 + $0xf0] sm:$0xff] %vm590_vm0, %v3526_v45  ;;  %v3430_v27 = vadd.f32 %v9172_v55, %v13187_v30  ;;  %v3424_v0 = vpop.f32.mrb[63].mxu1  ;;  %v9935_v45 = vpack.i.bf16 %v3689_v18, %v3688_v56 }
 0x371   : > { %3630 = vst.msk [vmem:[#allocation3 + $0xe8] sm:$0xff] %vm590_vm0, %v3525_v40  ;;  %v3425_v32 = vadd.f32 %v13187_v30, %v3424_v0  ;;  %v3721_v0 = vld [vmem:[#allocation3 + $0x71] sm:$0xff] }
 0x372   : > { %v3528_v53 = vmax.f32 %v3430_v27, 0.0  ;;  %v3720_v27 = vld [vmem:[#allocation3 + $0x69] sm:$0xff] }
 0x373   : > { %9916 = vrot.lane.b32.xlu0 %v9900_v57, %s16096_s27  ;;  %v3527_v47 = vmax.f32 %v3425_v32, 0.0  ;;  %v9175_v13 = vpop.f32.mrb[64].mxu1 }
 0x374   : > { %9921 = vrot.lane.b32.xlu1 %v9910_v6, %s15839_s22  ;;  %3633 = vst.msk [vmem:[#allocation3 + $0x110] sm:$0xff] %vm590_vm0, %v3528_v53  ;;  %v3440_v50 = vadd.f32 %v9175_v13, %v13187_v30  ;;  %v3434_v35 = vpop.f32.mrb[65].mxu1  ;;  %v9945_v6 = vpack.i.bf16 %v3846_v29, %v3845_v15 }
 0x375   : > { %3632 = vst.msk [vmem:[#allocation3 + $0x108] sm:$0xff] %vm590_vm0, %v3527_v47  ;;  %v3435_v25 = vadd.f32 %v13187_v30, %v3434_v35 }
 0x376   : > { %v3530_v12 = vmax.f32 %v3440_v50, 0.0 }
 0x377   : > { %9926 = vrot.lane.b32.xlu0 %v9900_v57, %s16094_s0  ;;  %v3529_v40 = vmax.f32 %v3435_v25, 0.0  ;;  %v9178_v55 = vpop.f32.mrb[66].mxu1  ;;  %v9940_v57 = vpack.i.bf16 %v3721_v0, %v3720_v27 }
 0x378   : > { %9931 = vrot.lane.b32.xlu1 %v9905_v59, %s10836_s26  ;;  %3635 = vst.msk [vmem:[#allocation3 + $0x130] sm:$0xff] %vm590_vm0, %v3530_v12  ;;  %v3450_v32 = vadd.f32 %v9178_v55, %v13187_v30  ;;  %v3444_v53 = vpop.f32.mrb[67].mxu1  ;;  %v3691_v55 = vld [vmem:[#allocation3 + $0x90] sm:$0xff] }
 0x379   : > { %3634 = vst.msk [vmem:[#allocation3 + $0x128] sm:$0xff] %vm590_vm0, %v3529_v40  ;;  %v3445_v47 = vadd.f32 %v13187_v30, %v3444_v53  ;;  %v3690_v40 = vld [vmem:[#allocation3 + $0x88] sm:$0xff] }
 0x37a   : > { %v3532_v13 = vmax.f32 %v3450_v32, 0.0 }
 0x37b   : > { %9946 = vrot.lane.b32.xlu0 %v9945_v6, %s16095_s18  ;;  %v3531_v59 = vmax.f32 %v3445_v47, 0.0  ;;  %v9181_v18 = vpop.f32.mrb[68].mxu1 }
 0x37c   : > { %9936 = vrot.lane.b32.xlu1 %v9935_v45, %s15837_s23  ;;  %3637 = vst.msk [vmem:[#allocation3 + $0x150] sm:$0xff] %vm590_vm0, %v3532_v13  ;;  %v3460_v15 = vadd.f32 %v9181_v18, %v13187_v30  ;;  %v3454_v29 = vpop.f32.mrb[69].mxu1  ;;  %v3723_v13 = vld [vmem:[#allocation3 + $0x91] sm:$0xff] }
 0x37d   : > { %3636 = vst.msk [vmem:[#allocation3 + $0x148] sm:$0xff] %vm590_vm0, %v3531_v59  ;;  %v3455_v56 = vadd.f32 %v13187_v30, %v3454_v29  ;;  %v3847_v29 = vld [vmem:[#allocation3 + $0x87] sm:$0xff] }
 0x37e   : > { %v3534_v50 = vmax.f32 %v3460_v15, 0.0  ;;  %v3722_v15 = vld [vmem:[#allocation3 + $0x89] sm:$0xff] }
 0x37f   : > { %9956 = vrot.lane.b32.xlu0 %v9945_v6, %s15839_s22  ;;  %v3533_v35 = vmax.f32 %v3455_v56, 0.0  ;;  %v9184_v25 = vpop.f32.mrb[70].mxu1  ;;  %v9970_v6 = vpack.i.bf16 %v3691_v55, %v3690_v40  ;;  %v3848_v56 = vld [vmem:[#allocation3 + $0x8f] sm:$0xff] }
 0x380   : > { %9941 = vrot.lane.b32.xlu1 %v9940_v57, %s16093_s21  ;;  %v13275_v12 = vpop.f32.mrb[32].mxu0  ;;  %3639 = vst.msk [vmem:[#allocation3 + $0x170] sm:$0xff] %vm590_vm0, %v3534_v50  ;;  %v3470_v27 = vadd.f32 %v9184_v25, %v13187_v30  ;;  %v3464_v0 = vpop.f32.mrb[71].mxu1  ;;  %v9980_v40 = vpack.i.bf16 %v3848_v56, %v3847_v29  ;;  %v3849_v29 = vld [vmem:[#allocation3 + $0xa7] sm:$0xff]  ;;  %v3850_v56 = vld [vmem:[#allocation3 + $0xaf] sm:$0xff] }
 0x381   : > { %v3090_v32 = vpop.f32.mrb[33].mxu0  ;;  %3638 = vst.msk [vmem:[#allocation3 + $0x168] sm:$0xff] %vm590_vm0, %v3533_v35  ;;  %v3465_v53 = vadd.f32 %v13187_v30, %v3464_v0  ;;  %v3732_v5 = vld [vmem:[#allocation3 + $0x129] sm:$0xff]  ;;  %v3733_v51 = vld [vmem:[#allocation3 + $0x131] sm:$0xff] }
 0x382   : > { %v3536_v47 = vmax.f32 %v3470_v27, 0.0 }
 0x383   : > { %9966 = vrot.lane.b32.xlu0 %v9940_v57, %s10836_s26  ;;  %v3535_v59 = vmax.f32 %v3465_v53, 0.0  ;;  %v9187_v18 = vpop.f32.mrb[72].mxu1  ;;  %v9975_v57 = vpack.i.bf16 %v3723_v13, %v3722_v15  ;;  %v3693_v15 = vld [vmem:[#allocation3 + $0xb0] sm:$0xff] }
 0x384   : > { %9951 = vrot.lane.b32.xlu1 %v9935_v45, %s16096_s27  ;;  %3641 = vst.msk [vmem:[#allocation3 + $0x190] sm:$0xff] %vm590_vm0, %v3536_v47  ;;  %v3480_v50 = vadd.f32 %v9187_v18, %v13187_v30  ;;  %v3474_v25 = vpop.f32.mrb[73].mxu1  ;;  %v3734_v17 = vld [vmem:[#allocation3 + $0x149] sm:$0xff] }
 0x385   : > { %3640 = vst.msk [vmem:[#allocation3 + $0x188] sm:$0xff] %vm590_vm0, %v3535_v59  ;;  %v3475_v35 = vadd.f32 %v13187_v30, %v3474_v25  ;;  %v3860_v42 = vld [vmem:[#allocation3 + $0x14f] sm:$0xff] }
 0x386   : > { %v3538_v27 = vmax.f32 %v3480_v50, 0.0  ;;  %v3692_v50 = vld [vmem:[#allocation3 + $0xa8] sm:$0xff] }
 0x387   : > { %9971 = vrot.lane.b32.xlu0 %v9970_v6, %s15837_s23  ;;  %v3537_v55 = vmax.f32 %v3475_v35, 0.0  ;;  %v9190_v0 = vpop.f32.mrb[74].mxu1  ;;  %v3737_v7 = vld [vmem:[#allocation3 + $0x171] sm:$0xff] }
 0x388   : > { %9961 = vrot.lane.b32.xlu1 %v9935_v45, %s16094_s0  ;;  %3643 = vst.msk [vmem:[#allocation3 + $0x1b0] sm:$0xff] %vm590_vm0, %v3538_v27  ;;  %v3490_v32 = vadd.f32 %v9190_v0, %v13187_v30  ;;  %v3484_v53 = vpop.f32.mrb[75].mxu1  ;;  %v10005_v0 = vpack.i.bf16 %v3693_v15, %v3692_v50  ;;  %v3736_v36 = vld [vmem:[#allocation3 + $0x169] sm:$0xff] }
 0x389   : > { %3642 = vst.msk [vmem:[#allocation3 + $0x1a8] sm:$0xff] %vm590_vm0, %v3537_v55  ;;  %v3485_v47 = vadd.f32 %v13187_v30, %v3484_v53  ;;  %v10015_v55 = vpack.i.bf16 %v3850_v56, %v3849_v29  ;;  %v3694_v29 = vld [vmem:[#allocation3 + $0xc8] sm:$0xff]  ;;  %v3695_v56 = vld [vmem:[#allocation3 + $0xd0] sm:$0xff] }
 0x38a   : > { %v3540_v59 = vmax.f32 %v3490_v32, 0.0 }
 0x38b   : > { %9976 = vrot.lane.b32.xlu0 %v9975_v57, %s16093_s21  ;;  %v3539_v18 = vmax.f32 %v3485_v47, 0.0  ;;  %v9193_v27 = vpop.f32.mrb[76].mxu1  ;;  %v3724_v47 = vld [vmem:[#allocation3 + $0xa9] sm:$0xff] }
 0x38c   : > { %9981 = vrot.lane.b32.xlu1 %v9980_v40, %s16095_s18  ;;  %3645 = vst.msk [vmem:[#allocation3 + $0x1d0] sm:$0xff] %vm590_vm0, %v3540_v59  ;;  %v3500_v32 = vadd.f32 %v9193_v27, %v13187_v30  ;;  %v3494_v53 = vpop.f32.mrb[77].mxu1  ;;  %v3725_v59 = vld [vmem:[#allocation3 + $0xb1] sm:$0xff] }
 0x38d   : > { %v13296_v45 = vpop.f32.mrb[34].mxu0  ;;  %3644 = vst.msk [vmem:[#allocation3 + $0x1c8] sm:$0xff] %vm590_vm0, %v3539_v18  ;;  %v3727_v27 = vld [vmem:[#allocation3 + $0xd1] sm:$0xff] }
 0x38e   : > { %v3095_v13 = vpop.f32.mrb[35].mxu0 }
 0x38f   : > { %9986 = vrot.lane.b32.xlu0 %v9970_v6, %s16096_s27  ;;  %v3542_v13 = vmax.f32 %v3500_v32, 0.0  ;;  %v3726_v32 = vld [vmem:[#allocation3 + $0xc9] sm:$0xff] }
 0x390   : > { %9991 = vrot.lane.b32.xlu1 %v9980_v40, %s15839_s22  ;;  %v3495_v40 = vadd.f32 %v13187_v30, %v3494_v53  ;;  %v3852_v53 = vld [vmem:[#allocation3 + $0xcf] sm:$0xff] }
 0x391   : > { %v13301_v25 = vpop.f32.mrb[36].mxu0  ;;  %3647 = vst.msk [vmem:[#allocation3 + $0x1f0] sm:$0xff] %vm590_vm0, %v3542_v13 }
 0x392   : > { %v3100_v35 = vpop.f32.mrb[37].mxu0  ;;  %v3541_v52 = vmax.f32 %v3495_v40, 0.0 }
 0x393   : > { %9996 = vrot.lane.b32.xlu0 %v9970_v6, %s16094_s0  ;;  %v10010_v6 = vpack.i.bf16 %v3725_v59, %v3724_v47  ;;  %v10040_v35 = vpack.i.bf16 %v3695_v56, %v3694_v29  ;;  %v9196_v47 = vpop.f32.mrb[78].mxu1 }
 0x394   : > { %10001 = vrot.lane.b32.xlu1 %v9975_v57, %s10836_s26  ;;  %3646 = vst.msk [vmem:[#allocation3 + $0x1e8] sm:$0xff] %vm590_vm0, %v3541_v52  ;;  %v3851_v52 = vld [vmem:[#allocation3 + $0xc7] sm:$0xff]  ;;  %v3504_v40 = vpop.f32.mrb[79].mxu1 }
 0x395   : > { %v13307_v18 = vpop.f32.mrb[38].mxu0 }
 0x396   : > { %v3105_v16 = vpop.f32.mrb[39].mxu0 }
 0x397   : > { %10016 = vrot.lane.b32.xlu0 %v10015_v55, %s16095_s18 }
 0x398   : > { %10006 = vrot.lane.b32.xlu1 %v10005_v0, %s15837_s23 }
 0x399   : > { %v13313_v57 = vpop.f32.mrb[40].mxu0 }
 0x39a   : > { %v3110_v15 = vpop.f32.mrb[41].mxu0 }
 0x39b   : > { %10026 = vrot.lane.b32.xlu0 %v10015_v55, %s15839_s22  ;;  %v3510_v55 = vadd.f32 %v9196_v47, %v13187_v30  ;;  %v3505_v15 = vadd.f32 %v13187_v30, %v3504_v40 }
 0x39c   : > { %10011 = vrot.lane.b32.xlu1 %v10010_v6, %s16093_s21 }
 0x39d   : > { %v13317_v16 = vpop.f32.mrb[42].mxu0  ;;  %v3544_v29 = vmax.f32 %v3510_v55, 0.0  ;;  %v3543_v56 = vmax.f32 %v3505_v15, 0.0  ;;  %v3729_v15 = vld [vmem:[#allocation3 + $0xf1] sm:$0xff] }
 0x39e   : > { %v3115_v50 = vpop.f32.mrb[43].mxu0 }
 0x39f   : > { %10036 = vrot.lane.b32.xlu0 %v10010_v6, %s10836_s26  ;;  %v10045_v6 = vpack.i.bf16 %v3727_v27, %v3726_v32  ;;  %v10050_v50 = vpack.i.bf16 %v3852_v53, %v3851_v52  ;;  %3649 = vst.msk [vmem:[#allocation3 + $0x210] sm:$0xff] %vm590_vm0, %v3544_v29  ;;  %3648 = vst.msk [vmem:[#allocation3 + $0x208] sm:$0xff] %vm590_vm0, %v3543_v56  ;;  %v3853_v27 = vld [vmem:[#allocation3 + $0xe7] sm:$0xff]  ;;  %v3854_v32 = vld [vmem:[#allocation3 + $0xef] sm:$0xff] }
 0x3a0   : > { %10021 = vrot.lane.b32.xlu1 %v10005_v0, %s16096_s27  ;;  %v3696_v52 = vld [vmem:[#allocation3 + $0xe8] sm:$0xff]  ;;  %v10085_v55 = vpack.i.bf16 %v3854_v32, %v3853_v27 }
 0x3a1   : > { %v13321_v59 = vpop.f32.mrb[44].mxu0 }
 0x3a2   : > { %v3120_v13 = vpop.f32.mrb[45].mxu0 }
 0x3a3   : > { %10041 = vrot.lane.b32.xlu0 %v10040_v35, %s15837_s23  ;;  %v3728_v13 = vld [vmem:[#allocation3 + $0xe9] sm:$0xff] }
 0x3a4   : > { %10031 = vrot.lane.b32.xlu1 %v10005_v0, %s16094_s0  ;;  %v3697_v0 = vld [vmem:[#allocation3 + $0xf0] sm:$0xff] }
 0x3a5   : > { %v13327_v10 = vpop.f32.mrb[46].mxu0  ;;  %v10075_v40 = vpack.i.bf16 %v3697_v0, %v3696_v52  ;;  %v3699_v0 = vld [vmem:[#allocation3 + $0x110] sm:$0xff] }
 0x3a6   : > { %v3125_v63 = vpop.f32.mrb[47].mxu0 }
 0x3a7   : > { %10046 = vrot.lane.b32.xlu0 %v10045_v6, %s16093_s21 }
 0x3a8   : > { %10051 = vrot.lane.b32.xlu1 %v10050_v50, %s16095_s18 }
 0x3a9   : > { %v13333_v30 = vpop.f32.mrb[48].mxu0 }
 0x3aa   : > { %v3130_v47 = vpop.f32.mrb[49].mxu0 }
 0x3ab   : > { %10056 = vrot.lane.b32.xlu0 %v10040_v35, %s16096_s27 }
 0x3ac   : > { %10061 = vrot.lane.b32.xlu1 %v10050_v50, %s15839_s22  ;;  %v10080_v50 = vpack.i.bf16 %v3729_v15, %v3728_v13  ;;  %v3730_v13 = vld [vmem:[#allocation3 + $0x109] sm:$0xff] }
 0x3ad   : > { %v13337_v53 = vpop.f32.mrb[50].mxu0  ;;  %v3855_v15 = vld [vmem:[#allocation3 + $0x107] sm:$0xff] }
 0x3ae   : > { %v3135_v63 = vpop.f32.mrb[51].mxu0 }
 0x3af   : > { %10066 = vrot.lane.b32.xlu0 %v10040_v35, %s16094_s0  ;;  %v13349_v35 = vpop.permute.xlu1 %9861  ;;  %v3731_v63 = vld [vmem:[#allocation3 + $0x111] sm:$0xff] }
 0x3b0   : > { %10071 = vrot.lane.b32.xlu1 %v10045_v6, %s10836_s26  ;;  %v3698_v6 = vld [vmem:[#allocation3 + $0x108] sm:$0xff] }
 0x3b1   : > { %v13341_v29 = vpop.f32.mrb[52].mxu0  ;;  %v10110_v52 = vpack.i.bf16 %v3699_v0, %v3698_v6 }
 0x3b2   : > { %v3140_v56 = vpop.f32.mrb[53].mxu0 }
 0x3b3   : > { %10086 = vrot.lane.b32.xlu0 %v10085_v55, %s16095_s18 }
 0x3b4   : > { %10076 = vrot.lane.b32.xlu1 %v10075_v40, %s15837_s23 }
 0x3b5   : > { %v13345_v47 = vpop.f32.mrb[54].mxu0 }
 0x3b6   : > { %v3145_v41 = vpop.f32.mrb[55].mxu0 }
 0x3b7   : > { %10096 = vrot.lane.b32.xlu0 %v10085_v55, %s15839_s22  ;;  %v3856_v41 = vld [vmem:[#allocation3 + $0x10f] sm:$0xff]  ;;  %v13357_v55 = vpop.permute.xlu1 %9871 }
 0x3b8   : > { %10081 = vrot.lane.b32.xlu1 %v10080_v50, %s16093_s21 }
 0x3b9   : > { %v13351_v27 = vpop.f32.mrb[56].mxu0 }
 0x3ba   : > { %v3150_v32 = vpop.f32.mrb[57].mxu0 }
 0x3bb   : > { %10106 = vrot.lane.b32.xlu0 %v10080_v50, %s10836_s26  ;;  %v10115_v32 = vpack.i.bf16 %v3731_v63, %v3730_v13  ;;  %v10120_v50 = vpack.i.bf16 %v3856_v41, %v3855_v15  ;;  %v13367_v0 = vpop.permute.xlu1 %6566  ;;  %v3857_v63 = vld [vmem:[#allocation3 + $0x127] sm:$0xff]  ;;  %v3858_v13 = vld [vmem:[#allocation3 + $0x12f] sm:$0xff] }
 0x3bc   : > { %10091 = vrot.lane.b32.xlu1 %v10075_v40, %s16096_s27  ;;  %16098 = vst [vmem:[#allocation32_spill] sm:$0xff] %v13367_v0  ;;  %v3700_v15 = vld [vmem:[#allocation3 + $0x128] sm:$0xff] }
 0x3bd   : > { %v13355_v56 = vpop.f32.mrb[58].mxu0 }
 0x3be   : > { %16097 = vst [vmem:[#allocation30_spill] sm:$0xff] %v13355_v56  ;;  %v3155_v19 = vpop.f32.mrb[59].mxu0 }
 0x3bf   : > { %10111 = vrot.lane.b32.xlu0 %v10110_v52, %s15837_s23 }
 0x3c0   : > { %10101 = vrot.lane.b32.xlu1 %v10075_v40, %s16094_s0  ;;  %v3701_v40 = vld [vmem:[#allocation3 + $0x130] sm:$0xff] }
 0x3c1   : > { %v13363_v20 = vpop.f32.mrb[60].mxu0  ;;  %v10145_v38 = vpack.i.bf16 %v3701_v40, %v3700_v15  ;;  %v3703_v40 = vld [vmem:[#allocation3 + $0x150] sm:$0xff] }
 0x3c2   : > { %v3160_v6 = vpop.f32.mrb[61].mxu0 }
 0x3c3   : > { %10116 = vrot.lane.b32.xlu0 %v10115_v32, %s16093_s21  ;;  %v13377_v6 = vpop.permute.xlu1 %6694 }
 0x3c4   : > { %10121 = vrot.lane.b32.xlu1 %v10120_v50, %s16095_s18  ;;  %16101 = vst [vmem:[#allocation29_spill] sm:$0xff] %v13377_v6 }
 0x3c5   : > { %v13371_v19 = vpop.f32.mrb[62].mxu0 }
 0x3c6   : > { %16099 = vst [vmem:[#allocation43_spill] sm:$0xff] %v13371_v19  ;;  %v3165_v46 = vpop.f32.mrb[63].mxu0 }
 0x3c7   : > { %10126 = vrot.lane.b32.xlu0 %v10110_v52, %s16096_s27  ;;  %v10155_v46 = vpack.i.bf16 %v3858_v13, %v3857_v63  ;;  %v13387_v60 = vpop.permute.xlu1 %6822 }
 0x3c8   : > { %10131 = vrot.lane.b32.xlu1 %v10120_v50, %s15839_s22  ;;  %16103 = vst [vmem:[#allocation42_spill] sm:$0xff] %v13387_v60 }
 0x3c9   : > { %v13375_v41 = vpop.f32.mrb[64].mxu0 }
 0x3ca   : > { %16100 = vst [vmem:[#allocation33_spill] sm:$0xff] %v13375_v41  ;;  %v3170_v39 = vpop.f32.mrb[65].mxu0 }
 0x3cb   : > { %10136 = vrot.lane.b32.xlu0 %v10110_v52, %s16094_s0  ;;  %v10150_v39 = vpack.i.bf16 %v3733_v51, %v3732_v5  ;;  %v3735_v51 = vld [vmem:[#allocation3 + $0x151] sm:$0xff] }
 0x3cc   : > { %10141 = vrot.lane.b32.xlu1 %v10115_v32, %s10836_s26  ;;  %v3702_v32 = vld [vmem:[#allocation3 + $0x148] sm:$0xff] }
 0x3cd   : > { %v13383_v50 = vpop.f32.mrb[66].mxu0  ;;  %v10180_v5 = vpack.i.bf16 %v3703_v40, %v3702_v32  ;;  %v9853_v40 = vunpack.i.l.bf16 %v13369_v4 }
 0x3ce   : > { %16102 = vst [vmem:[#allocation31_spill] sm:$0xff] %v13383_v50  ;;  %v3175_v8 = vpop.f32.mrb[67].mxu0  ;;  %v3904_v50 = vld [vmem:[#allocation3 + $0x210] sm:$0xff] }
 0x3cf   : > { %10156 = vrot.lane.b32.xlu0 %v10155_v46, %s16095_s18 }
 0x3d0   : > { %10146 = vrot.lane.b32.xlu1 %v10145_v38, %s15837_s23 }
 0x3d1   : > { %v13391_v14 = vpop.f32.mrb[68].mxu0 }
 0x3d2   : > { %16104 = vst [vmem:[#allocation28_spill] sm:$0xff] %v13391_v14  ;;  %v3180_v52 = vpop.f32.mrb[69].mxu0 }
 0x3d3   : > { %10166 = vrot.lane.b32.xlu0 %v10155_v46, %s15839_s22  ;;  %v3859_v52 = vld [vmem:[#allocation3 + $0x147] sm:$0xff] }
 0x3d4   : > { %10151 = vrot.lane.b32.xlu1 %v10150_v39, %s16093_s21  ;;  %v10190_v32 = vpack.i.bf16 %v3860_v42, %v3859_v52  ;;  %v4868_v42 = vsel %vm4867_vm9, %v4835_v49, %v9853_v40  ;;  %v3861_v49 = vld [vmem:[#allocation3 + $0x167] sm:$0xff] }
 0x3d5   : > { %v9887_v63 = vpop.permute.xlu0 %9886  ;;  %v13397_v13 = vpop.f32.mrb[70].mxu0 }
 0x3d6   : > { %v13395_v8 = vpop.permute.xlu1 %9876  ;;  %16105 = vst [vmem:[#allocation37_spill] sm:$0xff] %v13397_v13  ;;  %v3185_v15 = vpop.f32.mrb[71].mxu0  ;;  %v9888_v22 = vunpack.i.l.bf16 %v9887_v63  ;;  %v9889_v43 = vunpack.i.h.bf16 %v9887_v63  ;;  %v3705_v63 = vld [vmem:[#allocation3 + $0x170] sm:$0xff] }
 0x3d7   : > { %10176 = vrot.lane.b32.xlu0 %v10150_v39, %s10836_s26  ;;  %v10185_v39 = vpack.i.bf16 %v3735_v51, %v3734_v17  ;;  %v9854_v17 = vunpack.i.h.bf16 %v13369_v4  ;;  %v3862_v4 = vld [vmem:[#allocation3 + $0x16f] sm:$0xff] }
 0x3d8   : > { %10161 = vrot.lane.b32.xlu1 %v10145_v38, %s16096_s27  ;;  %v4900_v51 = vsel %vm2661_vm2, %v4868_v42, %v9888_v22 }
 0x3d9   : > { %v13401_v46 = vpop.permute.xlu0 %9896  ;;  %v13406_v26 = vpop.f32.mrb[72].mxu0 }
 0x3da   : > { %v13403_v48 = vpop.permute.xlu1 %9881  ;;  %16106 = vst [vmem:[#allocation39_spill] sm:$0xff] %v13406_v26  ;;  %v3190_v62 = vpop.f32.mrb[73].mxu0  ;;  %v9898_v40 = vunpack.i.l.bf16 %v13401_v46  ;;  %v9899_v28 = vunpack.i.h.bf16 %v13401_v46  ;;  %v9878_v46 = vunpack.i.l.bf16 %v13395_v8  ;;  %v3661_v26 = vld [vmem:[#allocation3 + $0xaf] sm:$0xff] }
 0x3db   : > { %10181 = vrot.lane.b32.xlu0 %v10180_v5, %s15837_s23  ;;  %v3651_v62 = vld [vmem:[#allocation3 + $0xf] sm:$0xff] }
 0x3dc   : > { %10171 = vrot.lane.b32.xlu1 %v10145_v38, %s16094_s0  ;;  %v4836_v34 = vsel %vm590_vm0, %v3651_v62, %v9849_v58  ;;  %v3704_v58 = vld [vmem:[#allocation3 + $0x168] sm:$0xff] }
 0x3dd   : > { %v13411_v15 = vpop.permute.xlu0 %9901  ;;  %v13415_v23 = vpop.f32.mrb[74].mxu0  ;;  %v4869_v22 = vsel %vm4867_vm9, %v4836_v34, %v9854_v17  ;;  %v10215_v34 = vpack.i.bf16 %v3705_v63, %v3704_v58  ;;  %v3909_v58 = vld [vmem:[#allocation3 + $0x69] sm:$0xff] }
 0x3de   : > { %v9892_v54 = vpop.permute.xlu1 %9891  ;;  %16107 = vst [vmem:[#allocation51_spill] sm:$0xff] %v13415_v23  ;;  %v3195_v60 = vpop.f32.mrb[75].mxu0 }
 0x3df   : > { %v9893_v61 = vunpack.i.l.bf16 %v9892_v54  ;;  %10186 = vrot.lane.b32.xlu0 %v10185_v39, %s16093_s21  ;;  %v9894_v6 = vunpack.i.h.bf16 %v9892_v54 }
 0x3e0   : > { %10191 = vrot.lane.b32.xlu1 %v10190_v32, %s16095_s18 }
 0x3e1   : > { %v13421_v38 = vpop.permute.xlu0 %9906  ;;  %v13425_v52 = vpop.f32.mrb[76].mxu0  ;;  %v4932_v60 = vsel %vm2858_vm6, %v4900_v51, %v9893_v61  ;;  %v4901_v61 = vsel %vm2661_vm2, %v4869_v22, %v9889_v43  ;;  %v10225_v51 = vpack.i.bf16 %v3862_v4, %v3861_v49 }
 0x3e2   : > { %v9912_v9 = vpop.permute.xlu1 %9911  ;;  %16108 = vst [vmem:[#allocation41_spill] sm:$0xff] %v13425_v52  ;;  %v3200_v21 = vpop.f32.mrb[77].mxu0  ;;  %v4933_v24 = vsel %vm2858_vm6, %v4901_v61, %v9894_v6  ;;  %v3908_v6 = vld [vmem:[#allocation3 + $0x51] sm:$0xff]  ;;  %v9884_v61 = vunpack.i.h.bf16 %v13403_v48 }
 0x3e3   : > { %v9913_v0 = vunpack.i.l.bf16 %v9912_v9  ;;  %10196 = vrot.lane.b32.xlu0 %v10180_v5, %s16096_s27  ;;  %v9914_v44 = vunpack.i.h.bf16 %v9912_v9  ;;  %v9883_v9 = vunpack.i.l.bf16 %v13403_v48 }
 0x3e4   : > { %10201 = vrot.lane.b32.xlu1 %v10190_v32, %s15839_s22  ;;  %v4965_v32 = vsel %vm4964_vm10, %v4932_v60, %v9898_v40 }
 0x3e5   : > { %v9917_v62 = vpop.permute.xlu0 %9916  ;;  %v13435_v21 = vpop.f32.mrb[78].mxu0  ;;  %v4997_v17 = vsel %vm2727_vm5, %v4965_v32, %v9913_v0 }
 0x3e6   : > { %v13432_v42 = vpop.permute.xlu1 %9921  ;;  %v9918_v54 = vunpack.i.l.bf16 %v9917_v62  ;;  %16109 = vst [vmem:[#allocation38_spill] sm:$0xff] %v13435_v21  ;;  %v3205_v37 = vpop.f32.mrb[79].mxu0  ;;  %v9919_v43 = vunpack.i.h.bf16 %v9917_v62  ;;  %v3707_v62 = vld [vmem:[#allocation3 + $0x190] sm:$0xff] }
 0x3e7   : > { %10206 = vrot.lane.b32.xlu0 %v10180_v5, %s16094_s0  ;;  %v4966_v37 = vsel %vm4964_vm10, %v4933_v24, %v9899_v28  ;;  %v10220_v5 = vpack.i.bf16 %v3737_v7, %v3736_v36  ;;  %v9923_v28 = vunpack.i.l.bf16 %v13432_v42  ;;  %v3652_v24 = vld [vmem:[#allocation3 + $0x27] sm:$0xff]  ;;  %v9879_v36 = vunpack.i.h.bf16 %v13395_v8 }
 0x3e8   : > { %10211 = vrot.lane.b32.xlu1 %v10185_v39, %s10836_s26  ;;  %v5030_v22 = vsel %vm5029_vm11, %v4997_v17, %v9918_v54  ;;  %v4998_v0 = vsel %vm2727_vm5, %v4966_v37, %v9914_v44  ;;  %v4837_v7 = vsel %vm590_vm0, %v3652_v24, %v9878_v46  ;;  %v3706_v44 = vld [vmem:[#allocation3 + $0x188] sm:$0xff] }
 0x3e9   : > { %v9927_v60 = vpop.permute.xlu0 %9926  ;;  %5248 = vmatmul.mubr.f32.vlgmr.msra.gmra.mrb[80].mxu1 %v5030_v22  ;;  %v5031_v39 = vsel %vm5029_vm11, %v4998_v0, %v9919_v43  ;;  %v4870_v54 = vsel %vm4867_vm9, %v4837_v7, %v9883_v9  ;;  %v9924_v43 = vunpack.i.h.bf16 %v13432_v42  ;;  %v10250_v48 = vpack.i.bf16 %v3707_v62, %v3706_v44  ;;  %v3864_v9 = vld [vmem:[#allocation3 + $0x18f] sm:$0xff] }
 0x3ea   : > { %v13444_v49 = vpop.permute.xlu1 %9931  ;;  %8724 = vmatprep.mubr.msk.f32.mxu1 %vm590_vm0, %v3908_v6  ;;  %v9928_v63 = vunpack.i.l.bf16 %v9927_v60  ;;  %v3653_v6 = vld [vmem:[#allocation3 + $0x2f] sm:$0xff]  ;;  %v9929_v8 = vunpack.i.h.bf16 %v9927_v60  ;;  %v9903_v62 = vunpack.i.l.bf16 %v13411_v15 }
 0x3eb   : > { %10226 = vrot.lane.b32.xlu0 %v10225_v51, %s16095_s18  ;;  %v9933_v22 = vunpack.i.l.bf16 %v13444_v49  ;;  %v4838_v46 = vsel %vm590_vm0, %v3653_v6, %v9879_v36  ;;  %v9934_v60 = vunpack.i.h.bf16 %v13444_v49  ;;  %v9908_v49 = vunpack.i.l.bf16 %v13421_v38  ;;  %v3910_v6 = vld [vmem:[#allocation3 + $0x71] sm:$0xff]  ;;  %v3915_v21 = vld [vmem:[#allocation3 + $0xc9] sm:$0xff] }
 0x3ec   : > { %10216 = vrot.lane.b32.xlu1 %v10215_v34, %s15837_s23  ;;  %v4871_v42 = vsel %vm4867_vm9, %v4838_v46, %v9884_v61  ;;  %v4839_v46 = vsel %vm590_vm0, %v13237_v31, %v9903_v62  ;;  %v3865_v62 = vld [vmem:[#allocation3 + $0x1a7] sm:$0xff] }
 0x3ed   : > { %v9947_v4 = vpop.permute.xlu0 %9946  ;;  %5253 = vmatmul.mubr.f32.gmra.mrb[82].mxu1 %v5031_v39  ;;  %v3863_v39 = vld [vmem:[#allocation3 + $0x187] sm:$0xff]  ;;  %v4903_v24 = vsel %vm2661_vm2, %v4871_v42, %v9924_v43  ;;  %v13502_v42 = vld [vmem:[#allocation3 + $0x191] sm:$0xff] }
 0x3ee   : > { %v13454_v40 = vpop.permute.xlu1 %9936  ;;  %8725 = vmatprep.mubr.msk.f32.mxu1 %vm590_vm0, %v3909_v58  ;;  %v9948_v0 = vunpack.i.l.bf16 %v9947_v4  ;;  %v10255_v44 = vpack.i.bf16 %v3864_v9, %v3863_v39  ;;  %v13500_v9 = vld [vmem:[#allocation3 + $0x189] sm:$0xff] }
 0x3ef   : > { %10236 = vrot.lane.b32.xlu0 %v10225_v51, %s15839_s22  ;;  %v4902_v51 = vsel %vm2661_vm2, %v4870_v54, %v9923_v28  ;;  %v9949_v54 = vunpack.i.h.bf16 %v9947_v4 }
 0x3f0   : > { %10221 = vrot.lane.b32.xlu1 %v10220_v5, %s16093_s21  ;;  %v4934_v37 = vsel %vm2858_vm6, %v4902_v51, %v9928_v63 }
 0x3f1   : > { %v13464_v32 = vpop.permute.xlu0 %9956  ;;  %v4967_v7 = vsel %vm4964_vm10, %v4934_v37, %v9933_v22 }
 0x3f2   : > { %v13466_v17 = vpop.permute.xlu1 %9941  ;;  %v4999_v36 = vsel %vm2727_vm5, %v4967_v7, %v9948_v0  ;;  %v9958_v4 = vunpack.i.l.bf16 %v13464_v32  ;;  %v9904_v0 = vunpack.i.h.bf16 %v13411_v15  ;;  %v3911_v7 = vld [vmem:[#allocation3 + $0x89] sm:$0xff]  ;;  %v9959_v15 = vunpack.i.h.bf16 %v13464_v32 }
 0x3f3   : > { %10246 = vrot.lane.b32.xlu0 %v10220_v5, %s10836_s26  ;;  %v4935_v5 = vsel %vm2858_vm6, %v4903_v24, %v9929_v8  ;;  %v4872_v24 = vsel %vm4867_vm9, %v4839_v46, %v9908_v49  ;;  %v3708_v49 = vld [vmem:[#allocation3 + $0x1a8] sm:$0xff] }
 0x3f4   : > { %10231 = vrot.lane.b32.xlu1 %v10215_v34, %s16096_s27  ;;  %v4840_v32 = vsel %vm590_vm0, %v13239_v2, %v9904_v0 }
 0x3f5   : > { %v13476_v58 = vpop.permute.xlu0 %9966 }
 0x3f6   : > { %v9952_v28 = vpop.permute.xlu1 %9951 }
 0x3f7   : > { %v9953_v63 = vunpack.i.l.bf16 %v9952_v28  ;;  %10251 = vrot.lane.b32.xlu0 %v10250_v48, %s15837_s23  ;;  %v9954_v61 = vunpack.i.h.bf16 %v9952_v28  ;;  %v9909_v28 = vunpack.i.h.bf16 %v13421_v38  ;;  %v10280_v38 = vpack.i.bf16 %v13502_v42, %v13500_v9 }
 0x3f8   : > { %10241 = vrot.lane.b32.xlu1 %v10215_v34, %s16094_s0  ;;  %v4968_v34 = vsel %vm4964_vm10, %v4935_v5, %v9934_v60  ;;  %v4904_v5 = vsel %vm2661_vm2, %v4872_v24, %v9958_v4 }
 0x3f9   : > { %v5032_v43 = vsel %vm5029_vm11, %v4999_v36, %v9953_v63  ;;  %v13488_v51 = vpop.permute.xlu0 %9971  ;;  %v5000_v37 = vsel %vm2727_vm5, %v4968_v34, %v9949_v54 }
 0x3fa   : > { %v9962_v22 = vpop.permute.xlu1 %9961  ;;  %5258 = vmatmul.mubr.f32.gmra.mrb[84].mxu1 %v5032_v43  ;;  %v5033_v39 = vsel %vm5029_vm11, %v5000_v37, %v9954_v61  ;;  %v3866_v61 = vld [vmem:[#allocation3 + $0x1af] sm:$0xff]  ;;  %v9968_v43 = vunpack.i.l.bf16 %v13476_v58 }
 0x3fb   : > { %8726 = vmatprep.mubr.msk.f32.mxu1 %vm590_vm0, %v3910_v6  ;;  %v9963_v8 = vunpack.i.l.bf16 %v9962_v22  ;;  %10261 = vrot.lane.b32.xlu0 %v10250_v48, %s16096_s27  ;;  %v9964_v31 = vunpack.i.h.bf16 %v9962_v22  ;;  %v3709_v6 = vld [vmem:[#allocation3 + $0x1b0] sm:$0xff]  ;;  %v4873_v22 = vsel %vm4867_vm9, %v4840_v32, %v9909_v28  ;;  %v10290_v37 = vpack.i.bf16 %v3866_v61, %v3865_v62 }
 0x3fc   : > { %10256 = vrot.lane.b32.xlu1 %v10255_v44, %s16095_s18  ;;  %v10285_v0 = vpack.i.bf16 %v3709_v6, %v3708_v49  ;;  %v9969_v28 = vunpack.i.h.bf16 %v13476_v58  ;;  %v9938_v58 = vunpack.i.l.bf16 %v13454_v40  ;;  %v13541_v62 = vld [vmem:[#allocation3 + $0x1b1] sm:$0xff]  ;;  %v9943_v61 = vunpack.i.l.bf16 %v13466_v17  ;;  %v3913_v49 = vld [vmem:[#allocation3 + $0xa9] sm:$0xff] }
 0x3fd   : > { %v13506_v60 = vpop.permute.xlu0 %9976  ;;  %v4936_v54 = vsel %vm2858_vm6, %v4904_v5, %v9963_v8 }
 0x3fe   : > { %v9982_v63 = vpop.permute.xlu1 %9981  ;;  %5263 = vmatmul.mubr.f32.gmra.mrb[86].mxu1 %v5033_v39  ;;  %v4969_v8 = vsel %vm4964_vm10, %v4936_v54, %v9968_v43  ;;  %v3912_v54 = vld [vmem:[#allocation3 + $0x91] sm:$0xff] }
 0x3ff   : > { %8727 = vmatprep.mubr.msk.f32.mxu1 %vm590_vm0, %v3911_v7  ;;  %v9983_v36 = vunpack.i.l.bf16 %v9982_v63  ;;  %10271 = vrot.lane.b32.xlu0 %v10250_v48, %s16094_s0  ;;  %v4905_v48 = vsel %vm2661_vm2, %v4873_v22, %v9959_v15  ;;  %v9984_v39 = vunpack.i.h.bf16 %v9982_v63  ;;  %v3656_v22 = vld [vmem:[#allocation3 + $0x67] sm:$0xff] }
 0x400   : > { %10266 = vrot.lane.b32.xlu1 %v10255_v44, %s15839_s22  ;;  %v4937_v46 = vsel %vm2858_vm6, %v4905_v48, %v9964_v31 }
 0x401   : > { %v9987_v4 = vpop.permute.xlu0 %9986  ;;  %v5001_v2 = vsel %vm2727_vm5, %v4969_v8, %v9983_v36  ;;  %v4970_v63 = vsel %vm4964_vm10, %v4937_v46, %v9969_v28  ;;  %v4841_v8 = vsel %vm590_vm0, %v3656_v22, %v9938_v58  ;;  %v3710_v46 = vld [vmem:[#allocation3 + $0x1c8] sm:$0xff] }
 0x402   : > { %v13520_v34 = vpop.permute.xlu1 %9991  ;;  %v9988_v44 = vunpack.i.l.bf16 %v9987_v4  ;;  %v9989_v24 = vunpack.i.h.bf16 %v9987_v4  ;;  %v5002_v31 = vsel %vm2727_vm5, %v4970_v63, %v9984_v39  ;;  %v3711_v39 = vld [vmem:[#allocation3 + $0x1d0] sm:$0xff]  ;;  %v4874_v28 = vsel %vm4867_vm9, %v4841_v8, %v9943_v61 }
 0x403   : > { %10281 = vrot.lane.b32.xlu0 %v10280_v38, %s16093_s21  ;;  %v9993_v6 = vunpack.i.l.bf16 %v13520_v34  ;;  %v13569_v22 = vld [vmem:[#allocation3 + $0x1cf] sm:$0xff] }
 0x404   : > { %10276 = vrot.lane.b32.xlu1 %v10280_v38, %s10836_s26  ;;  %v5034_v7 = vsel %vm5029_vm11, %v5001_v2, %v9988_v44  ;;  %v5035_v36 = vsel %vm5029_vm11, %v5002_v31, %v9989_v24  ;;  %v13539_v38 = vld [vmem:[#allocation3 + $0x1a9] sm:$0xff]  ;;  %v9939_v44 = vunpack.i.h.bf16 %v13454_v40  ;;  %v9944_v2 = vunpack.i.h.bf16 %v13466_v17 }
 0x405   : > { %v9997_v15 = vpop.permute.xlu0 %9996  ;;  %5268 = vmatmul.mubr.f32.gmra.mrb[88].mxu1 %v5034_v7  ;;  %v10315_v48 = vpack.i.bf16 %v13541_v62, %v13539_v38  ;;  %v3657_v31 = vld [vmem:[#allocation3 + $0x6f] sm:$0xff]  ;;  %v10320_v17 = vpack.i.bf16 %v3711_v39, %v3710_v46 }
 0x406   : > { %v13530_v5 = vpop.permute.xlu1 %10001  ;;  %8728 = vmatprep.mubr.msk.f32.mxu1 %vm590_vm0, %v3912_v54  ;;  %v9998_v4 = vunpack.i.l.bf16 %v9997_v15  ;;  %v9994_v54 = vunpack.i.h.bf16 %v13520_v34  ;;  %v9999_v40 = vunpack.i.h.bf16 %v9997_v15  ;;  %v4842_v61 = vsel %vm590_vm0, %v3657_v31, %v9939_v44 }
 0x407   : > { %10291 = vrot.lane.b32.xlu0 %v10290_v37, %s16095_s18  ;;  %v10003_v63 = vunpack.i.l.bf16 %v13530_v5  ;;  %v4875_v34 = vsel %vm4867_vm9, %v4842_v61, %v9944_v2  ;;  %v9973_v2 = vunpack.i.l.bf16 %v13488_v51  ;;  %v9978_v31 = vunpack.i.l.bf16 %v13506_v60 }
 0x408   : > { %10286 = vrot.lane.b32.xlu1 %v10285_v0, %s15837_s23  ;;  %v4907_v15 = vsel %vm2661_vm2, %v4875_v34, %v9994_v54 }
 0x409   : > { %v10017_v32 = vpop.permute.xlu0 %10016  ;;  %5273 = vmatmul.mubr.f32.gmra.mrb[90].mxu1 %v5035_v36 }
 0x40a   : > { %v13544_v43 = vpop.permute.xlu1 %10006  ;;  %8729 = vmatprep.mubr.msk.f32.mxu1 %vm590_vm0, %v3913_v49  ;;  %v10018_v36 = vunpack.i.l.bf16 %v10017_v32  ;;  %v13567_v49 = vld [vmem:[#allocation3 + $0x1c7] sm:$0xff]  ;;  %v10019_v46 = vunpack.i.h.bf16 %v10017_v32  ;;  %v3914_v32 = vld [vmem:[#allocation3 + $0xb1] sm:$0xff] }
 0x40b   : > { %10306 = vrot.lane.b32.xlu0 %v10285_v0, %s16094_s0  ;;  %v10325_v39 = vpack.i.bf16 %v13569_v22, %v13567_v49 }
 0x40c   : > { %10296 = vrot.lane.b32.xlu1 %v10285_v0, %s16096_s27  ;;  %v4906_v0 = vsel %vm2661_vm2, %v4874_v28, %v9993_v6 }
 0x40d   : > { %v13556_v24 = vpop.permute.xlu0 %10026  ;;  %v4938_v58 = vsel %vm2858_vm6, %v4906_v0, %v9998_v4  ;;  %v10004_v4 = vunpack.i.h.bf16 %v13530_v5 }
 0x40e   : > { %v13558_v7 = vpop.permute.xlu1 %10011  ;;  %v4971_v0 = vsel %vm4964_vm10, %v4938_v58, %v10003_v63  ;;  %v10028_v58 = vunpack.i.l.bf16 %v13556_v24 }
 0x40f   : > { %10316 = vrot.lane.b32.xlu0 %v10315_v48, %s16093_s21  ;;  %v5003_v44 = vsel %vm2727_vm5, %v4971_v0, %v10018_v36  ;;  %v3658_v36 = vld [vmem:[#allocation3 + $0x87] sm:$0xff] }
 0x410   : > { %10301 = vrot.lane.b32.xlu1 %v10290_v37, %s15839_s22  ;;  %v4939_v37 = vsel %vm2858_vm6, %v4907_v15, %v9999_v40  ;;  %v4843_v15 = vsel %vm590_vm0, %v3658_v36, %v9973_v2  ;;  %v13597_v0 = vld [vmem:[#allocation3 + $0x1c9] sm:$0xff] }
 0x411   : > { %v13572_v6 = vpop.permute.xlu0 %10036 }
 0x412   : > { %v10022_v8 = vpop.permute.xlu1 %10021  ;;  %v10038_v2 = vunpack.i.l.bf16 %v13572_v6 }
 0x413   : > { %v10023_v28 = vunpack.i.l.bf16 %v10022_v8  ;;  %10321 = vrot.lane.b32.xlu0 %v10320_v17, %s15837_s23  ;;  %v10024_v54 = vunpack.i.h.bf16 %v10022_v8  ;;  %v9974_v8 = vunpack.i.h.bf16 %v13488_v51 }
 0x414   : > { %10311 = vrot.lane.b32.xlu1 %v10315_v48, %s10836_s26  ;;  %v4972_v48 = vsel %vm4964_vm10, %v4939_v37, %v10004_v4  ;;  %v9979_v4 = vunpack.i.h.bf16 %v13506_v60  ;;  %v4876_v37 = vsel %vm4867_vm9, %v4843_v15, %v9978_v31  ;;  %v3659_v60 = vld [vmem:[#allocation3 + $0x8f] sm:$0xff] }
 0x415   : > { %v5036_v5 = vsel %vm5029_vm11, %v5003_v44, %v10023_v28  ;;  %v13586_v63 = vpop.permute.xlu0 %10041  ;;  %v5004_v34 = vsel %vm2727_vm5, %v4972_v48, %v10019_v46  ;;  %v13599_v44 = vld [vmem:[#allocation3 + $0x1d1] sm:$0xff]  ;;  %v10029_v46 = vunpack.i.h.bf16 %v13556_v24  ;;  %v4908_v51 = vsel %vm2661_vm2, %v4876_v37, %v10028_v58  ;;  %v3712_v15 = vld [vmem:[#allocation3 + $0x1e8] sm:$0xff] }
 0x416   : > { %v10032_v40 = vpop.permute.xlu1 %10031  ;;  %5278 = vmatmul.mubr.f32.gmra.mrb[92].mxu1 %v5036_v5  ;;  %v5037_v28 = vsel %vm5029_vm11, %v5004_v34, %v10024_v54  ;;  %v13609_v54 = vld [vmem:[#allocation3 + $0x1e7] sm:$0xff]  ;;  %v13611_v48 = vld [vmem:[#allocation3 + $0x1ef] sm:$0xff]  ;;  %v10350_v24 = vpack.i.bf16 %v13599_v44, %v13597_v0  ;;  %v4844_v58 = vsel %vm590_vm0, %v3659_v60, %v9974_v8 }
 0x417   : > { %8730 = vmatprep.mubr.msk.f32.mxu1 %vm590_vm0, %v3914_v32  ;;  %v10033_v61 = vunpack.i.l.bf16 %v10032_v40  ;;  %10326 = vrot.lane.b32.xlu0 %v10325_v39, %s16095_s18  ;;  %v10034_v36 = vunpack.i.h.bf16 %v10032_v40  ;;  %v10360_v40 = vpack.i.bf16 %v13611_v48, %v13609_v54 }
 0x418   : > { %10331 = vrot.lane.b32.xlu1 %v10320_v17, %s16096_s27 }
 0x419   : > { %v13603_v5 = vpop.permute.xlu0 %10046  ;;  %v4940_v31 = vsel %vm2858_vm6, %v4908_v51, %v10033_v61 }
 0x41a   : > { %v10052_v32 = vpop.permute.xlu1 %10051  ;;  %5283 = vmatmul.mubr.f32.gmra.mrb[94].mxu1 %v5037_v28  ;;  %v4877_v28 = vsel %vm4867_vm9, %v4844_v58, %v9979_v4  ;;  %v4973_v51 = vsel %vm4964_vm10, %v4940_v31, %v10038_v2 }
 0x41b   : > { %8731 = vmatprep.mubr.msk.f32.mxu1 %vm590_vm0, %v3915_v21  ;;  %v10053_v34 = vunpack.i.l.bf16 %v10052_v32  ;;  %10341 = vrot.lane.b32.xlu0 %v10320_v17, %s16094_s0  ;;  %v3713_v21 = vld [vmem:[#allocation3 + $0x1f0] sm:$0xff]  ;;  %v4909_v61 = vsel %vm2661_vm2, %v4877_v28, %v10029_v46  ;;  %v10039_v17 = vunpack.i.h.bf16 %v13572_v6  ;;  %v10054_v8 = vunpack.i.h.bf16 %v10052_v32 }
 0x41c   : > { %10336 = vrot.lane.b32.xlu1 %v10325_v39, %s15839_s22  ;;  %v4941_v23 = vsel %vm2858_vm6, %v4909_v61, %v10034_v36  ;;  %v10355_v60 = vpack.i.bf16 %v3713_v21, %v3712_v15  ;;  %v3916_v6 = vld [vmem:[#allocation3 + $0xd1] sm:$0xff]  ;;  %v10008_v36 = vunpack.i.l.bf16 %v13544_v43 }
 0x41d   : > { %v10057_v37 = vpop.permute.xlu0 %10056  ;;  %v5005_v4 = vsel %vm2727_vm5, %v4973_v51, %v10053_v34  ;;  %v4974_v2 = vsel %vm4964_vm10, %v4941_v23, %v10039_v17  ;;  %v13641_v34 = vld [vmem:[#allocation3 + $0x1e9] sm:$0xff] }
 0x41e   : > { %v13620_v3 = vpop.permute.xlu1 %10061  ;;  %v10058_v39 = vunpack.i.l.bf16 %v10057_v37  ;;  %v10059_v58 = vunpack.i.h.bf16 %v10057_v37  ;;  %v5006_v32 = vsel %vm2727_vm5, %v4974_v2, %v10054_v8  ;;  %v3917_v23 = vld [vmem:[#allocation3 + $0xe9] sm:$0xff] }
 0x41f   : > { %10351 = vrot.lane.b32.xlu0 %v10350_v24, %s16093_s21  ;;  %v10063_v28 = vunpack.i.l.bf16 %v13620_v3  ;;  %v3660_v37 = vld [vmem:[#allocation3 + $0xa7] sm:$0xff] }
 0x420   : > { %10346 = vrot.lane.b32.xlu1 %v10350_v24, %s10836_s26  ;;  %v5038_v52 = vsel %vm5029_vm11, %v5005_v4, %v10058_v39  ;;  %v5039_v31 = vsel %vm5029_vm11, %v5006_v32, %v10059_v58  ;;  %v13643_v24 = vld [vmem:[#allocation3 + $0x1f1] sm:$0xff]  ;;  %v10009_v39 = vunpack.i.h.bf16 %v13544_v43  ;;  %v4845_v51 = vsel %vm590_vm0, %v3660_v37, %v10008_v36  ;;  %v3871_v8 = vld [vmem:[#allocation3 + $0x207] sm:$0xff] }
 0x421   : > { %v10067_v13 = vpop.permute.xlu0 %10066  ;;  %5288 = vmatmul.mubr.f32.gmra.mrb[96].mxu1 %v5038_v52  ;;  %v10013_v52 = vunpack.i.l.bf16 %v13558_v7  ;;  %v10385_v17 = vpack.i.bf16 %v13643_v24, %v13641_v34  ;;  %v3872_v4 = vld [vmem:[#allocation3 + $0x20f] sm:$0xff]  ;;  %v10014_v58 = vunpack.i.h.bf16 %v13558_v7 }
 0x422   : > { %v13632_v46 = vpop.permute.xlu1 %10071  ;;  %8732 = vmatprep.mubr.msk.f32.mxu1 %vm590_vm0, %v3916_v6  ;;  %v10068_v61 = vunpack.i.l.bf16 %v10067_v13  ;;  %v10069_v43 = vunpack.i.h.bf16 %v10067_v13  ;;  %v10390_v7 = vpack.i.bf16 %v3872_v4, %v3871_v8  ;;  %v10043_v8 = vunpack.i.l.bf16 %v13586_v63 }
 0x423   : > { %10361 = vrot.lane.b32.xlu0 %v10360_v40, %s16095_s18  ;;  %v4878_v6 = vsel %vm4867_vm9, %v4845_v51, %v10013_v52  ;;  %v4846_v52 = vsel %vm590_vm0, %v3661_v26, %v10009_v39  ;;  %v3903_v51 = vld [vmem:[#allocation3 + $0x208] sm:$0xff]  ;;  %v10074_v13 = vunpack.i.h.bf16 %v13632_v46 }
 0x424   : > { %10356 = vrot.lane.b32.xlu1 %v10355_v60, %s15837_s23  ;;  %v10395_v39 = vpack.i.bf16 %v3904_v50, %v3903_v51 }
 0x425   : > { %v10087_v15 = vpop.permute.xlu0 %10086  ;;  %5293 = vmatmul.mubr.f32.gmra.mrb[98].mxu1 %v5039_v31  ;;  %v10064_v31 = vunpack.i.h.bf16 %v13620_v3  ;;  %v4879_v3 = vsel %vm4867_vm9, %v4846_v52, %v10014_v58  ;;  %v10044_v52 = vunpack.i.h.bf16 %v13586_v63 }
 0x426   : > { %v13646_v21 = vpop.permute.xlu1 %10076  ;;  %8733 = vmatprep.mubr.msk.f32.mxu1 %vm590_vm0, %v3917_v23  ;;  %v10073_v23 = vunpack.i.l.bf16 %v13632_v46  ;;  %v10088_v37 = vunpack.i.l.bf16 %v10087_v15  ;;  %v10089_v19 = vunpack.i.h.bf16 %v10087_v15  ;;  %v10048_v46 = vunpack.i.l.bf16 %v13603_v5 }
 0x427   : > { %10376 = vrot.lane.b32.xlu0 %v10355_v60, %s16094_s0 }
 0x428   : > { %10366 = vrot.lane.b32.xlu1 %v10355_v60, %s16096_s27  ;;  %v4910_v60 = vsel %vm2661_vm2, %v4878_v6, %v10063_v28  ;;  %v4911_v6 = vsel %vm2661_vm2, %v4879_v3, %v10064_v31 }
 0x429   : > { %v13658_v2 = vpop.permute.xlu0 %10096  ;;  %v4942_v36 = vsel %vm2858_vm6, %v4910_v60, %v10068_v61 }
 0x42a   : > { %v13660_v32 = vpop.permute.xlu1 %10081  ;;  %v4975_v60 = vsel %vm4964_vm10, %v4942_v36, %v10073_v23  ;;  %v10098_v15 = vunpack.i.l.bf16 %v13658_v2  ;;  %v3662_v36 = vld [vmem:[#allocation3 + $0xc7] sm:$0xff] }
 0x42b   : > { %10386 = vrot.lane.b32.xlu0 %v10385_v17, %s16093_s21  ;;  %v5007_v26 = vsel %vm2727_vm5, %v4975_v60, %v10088_v37  ;;  %v4847_v51 = vsel %vm590_vm0, %v3662_v36, %v10043_v8  ;;  %v3663_v8 = vld [vmem:[#allocation3 + $0xcf] sm:$0xff] }
 0x42c   : > { %10371 = vrot.lane.b32.xlu1 %v10360_v40, %s15839_s22  ;;  %v4943_v40 = vsel %vm2858_vm6, %v4911_v6, %v10069_v43  ;;  %v3918_v43 = vld [vmem:[#allocation3 + $0xf1] sm:$0xff] }
 0x42d   : > { %v13670_v14 = vpop.permute.xlu0 %10106  ;;  %v13695_v6 = vld [vmem:[#allocation3 + $0x211] sm:$0xff] }
 0x42e   : > { %v10092_v28 = vpop.permute.xlu1 %10091 }
 0x42f   : > { %v10093_v61 = vunpack.i.l.bf16 %v10092_v28  ;;  %10391 = vrot.lane.b32.xlu0 %v10390_v7, %s16095_s18  ;;  %v10094_v4 = vunpack.i.h.bf16 %v10092_v28  ;;  %v13693_v28 = vld [vmem:[#allocation3 + $0x209] sm:$0xff] }
 0x430   : > { %10381 = vrot.lane.b32.xlu1 %v10385_v17, %s10836_s26  ;;  %v4976_v17 = vsel %vm4964_vm10, %v4943_v40, %v10074_v13  ;;  %v10049_v13 = vunpack.i.h.bf16 %v13603_v5 }
 0x431   : > { %v5040_v58 = vsel %vm5029_vm11, %v5007_v26, %v10093_v61  ;;  %v13682_v31 = vpop.permute.xlu0 %10111  ;;  %v5008_v37 = vsel %vm2727_vm5, %v4976_v17, %v10089_v19  ;;  %v4880_v61 = vsel %vm4867_vm9, %v4847_v51, %v10048_v46  ;;  %v3919_v19 = vld [vmem:[#allocation3 + $0x109] sm:$0xff]  ;;  %v10099_v26 = vunpack.i.h.bf16 %v13658_v2 }
 0x432   : > { %v10102_v23 = vpop.permute.xlu1 %10101  ;;  %5298 = vmatmul.mubr.f32.gmra.mrb[100].mxu1 %v5040_v58  ;;  %v5041_v3 = vsel %vm5029_vm11, %v5008_v37, %v10094_v4  ;;  %v4912_v63 = vsel %vm2661_vm2, %v4880_v61, %v10098_v15  ;;  %v10410_v46 = vpack.i.bf16 %v13695_v6, %v13693_v28  ;;  %v10109_v37 = vunpack.i.h.bf16 %v13670_v14 }
 0x433   : > { %8734 = vmatprep.mubr.msk.f32.mxu1 %vm590_vm0, %v3918_v43  ;;  %v10103_v50 = vunpack.i.l.bf16 %v10102_v23  ;;  %10406 = vrot.lane.b32.xlu0 %v10395_v39, %s16094_s0  ;;  %v10104_v4 = vunpack.i.h.bf16 %v10102_v23  ;;  %v4848_v43 = vsel %vm590_vm0, %v3663_v8, %v10044_v52  ;;  %v10083_v8 = vunpack.i.l.bf16 %v13660_v32 }
 0x434   : > { %10396 = vrot.lane.b32.xlu1 %v10395_v39, %s16096_s27  ;;  %v10108_v39 = vunpack.i.l.bf16 %v13670_v14  ;;  %v4881_v2 = vsel %vm4867_vm9, %v4848_v43, %v10049_v13  ;;  %v3664_v43 = vld [vmem:[#allocation3 + $0xe7] sm:$0xff]  ;;  %s16110_s27 = smov 120  }
 0x435   : > { %v13699_v60 = vpop.permute.xlu0 %10116  ;;  %v4944_v58 = vsel %vm2858_vm6, %v4912_v63, %v10103_v50  ;;  %v4913_v36 = vsel %vm2661_vm2, %v4881_v2, %v10099_v26  ;;  %v3920_v63 = vld [vmem:[#allocation3 + $0x111] sm:$0xff] }
 0x436   : > { %v10122_v40 = vpop.permute.xlu1 %10121  ;;  %5303 = vmatmul.mubr.f32.gmra.mrb[102].mxu1 %v5041_v3  ;;  %v4977_v23 = vsel %vm4964_vm10, %v4944_v58, %v10108_v39  ;;  %v4945_v50 = vsel %vm2858_vm6, %v4913_v36, %v10104_v4  ;;  %v10078_v39 = vunpack.i.l.bf16 %v13646_v21 }
 0x437   : > { %8735 = vmatprep.mubr.msk.f32.mxu1 %vm590_vm0, %v3919_v19  ;;  %v10123_v5 = vunpack.i.l.bf16 %v10122_v40  ;;  %v10124_v3 = vunpack.i.h.bf16 %v10122_v40  ;;  %v4978_v14 = vsel %vm4964_vm10, %v4945_v50, %v10109_v37  ;;  %v10084_v37 = vunpack.i.h.bf16 %v13660_v32 }
 0x438   : > { %10401 = vrot.lane.b32.xlu1 %v10390_v7, %s15839_s22  ;;  %v4849_v36 = vsel %vm590_vm0, %v3664_v43, %v10078_v39 }
 0x439   : > { %v10127_v17 = vpop.permute.xlu0 %10126  ;;  %v5009_v7 = vsel %vm2727_vm5, %v4977_v23, %v10123_v5  ;;  %v5010_v26 = vsel %vm2727_vm5, %v4978_v14, %v10124_v3  ;;  %v3921_v5 = vld [vmem:[#allocation3 + $0x129] sm:$0xff] }
 0x43a   : > { %v10132_v15 = vpop.permute.xlu1 %10131  ;;  %v10128_v51 = vunpack.i.l.bf16 %v10127_v17  ;;  %v10129_v61 = vunpack.i.h.bf16 %v10127_v17  ;;  %v10079_v17 = vunpack.i.h.bf16 %v13646_v21 }
 0x43b   : > { %v10134_v3 = vunpack.i.h.bf16 %v10132_v15 }
 0x43c   : > { %10411 = vrot.lane.b32.xlu1 %v10410_v46, %s10836_s26  ;;  %v5042_v52 = vsel %vm5029_vm11, %v5009_v7, %v10128_v51  ;;  %v5043_v40 = vsel %vm5029_vm11, %v5010_v26, %v10129_v61  ;;  %v10133_v46 = vunpack.i.l.bf16 %v10132_v15  ;;  %v4882_v51 = vsel %vm4867_vm9, %v4849_v36, %v10083_v8 }
 0x43d   : > { %v10137_v13 = vpop.permute.xlu0 %10136  ;;  %5308 = vmatmul.mubr.f32.gmra.mrb[104].mxu1 %v5042_v52  ;;  %v3665_v52 = vld [vmem:[#allocation3 + $0xef] sm:$0xff] }
 0x43e   : > { %v10142_v19 = vpop.permute.xlu1 %10141  ;;  %8736 = vmatprep.mubr.msk.f32.mxu1 %vm590_vm0, %v3920_v63  ;;  %v10138_v2 = vunpack.i.l.bf16 %v10137_v13  ;;  %v4914_v7 = vsel %vm2661_vm2, %v4882_v51, %v10133_v46  ;;  %v10139_v63 = vunpack.i.h.bf16 %v10137_v13  ;;  %v4850_v21 = vsel %vm590_vm0, %v3665_v52, %v10079_v17 }
 0x43f   : > { %v10143_v61 = vunpack.i.l.bf16 %v10142_v19  ;;  %v4883_v39 = vsel %vm4867_vm9, %v4850_v21, %v10084_v37  ;;  %v10118_v37 = vunpack.i.l.bf16 %v13699_v60 }
 0x440   : > { %v4946_v14 = vsel %vm2858_vm6, %v4914_v7, %v10138_v2  ;;  %v4915_v8 = vsel %vm2661_vm2, %v4883_v39, %v10134_v3  ;;  %v10113_v2 = vunpack.i.l.bf16 %v13682_v31 }
 0x441   : > { %v10157_v4 = vpop.permute.xlu0 %10156  ;;  %5313 = vmatmul.mubr.f32.gmra.mrb[106].mxu1 %v5043_v40  ;;  %v4979_v15 = vsel %vm4964_vm10, %v4946_v14, %v10143_v61  ;;  %v4947_v46 = vsel %vm2858_vm6, %v4915_v8, %v10139_v63 }
 0x442   : > { %v13724_v58 = vpop.permute.xlu1 %10146  ;;  %8737 = vmatprep.mubr.msk.f32.mxu1 %vm590_vm0, %v3921_v5  ;;  %v10158_v26 = vunpack.i.l.bf16 %v10157_v4  ;;  %v10144_v5 = vunpack.i.h.bf16 %v10142_v19  ;;  %v10159_v36 = vunpack.i.h.bf16 %v10157_v4  ;;  %v3922_v19 = vld [vmem:[#allocation3 + $0x131] sm:$0xff]  ;;  %v3666_v4 = vld [vmem:[#allocation3 + $0x107] sm:$0xff] }
 0x443   : > { %v4851_v21 = vsel %vm590_vm0, %v3666_v4, %v10113_v2 }
 0x444   : > { %v5011_v13 = vsel %vm2727_vm5, %v4979_v15, %v10158_v26  ;;  %v4980_v61 = vsel %vm4964_vm10, %v4947_v46, %v10144_v5  ;;  %v10114_v26 = vunpack.i.h.bf16 %v13682_v31  ;;  %v4884_v8 = vsel %vm4867_vm9, %v4851_v21, %v10118_v37  ;;  %v3667_v31 = vld [vmem:[#allocation3 + $0x10f] sm:$0xff] }
 0x445   : > { %v10167_v23 = vpop.permute.xlu0 %10166  ;;  %v5012_v14 = vsel %vm2727_vm5, %v4980_v61, %v10159_v36 }
 0x446   : > { %v13731_v50 = vpop.permute.xlu1 %10151  ;;  %v10168_v3 = vunpack.i.l.bf16 %v10167_v23  ;;  %v10169_v5 = vunpack.i.h.bf16 %v10167_v23 }
 0x448   : > { %v4916_v46 = vsel %vm2661_vm2, %v4884_v8, %v10168_v3 }
 0x449   : > { %v10177_v40 = vpop.permute.xlu0 %10176 }
 0x44a   : > { %v10162_v32 = vpop.permute.xlu1 %10161 }
 0x44b   : > { %v10163_v43 = vunpack.i.l.bf16 %v10162_v32  ;;  %v10164_v51 = vunpack.i.h.bf16 %v10162_v32  ;;  %v10119_v32 = vunpack.i.h.bf16 %v13699_v60  ;;  %v4852_v60 = vsel %vm590_vm0, %v3667_v31, %v10114_v26 }
 0x44d   : > { %v5044_v17 = vsel %vm5029_vm11, %v5011_v13, %v10163_v43  ;;  %v13744_v7 = vpop.permute.xlu0 %10181  ;;  %v5045_v39 = vsel %vm5029_vm11, %v5012_v14, %v10164_v51  ;;  %v3923_v13 = vld [vmem:[#allocation3 + $0x149] sm:$0xff]  ;;  %v4885_v37 = vsel %vm4867_vm9, %v4852_v60, %v10119_v32  ;;  %v10179_v14 = vunpack.i.h.bf16 %v10177_v40  ;;  %v3924_v32 = vld [vmem:[#allocation3 + $0x151] sm:$0xff] }
 0x44e   : > { %v10172_v52 = vpop.permute.xlu1 %10171  ;;  %5318 = vmatmul.mubr.f32.gmra.mrb[108].mxu1 %v5044_v17  ;;  %v10178_v17 = vunpack.i.l.bf16 %v10177_v40  ;;  %v4917_v4 = vsel %vm2661_vm2, %v4885_v37, %v10169_v5  ;;  %v3668_v60 = vld [vmem:[#allocation3 + $0x127] sm:$0xff] }
 0x44f   : > { %8738 = vmatprep.mubr.msk.f32.mxu1 %vm590_vm0, %v3922_v19  ;;  %v10173_v63 = vunpack.i.l.bf16 %v10172_v52  ;;  %v10174_v36 = vunpack.i.h.bf16 %v10172_v52 }
 0x451   : > { %v13754_v43 = vpop.permute.xlu0 %10186  ;;  %v4948_v2 = vsel %vm2858_vm6, %v4916_v46, %v10173_v63  ;;  %v4949_v21 = vsel %vm2858_vm6, %v4917_v4, %v10174_v36  ;;  %v10148_v46 = vunpack.i.l.bf16 %v13724_v58 }
 0x452   : > { %v10192_v15 = vpop.permute.xlu1 %10191  ;;  %5323 = vmatmul.mubr.f32.gmra.mrb[110].mxu1 %v5045_v39  ;;  %v4981_v3 = vsel %vm4964_vm10, %v4948_v2, %v10178_v17  ;;  %v4982_v5 = vsel %vm4964_vm10, %v4949_v21, %v10179_v14  ;;  %v3925_v2 = vld [vmem:[#allocation3 + $0x169] sm:$0xff]  ;;  %v10154_v14 = vunpack.i.h.bf16 %v13731_v50 }
 0x453   : > { %8739 = vmatprep.mubr.msk.f32.mxu1 %vm590_vm0, %v3923_v13  ;;  %v10193_v51 = vunpack.i.l.bf16 %v10192_v15  ;;  %v10194_v39 = vunpack.i.h.bf16 %v10192_v15  ;;  %v10153_v15 = vunpack.i.l.bf16 %v13731_v50  ;;  %v4853_v4 = vsel %vm590_vm0, %v3668_v60, %v10148_v46 }
 0x454   : > { %v10184_v50 = vunpack.i.h.bf16 %v13744_v7 }
 0x455   : > { %v10197_v19 = vpop.permute.xlu0 %10196  ;;  %v5013_v52 = vsel %vm2727_vm5, %v4981_v3, %v10193_v51  ;;  %v5014_v40 = vsel %vm2727_vm5, %v4982_v5, %v10194_v39 }
 0x456   : > { %v10202_v61 = vpop.permute.xlu1 %10201  ;;  %v10198_v23 = vunpack.i.l.bf16 %v10197_v19  ;;  %v10199_v8 = vunpack.i.h.bf16 %v10197_v19  ;;  %v10149_v19 = vunpack.i.h.bf16 %v13724_v58 }
 0x457   : > { %v10203_v51 = vunpack.i.l.bf16 %v10202_v61  ;;  %v10204_v39 = vunpack.i.h.bf16 %v10202_v61 }
 0x458   : > { %v5046_v63 = vsel %vm5029_vm11, %v5013_v52, %v10198_v23  ;;  %v5047_v17 = vsel %vm5029_vm11, %v5014_v40, %v10199_v8  ;;  %v4886_v23 = vsel %vm4867_vm9, %v4853_v4, %v10153_v15  ;;  %v10188_v15 = vunpack.i.l.bf16 %v13754_v43 }
 0x459   : > { %v10207_v13 = vpop.permute.xlu0 %10206  ;;  %5328 = vmatmul.mubr.f32.gmra.mrb[112].mxu1 %v5046_v63  ;;  %v4918_v52 = vsel %vm2661_vm2, %v4886_v23, %v10203_v51  ;;  %v3669_v63 = vld [vmem:[#allocation3 + $0x12f] sm:$0xff] }
 0x45a   : > { %v10212_v26 = vpop.permute.xlu1 %10211  ;;  %8740 = vmatprep.mubr.msk.f32.mxu1 %vm590_vm0, %v3924_v32  ;;  %v10208_v37 = vunpack.i.l.bf16 %v10207_v13  ;;  %v10209_v32 = vunpack.i.h.bf16 %v10207_v13  ;;  %v4854_v58 = vsel %vm590_vm0, %v3669_v63, %v10149_v19  ;;  %v10189_v63 = vunpack.i.h.bf16 %v13754_v43 }
 0x45b   : > { %v10213_v8 = vunpack.i.l.bf16 %v10212_v26  ;;  %v4887_v46 = vsel %vm4867_vm9, %v4854_v58, %v10154_v14  ;;  %v10214_v60 = vunpack.i.h.bf16 %v10212_v26 }
 0x45c   : > { %v4950_v5 = vsel %vm2858_vm6, %v4918_v52, %v10208_v37  ;;  %v4919_v51 = vsel %vm2661_vm2, %v4887_v46, %v10204_v39  ;;  %v3670_v52 = vld [vmem:[#allocation3 + $0x147] sm:$0xff] }
 0x45d   : > { %v10227_v31 = vpop.permute.xlu0 %10226  ;;  %5333 = vmatmul.mubr.f32.gmra.mrb[114].mxu1 %v5047_v17  ;;  %v10183_v17 = vunpack.i.l.bf16 %v13744_v7  ;;  %v4983_v13 = vsel %vm4964_vm10, %v4950_v5, %v10213_v8  ;;  %v4951_v37 = vsel %vm2858_vm6, %v4919_v51, %v10209_v32  ;;  %v3926_v8 = vld [vmem:[#allocation3 + $0x171] sm:$0xff] }
 0x45e   : > { %v13772_v36 = vpop.permute.xlu1 %10216  ;;  %8741 = vmatprep.mubr.msk.f32.mxu1 %vm590_vm0, %v3925_v2  ;;  %v10228_v40 = vunpack.i.l.bf16 %v10227_v31  ;;  %v10229_v23 = vunpack.i.h.bf16 %v10227_v31  ;;  %v3671_v5 = vld [vmem:[#allocation3 + $0x14f] sm:$0xff]  ;;  %v4984_v43 = vsel %vm4964_vm10, %v4951_v37, %v10214_v60 }
 0x45f   : > { %v4855_v41 = vsel %vm590_vm0, %v3670_v52, %v10183_v17 }
 0x460   : > { %v5015_v14 = vsel %vm2727_vm5, %v4983_v13, %v10228_v40  ;;  %v4888_v31 = vsel %vm4867_vm9, %v4855_v41, %v10188_v15  ;;  %v4856_v40 = vsel %vm590_vm0, %v3671_v5, %v10184_v50  ;;  %v10218_v5 = vunpack.i.l.bf16 %v13772_v36 }
 0x461   : > { %v10237_v3 = vpop.permute.xlu0 %10236  ;;  %v4889_v51 = vsel %vm4867_vm9, %v4856_v40, %v10189_v63  ;;  %v3672_v40 = vld [vmem:[#allocation3 + $0x167] sm:$0xff] }
 0x462   : > { %v13779_v21 = vpop.permute.xlu1 %10221  ;;  %v10238_v19 = vunpack.i.l.bf16 %v10237_v3  ;;  %v10239_v56 = vunpack.i.h.bf16 %v10237_v3  ;;  %v5016_v3 = vsel %vm2727_vm5, %v4984_v43, %v10229_v23 }
 0x464   : > { %v4921_v41 = vsel %vm2661_vm2, %v4889_v51, %v10239_v56 }
 0x465   : > { %v10247_v2 = vpop.permute.xlu0 %10246 }
 0x466   : > { %v10232_v61 = vpop.permute.xlu1 %10231  ;;  %v10248_v17 = vunpack.i.l.bf16 %v10247_v2  ;;  %v10249_v15 = vunpack.i.h.bf16 %v10247_v2 }
 0x467   : > { %v10233_v4 = vunpack.i.l.bf16 %v10232_v61  ;;  %v10234_v7 = vunpack.i.h.bf16 %v10232_v61  ;;  %v4920_v61 = vsel %vm2661_vm2, %v4888_v31, %v10238_v19 }
 0x469   : > { %v5048_v58 = vsel %vm5029_vm11, %v5015_v14, %v10233_v4  ;;  %v13795_v39 = vpop.permute.xlu0 %10251  ;;  %v5049_v13 = vsel %vm5029_vm11, %v5016_v3, %v10234_v7 }
 0x46a   : > { %v10242_v26 = vpop.permute.xlu1 %10241  ;;  %5338 = vmatmul.mubr.f32.gmra.mrb[116].mxu1 %v5048_v58 }
 0x46b   : > { %v10244_v32 = vunpack.i.h.bf16 %v10242_v26  ;;  %v10243_v46 = vunpack.i.l.bf16 %v10242_v26  ;;  %8742 = vmatprep.mubr.msk.f32.mxu1 %vm590_vm0, %v3926_v8 }
 0x46d   : > { %v4952_v4 = vsel %vm2858_vm6, %v4920_v61, %v10243_v46  ;;  %v10262_v14 = vpop.permute.xlu0 %10261  ;;  %v4953_v60 = vsel %vm2858_vm6, %v4921_v41, %v10244_v32  ;;  %v10219_v61 = vunpack.i.h.bf16 %v13772_v36 }
 0x46e   : > { %v10257_v52 = vpop.permute.xlu1 %10256  ;;  %5343 = vmatmul.mubr.f32.gmra.mrb[118].mxu1 %v5049_v13  ;;  %v10263_v50 = vunpack.i.l.bf16 %v10262_v14  ;;  %v4985_v23 = vsel %vm4964_vm10, %v4952_v4, %v10248_v17  ;;  %v10264_v58 = vunpack.i.h.bf16 %v10262_v14  ;;  %v4986_v2 = vsel %vm4964_vm10, %v4953_v60, %v10249_v15 }
 0x46f   : > { %v10259_v37 = vunpack.i.h.bf16 %v10257_v52  ;;  %v10258_v19 = vunpack.i.l.bf16 %v10257_v52  ;;  %8743 = vmatprep.mubr.msk.f32.mxu1 %vm590_vm0, %v13500_v9  ;;  %v10223_v9 = vunpack.i.l.bf16 %v13779_v21  ;;  %v4857_v17 = vsel %vm590_vm0, %v3672_v40, %v10218_v5  ;;  %v3673_v52 = vld [vmem:[#allocation3 + $0x16f] sm:$0xff] }
 0x471   : > { %v5017_v63 = vsel %vm2727_vm5, %v4985_v23, %v10258_v19  ;;  %v10272_v7 = vpop.permute.xlu0 %10271  ;;  %v5018_v8 = vsel %vm2727_vm5, %v4986_v2, %v10259_v37  ;;  %v4890_v3 = vsel %vm4867_vm9, %v4857_v17, %v10223_v9  ;;  %v10253_v9 = vunpack.i.l.bf16 %v13795_v39 }
 0x472   : > { %v10267_v26 = vpop.permute.xlu1 %10266  ;;  %v5050_v56 = vsel %vm5029_vm11, %v5017_v63, %v10263_v50  ;;  %v5051_v46 = vsel %vm5029_vm11, %v5018_v8, %v10264_v58  ;;  %v10273_v51 = vunpack.i.l.bf16 %v10272_v7  ;;  %v10274_v50 = vunpack.i.h.bf16 %v10272_v7 }
 0x473   : > { %5348 = vmatmul.mubr.f32.gmra.mrb[120].mxu1 %v5050_v56  ;;  %v10268_v43 = vunpack.i.l.bf16 %v10267_v26  ;;  %v10269_v41 = vunpack.i.h.bf16 %v10267_v26 }
 0x474   : > { %8744 = vmatprep.mubr.msk.f32.mxu1 %vm590_vm0, %v13502_v42  ;;  %v10224_v42 = vunpack.i.h.bf16 %v13779_v21 }
 0x475   : > { %v10282_v31 = vpop.permute.xlu0 %10281  ;;  %v4922_v15 = vsel %vm2661_vm2, %v4890_v3, %v10268_v43 }
 0x476   : > { %v10277_v32 = vpop.permute.xlu1 %10276  ;;  %v4954_v21 = vsel %vm2858_vm6, %v4922_v15, %v10273_v51  ;;  %v10283_v40 = vunpack.i.l.bf16 %v10282_v31  ;;  %v10284_v3 = vunpack.i.h.bf16 %v10282_v31 }
 0x477   : > { %5353 = vmatmul.mubr.f32.gmra.mrb[122].mxu1 %v5051_v46  ;;  %v10278_v14 = vunpack.i.l.bf16 %v10277_v32  ;;  %v10279_v63 = vunpack.i.h.bf16 %v10277_v32 }
 0x478   : > { %8745 = vmatprep.mubr.msk.f32.mxu1 %vm590_vm0, %v13539_v38  ;;  %v4858_v38 = vsel %vm590_vm0, %v3673_v52, %v10219_v61  ;;  %v10254_v61 = vunpack.i.h.bf16 %v13795_v39  ;;  %v10775_v39 = vld [vmem:[#allocation3 + $0x18f] sm:$0xff] }
 0x479   : > { %v10292_v4 = vpop.permute.xlu0 %10291  ;;  %v4891_v36 = vsel %vm4867_vm9, %v4858_v38, %v10224_v42  ;;  %v4987_v26 = vsel %vm4964_vm10, %v4954_v21, %v10278_v14 }
 0x47a   : > { %v13826_v13 = vpop.permute.xlu1 %10286  ;;  %v10293_v60 = vunpack.i.l.bf16 %v10292_v4  ;;  %v4923_v23 = vsel %vm2661_vm2, %v4891_v36, %v10269_v41  ;;  %v10294_v56 = vunpack.i.h.bf16 %v10292_v4  ;;  %v10774_v4 = vld [vmem:[#allocation3 + $0x187] sm:$0xff]  ;;  %v4860_v38 = vsel %vm590_vm0, %v10775_v39, %v10254_v61 }
 0x47b   : > { %v4955_v43 = vsel %vm2858_vm6, %v4923_v23, %v10274_v50  ;;  %v4859_v41 = vsel %vm590_vm0, %v10774_v4, %v10253_v9  ;;  %v4893_v50 = vsel %vm4867_vm9, %v4860_v38, %v10284_v3 }
 0x47c   : > { %v5019_v2 = vsel %vm2727_vm5, %v4987_v26, %v10293_v60  ;;  %v4988_v32 = vsel %vm4964_vm10, %v4955_v43, %v10279_v63 }
 0x47d   : > { %v10307_v37 = vpop.permute.xlu0 %10306  ;;  %v5020_v42 = vsel %vm2727_vm5, %v4988_v32, %v10294_v56 }
 0x47e   : > { %v10297_v19 = vpop.permute.xlu1 %10296  ;;  %v10308_v60 = vunpack.i.l.bf16 %v10307_v37 }
 0x47f   : > { %v10298_v58 = vunpack.i.l.bf16 %v10297_v19  ;;  %v10299_v8 = vunpack.i.h.bf16 %v10297_v19  ;;  %v10309_v19 = vunpack.i.h.bf16 %v10307_v37 }
 0x481   : > { %v5052_v5 = vsel %vm5029_vm11, %v5019_v2, %v10298_v58  ;;  %v13837_v46 = vpop.permute.xlu0 %10316  ;;  %v5053_v51 = vsel %vm5029_vm11, %v5020_v42, %v10299_v8 }
 0x482   : > { %v10302_v7 = vpop.permute.xlu1 %10301  ;;  %5358 = vmatmul.mubr.f32.gmra.mrb[124].mxu1 %v5052_v5  ;;  %v10318_v42 = vunpack.i.l.bf16 %v13837_v46 }
 0x483   : > { %8746 = vmatprep.mubr.msk.f32.mxu1 %vm590_vm0, %v13541_v62  ;;  %v10303_v17 = vunpack.i.l.bf16 %v10302_v7  ;;  %v10304_v15 = vunpack.i.h.bf16 %v10302_v7  ;;  %v4892_v62 = vsel %vm4867_vm9, %v4859_v41, %v10283_v40 }
 0x485   : > { %v13847_v14 = vpop.permute.xlu0 %10321  ;;  %v4924_v31 = vsel %vm2661_vm2, %v4892_v62, %v10303_v17  ;;  %v4925_v21 = vsel %vm2661_vm2, %v4893_v50, %v10304_v15  ;;  %v10288_v17 = vunpack.i.l.bf16 %v13826_v13  ;;  %v10289_v15 = vunpack.i.h.bf16 %v13826_v13 }
 0x486   : > { %v10312_v52 = vpop.permute.xlu1 %10311  ;;  %5363 = vmatmul.mubr.f32.gmra.mrb[126].mxu1 %v5053_v51  ;;  %v4956_v8 = vsel %vm2858_vm6, %v4924_v31, %v10308_v60  ;;  %v4957_v9 = vsel %vm2858_vm6, %v4925_v21, %v10309_v19 }
 0x487   : > { %8747 = vmatprep.mubr.msk.f32.mxu1 %vm590_vm0, %v13597_v0  ;;  %v10313_v36 = vunpack.i.l.bf16 %v10312_v52  ;;  %v10314_v23 = vunpack.i.h.bf16 %v10312_v52  ;;  %v10776_v52 = vld [vmem:[#allocation3 + $0x1a7] sm:$0xff] }
 0x488   : > { %v4861_v62 = vsel %vm590_vm0, %v10776_v52, %v10288_v17 }
 0x489   : > { %v10327_v63 = vpop.permute.xlu0 %10326  ;;  %v4989_v0 = vsel %vm4964_vm10, %v4956_v8, %v10313_v36  ;;  %v4990_v32 = vsel %vm4964_vm10, %v4957_v9, %v10314_v23  ;;  %v4894_v60 = vsel %vm4867_vm9, %v4861_v62, %v10318_v42  ;;  %v10777_v23 = vld [vmem:[#allocation3 + $0x1af] sm:$0xff]  ;;  %v10324_v42 = vunpack.i.h.bf16 %v13847_v14 }
 0x48a   : > { %v10332_v58 = vpop.permute.xlu1 %10331  ;;  %v10329_v26 = vunpack.i.h.bf16 %v10327_v63  ;;  %v10328_v56 = vunpack.i.l.bf16 %v10327_v63  ;;  %v10323_v63 = vunpack.i.l.bf16 %v13847_v14  ;;  %v7114_v14 = vld [vmem:[%s15721_s11] sm:$0xff] }
 0x48b   : > { %v10333_v2 = vunpack.i.l.bf16 %v10332_v58  ;;  %v10334_v7 = vunpack.i.h.bf16 %v10332_v58 }
 0x48c   : > { %v5021_v5 = vsel %vm2727_vm5, %v4989_v0, %v10328_v56  ;;  %v5022_v61 = vsel %vm2727_vm5, %v4990_v32, %v10329_v26 }
 0x48d   : > { %v10342_v43 = vpop.permute.xlu0 %10341  ;;  %v5054_v37 = vsel %vm5029_vm11, %v5021_v5, %v10333_v2  ;;  %v5055_v4 = vsel %vm5029_vm11, %v5022_v61, %v10334_v7 }
 0x48e   : > { %v10337_v40 = vpop.permute.xlu1 %10336  ;;  %5368 = vmatmul.mubr.f32.gmra.mrb[128].mxu1 %v5054_v37  ;;  %v10343_v39 = vunpack.i.l.bf16 %v10342_v43  ;;  %v10344_v58 = vunpack.i.h.bf16 %v10342_v43 }
 0x48f   : > { %8748 = vmatprep.mubr.msk.f32.mxu1 %vm590_vm0, %v13599_v44  ;;  %v10338_v41 = vunpack.i.l.bf16 %v10337_v40  ;;  %v10319_v44 = vunpack.i.h.bf16 %v13837_v46  ;;  %v10339_v36 = vunpack.i.h.bf16 %v10337_v40 }
 0x491   : > { %v13867_v3 = vpop.permute.xlu0 %10351  ;;  %v4926_v50 = vsel %vm2661_vm2, %v4894_v60, %v10338_v41 }
 0x492   : > { %v10347_v51 = vpop.permute.xlu1 %10346  ;;  %5373 = vmatmul.mubr.f32.gmra.mrb[130].mxu1 %v5055_v4  ;;  %v4958_v56 = vsel %vm2858_vm6, %v4926_v50, %v10343_v39  ;;  %v10353_v9 = vunpack.i.l.bf16 %v13867_v3  ;;  %v4864_v50 = vsel %vm590_vm0, %v13569_v22, %v10324_v42  ;;  %v7117_v22 = vld [vmem:[%s15721_s11 + $0x18] sm:$0xff] }
 0x493   : > { %8749 = vmatprep.mubr.msk.f32.mxu1 %vm590_vm0, %v13641_v34  ;;  %v10348_v19 = vunpack.i.l.bf16 %v10347_v51  ;;  %v4862_v34 = vsel %vm590_vm0, %v10777_v23, %v10289_v15  ;;  %v10349_v8 = vunpack.i.h.bf16 %v10347_v51  ;;  %v4863_v51 = vsel %vm590_vm0, %v13567_v49, %v10323_v63  ;;  %v7115_v49 = vld [vmem:[%s15721_s11 + $0x8] sm:$0xff] }
 0x494   : > { %v4895_v13 = vsel %vm4867_vm9, %v4862_v34, %v10319_v44  ;;  %v10354_v15 = vunpack.i.h.bf16 %v13867_v3  ;;  %v4896_v52 = vsel %vm4867_vm9, %v4863_v51, %v10353_v9 }
 0x495   : > { %v10362_v38 = vpop.permute.xlu0 %10361  ;;  %v4927_v2 = vsel %vm2661_vm2, %v4895_v13, %v10339_v36  ;;  %v4991_v5 = vsel %vm4964_vm10, %v4958_v56, %v10348_v19  ;;  %v9406_v36 = vpack.c.bf16 %v7115_v49, %v7114_v14 }
 0x496   : > { %v13876_v31 = vpop.permute.xlu1 %10356  ;;  %v10363_v21 = vunpack.i.l.bf16 %v10362_v38  ;;  %v10364_v7 = vunpack.i.h.bf16 %v10362_v38  ;;  %v4959_v17 = vsel %vm2858_vm6, %v4927_v2, %v10344_v58  ;;  %v4897_v34 = vsel %vm4867_vm9, %v4864_v50, %v10354_v15 }
 0x497   : > { %v4992_v41 = vsel %vm4964_vm10, %v4959_v17, %v10349_v8  ;;  %v10359_v19 = vunpack.i.h.bf16 %v13876_v31  ;;  %9407 = vmatpush1.bf16.msra.mxu0 %v9406_v36 }
 0x498   : > { %v5023_v40 = vsel %vm2727_vm5, %v4991_v5, %v10363_v21  ;;  %v5024_v44 = vsel %vm2727_vm5, %v4992_v41, %v10364_v7  ;;  %v10358_v21 = vunpack.i.l.bf16 %v13876_v31  ;;  %9408 = vmatprep.subr.bf16.mxu0 %v15877_v1 }
 0x499   : > { %v10377_v26 = vpop.permute.xlu0 %10376  ;;  %v4866_v8 = vsel %vm590_vm0, %v13611_v48, %v10359_v19  ;;  %v7119_v48 = vld [vmem:[%s15721_s11 + $0x28] sm:$0xff] }
 0x49a   : > { %v10367_v46 = vpop.permute.xlu1 %10366  ;;  %v10378_v62 = vunpack.i.l.bf16 %v10377_v26  ;;  %v10379_v13 = vunpack.i.h.bf16 %v10377_v26 }
 0x49b   : > { %v10368_v0 = vunpack.i.l.bf16 %v10367_v46  ;;  %v10369_v37 = vunpack.i.h.bf16 %v10367_v46  ;;  %v7116_v46 = vld [vmem:[%s15721_s11 + $0x10] sm:$0xff] }
 0x49c   : > { %v9409_v26 = vpack.c.bf16 %v7117_v22, %v7116_v46  ;;  %v9863_v46 = vunpack.i.l.bf16 %v13349_v35 }
 0x49d   : > { %v5056_v32 = vsel %vm5029_vm11, %v5023_v40, %v10368_v0  ;;  %v13888_v43 = vpop.permute.xlu0 %10386  ;;  %v5057_v39 = vsel %vm5029_vm11, %v5024_v44, %v10369_v37  ;;  %v4865_v0 = vsel %vm590_vm0, %v13609_v54, %v10358_v21 }
 0x49e   : > { %v10372_v61 = vpop.permute.xlu1 %10371  ;;  %5378 = vmatmul.mubr.f32.gmra.mrb[132].mxu1 %v5056_v32  ;;  %v10388_v5 = vunpack.i.l.bf16 %v13888_v43  ;;  %v10389_v7 = vunpack.i.h.bf16 %v13888_v43  ;;  %9410 = vmatpush1.bf16.msra.mxu0 %v9409_v26 }
 0x49f   : > { %v10373_v4 = vunpack.i.l.bf16 %v10372_v61  ;;  %8750 = vmatprep.mubr.msk.f32.mxu1 %vm590_vm0, %v13643_v24  ;;  %v10374_v60 = vunpack.i.h.bf16 %v10372_v61  ;;  %v7118_v61 = vld [vmem:[%s15721_s11 + $0x20] sm:$0xff]  ;;  %9411 = vmatprep.subr.bf16.mxu0 %v15877_v1 }
 0x4a0   : > { %v9412_v51 = vpack.c.bf16 %v7119_v48, %v7118_v61  ;;  %v4898_v41 = vsel %vm4867_vm9, %v4865_v0, %v10388_v5  ;;  %v7124_v5 = vld [vmem:[%s15721_s11 + $0x50] sm:$0xff]  ;;  %v13995_v61 = vld [vmem:[%s15720_s10] ss:$0 sm:$0xff] }
 0x4a1   : > { %v4928_v24 = vsel %vm2661_vm2, %v4896_v52, %v10373_v4  ;;  %v10392_v3 = vpop.permute.xlu0 %10391  ;;  %v4929_v31 = vsel %vm2661_vm2, %v4897_v34, %v10374_v60  ;;  %v3937_v60 = vld [vmem:[#allocation3 + $0x229] sm:$0xff] }
 0x4a2   : > { %v10382_v38 = vpop.permute.xlu1 %10381  ;;  %5383 = vmatmul.mubr.f32.gmra.mrb[134].mxu1 %v5057_v39  ;;  %v10393_v63 = vunpack.i.l.bf16 %v10392_v3  ;;  %v4960_v58 = vsel %vm2858_vm6, %v4928_v24, %v10378_v62  ;;  %v10394_v40 = vunpack.i.h.bf16 %v10392_v3  ;;  %v4961_v32 = vsel %vm2858_vm6, %v4929_v31, %v10379_v13  ;;  %9413 = vmatpush1.bf16.msra.mxu0 %v9412_v51  ;;  %v7120_v24 = vld [vmem:[%s15721_s11 + $0x30] sm:$0xff]  ;;  %v7121_v39 = vld [vmem:[%s15721_s11 + $0x38] sm:$0xff] }
 0x4a3   : > { %v10383_v23 = vunpack.i.l.bf16 %v10382_v38  ;;  %8751 = vmatprep.mubr.msk.f32.mxu1 %vm590_vm0, %v13693_v28  ;;  %v10384_v56 = vunpack.i.h.bf16 %v10382_v38  ;;  %v4899_v62 = vsel %vm4867_vm9, %v4866_v8, %v10389_v7  ;;  %9414 = vmatprep.subr.bf16.mxu0 %v15877_v1  ;;  %v9415_v36 = vpack.c.bf16 %v7121_v39, %v7120_v24  ;;  %v7128_v48 = vld [vmem:[%s15721_s11 + $0x70] sm:$0xff]  ;;  %v7133_v24 = vld [vmem:[%s15721_s11 + $0x98] sm:$0xff] }
 0x4a4   : > { %v9864_v7 = vunpack.i.h.bf16 %v13349_v35 }
 0x4a5   : > { %v4993_v28 = vsel %vm4964_vm10, %v4960_v58, %v10383_v23  ;;  %v10407_v42 = vpop.permute.xlu0 %10406  ;;  %v4994_v43 = vsel %vm4964_vm10, %v4961_v32, %v10384_v56  ;;  %v9858_v23 = vunpack.i.l.bf16 %v13379_v33  ;;  %v7123_v58 = vld [vmem:[%s15721_s11 + $0x48] sm:$0xff] }
 0x4a6   : > { %v10397_v2 = vpop.permute.xlu1 %10396  ;;  %v5025_v37 = vsel %vm2727_vm5, %v4993_v28, %v10393_v63  ;;  %v10409_v44 = vunpack.i.h.bf16 %v10407_v42  ;;  %v10408_v14 = vunpack.i.l.bf16 %v10407_v42  ;;  %v5026_v49 = vsel %vm2727_vm5, %v4994_v43, %v10394_v40  ;;  %9416 = vmatpush1.bf16.msra.mxu0 %v9415_v36  ;;  %v7122_v63 = vld [vmem:[%s15721_s11 + $0x40] sm:$0xff]  ;;  %v7127_v32 = vld [vmem:[%s15721_s11 + $0x68] sm:$0xff]  ;;  %v7136_v36 = vld [vmem:[%s15721_s11 + $0xb0] sm:$0xff] }
 0x4a7   : > { %v10398_v9 = vunpack.i.l.bf16 %v10397_v2  ;;  %v10399_v54 = vunpack.i.h.bf16 %v10397_v2  ;;  %9417 = vmatprep.subr.bf16.mxu0 %v15877_v1  ;;  %v9418_v56 = vpack.c.bf16 %v7123_v58, %v7122_v63  ;;  %v9859_v28 = vunpack.i.h.bf16 %v13379_v33  ;;  %v3938_v2 = vld [vmem:[#allocation3 + $0x231] sm:$0xff] }
 0x4a9   : > { %v5058_v17 = vsel %vm5029_vm11, %v5025_v37, %v10398_v9  ;;  %v5059_v3 = vsel %vm5029_vm11, %v5026_v49, %v10399_v54  ;;  %v7125_v9 = vld [vmem:[%s15721_s11 + $0x58] sm:$0xff]  ;;  %v7126_v37 = vld [vmem:[%s15721_s11 + $0x60] sm:$0xff] }
 0x4aa   : > { %v10402_v4 = vpop.permute.xlu1 %10401  ;;  %5388 = vmatmul.mubr.f32.gmra.mrb[136].mxu1 %v5058_v17  ;;  %9419 = vmatpush1.bf16.msra.mxu0 %v9418_v56  ;;  %v9421_v33 = vpack.c.bf16 %v7125_v9, %v7124_v5  ;;  %v9424_v35 = vpack.c.bf16 %v7127_v32, %v7126_v37  ;;  %v7129_v54 = vld [vmem:[%s15721_s11 + $0x78] sm:$0xff]  ;;  %v16113_v37 = vmov 0.0  }
 0x4ab   : > { %v10404_v15 = vunpack.i.h.bf16 %v10402_v4  ;;  %v10403_v52 = vunpack.i.l.bf16 %v10402_v4  ;;  %8752 = vmatprep.mubr.msk.f32.mxu1 %vm590_vm0, %v13695_v6  ;;  %9420 = vmatprep.subr.bf16.mxu0 %v15877_v1  ;;  %v9427_v42 = vpack.c.bf16 %v7129_v54, %v7128_v48 }
 0x4ad   : > { %v4930_v38 = vsel %vm2661_vm2, %v4898_v41, %v10403_v52  ;;  %v4931_v6 = vsel %vm2661_vm2, %v4899_v62, %v10404_v15  ;;  %v7130_v41 = vld [vmem:[%s15721_s11 + $0x80] sm:$0xff]  ;;  %v7131_v15 = vld [vmem:[%s15721_s11 + $0x88] sm:$0xff] }
 0x4ae   : > { %v10412_v50 = vpop.permute.xlu1 %10411  ;;  %5393 = vmatmul.mubr.f32.gmra.mrb[138].mxu1 %v5059_v3  ;;  %v4962_v34 = vsel %vm2858_vm6, %v4930_v38, %v10408_v14  ;;  %v4963_v13 = vsel %vm2858_vm6, %v4931_v6, %v10409_v44  ;;  %9422 = vmatpush1.bf16.msra.mxu0 %v9421_v33  ;;  %v9430_v62 = vpack.c.bf16 %v7131_v15, %v7130_v41  ;;  %v7134_v38 = vld [vmem:[%s15721_s11 + $0xa0] sm:$0xff]  ;;  %v7135_v6 = vld [vmem:[%s15721_s11 + $0xa8] sm:$0xff] }
 0x4af   : > { %v10414_v19 = vunpack.i.h.bf16 %v10412_v50  ;;  %v10413_v21 = vunpack.i.l.bf16 %v10412_v50  ;;  %8753 = vmatprep.mubr.msk.f32.mxu1 %vm590_vm0, %v3937_v60  ;;  %9423 = vmatprep.subr.bf16.mxu0 %v15877_v1  ;;  %v7132_v60 = vld [vmem:[%s15721_s11 + $0x90] sm:$0xff]  ;;  %v9436_v3 = vpack.c.bf16 %v7135_v6, %v7134_v38  ;;  %v7137_v50 = vld [vmem:[%s15721_s11 + $0xb8] sm:$0xff] }
 0x4b0   : > { %v9433_v39 = vpack.c.bf16 %v7133_v24, %v7132_v60 }
 0x4b1   : > { %v4995_v22 = vsel %vm4964_vm10, %v4962_v34, %v10413_v21  ;;  %v4996_v31 = vsel %vm4964_vm10, %v4963_v13, %v10414_v19  ;;  %v9439_v13 = vpack.c.bf16 %v7137_v50, %v7136_v36 }
 0x4b2   : > { %v5027_v26 = vsel %vm2727_vm5, %v4995_v22, %v9858_v23  ;;  %v5028_v0 = vsel %vm2727_vm5, %v4996_v31, %v9859_v28  ;;  %9425 = vmatpush1.bf16.msra.mxu0 %v9424_v35  ;;  %v7138_v28 = vld [vmem:[%s15721_s11 + $0xc0] sm:$0xff] }
 0x4b3   : > { %v5060_v8 = vsel %vm5029_vm11, %v5027_v26, %v9863_v46  ;;  %v5061_v40 = vsel %vm5029_vm11, %v5028_v0, %v9864_v7  ;;  %9426 = vmatprep.subr.bf16.mxu0 %v15877_v1  ;;  %v7139_v26 = vld [vmem:[%s15721_s11 + $0xc8] sm:$0xff] }
 0x4b4   : > { %5398 = vmatmul.mubr.f32.gmra.mrb[140].mxu1 %v5060_v8  ;;  %v9442_v0 = vpack.c.bf16 %v7139_v26, %v7138_v28 }
 0x4b5   : > { %8754 = vmatprep.mubr.msk.f32.mxu1 %vm590_vm0, %v3938_v2 }
 0x4b6   : > { %9428 = vmatpush1.bf16.msra.mxu0 %v9427_v42 }
 0x4b7   : > { %9429 = vmatprep.subr.bf16.mxu0 %v15877_v1 }
 0x4b8   : > { %5403 = vmatmul.mubr.f32.gmra.mrb[142].mxu1 %v5061_v40 }
 0x4ba   : > { %9431 = vmatpush1.bf16.msra.mxu0 %v9430_v62 }
 0x4bb   : > { %9432 = vmatprep.subr.bf16.mxu0 %v15877_v1 }
 0x4bc   : > { %v5249_v17 = vpop.f32.mrb[80].mxu1 }
 0x4bd   : > { %v5250_v43 = vadd.f32 %v13995_v61, %v5249_v17  ;;  %v5251_v51 = vpop.f32.mrb[81].mxu1 }
 0x4be   : > { %9434 = vmatpush1.bf16.msra.mxu0 %v9433_v39 }
 0x4bf   : > { %v5408_v4 = vmax.f32 %v5250_v43, 0.0  ;;  %9435 = vmatprep.subr.bf16.mxu0 %v15877_v1 }
 0x4c0   : > { %v5254_v52 = vpop.f32.mrb[82].mxu1 }
 0x4c1   : > { %5513 = vst.msk [vmem:[#allocation4 + $0x28] sm:$0xff] %vm1210_vm1, %v5408_v4  ;;  %v5255_v44 = vadd.f32 %v13995_v61, %v5254_v52  ;;  %v5256_v14 = vpop.f32.mrb[83].mxu1 }
 0x4c2   : > { %9437 = vmatpush1.bf16.msra.mxu0 %v9436_v3 }
 0x4c3   : > { %v5409_v49 = vmax.f32 %v5255_v44, 0.0  ;;  %9438 = vmatprep.subr.bf16.mxu0 %v15877_v1 }
 0x4c5   : > { %5514 = vst.msk [vmem:[#allocation4 + $0x30] sm:$0xff] %vm1210_vm1, %v5409_v49 }
 0x4c6   : > { %9440 = vmatpush1.bf16.msra.mxu0 %v9439_v13 }
 0x4c7   : > { %9441 = vmatprep.subr.bf16.mxu0 %v15877_v1  ;;  %v7140_v1 = vld [vmem:[%s15721_s11 + $0xd0] sm:$0xff] }
 0x4c8   : > { %v14040_v22 = vld [vmem:[#allocation4 + $0x27] sm:$0xff] }
 0x4c9   : > { %v5673_v7 = vld [vmem:[#allocation4 + $0x28] sm:$0xff] }
 0x4ca   : > { %9443 = vmatpush1.bf16.msra.mxu0 %v9442_v0 }
 0x4cb   : > { %7296 = vmatprep.subr.mxu0 %v16113_v37 }
 0x4cc   : > { %v5705_v21 = vld [vmem:[#allocation4 + $0x29] sm:$0xff]  ;;  %v5612_v23 = vld [vmem:[#allocation4 + $0x31] sm:$0xff] }
 0x4cd   : > { %v5259_v19 = vpop.f32.mrb[84].mxu1  ;;  %v14035_v34 = vld [vmem:[#allocation4 + $0x2f] sm:$0xff]  ;;  %6378 = vrot.lane.b32.xlu0 %v5705_v21, %s16110_s27  ;;  %v10430_v46 = vpack.i.bf16 %v5612_v23, %v5705_v21 }
 0x4ce   : > { %v5260_v63 = vadd.f32 %v13995_v61, %v5259_v19  ;;  %v5261_v58 = vpop.f32.mrb[85].mxu1  ;;  %v10415_v56 = vpack.i.bf16 %v14035_v34, %v14040_v22  ;;  %v5674_v8 = vld [vmem:[#allocation4 + $0x30] sm:$0xff]  ;;  %7297 = vmatpush1.msra.mxu0 %v7140_v1 }
 0x4cf   : > { %10431 = vrot.lane.b32.xlu1 %v10430_v46, %s16111_s1  ;;  %v10420_v40 = vpack.i.bf16 %v5674_v8, %v5673_v7 }
 0x4d0   : > { %v5410_v31 = vmax.f32 %v5260_v63, 0.0 }
 0x4d1   : > { %v5264_v2 = vpop.f32.mrb[86].mxu1  ;;  %10416 = vrot.lane.b32.xlu0 %v10415_v56, %s16112_s3 }
 0x4d2   : > { %5515 = vst.msk [vmem:[#allocation4 + $0x48] sm:$0xff] %vm1210_vm1, %v5410_v31  ;;  %v5265_v5 = vadd.f32 %v13995_v61, %v5264_v2  ;;  %v5266_v9 = vpop.f32.mrb[87].mxu1 }
 0x4d4   : > { %v5411_v33 = vmax.f32 %v5265_v5, 0.0 }
 0x4d5   : > { %10421 = vrot.lane.b32.xlu0 %v10420_v40, %s16095_s18 }
 0x4d6   : > { %5516 = vst.msk [vmem:[#allocation4 + $0x50] sm:$0xff] %vm1210_vm1, %v5411_v33 }
 0x4d8   : > { %v5269_v32 = vpop.f32.mrb[88].mxu1 }
 0x4d9   : > { %v14061_v35 = vld [vmem:[#allocation4 + $0x47] sm:$0xff]  ;;  %v5270_v48 = vadd.f32 %v13995_v61, %v5269_v32  ;;  %6380 = vrot.lane.b32.xlu0 %v5612_v23, %s16110_s27  ;;  %v5271_v54 = vpop.f32.mrb[89].mxu1 }
 0x4da   : > { %6506 = vrot.lane.b32.xlu1 %v14061_v35, %s16114_s19  ;;  %v5770_v43 = vld [vmem:[#allocation4 + $0x48] sm:$0xff] }
 0x4db   : > { %v5412_v17 = vmax.f32 %v5270_v48, 0.0 }
 0x4dc   : > { %v5274_v42 = vpop.f32.mrb[90].mxu1 }
 0x4dd   : > { %5517 = vst.msk [vmem:[#allocation4 + $0x68] sm:$0xff] %vm1210_vm1, %v5412_v17  ;;  %v5275_v51 = vadd.f32 %v13995_v61, %v5274_v42  ;;  %10426 = vrot.lane.b32.xlu0 %v10420_v40, %s16009_s29  ;;  %v5276_v4 = vpop.f32.mrb[91].mxu1  ;;  %v5771_v15 = vld [vmem:[#allocation4 + $0x50] sm:$0xff] }
 0x4de   : > { %6634 = vrot.lane.b32.xlu1 %v5770_v43, %s16115_s28  ;;  %v5802_v52 = vld [vmem:[#allocation4 + $0x49] sm:$0xff]  ;;  %v5803_v49 = vld [vmem:[#allocation4 + $0x51] sm:$0xff]  ;;  %v10440_v38 = vpack.i.bf16 %v5771_v15, %v5770_v43 }
 0x4df   : > { %v5413_v41 = vmax.f32 %v5275_v51, 0.0  ;;  %v14074_v62 = vld [vmem:[#allocation4 + $0x4f] sm:$0xff]  ;;  %v10450_v6 = vpack.i.bf16 %v5803_v49, %v5802_v52 }
 0x4e0   : > { %v10435_v44 = vpack.i.bf16 %v14074_v62, %v14061_v35 }
 0x4e1   : > { %5518 = vst.msk [vmem:[#allocation4 + $0x70] sm:$0xff] %vm1210_vm1, %v5413_v41  ;;  %6636 = vrot.lane.b32.xlu0 %v5771_v15, %s16115_s28 }
 0x4e2   : > { %6762 = vrot.lane.b32.xlu1 %v5802_v52, %s16094_s0 }
 0x4e4   : > { %v14088_v21 = vld [vmem:[#allocation4 + $0x67] sm:$0xff] }
 0x4e5   : > { %6382 = vrot.lane.b32.xlu0 %v5802_v52, %s16110_s27  ;;  %v5772_v13 = vld [vmem:[#allocation4 + $0x68] sm:$0xff] }
 0x4e6   : > { %6508 = vrot.lane.b32.xlu1 %v14074_v62, %s16114_s19 }
 0x4e8   : > { %v5804_v56 = vld [vmem:[#allocation4 + $0x69] sm:$0xff]  ;;  %v5805_v9 = vld [vmem:[#allocation4 + $0x71] sm:$0xff] }
 0x4e9   : > { %v5279_v14 = vpop.f32.mrb[92].mxu1  ;;  %10436 = vrot.lane.b32.xlu0 %v10435_v44, %s16112_s3  ;;  %v5773_v28 = vld [vmem:[#allocation4 + $0x70] sm:$0xff]  ;;  %v10470_v7 = vpack.i.bf16 %v5805_v9, %v5804_v56 }
 0x4ea   : > { %v5280_v60 = vadd.f32 %v13995_v61, %v5279_v14  ;;  %v5281_v24 = vpop.f32.mrb[93].mxu1  ;;  %6764 = vrot.lane.b32.xlu1 %v5803_v49, %s16094_s0  ;;  %v14101_v0 = vld [vmem:[#allocation4 + $0x6f] sm:$0xff]  ;;  %v10460_v33 = vpack.i.bf16 %v5773_v28, %v5772_v13 }
 0x4eb   : > { %v10455_v5 = vpack.i.bf16 %v14101_v0, %v14088_v21 }
 0x4ec   : > { %v5414_v39 = vmax.f32 %v5280_v60, 0.0 }
 0x4ed   : > { %v5284_v3 = vpop.f32.mrb[94].mxu1  ;;  %10441 = vrot.lane.b32.xlu0 %v10440_v38, %s16095_s18 }
 0x4ee   : > { %5519 = vst.msk [vmem:[#allocation4 + $0x88] sm:$0xff] %vm1210_vm1, %v5414_v39  ;;  %v5285_v36 = vadd.f32 %v13995_v61, %v5284_v3  ;;  %v5286_v50 = vpop.f32.mrb[95].mxu1  ;;  %10451 = vrot.lane.b32.xlu1 %v10450_v6, %s16111_s1 }
 0x4f0   : > { %v5415_v19 = vmax.f32 %v5285_v36, 0.0 }
 0x4f1   : > { %6384 = vrot.lane.b32.xlu0 %v5803_v49, %s16110_s27 }
 0x4f2   : > { %5520 = vst.msk [vmem:[#allocation4 + $0x90] sm:$0xff] %vm1210_vm1, %v5415_v19  ;;  %6510 = vrot.lane.b32.xlu1 %v14088_v21, %s16114_s19 }
 0x4f4   : > { %v5289_v23 = vpop.f32.mrb[96].mxu1 }
 0x4f5   : > { %v5290_v63 = vadd.f32 %v13995_v61, %v5289_v23  ;;  %v5291_v58 = vpop.f32.mrb[97].mxu1  ;;  %10446 = vrot.lane.b32.xlu0 %v10440_v38, %s16009_s29  ;;  %v14114_v54 = vld [vmem:[#allocation4 + $0x87] sm:$0xff] }
 0x4f6   : > { %6638 = vrot.lane.b32.xlu1 %v5772_v13, %s16115_s28  ;;  %v5774_v51 = vld [vmem:[#allocation4 + $0x88] sm:$0xff] }
 0x4f7   : > { %v5416_v46 = vmax.f32 %v5290_v63, 0.0 }
 0x4f8   : > { %v5294_v31 = vpop.f32.mrb[98].mxu1 }
 0x4f9   : > { %5521 = vst.msk [vmem:[#allocation4 + $0xa8] sm:$0xff] %vm1210_vm1, %v5416_v46  ;;  %v5295_v26 = vadd.f32 %v13995_v61, %v5294_v31  ;;  %v5296_v2 = vpop.f32.mrb[99].mxu1  ;;  %6640 = vrot.lane.b32.xlu0 %v5773_v28, %s16115_s28  ;;  %v5806_v41 = vld [vmem:[#allocation4 + $0x89] sm:$0xff]  ;;  %v5807_v3 = vld [vmem:[#allocation4 + $0x91] sm:$0xff] }
 0x4fa   : > { %6766 = vrot.lane.b32.xlu1 %v5804_v56, %s16094_s0  ;;  %v5775_v15 = vld [vmem:[#allocation4 + $0x90] sm:$0xff]  ;;  %v10490_v36 = vpack.i.bf16 %v5807_v3, %v5806_v41 }
 0x4fb   : > { %v5417_v8 = vmax.f32 %v5295_v26, 0.0  ;;  %v14127_v60 = vld [vmem:[#allocation4 + $0x8f] sm:$0xff]  ;;  %v10480_v50 = vpack.i.bf16 %v5775_v15, %v5774_v51 }
 0x4fc   : > { %v10475_v6 = vpack.i.bf16 %v14127_v60, %v14114_v54 }
 0x4fd   : > { %5522 = vst.msk [vmem:[#allocation4 + $0xb0] sm:$0xff] %vm1210_vm1, %v5417_v8  ;;  %6386 = vrot.lane.b32.xlu0 %v5804_v56, %s16110_s27 }
 0x4fe   : > { %6512 = vrot.lane.b32.xlu1 %v14101_v0, %s16114_s19 }
 0x500   : > { %v5744_v23 = vld [vmem:[#allocation4 + $0xa7] sm:$0xff] }
 0x501   : > { %10456 = vrot.lane.b32.xlu0 %v10455_v5, %s16112_s3  ;;  %v5776_v31 = vld [vmem:[#allocation4 + $0xa8] sm:$0xff] }
 0x502   : > { %6768 = vrot.lane.b32.xlu1 %v5805_v9, %s16094_s0 }
 0x504   : > { %v5808_v2 = vld [vmem:[#allocation4 + $0xa9] sm:$0xff] }
 0x505   : > { %v5299_v40 = vpop.f32.mrb[100].mxu1  ;;  %10461 = vrot.lane.b32.xlu0 %v10460_v33, %s16095_s18  ;;  %v5777_v8 = vld [vmem:[#allocation4 + $0xb0] sm:$0xff] }
 0x506   : > { %v5300_v37 = vadd.f32 %v13995_v61, %v5299_v40  ;;  %v5301_v1 = vpop.f32.mrb[101].mxu1  ;;  %10471 = vrot.lane.b32.xlu1 %v10470_v7, %s16111_s1 }
 0x508   : > { %v5418_v32 = vmax.f32 %v5300_v37, 0.0 }
 0x509   : > { %v5304_v48 = vpop.f32.mrb[102].mxu1  ;;  %6388 = vrot.lane.b32.xlu0 %v5805_v9, %s16110_s27  ;;  %v14151_v9 = vld [vmem:[#allocation4 + $0xaf] sm:$0xff] }
 0x50a   : > { %5523 = vst.msk [vmem:[#allocation4 + $0xc8] sm:$0xff] %vm1210_vm1, %v5418_v32  ;;  %v5305_v17 = vadd.f32 %v13995_v61, %v5304_v48  ;;  %v5306_v42 = vpop.f32.mrb[103].mxu1  ;;  %6514 = vrot.lane.b32.xlu1 %v14114_v54, %s16114_s19  ;;  %v10495_v37 = vpack.i.bf16 %v14151_v9, %v5744_v23  ;;  %v5809_v32 = vld [vmem:[#allocation4 + $0xb1] sm:$0xff] }
 0x50c   : > { %v5419_v43 = vmax.f32 %v5305_v17, 0.0 }
 0x50d   : > { %10466 = vrot.lane.b32.xlu0 %v10460_v33, %s16009_s29 }
 0x50e   : > { %5524 = vst.msk [vmem:[#allocation4 + $0xd0] sm:$0xff] %vm1210_vm1, %v5419_v43  ;;  %6642 = vrot.lane.b32.xlu1 %v5774_v51, %s16115_s28  ;;  %v10510_v43 = vpack.i.bf16 %v5809_v32, %v5808_v2  ;;  %v10500_v51 = vpack.i.bf16 %v5777_v8, %v5776_v31 }
 0x510   : > { %v5309_v4 = vpop.f32.mrb[104].mxu1 }
 0x511   : > { %v5310_v52 = vadd.f32 %v13995_v61, %v5309_v4  ;;  %v5311_v44 = vpop.f32.mrb[105].mxu1  ;;  %6644 = vrot.lane.b32.xlu0 %v5775_v15, %s16115_s28  ;;  %v5746_v4 = vld [vmem:[#allocation4 + $0xc7] sm:$0xff] }
 0x512   : > { %6770 = vrot.lane.b32.xlu1 %v5806_v41, %s16094_s0  ;;  %v5778_v15 = vld [vmem:[#allocation4 + $0xc8] sm:$0xff] }
 0x513   : > { %v5420_v14 = vmax.f32 %v5310_v52, 0.0 }
 0x514   : > { %v5314_v49 = vpop.f32.mrb[106].mxu1 }
 0x515   : > { %5525 = vst.msk [vmem:[#allocation4 + $0xe8] sm:$0xff] %vm1210_vm1, %v5420_v14  ;;  %v5315_v24 = vadd.f32 %v13995_v61, %v5314_v49  ;;  %v5316_v39 = vpop.f32.mrb[107].mxu1  ;;  %6390 = vrot.lane.b32.xlu0 %v5806_v41, %s16110_s27 }
 0x516   : > { %6516 = vrot.lane.b32.xlu1 %v14127_v60, %s16114_s19  ;;  %v5810_v39 = vld [vmem:[#allocation4 + $0xc9] sm:$0xff] }
 0x517   : > { %v5421_v38 = vmax.f32 %v5315_v24, 0.0 }
 0x519   : > { %5526 = vst.msk [vmem:[#allocation4 + $0xf0] sm:$0xff] %vm1210_vm1, %v5421_v38  ;;  %10476 = vrot.lane.b32.xlu0 %v10475_v6, %s16112_s3  ;;  %v5779_v38 = vld [vmem:[#allocation4 + $0xd0] sm:$0xff] }
 0x51a   : > { %6772 = vrot.lane.b32.xlu1 %v5807_v3, %s16094_s0 }
 0x51d   : > { %10481 = vrot.lane.b32.xlu0 %v10480_v50, %s16095_s18 }
 0x51e   : > { %10491 = vrot.lane.b32.xlu1 %v10490_v36, %s16111_s1 }
 0x521   : > { %v5319_v19 = vpop.f32.mrb[108].mxu1  ;;  %6392 = vrot.lane.b32.xlu0 %v5807_v3, %s16110_s27 }
 0x522   : > { %v5320_v13 = vadd.f32 %v13995_v61, %v5319_v19  ;;  %v5321_v63 = vpop.f32.mrb[109].mxu1  ;;  %6518 = vrot.lane.b32.xlu1 %v5744_v23, %s16114_s19  ;;  %v14178_v19 = vld [vmem:[#allocation4 + $0xcf] sm:$0xff] }
 0x524   : > { %v5422_v58 = vmax.f32 %v5320_v13, 0.0 }
 0x525   : > { %v5324_v46 = vpop.f32.mrb[110].mxu1  ;;  %10486 = vrot.lane.b32.xlu0 %v10480_v50, %s16009_s29 }
 0x526   : > { %5527 = vst.msk [vmem:[#allocation4 + $0x108] sm:$0xff] %vm1210_vm1, %v5422_v58  ;;  %v5325_v56 = vadd.f32 %v13995_v61, %v5324_v46  ;;  %v5326_v28 = vpop.f32.mrb[111].mxu1  ;;  %6646 = vrot.lane.b32.xlu1 %v5776_v31, %s16115_s28  ;;  %v10515_v31 = vpack.i.bf16 %v14178_v19, %v5746_v4 }
 0x527   : > { %v5811_v28 = vld [vmem:[#allocation4 + $0xd1] sm:$0xff] }
 0x528   : > { %v5423_v26 = vmax.f32 %v5325_v56, 0.0 }
 0x529   : > { %6648 = vrot.lane.b32.xlu0 %v5777_v8, %s16115_s28 }
 0x52a   : > { %5528 = vst.msk [vmem:[#allocation4 + $0x110] sm:$0xff] %vm1210_vm1, %v5423_v26  ;;  %6774 = vrot.lane.b32.xlu1 %v5808_v2, %s16094_s0 }
 0x52c   : > { %v5329_v5 = vpop.f32.mrb[112].mxu1 }
 0x52d   : > { %v5330_v7 = vadd.f32 %v13995_v61, %v5329_v5  ;;  %v5331_v33 = vpop.f32.mrb[113].mxu1  ;;  %6394 = vrot.lane.b32.xlu0 %v5808_v2, %s16110_s27  ;;  %v9868_v2 = vunpack.i.l.bf16 %v13389_v11 }
 0x52e   : > { %6520 = vrot.lane.b32.xlu1 %v14151_v9, %s16114_s19 }
 0x52f   : > { %v5424_v40 = vmax.f32 %v5330_v7, 0.0  ;;  %v5545_v7 = vld [vmem:[#allocation4 + $0x7] sm:$0xff] }
 0x530   : > { %v5334_v1 = vpop.f32.mrb[114].mxu1 }
 0x531   : > { %5529 = vst.msk [vmem:[#allocation4 + $0x128] sm:$0xff] %vm1210_vm1, %v5424_v40  ;;  %v5335_v48 = vadd.f32 %v13995_v61, %v5334_v1  ;;  %v5336_v17 = vpop.f32.mrb[115].mxu1  ;;  %10496 = vrot.lane.b32.xlu0 %v10495_v37, %s16112_s3  ;;  %v10530_v37 = vpack.i.bf16 %v5811_v28, %v5810_v39  ;;  %v10520_v1 = vpack.i.bf16 %v5779_v38, %v5778_v15 }
 0x532   : > { %6776 = vrot.lane.b32.xlu1 %v5809_v32, %s16094_s0  ;;  %v6858_v17 = vsel %vm1210_vm1, %v5545_v7, %v9868_v2 }
 0x533   : > { %v5425_v42 = vmax.f32 %v5335_v48, 0.0  ;;  %v9873_v48 = vunpack.i.l.bf16 %v13357_v55 }
 0x535   : > { %5530 = vst.msk [vmem:[#allocation4 + $0x130] sm:$0xff] %vm1210_vm1, %v5425_v42  ;;  %10501 = vrot.lane.b32.xlu0 %v10500_v51, %s16095_s18 }
 0x536   : > { %10511 = vrot.lane.b32.xlu1 %v10510_v43, %s16111_s1 }
 0x539   : > { %6396 = vrot.lane.b32.xlu0 %v5809_v32, %s16110_s27 }
 0x53a   : > { %6522 = vrot.lane.b32.xlu1 %v5746_v4, %s16114_s19 }
 0x53d   : > { %v5339_v41 = vpop.f32.mrb[116].mxu1  ;;  %10506 = vrot.lane.b32.xlu0 %v10500_v51, %s16009_s29 }
 0x53e   : > { %v5340_v52 = vadd.f32 %v13995_v61, %v5339_v41  ;;  %v5341_v44 = vpop.f32.mrb[117].mxu1  ;;  %6650 = vrot.lane.b32.xlu1 %v5778_v15, %s16115_s28  ;;  %v14206_v41 = vld [vmem:[#allocation4 + $0xe7] sm:$0xff]  ;;  %v6890_v15 = vsel %vm2661_vm2, %v6858_v17, %v9873_v48 }
 0x53f   : > { %v14170_v49 = vpop.permute.xlu0 %6378 }
 0x540   : > { %v5426_v14 = vmax.f32 %v5340_v52, 0.0  ;;  %v9869_v52 = vunpack.i.h.bf16 %v13389_v11 }
 0x541   : > { %v5344_v24 = vpop.f32.mrb[118].mxu1  ;;  %6652 = vrot.lane.b32.xlu0 %v5779_v38, %s16115_s28  ;;  %v14185_v58 = vpop.permute.xlu1 %10431 }
 0x542   : > { %5531 = vst.msk [vmem:[#allocation4 + $0x148] sm:$0xff] %vm1210_vm1, %v5426_v14  ;;  %v5345_v6 = vadd.f32 %v13995_v61, %v5344_v24  ;;  %v5346_v3 = vpop.f32.mrb[119].mxu1  ;;  %6778 = vrot.lane.b32.xlu1 %v5810_v39, %s16094_s0  ;;  %v5546_v24 = vld [vmem:[#allocation4 + $0xf] sm:$0xff] }
 0x543   : > { %v14176_v50 = vpop.permute.xlu0 %10416 }
 0x544   : > { %v5427_v36 = vmax.f32 %v5345_v6, 0.0  ;;  %v10418_v42 = vunpack.i.l.bf16 %v14176_v50 }
 0x545   : > { %6398 = vrot.lane.b32.xlu0 %v5810_v39, %s16110_s27 }
 0x546   : > { %5532 = vst.msk [vmem:[#allocation4 + $0x150] sm:$0xff] %vm1210_vm1, %v5427_v36  ;;  %v5349_v23 = vpop.f32.mrb[120].mxu1  ;;  %6524 = vrot.lane.b32.xlu1 %v14178_v19, %s16114_s19  ;;  %v6922_v44 = vsel %vm2694_vm3, %v6890_v15, %v10418_v42 }
 0x547   : > { %v5350_v13 = vadd.f32 %v13995_v61, %v5349_v23  ;;  %v5351_v63 = vpop.f32.mrb[121].mxu1  ;;  %v14187_v46 = vpop.permute.xlu0 %10421 }
 0x548   : > { %v10423_v43 = vunpack.i.l.bf16 %v14187_v46  ;;  %v9874_v63 = vunpack.i.h.bf16 %v13357_v55  ;;  %v10424_v2 = vunpack.i.h.bf16 %v14187_v46 }
 0x549   : > { %v5428_v56 = vmax.f32 %v5350_v13, 0.0  ;;  %10516 = vrot.lane.b32.xlu0 %v10515_v31, %s16112_s3  ;;  %v5780_v13 = vld [vmem:[#allocation4 + $0xe8] sm:$0xff] }
 0x54a   : > { %v5354_v26 = vpop.f32.mrb[122].mxu1  ;;  %6780 = vrot.lane.b32.xlu1 %v5811_v28, %s16094_s0  ;;  %v6954_v3 = vsel %vm2727_vm5, %v6922_v44, %v10423_v43 }
 0x54b   : > { %5533 = vst.msk [vmem:[#allocation4 + $0x168] sm:$0xff] %vm1210_vm1, %v5428_v56  ;;  %v5355_v8 = vadd.f32 %v13995_v61, %v5354_v26  ;;  %v5356_v5 = vpop.f32.mrb[123].mxu1  ;;  %v14195_v33 = vpop.permute.xlu0 %6380  ;;  %v6859_v56 = vsel %vm1210_vm1, %v5546_v24, %v9869_v52  ;;  %v6986_v26 = vsel %vm2760_vm8, %v6954_v3, %v14170_v49  ;;  %v14244_v52 = vld [vmem:[#allocation4 + $0xef] sm:$0xff] }
 0x54c   : > { %v6507_v40 = vpop.permute.xlu1 %6506 }
 0x54d   : > { %v5429_v32 = vmax.f32 %v5355_v8, 0.0  ;;  %10521 = vrot.lane.b32.xlu0 %v10520_v1, %s16095_s18  ;;  %v7018_v14 = vsel %vm590_vm0, %v14170_v49, %v6507_v40  ;;  %v6891_v49 = vsel %vm2661_vm2, %v6859_v56, %v9874_v63 }
 0x54e   : > { %10531 = vrot.lane.b32.xlu1 %v10530_v37, %s16111_s1  ;;  %v5812_v37 = vld [vmem:[#allocation4 + $0xe9] sm:$0xff] }
 0x54f   : > { %5534 = vst.msk [vmem:[#allocation4 + $0x170] sm:$0xff] %vm1210_vm1, %v5429_v32  ;;  %v14204_v51 = vpop.permute.xlu0 %10426 }
 0x550   : > { %v6635_v4 = vpop.permute.xlu1 %6634  ;;  %v10428_v3 = vunpack.i.l.bf16 %v14204_v51 }
 0x551   : > { %6400 = vrot.lane.b32.xlu0 %v5811_v28, %s16110_s27  ;;  %v7050_v39 = vsel %vm2825_vm4, %v7018_v14, %v6635_v4  ;;  %v10419_v28 = vunpack.i.h.bf16 %v14176_v50 }
 0x552   : > { %6526 = vrot.lane.b32.xlu1 %v14206_v41, %s16114_s19 }
 0x553   : > { %v6637_v38 = vpop.permute.xlu0 %6636  ;;  %v6923_v46 = vsel %vm2694_vm3, %v6891_v49, %v10419_v28 }
 0x554   : > { %v6763_v6 = vpop.permute.xlu1 %6762  ;;  %v6955_v4 = vsel %vm2727_vm5, %v6923_v46, %v10424_v2 }
 0x555   : > { %v7082_v36 = vsel %vm2858_vm6, %v7050_v39, %v6763_v6  ;;  %v5359_v23 = vpop.f32.mrb[124].mxu1  ;;  %10526 = vrot.lane.b32.xlu0 %v10520_v1, %s16009_s29  ;;  %v5781_v1 = vld [vmem:[#allocation4 + $0xf0] sm:$0xff]  ;;  %v6987_v44 = vsel %vm2760_vm8, %v6955_v4, %v14195_v33  ;;  %v10535_v39 = vpack.i.bf16 %v14244_v52, %v14206_v41 }
 0x556   : > { %v5360_v11 = vadd.f32 %v13995_v61, %v5359_v23  ;;  %v5361_v31 = vpop.f32.mrb[125].mxu1  ;;  %6654 = vrot.lane.b32.xlu1 %v5780_v13, %s16115_s28  ;;  %8756 = vmatprep.mubr.msk.f32.mxu0 %vm2925_vm7, %v7082_v36 }
 0x557   : > { %7309 = vmatmul.mubr.f32.vlgmr.msra.gmra.mrb[80].mxu0 %v6986_v26  ;;  %v14229_v5 = vpop.permute.xlu0 %6382  ;;  %v10540_v31 = vpack.i.bf16 %v5781_v1, %v5780_v13  ;;  %v6860_v26 = vsel %vm1210_vm1, %v14040_v22, %v10428_v3 }
 0x558   : > { %v5430_v8 = vmax.f32 %v5360_v11, 0.0  ;;  %v6509_v55 = vpop.permute.xlu1 %6508 }
 0x559   : > { %v7019_v7 = vsel %vm590_vm0, %v14195_v33, %v6509_v55  ;;  %v5364_v40 = vpop.f32.mrb[126].mxu1  ;;  %6656 = vrot.lane.b32.xlu0 %v5781_v1, %s16115_s28 }
 0x55a   : > { %5535 = vst.msk [vmem:[#allocation4 + $0x188] sm:$0xff] %vm1210_vm1, %v5430_v8  ;;  %v5365_v50 = vadd.f32 %v13995_v61, %v5364_v40  ;;  %v5366_v32 = vpop.f32.mrb[127].mxu1  ;;  %6782 = vrot.lane.b32.xlu1 %v5812_v37, %s16094_s0  ;;  %v7051_v17 = vsel %vm2825_vm4, %v7019_v7, %v6637_v38  ;;  %v5813_v38 = vld [vmem:[#allocation4 + $0xf1] sm:$0xff]  ;;  %v10433_v7 = vunpack.i.l.bf16 %v14185_v58 }
 0x55b   : > { %v14240_v43 = vpop.permute.xlu0 %10436  ;;  %v10550_v11 = vpack.i.bf16 %v5813_v38, %v5812_v37  ;;  %v10429_v32 = vunpack.i.h.bf16 %v14204_v51 }
 0x55c   : > { %v5431_v48 = vmax.f32 %v5365_v50, 0.0  ;;  %v6765_v42 = vpop.permute.xlu1 %6764  ;;  %v10438_v2 = vunpack.i.l.bf16 %v14240_v43  ;;  %v14276_v50 = vld [vmem:[#allocation4 + $0x107] sm:$0xff]  ;;  %v6892_v22 = vsel %vm2661_vm2, %v6860_v26, %v10433_v7 }
 0x55d   : > { %v7083_v15 = vsel %vm2858_vm6, %v7051_v17, %v6765_v42  ;;  %6402 = vrot.lane.b32.xlu0 %v5812_v37, %s16110_s27  ;;  %v6861_v51 = vsel %vm1210_vm1, %v14035_v34, %v10429_v32  ;;  %v5814_v34 = vld [vmem:[#allocation4 + $0x109] sm:$0xff] }
 0x55e   : > { %5536 = vst.msk [vmem:[#allocation4 + $0x190] sm:$0xff] %vm1210_vm1, %v5431_v48  ;;  %6528 = vrot.lane.b32.xlu1 %v14244_v52, %s16114_s19  ;;  %8757 = vmatprep.mubr.msk.f32.mxu0 %vm2925_vm7, %v7083_v15  ;;  %v6924_v46 = vsel %vm2694_vm3, %v6892_v22, %v10438_v2 }
 0x55f   : > { %7314 = vmatmul.mubr.f32.gmra.mrb[82].mxu0 %v6987_v44  ;;  %v14253_v14 = vpop.permute.xlu0 %10441  ;;  %v5782_v44 = vld [vmem:[#allocation4 + $0x108] sm:$0xff] }
 0x560   : > { %v14255_v24 = vpop.permute.xlu1 %10451  ;;  %v10443_v13 = vunpack.i.l.bf16 %v14253_v14  ;;  %v10444_v3 = vunpack.i.h.bf16 %v14253_v14 }
 0x561   : > { %v5369_v6 = vpop.f32.mrb[128].mxu1  ;;  %10536 = vrot.lane.b32.xlu0 %v10535_v39, %s16112_s3  ;;  %v10439_v39 = vunpack.i.h.bf16 %v14240_v43 }
 0x562   : > { %6784 = vrot.lane.b32.xlu1 %v5813_v38, %s16094_s0  ;;  %v5370_v36 = vadd.f32 %v13995_v61, %v5369_v6  ;;  %v5371_v23 = vpop.f32.mrb[129].mxu1  ;;  %v6956_v4 = vsel %vm2727_vm5, %v6924_v46, %v10443_v13  ;;  %v10434_v6 = vunpack.i.h.bf16 %v14185_v58  ;;  %v14314_v13 = vld [vmem:[#allocation4 + $0x10f] sm:$0xff] }
 0x563   : > { %v14263_v33 = vpop.permute.xlu0 %6384 }
 0x564   : > { %v6511_v63 = vpop.permute.xlu1 %6510  ;;  %v5432_v56 = vmax.f32 %v5370_v36, 0.0  ;;  %v6893_v58 = vsel %vm2661_vm2, %v6861_v51, %v10434_v6 }
 0x565   : > { %v5374_v28 = vpop.f32.mrb[130].mxu1  ;;  %10541 = vrot.lane.b32.xlu0 %v10540_v31, %s16095_s18  ;;  %v7020_v49 = vsel %vm590_vm0, %v14229_v5, %v6511_v63 }
 0x566   : > { %10551 = vrot.lane.b32.xlu1 %v10550_v11, %s16111_s1  ;;  %5537 = vst.msk [vmem:[#allocation4 + $0x1a8] sm:$0xff] %vm1210_vm1, %v5432_v56  ;;  %v5375_v8 = vadd.f32 %v13995_v61, %v5374_v28  ;;  %v5376_v55 = vpop.f32.mrb[131].mxu1 }
 0x567   : > { %v14274_v37 = vpop.permute.xlu0 %10446 }
 0x568   : > { %v6639_v40 = vpop.permute.xlu1 %6638  ;;  %v5433_v1 = vmax.f32 %v5375_v8, 0.0 }
 0x569   : > { %6404 = vrot.lane.b32.xlu0 %v5813_v38, %s16110_s27  ;;  %v7052_v48 = vsel %vm2825_vm4, %v7020_v49, %v6639_v40  ;;  %v6988_v38 = vsel %vm2760_vm8, %v6956_v4, %v14229_v5  ;;  %v6925_v5 = vsel %vm2694_vm3, %v6893_v58, %v10439_v39 }
 0x56a   : > { %6530 = vrot.lane.b32.xlu1 %v14276_v50, %s16114_s19  ;;  %5538 = vst.msk [vmem:[#allocation4 + $0x1b0] sm:$0xff] %vm1210_vm1, %v5433_v1  ;;  %v6957_v8 = vsel %vm2727_vm5, %v6925_v5, %v10444_v3 }
 0x56b   : > { %v6641_v42 = vpop.permute.xlu0 %6640  ;;  %v6989_v22 = vsel %vm2760_vm8, %v6957_v8, %v14263_v33 }
 0x56c   : > { %v6767_v17 = vpop.permute.xlu1 %6766 }
 0x56d   : > { %v7084_v15 = vsel %vm2858_vm6, %v7052_v48, %v6767_v17  ;;  %10546 = vrot.lane.b32.xlu0 %v10540_v31, %s16009_s29  ;;  %v5783_v31 = vld [vmem:[#allocation4 + $0x110] sm:$0xff]  ;;  %v10555_v48 = vpack.i.bf16 %v14314_v13, %v14276_v50 }
 0x56e   : > { %6658 = vrot.lane.b32.xlu1 %v5782_v44, %s16115_s28  ;;  %8758 = vmatprep.mubr.msk.f32.mxu0 %vm2925_vm7, %v7084_v15  ;;  %v5815_v17 = vld [vmem:[#allocation4 + $0x111] sm:$0xff]  ;;  %v10560_v51 = vpack.i.bf16 %v5783_v31, %v5782_v44 }
 0x56f   : > { %7319 = vmatmul.mubr.f32.gmra.mrb[84].mxu0 %v6988_v38  ;;  %v14300_v23 = vpop.permute.xlu0 %6386  ;;  %v10570_v15 = vpack.i.bf16 %v5815_v17, %v5814_v34 }
 0x570   : > { %v6513_v36 = vpop.permute.xlu1 %6512 }
 0x571   : > { %v7021_v63 = vsel %vm590_vm0, %v14263_v33, %v6513_v36  ;;  %v5379_v11 = vpop.f32.mrb[132].mxu1  ;;  %6660 = vrot.lane.b32.xlu0 %v5783_v31, %s16115_s28 }
 0x572   : > { %v5380_v43 = vadd.f32 %v13995_v61, %v5379_v11  ;;  %v5381_v56 = vpop.f32.mrb[133].mxu1  ;;  %6786 = vrot.lane.b32.xlu1 %v5814_v34, %s16094_s0  ;;  %v7053_v26 = vsel %vm2825_vm4, %v7021_v63, %v6641_v42  ;;  %v10448_v42 = vunpack.i.l.bf16 %v14274_v37  ;;  %v10453_v63 = vunpack.i.l.bf16 %v14255_v24 }
 0x573   : > { %v14310_v2 = vpop.permute.xlu0 %10456  ;;  %v14346_v56 = vld [vmem:[#allocation4 + $0x127] sm:$0xff] }
 0x574   : > { %v5434_v14 = vmax.f32 %v5380_v43, 0.0  ;;  %v6769_v28 = vpop.permute.xlu1 %6768  ;;  %v6862_v3 = vsel %vm1210_vm1, %v14061_v35, %v10448_v42  ;;  %v10458_v36 = vunpack.i.l.bf16 %v14310_v2 }
 0x575   : > { %v7085_v55 = vsel %vm2858_vm6, %v7053_v26, %v6769_v28  ;;  %v5384_v7 = vpop.f32.mrb[134].mxu1  ;;  %6406 = vrot.lane.b32.xlu0 %v5814_v34, %s16110_s27  ;;  %v6894_v35 = vsel %vm2661_vm2, %v6862_v3, %v10453_v63  ;;  %v5785_v3 = vld [vmem:[#allocation4 + $0x130] sm:$0xff] }
 0x576   : > { %5539 = vst.msk [vmem:[#allocation4 + $0x1c8] sm:$0xff] %vm1210_vm1, %v5434_v14  ;;  %v5385_v40 = vadd.f32 %v13995_v61, %v5384_v7  ;;  %v5386_v1 = vpop.f32.mrb[135].mxu1  ;;  %6532 = vrot.lane.b32.xlu1 %v14314_v13, %s16114_s19  ;;  %8759 = vmatprep.mubr.msk.f32.mxu0 %vm2925_vm7, %v7085_v55  ;;  %v10449_v14 = vunpack.i.h.bf16 %v14274_v37  ;;  %v6926_v26 = vsel %vm2694_vm3, %v6894_v35, %v10458_v36  ;;  %v14386_v35 = vld [vmem:[#allocation4 + $0x12f] sm:$0xff] }
 0x577   : > { %7324 = vmatmul.mubr.f32.gmra.mrb[86].mxu0 %v6989_v22  ;;  %v14326_v46 = vpop.permute.xlu0 %10461 }
 0x578   : > { %v5435_v32 = vmax.f32 %v5385_v40, 0.0  ;;  %v14324_v49 = vpop.permute.xlu1 %10471  ;;  %v10463_v11 = vunpack.i.l.bf16 %v14326_v46  ;;  %v6863_v37 = vsel %vm1210_vm1, %v14074_v62, %v10449_v14 }
 0x579   : > { %10556 = vrot.lane.b32.xlu0 %v10555_v48, %s16112_s3  ;;  %v10459_v48 = vunpack.i.h.bf16 %v14310_v2  ;;  %v5816_v2 = vld [vmem:[#allocation4 + $0x129] sm:$0xff] }
 0x57a   : > { %5540 = vst.msk [vmem:[#allocation4 + $0x1d0] sm:$0xff] %vm1210_vm1, %v5435_v32  ;;  %6788 = vrot.lane.b32.xlu1 %v5815_v17, %s16094_s0  ;;  %v6958_v1 = vsel %vm2727_vm5, %v6926_v26, %v10463_v11  ;;  %v5784_v32 = vld [vmem:[#allocation4 + $0x128] sm:$0xff]  ;;  %v10575_v26 = vpack.i.bf16 %v14386_v35, %v14346_v56 }
 0x57b   : > { %v14334_v33 = vpop.permute.xlu0 %6388  ;;  %v6990_v42 = vsel %vm2760_vm8, %v6958_v1, %v14300_v23 }
 0x57c   : > { %v6515_v4 = vpop.permute.xlu1 %6514 }
 0x57d   : > { %v5389_v39 = vpop.f32.mrb[136].mxu1  ;;  %10561 = vrot.lane.b32.xlu0 %v10560_v51, %s16095_s18  ;;  %v7022_v28 = vsel %vm590_vm0, %v14300_v23, %v6515_v4  ;;  %v10454_v4 = vunpack.i.h.bf16 %v14255_v24 }
 0x57e   : > { %v5390_v38 = vadd.f32 %v13995_v61, %v5389_v39  ;;  %v5391_v6 = vpop.f32.mrb[137].mxu1  ;;  %10571 = vrot.lane.b32.xlu1 %v10570_v15, %s16111_s1  ;;  %v10464_v15 = vunpack.i.h.bf16 %v14326_v46 }
 0x57f   : > { %v14344_v44 = vpop.permute.xlu0 %10466  ;;  %v6895_v24 = vsel %vm2661_vm2, %v6863_v37, %v10454_v4 }
 0x580   : > { %v5436_v43 = vmax.f32 %v5390_v38, 0.0  ;;  %v6643_v34 = vpop.permute.xlu1 %6642  ;;  %v6927_v46 = vsel %vm2694_vm3, %v6895_v24, %v10459_v48 }
 0x581   : > { %v5394_v31 = vpop.f32.mrb[138].mxu1  ;;  %6408 = vrot.lane.b32.xlu0 %v5815_v17, %s16110_s27  ;;  %v7054_v8 = vsel %vm2825_vm4, %v7022_v28, %v6643_v34 }
 0x582   : > { %5541 = vst.msk [vmem:[#allocation4 + $0x1e8] sm:$0xff] %vm1210_vm1, %v5436_v43  ;;  %v5395_v58 = vadd.f32 %v13995_v61, %v5394_v31  ;;  %v5396_v5 = vpop.f32.mrb[139].mxu1  ;;  %6534 = vrot.lane.b32.xlu1 %v14346_v56, %s16114_s19  ;;  %v6959_v31 = vsel %vm2727_vm5, %v6927_v46, %v10464_v15 }
 0x583   : > { %v6645_v40 = vpop.permute.xlu0 %6644 }
 0x584   : > { %v5437_v55 = vmax.f32 %v5395_v58, 0.0  ;;  %v6771_v7 = vpop.permute.xlu1 %6770 }
 0x585   : > { %v7086_v22 = vsel %vm2858_vm6, %v7054_v8, %v6771_v7  ;;  %10566 = vrot.lane.b32.xlu0 %v10560_v51, %s16009_s29  ;;  %v10468_v7 = vunpack.i.l.bf16 %v14344_v44 }
 0x586   : > { %5542 = vst.msk [vmem:[#allocation4 + $0x1f0] sm:$0xff] %vm1210_vm1, %v5437_v55  ;;  %6662 = vrot.lane.b32.xlu1 %v5784_v32, %s16115_s28  ;;  %8760 = vmatprep.mubr.msk.f32.mxu0 %vm2925_vm7, %v7086_v22  ;;  %v5817_v55 = vld [vmem:[#allocation4 + $0x131] sm:$0xff]  ;;  %v10580_v22 = vpack.i.bf16 %v5785_v3, %v5784_v32 }
 0x587   : > { %v5399_v17 = vpop.f32.mrb[140].mxu1  ;;  %7329 = vmatmul.mubr.f32.gmra.mrb[88].mxu0 %v6990_v42  ;;  %v14375_v6 = vpop.permute.xlu0 %6390  ;;  %v10590_v1 = vpack.i.bf16 %v5817_v55, %v5816_v2  ;;  %v6864_v37 = vsel %vm1210_vm1, %v14088_v21, %v10468_v7  ;;  %v14438_v7 = vld [vmem:[#allocation4 + $0x14f] sm:$0xff] }
 0x588   : > { %v5400_v39 = vadd.f32 %v13995_v61, %v5399_v17  ;;  %v5401_v38 = vpop.f32.mrb[141].mxu1  ;;  %v6517_v51 = vpop.permute.xlu1 %6516  ;;  %v10473_v17 = vunpack.i.l.bf16 %v14324_v49 }
 0x589   : > { %v7023_v62 = vsel %vm590_vm0, %v14334_v33, %v6517_v51  ;;  %6664 = vrot.lane.b32.xlu0 %v5785_v3, %s16115_s28  ;;  %v10469_v38 = vunpack.i.h.bf16 %v14344_v44 }
 0x58a   : > { %v5438_v36 = vmax.f32 %v5400_v39, 0.0  ;;  %6790 = vrot.lane.b32.xlu1 %v5816_v2, %s16094_s0  ;;  %v7055_v34 = vsel %vm2825_vm4, %v7023_v62, %v6645_v40  ;;  %v14409_v39 = vld [vmem:[#allocation4 + $0x147] sm:$0xff]  ;;  %v6896_v32 = vsel %vm2661_vm2, %v6864_v37, %v10473_v17 }
 0x58b   : > { %v5404_v23 = vpop.f32.mrb[142].mxu1  ;;  %v10477_v5 = vpop.permute.xlu0 %10476  ;;  %v6865_v44 = vsel %vm1210_vm1, %v14101_v0, %v10469_v38 }
 0x58c   : > { %5543 = vst.msk [vmem:[#allocation4 + $0x208] sm:$0xff] %vm1210_vm1, %v5438_v36  ;;  %v5405_v63 = vadd.f32 %v13995_v61, %v5404_v23  ;;  %v5406_v11 = vpop.f32.mrb[143].mxu1  ;;  %v6773_v43 = vpop.permute.xlu1 %6772  ;;  %v6991_v61 = vsel %vm2760_vm8, %v6959_v31, %v14334_v33  ;;  %v10478_v48 = vunpack.i.l.bf16 %v10477_v5  ;;  %v5786_v23 = vld [vmem:[#allocation4 + $0x148] sm:$0xff]  ;;  %v10479_v46 = vunpack.i.h.bf16 %v10477_v5 }
 0x58d   : > { %v7087_v58 = vsel %vm2858_vm6, %v7055_v34, %v6773_v43  ;;  %6410 = vrot.lane.b32.xlu0 %v5816_v2, %s16110_s27  ;;  %v10474_v11 = vunpack.i.h.bf16 %v14324_v49 }
 0x58e   : > { %v5439_v14 = vmax.f32 %v5405_v63, 0.0  ;;  %6536 = vrot.lane.b32.xlu1 %v14386_v35, %s16114_s19  ;;  %8761 = vmatprep.mubr.msk.f32.mxu0 %vm2925_vm7, %v7087_v58  ;;  %v6928_v51 = vsel %vm2694_vm3, %v6896_v32, %v10478_v48  ;;  %v5819_v48 = vld [vmem:[#allocation4 + $0x151] sm:$0xff] }
 0x58f   : > { %7334 = vmatmul.mubr.f32.gmra.mrb[90].mxu0 %v6991_v61  ;;  %v10482_v8 = vpop.permute.xlu0 %10481  ;;  %v5787_v61 = vld [vmem:[#allocation4 + $0x150] sm:$0xff]  ;;  %v6897_v0 = vsel %vm2661_vm2, %v6865_v44, %v10474_v11 }
 0x590   : > { %5544 = vst.msk [vmem:[#allocation4 + $0x210] sm:$0xff] %vm1210_vm1, %v5439_v14  ;;  %v14395_v28 = vpop.permute.xlu1 %10491  ;;  %v10483_v42 = vunpack.i.l.bf16 %v10482_v8  ;;  %v10484_v43 = vunpack.i.h.bf16 %v10482_v8  ;;  %v5818_v14 = vld [vmem:[#allocation4 + $0x149] sm:$0xff]  ;;  %v6929_v5 = vsel %vm2694_vm3, %v6897_v0, %v10479_v46  ;;  %v10600_v32 = vpack.i.bf16 %v5787_v61, %v5786_v23 }
 0x591   : > { %10576 = vrot.lane.b32.xlu0 %v10575_v26, %s16112_s3  ;;  %v10494_v0 = vunpack.i.h.bf16 %v14395_v28 }
 0x592   : > { %6792 = vrot.lane.b32.xlu1 %v5817_v55, %s16094_s0  ;;  %v6960_v3 = vsel %vm2727_vm5, %v6928_v51, %v10483_v42  ;;  %v6961_v49 = vsel %vm2727_vm5, %v6929_v5, %v10484_v43  ;;  %v10493_v51 = vunpack.i.l.bf16 %v14395_v28 }
 0x593   : > { %v6393_v33 = vpop.permute.xlu0 %6392  ;;  %v6992_v63 = vsel %vm2760_vm8, %v6960_v3, %v14375_v6 }
 0x594   : > { %v6519_v40 = vpop.permute.xlu1 %6518 }
 0x595   : > { %10581 = vrot.lane.b32.xlu0 %v10580_v22, %s16095_s18  ;;  %v7024_v21 = vsel %vm590_vm0, %v14375_v6, %v6519_v40  ;;  %v6993_v40 = vsel %vm2760_vm8, %v6961_v49, %v6393_v33 }
 0x596   : > { %10591 = vrot.lane.b32.xlu1 %v10590_v1, %s16111_s1 }
 0x597   : > { %v14407_v15 = vpop.permute.xlu0 %10486 }
 0x598   : > { %v6647_v4 = vpop.permute.xlu1 %6646  ;;  %v10488_v17 = vunpack.i.l.bf16 %v14407_v15 }
 0x599   : > { %6412 = vrot.lane.b32.xlu0 %v5817_v55, %s16110_s27  ;;  %v7056_v62 = vsel %vm2825_vm4, %v7024_v21, %v6647_v4  ;;  %v10610_v4 = vpack.i.bf16 %v5819_v48, %v5818_v14 }
 0x59a   : > { %6538 = vrot.lane.b32.xlu1 %v14409_v39, %s16114_s19 }
 0x59b   : > { %v6649_v24 = vpop.permute.xlu0 %6648 }
 0x59c   : > { %v6775_v2 = vpop.permute.xlu1 %6774 }
 0x59d   : > { %v7088_v36 = vsel %vm2858_vm6, %v7056_v62, %v6775_v2  ;;  %10586 = vrot.lane.b32.xlu0 %v10580_v22, %s16009_s29  ;;  %v10595_v22 = vpack.i.bf16 %v14438_v7, %v14409_v39 }
 0x59e   : > { %6666 = vrot.lane.b32.xlu1 %v5786_v23, %s16115_s28  ;;  %8762 = vmatprep.mubr.msk.f32.mxu0 %vm2925_vm7, %v7088_v36  ;;  %v14459_v36 = vld [vmem:[#allocation4 + $0x167] sm:$0xff]  ;;  %v10489_v23 = vunpack.i.h.bf16 %v14407_v15 }
 0x59f   : > { %7339 = vmatmul.mubr.f32.gmra.mrb[92].mxu0 %v6992_v63  ;;  %v6395_v58 = vpop.permute.xlu0 %6394 }
 0x5a0   : > { %v6521_v34 = vpop.permute.xlu1 %6520  ;;  %v6867_v15 = vsel %vm1210_vm1, %v14127_v60, %v10489_v23 }
 0x5a1   : > { %v7025_v31 = vsel %vm590_vm0, %v6393_v33, %v6521_v34  ;;  %6668 = vrot.lane.b32.xlu0 %v5787_v61, %s16115_s28  ;;  %v6866_v33 = vsel %vm1210_vm1, %v14114_v54, %v10488_v17  ;;  %v6899_v60 = vsel %vm2661_vm2, %v6867_v15, %v10494_v0  ;;  %v14486_v17 = vld [vmem:[#allocation4 + $0x16f] sm:$0xff] }
 0x5a2   : > { %6794 = vrot.lane.b32.xlu1 %v5818_v14, %s16094_s0  ;;  %v7057_v6 = vsel %vm2825_vm4, %v7025_v31, %v6649_v24  ;;  %v6898_v24 = vsel %vm2661_vm2, %v6866_v33, %v10493_v51  ;;  %v5788_v31 = vld [vmem:[#allocation4 + $0x168] sm:$0xff] }
 0x5a3   : > { %v10497_v55 = vpop.permute.xlu0 %10496 }
 0x5a4   : > { %v6777_v26 = vpop.permute.xlu1 %6776  ;;  %v10498_v21 = vunpack.i.l.bf16 %v10497_v55 }
 0x5a5   : > { %v7089_v8 = vsel %vm2858_vm6, %v7057_v6, %v6777_v26  ;;  %6414 = vrot.lane.b32.xlu0 %v5818_v14, %s16110_s27  ;;  %v10499_v14 = vunpack.i.h.bf16 %v10497_v55 }
 0x5a6   : > { %6540 = vrot.lane.b32.xlu1 %v14438_v7, %s16114_s19  ;;  %8763 = vmatprep.mubr.msk.f32.mxu0 %vm2925_vm7, %v7089_v8  ;;  %v6930_v44 = vsel %vm2694_vm3, %v6898_v24, %v10498_v21  ;;  %v5820_v8 = vld [vmem:[#allocation4 + $0x169] sm:$0xff]  ;;  %v5821_v21 = vld [vmem:[#allocation4 + $0x171] sm:$0xff] }
 0x5a7   : > { %7344 = vmatmul.mubr.f32.gmra.mrb[94].mxu0 %v6993_v40  ;;  %v10502_v37 = vpop.permute.xlu0 %10501  ;;  %v5789_v40 = vld [vmem:[#allocation4 + $0x170] sm:$0xff]  ;;  %v6931_v55 = vsel %vm2694_vm3, %v6899_v60, %v10499_v14 }
 0x5a8   : > { %v14445_v1 = vpop.permute.xlu1 %10511  ;;  %v10503_v62 = vunpack.i.l.bf16 %v10502_v37  ;;  %v10504_v5 = vunpack.i.h.bf16 %v10502_v37  ;;  %v10620_v24 = vpack.i.bf16 %v5789_v40, %v5788_v31 }
 0x5a9   : > { %10596 = vrot.lane.b32.xlu0 %v10595_v22, %s16112_s3 }
 0x5aa   : > { %6796 = vrot.lane.b32.xlu1 %v5819_v48, %s16094_s0  ;;  %v6962_v11 = vsel %vm2727_vm5, %v6930_v44, %v10503_v62  ;;  %v6963_v28 = vsel %vm2727_vm5, %v6931_v55, %v10504_v5 }
 0x5ab   : > { %v6397_v38 = vpop.permute.xlu0 %6396  ;;  %v6994_v61 = vsel %vm2760_vm8, %v6962_v11, %v6395_v58 }
 0x5ac   : > { %v6523_v42 = vpop.permute.xlu1 %6522 }
 0x5ad   : > { %10601 = vrot.lane.b32.xlu0 %v10600_v32, %s16095_s18  ;;  %v7026_v54 = vsel %vm590_vm0, %v6395_v58, %v6523_v42  ;;  %v6995_v42 = vsel %vm2760_vm8, %v6963_v28, %v6397_v38 }
 0x5ae   : > { %10611 = vrot.lane.b32.xlu1 %v10610_v4, %s16111_s1 }
 0x5af   : > { %v14457_v3 = vpop.permute.xlu0 %10506 }
 0x5b0   : > { %v6651_v2 = vpop.permute.xlu1 %6650  ;;  %v10508_v51 = vunpack.i.l.bf16 %v14457_v3  ;;  %v10509_v15 = vunpack.i.h.bf16 %v14457_v3 }
 0x5b1   : > { %6416 = vrot.lane.b32.xlu0 %v5819_v48, %s16110_s27  ;;  %v7058_v46 = vsel %vm2825_vm4, %v7026_v54, %v6651_v2  ;;  %v10630_v2 = vpack.i.bf16 %v5821_v21, %v5820_v8  ;;  %v5555_v54 = vld [vmem:[#allocation4 + $0xa7] sm:$0xff] }
 0x5b2   : > { %6542 = vrot.lane.b32.xlu1 %v14459_v36, %s16114_s19  ;;  %v6869_v3 = vsel %vm1210_vm1, %v14151_v9, %v10509_v15 }
 0x5b3   : > { %v6653_v34 = vpop.permute.xlu0 %6652 }
 0x5b4   : > { %v6779_v63 = vpop.permute.xlu1 %6778 }
 0x5b5   : > { %v7090_v43 = vsel %vm2858_vm6, %v7058_v46, %v6779_v63  ;;  %10606 = vrot.lane.b32.xlu0 %v10600_v32, %s16009_s29  ;;  %v10615_v32 = vpack.i.bf16 %v14486_v17, %v14459_v36  ;;  %v10513_v46 = vunpack.i.l.bf16 %v14445_v1 }
 0x5b6   : > { %6670 = vrot.lane.b32.xlu1 %v5788_v31, %s16115_s28  ;;  %8764 = vmatprep.mubr.msk.f32.mxu0 %vm2925_vm7, %v7090_v43 }
 0x5b7   : > { %7349 = vmatmul.mubr.f32.gmra.mrb[96].mxu0 %v6994_v61  ;;  %v6399_v49 = vpop.permute.xlu0 %6398 }
 0x5b8   : > { %v6525_v26 = vpop.permute.xlu1 %6524 }
 0x5b9   : > { %v7027_v6 = vsel %vm590_vm0, %v6397_v38, %v6525_v26  ;;  %6672 = vrot.lane.b32.xlu0 %v5789_v40, %s16115_s28  ;;  %v6868_v38 = vsel %vm1210_vm1, %v5555_v54, %v10508_v51  ;;  %v5790_v40 = vld [vmem:[#allocation4 + $0x188] sm:$0xff] }
 0x5ba   : > { %6798 = vrot.lane.b32.xlu1 %v5820_v8, %s16094_s0  ;;  %v7059_v58 = vsel %vm2825_vm4, %v7027_v6, %v6653_v34  ;;  %v14506_v34 = vld [vmem:[#allocation4 + $0x187] sm:$0xff]  ;;  %v6900_v31 = vsel %vm2661_vm2, %v6868_v38, %v10513_v46  ;;  %v5823_v46 = vld [vmem:[#allocation4 + $0x191] sm:$0xff] }
 0x5bb   : > { %v10517_v48 = vpop.permute.xlu0 %10516 }
 0x5bc   : > { %v6781_v22 = vpop.permute.xlu1 %6780  ;;  %v10518_v44 = vunpack.i.l.bf16 %v10517_v48  ;;  %v10519_v60 = vunpack.i.h.bf16 %v10517_v48 }
 0x5bd   : > { %v7091_v37 = vsel %vm2858_vm6, %v7059_v58, %v6781_v22  ;;  %6418 = vrot.lane.b32.xlu0 %v5820_v8, %s16110_s27  ;;  %v10514_v22 = vunpack.i.h.bf16 %v14445_v1 }
 0x5be   : > { %6544 = vrot.lane.b32.xlu1 %v14486_v17, %s16114_s19  ;;  %8765 = vmatprep.mubr.msk.f32.mxu0 %vm2925_vm7, %v7091_v37  ;;  %v6932_v61 = vsel %vm2694_vm3, %v6900_v31, %v10518_v44 }
 0x5bf   : > { %7354 = vmatmul.mubr.f32.gmra.mrb[98].mxu0 %v6995_v42  ;;  %v10522_v33 = vpop.permute.xlu0 %10521  ;;  %v6901_v9 = vsel %vm2661_vm2, %v6869_v3, %v10514_v22  ;;  %v5760_v3 = vld [vmem:[#allocation4 + $0x1a7] sm:$0xff] }
 0x5c0   : > { %v14493_v4 = vpop.permute.xlu1 %10531  ;;  %v10523_v63 = vunpack.i.l.bf16 %v10522_v33  ;;  %v10524_v58 = vunpack.i.h.bf16 %v10522_v33  ;;  %v6933_v48 = vsel %vm2694_vm3, %v6901_v9, %v10519_v60  ;;  %v5792_v9 = vld [vmem:[#allocation4 + $0x1a8] sm:$0xff] }
 0x5c1   : > { %10616 = vrot.lane.b32.xlu0 %v10615_v32, %s16112_s3  ;;  %v5822_v32 = vld [vmem:[#allocation4 + $0x189] sm:$0xff] }
 0x5c2   : > { %6800 = vrot.lane.b32.xlu1 %v5821_v21, %s16094_s0  ;;  %v6964_v26 = vsel %vm2727_vm5, %v6932_v61, %v10523_v63  ;;  %v6965_v1 = vsel %vm2727_vm5, %v6933_v48, %v10524_v58  ;;  %v10650_v31 = vpack.i.bf16 %v5823_v46, %v5822_v32  ;;  %v5557_v61 = vld [vmem:[#allocation4 + $0xc7] sm:$0xff] }
 0x5c3   : > { %v6401_v23 = vpop.permute.xlu0 %6400  ;;  %v6996_v55 = vsel %vm2760_vm8, %v6964_v26, %v6399_v49 }
 0x5c4   : > { %v6527_v62 = vpop.permute.xlu1 %6526 }
 0x5c5   : > { %10621 = vrot.lane.b32.xlu0 %v10620_v24, %s16095_s18  ;;  %v7028_v14 = vsel %vm590_vm0, %v6399_v49, %v6527_v62 }
 0x5c6   : > { %10631 = vrot.lane.b32.xlu1 %v10630_v2, %s16111_s1  ;;  %v14533_v2 = vld [vmem:[#allocation4 + $0x18f] sm:$0xff] }
 0x5c7   : > { %v14504_v43 = vpop.permute.xlu0 %10526  ;;  %v10635_v38 = vpack.i.bf16 %v14533_v2, %v14506_v34 }
 0x5c8   : > { %v6655_v11 = vpop.permute.xlu1 %6654  ;;  %v10528_v63 = vunpack.i.l.bf16 %v14504_v43  ;;  %v10529_v60 = vunpack.i.h.bf16 %v14504_v43 }
 0x5c9   : > { %6420 = vrot.lane.b32.xlu0 %v5821_v21, %s16110_s27  ;;  %v7060_v0 = vsel %vm2825_vm4, %v7028_v14, %v6655_v11  ;;  %v5791_v21 = vld [vmem:[#allocation4 + $0x190] sm:$0xff] }
 0x5ca   : > { %6546 = vrot.lane.b32.xlu1 %v14506_v34, %s16114_s19  ;;  %v10640_v15 = vpack.i.bf16 %v5791_v21, %v5790_v40  ;;  %v6871_v43 = vsel %vm1210_vm1, %v14178_v19, %v10529_v60 }
 0x5cb   : > { %v6657_v8 = vpop.permute.xlu0 %6656 }
 0x5cc   : > { %v6783_v5 = vpop.permute.xlu1 %6782 }
 0x5cd   : > { %v7092_v6 = vsel %vm2858_vm6, %v7060_v0, %v6783_v5  ;;  %10626 = vrot.lane.b32.xlu0 %v10620_v24, %s16009_s29  ;;  %v6997_v24 = vsel %vm2760_vm8, %v6965_v1, %v6401_v23  ;;  %v10533_v5 = vunpack.i.l.bf16 %v14493_v4 }
 0x5ce   : > { %6674 = vrot.lane.b32.xlu1 %v5790_v40, %s16115_s28  ;;  %8766 = vmatprep.mubr.msk.f32.mxu0 %vm2925_vm7, %v7092_v6 }
 0x5cf   : > { %7359 = vmatmul.mubr.f32.gmra.mrb[100].mxu0 %v6996_v55  ;;  %v6403_v42 = vpop.permute.xlu0 %6402 }
 0x5d0   : > { %v6529_v28 = vpop.permute.xlu1 %6528 }
 0x5d1   : > { %v7029_v37 = vsel %vm590_vm0, %v6401_v23, %v6529_v28  ;;  %6676 = vrot.lane.b32.xlu0 %v5791_v21, %s16115_s28  ;;  %v6870_v23 = vsel %vm1210_vm1, %v5557_v61, %v10528_v63  ;;  %v5793_v63 = vld [vmem:[#allocation4 + $0x1b0] sm:$0xff] }
 0x5d2   : > { %6802 = vrot.lane.b32.xlu1 %v5822_v32, %s16094_s0  ;;  %v7061_v49 = vsel %vm2825_vm4, %v7029_v37, %v6657_v8  ;;  %v6902_v40 = vsel %vm2661_vm2, %v6870_v23, %v10533_v5 }
 0x5d3   : > { %v10537_v62 = vpop.permute.xlu0 %10536 }
 0x5d4   : > { %v6785_v51 = vpop.permute.xlu1 %6784  ;;  %v10538_v0 = vunpack.i.l.bf16 %v10537_v62  ;;  %v10539_v48 = vunpack.i.h.bf16 %v10537_v62 }
 0x5d5   : > { %v7093_v33 = vsel %vm2858_vm6, %v7061_v49, %v6785_v51  ;;  %6422 = vrot.lane.b32.xlu0 %v5822_v32, %s16110_s27  ;;  %v10534_v49 = vunpack.i.h.bf16 %v14493_v4 }
 0x5d6   : > { %6548 = vrot.lane.b32.xlu1 %v14533_v2, %s16114_s19  ;;  %8767 = vmatprep.mubr.msk.f32.mxu0 %vm2925_vm7, %v7093_v33  ;;  %v6934_v22 = vsel %vm2694_vm3, %v6902_v40, %v10538_v0 }
 0x5d7   : > { %7364 = vmatmul.mubr.f32.gmra.mrb[102].mxu0 %v6997_v24  ;;  %v10542_v44 = vpop.permute.xlu0 %10541  ;;  %v6903_v19 = vsel %vm2661_vm2, %v6871_v43, %v10534_v49 }
 0x5d8   : > { %v14540_v54 = vpop.permute.xlu1 %10551  ;;  %v10543_v26 = vunpack.i.l.bf16 %v10542_v44  ;;  %v10544_v1 = vunpack.i.h.bf16 %v10542_v44  ;;  %v6935_v62 = vsel %vm2694_vm3, %v6903_v19, %v10539_v48 }
 0x5d9   : > { %10636 = vrot.lane.b32.xlu0 %v10635_v38, %s16112_s3 }
 0x5da   : > { %6804 = vrot.lane.b32.xlu1 %v5823_v46, %s16094_s0  ;;  %v6966_v37 = vsel %vm2727_vm5, %v6934_v22, %v10543_v26  ;;  %v6967_v4 = vsel %vm2727_vm5, %v6935_v62, %v10544_v1  ;;  %v5825_v26 = vld [vmem:[#allocation4 + $0x1b1] sm:$0xff]  ;;  %v10554_v62 = vunpack.i.h.bf16 %v14540_v54 }
 0x5db   : > { %v6405_v14 = vpop.permute.xlu0 %6404  ;;  %v6998_v51 = vsel %vm2760_vm8, %v6966_v37, %v6403_v42 }
 0x5dc   : > { %v6531_v11 = vpop.permute.xlu1 %6530  ;;  %v6999_v61 = vsel %vm2760_vm8, %v6967_v4, %v6405_v14 }
 0x5dd   : > { %10641 = vrot.lane.b32.xlu0 %v10640_v15, %s16095_s18  ;;  %v7030_v55 = vsel %vm590_vm0, %v6403_v42, %v6531_v11 }
 0x5de   : > { %10651 = vrot.lane.b32.xlu1 %v10650_v31, %s16111_s1 }
 0x5df   : > { %v14551_v8 = vpop.permute.xlu0 %10546 }
 0x5e0   : > { %v6659_v6 = vpop.permute.xlu1 %6658  ;;  %v10549_v43 = vunpack.i.h.bf16 %v14551_v8 }
 0x5e1   : > { %6424 = vrot.lane.b32.xlu0 %v5823_v46, %s16110_s27  ;;  %v7062_v58 = vsel %vm2825_vm4, %v7030_v55, %v6659_v6  ;;  %v5824_v46 = vld [vmem:[#allocation4 + $0x1a9] sm:$0xff]  ;;  %v10548_v6 = vunpack.i.l.bf16 %v14551_v8  ;;  %v10660_v55 = vpack.i.bf16 %v5793_v63, %v5792_v9 }
 0x5e2   : > { %6550 = vrot.lane.b32.xlu1 %v5760_v3, %s16114_s19  ;;  %v10670_v60 = vpack.i.bf16 %v5825_v26, %v5824_v46  ;;  %v6873_v8 = vsel %vm1210_vm1, %v14244_v52, %v10549_v43 }
 0x5e3   : > { %v6661_v21 = vpop.permute.xlu0 %6660  ;;  %v6905_v52 = vsel %vm2661_vm2, %v6873_v8, %v10554_v62 }
 0x5e4   : > { %v6787_v28 = vpop.permute.xlu1 %6786 }
 0x5e5   : > { %v7094_v32 = vsel %vm2858_vm6, %v7062_v58, %v6787_v28  ;;  %10646 = vrot.lane.b32.xlu0 %v10640_v15, %s16009_s29  ;;  %v5761_v15 = vld [vmem:[#allocation4 + $0x1af] sm:$0xff]  ;;  %v10553_v58 = vunpack.i.l.bf16 %v14540_v54 }
 0x5e6   : > { %6678 = vrot.lane.b32.xlu1 %v5792_v9, %s16115_s28  ;;  %8768 = vmatprep.mubr.msk.f32.mxu0 %vm2925_vm7, %v7094_v32  ;;  %v10655_v0 = vpack.i.bf16 %v5761_v15, %v5760_v3 }
 0x5e7   : > { %7369 = vmatmul.mubr.f32.gmra.mrb[104].mxu0 %v6998_v51  ;;  %v6407_v38 = vpop.permute.xlu0 %6406 }
 0x5e8   : > { %v6533_v33 = vpop.permute.xlu1 %6532 }
 0x5e9   : > { %v7031_v24 = vsel %vm590_vm0, %v6405_v14, %v6533_v33  ;;  %6680 = vrot.lane.b32.xlu0 %v5793_v63, %s16115_s28  ;;  %v6872_v14 = vsel %vm1210_vm1, %v14206_v41, %v10548_v6  ;;  %v5763_v6 = vld [vmem:[#allocation4 + $0x1cf] sm:$0xff] }
 0x5ea   : > { %6806 = vrot.lane.b32.xlu1 %v5824_v46, %s16094_s0  ;;  %v7063_v42 = vsel %vm2825_vm4, %v7031_v24, %v6661_v21  ;;  %v5762_v21 = vld [vmem:[#allocation4 + $0x1c7] sm:$0xff]  ;;  %v6904_v9 = vsel %vm2661_vm2, %v6872_v14, %v10553_v58 }
 0x5eb   : > { %v10557_v31 = vpop.permute.xlu0 %10556 }
 0x5ec   : > { %v6789_v11 = vpop.permute.xlu1 %6788  ;;  %v10558_v3 = vunpack.i.l.bf16 %v10557_v31  ;;  %v10559_v63 = vunpack.i.h.bf16 %v10557_v31 }
 0x5ed   : > { %v7095_v44 = vsel %vm2858_vm6, %v7063_v42, %v6789_v11  ;;  %6426 = vrot.lane.b32.xlu0 %v5824_v46, %s16110_s27  ;;  %v5794_v46 = vld [vmem:[#allocation4 + $0x1c8] sm:$0xff] }
 0x5ee   : > { %6552 = vrot.lane.b32.xlu1 %v5761_v15, %s16114_s19  ;;  %8769 = vmatprep.mubr.msk.f32.mxu0 %vm2925_vm7, %v7095_v44  ;;  %v6936_v41 = vsel %vm2694_vm3, %v6904_v9, %v10558_v3  ;;  %v5826_v15 = vld [vmem:[#allocation4 + $0x1c9] sm:$0xff]  ;;  %v6937_v31 = vsel %vm2694_vm3, %v6905_v52, %v10559_v63  ;;  %v5827_v3 = vld [vmem:[#allocation4 + $0x1d1] sm:$0xff] }
 0x5ef   : > { %7374 = vmatmul.mubr.f32.gmra.mrb[106].mxu0 %v6999_v61  ;;  %v10562_v5 = vpop.permute.xlu0 %10561  ;;  %v5795_v61 = vld [vmem:[#allocation4 + $0x1d0] sm:$0xff] }
 0x5f0   : > { %v14581_v23 = vpop.permute.xlu1 %10571  ;;  %v10563_v28 = vunpack.i.l.bf16 %v10562_v5  ;;  %v10564_v11 = vunpack.i.h.bf16 %v10562_v5  ;;  %v10680_v9 = vpack.i.bf16 %v5795_v61, %v5794_v46 }
 0x5f1   : > { %10656 = vrot.lane.b32.xlu0 %v10655_v0, %s16112_s3 }
 0x5f2   : > { %6808 = vrot.lane.b32.xlu1 %v5825_v26, %s16094_s0  ;;  %v6968_v1 = vsel %vm2727_vm5, %v6936_v41, %v10563_v28  ;;  %v6969_v54 = vsel %vm2727_vm5, %v6937_v31, %v10564_v11 }
 0x5f3   : > { %v6409_v22 = vpop.permute.xlu0 %6408  ;;  %v7000_v19 = vsel %vm2760_vm8, %v6968_v1, %v6407_v38  ;;  %v5764_v1 = vld [vmem:[#allocation4 + $0x1e7] sm:$0xff] }
 0x5f4   : > { %v6535_v40 = vpop.permute.xlu1 %6534 }
 0x5f5   : > { %10661 = vrot.lane.b32.xlu0 %v10660_v55, %s16095_s18  ;;  %v7032_v48 = vsel %vm590_vm0, %v6407_v38, %v6535_v40  ;;  %v7001_v40 = vsel %vm2760_vm8, %v6969_v54, %v6409_v22  ;;  %v5828_v54 = vld [vmem:[#allocation4 + $0x1e9] sm:$0xff] }
 0x5f6   : > { %10671 = vrot.lane.b32.xlu1 %v10670_v60, %s16111_s1 }
 0x5f7   : > { %v14591_v32 = vpop.permute.xlu0 %10566 }
 0x5f8   : > { %v6663_v37 = vpop.permute.xlu1 %6662  ;;  %v10568_v58 = vunpack.i.l.bf16 %v14591_v32 }
 0x5f9   : > { %6428 = vrot.lane.b32.xlu0 %v5825_v26, %s16110_s27  ;;  %v7064_v51 = vsel %vm2825_vm4, %v7032_v48, %v6663_v37  ;;  %v10690_v37 = vpack.i.bf16 %v5827_v3, %v5826_v15  ;;  %v10573_v48 = vunpack.i.l.bf16 %v14581_v23 }
 0x5fa   : > { %6554 = vrot.lane.b32.xlu1 %v5762_v21, %s16114_s19 }
 0x5fb   : > { %v6665_v24 = vpop.permute.xlu0 %6664 }
 0x5fc   : > { %v6791_v49 = vpop.permute.xlu1 %6790 }
 0x5fd   : > { %v7096_v33 = vsel %vm2858_vm6, %v7064_v51, %v6791_v49  ;;  %10666 = vrot.lane.b32.xlu0 %v10660_v55, %s16009_s29  ;;  %v10675_v55 = vpack.i.bf16 %v5763_v6, %v5762_v21 }
 0x5fe   : > { %6682 = vrot.lane.b32.xlu1 %v5794_v46, %s16115_s28  ;;  %8770 = vmatprep.mubr.msk.f32.mxu0 %vm2925_vm7, %v7096_v33 }
 0x5ff   : > { %7379 = vmatmul.mubr.f32.gmra.mrb[108].mxu0 %v7000_v19  ;;  %v6411_v44 = vpop.permute.xlu0 %6410 }
 0x600   : > { %v6537_v42 = vpop.permute.xlu1 %6536 }
 0x601   : > { %v7033_v4 = vsel %vm590_vm0, %v6409_v22, %v6537_v42  ;;  %6684 = vrot.lane.b32.xlu0 %v5795_v61, %s16115_s28  ;;  %v6874_v22 = vsel %vm1210_vm1, %v14276_v50, %v10568_v58  ;;  %v5796_v42 = vld [vmem:[#allocation4 + $0x1e8] sm:$0xff]  ;;  %v10574_v61 = vunpack.i.h.bf16 %v14581_v23 }
 0x602   : > { %6810 = vrot.lane.b32.xlu1 %v5826_v15, %s16094_s0  ;;  %v7065_v38 = vsel %vm2825_vm4, %v7033_v4, %v6665_v24  ;;  %v6906_v33 = vsel %vm2661_vm2, %v6874_v22, %v10573_v48  ;;  %v10569_v24 = vunpack.i.h.bf16 %v14591_v32 }
 0x603   : > { %v10577_v26 = vpop.permute.xlu0 %10576 }
 0x604   : > { %v6793_v0 = vpop.permute.xlu1 %6792  ;;  %v10578_v21 = vunpack.i.l.bf16 %v10577_v26  ;;  %v6875_v32 = vsel %vm1210_vm1, %v14314_v13, %v10569_v24  ;;  %v10579_v4 = vunpack.i.h.bf16 %v10577_v26 }
 0x605   : > { %v7097_v5 = vsel %vm2858_vm6, %v7065_v38, %v6793_v0  ;;  %6430 = vrot.lane.b32.xlu0 %v5826_v15, %s16110_s27  ;;  %v6907_v13 = vsel %vm2661_vm2, %v6875_v32, %v10574_v61 }
 0x606   : > { %6556 = vrot.lane.b32.xlu1 %v5763_v6, %s16114_s19  ;;  %8771 = vmatprep.mubr.msk.f32.mxu0 %vm2925_vm7, %v7097_v5  ;;  %v6938_v50 = vsel %vm2694_vm3, %v6906_v33, %v10578_v21  ;;  %v5797_v5 = vld [vmem:[#allocation4 + $0x1f0] sm:$0xff]  ;;  %v6939_v26 = vsel %vm2694_vm3, %v6907_v13, %v10579_v4 }
 0x607   : > { %7384 = vmatmul.mubr.f32.gmra.mrb[110].mxu0 %v7001_v40  ;;  %v10582_v14 = vpop.permute.xlu0 %10581 }
 0x608   : > { %v14621_v60 = vpop.permute.xlu1 %10591  ;;  %v10583_v41 = vunpack.i.l.bf16 %v10582_v14  ;;  %v10584_v52 = vunpack.i.h.bf16 %v10582_v14  ;;  %v14657_v14 = vld [vmem:[#allocation4 + $0x1ef] sm:$0xff] }
 0x609   : > { %10676 = vrot.lane.b32.xlu0 %v10675_v55, %s16112_s3  ;;  %v10593_v33 = vunpack.i.l.bf16 %v14621_v60 }
 0x60a   : > { %6812 = vrot.lane.b32.xlu1 %v5827_v3, %s16094_s0  ;;  %v6970_v19 = vsel %vm2727_vm5, %v6938_v50, %v10583_v41  ;;  %v6971_v23 = vsel %vm2727_vm5, %v6939_v26, %v10584_v52  ;;  %v10700_v41 = vpack.i.bf16 %v5797_v5, %v5796_v42 }
 0x60b   : > { %v6413_v43 = vpop.permute.xlu0 %6412  ;;  %v7002_v15 = vsel %vm2760_vm8, %v6970_v19, %v6411_v44 }
 0x60c   : > { %v6539_v28 = vpop.permute.xlu1 %6538 }
 0x60d   : > { %10681 = vrot.lane.b32.xlu0 %v10680_v9, %s16095_s18  ;;  %v7034_v46 = vsel %vm590_vm0, %v6411_v44, %v6539_v28  ;;  %v10695_v28 = vpack.i.bf16 %v14657_v14, %v5764_v1 }
 0x60e   : > { %10691 = vrot.lane.b32.xlu1 %v10690_v37, %s16111_s1 }
 0x60f   : > { %v14631_v49 = vpop.permute.xlu0 %10586 }
 0x610   : > { %v6667_v51 = vpop.permute.xlu1 %6666  ;;  %v10588_v22 = vunpack.i.l.bf16 %v14631_v49  ;;  %v10589_v19 = vunpack.i.h.bf16 %v14631_v49 }
 0x611   : > { %6432 = vrot.lane.b32.xlu0 %v5827_v3, %s16110_s27  ;;  %v7066_v8 = vsel %vm2825_vm4, %v7034_v46, %v6667_v51  ;;  %v7003_v3 = vsel %vm2760_vm8, %v6971_v23, %v6413_v43  ;;  %v5830_v23 = vld [vmem:[#allocation4 + $0x209] sm:$0xff] }
 0x612   : > { %6558 = vrot.lane.b32.xlu1 %v5764_v1, %s16114_s19  ;;  %v6877_v49 = vsel %vm1210_vm1, %v14386_v35, %v10589_v19 }
 0x613   : > { %v6669_v11 = vpop.permute.xlu0 %6668 }
 0x614   : > { %v6795_v63 = vpop.permute.xlu1 %6794 }
 0x615   : > { %v7098_v62 = vsel %vm2858_vm6, %v7066_v8, %v6795_v63  ;;  %10686 = vrot.lane.b32.xlu0 %v10680_v9, %s16009_s29  ;;  %v5829_v9 = vld [vmem:[#allocation4 + $0x1f1] sm:$0xff]  ;;  %v14677_v8 = vld [vmem:[#allocation4 + $0x207] sm:$0xff] }
 0x616   : > { %6686 = vrot.lane.b32.xlu1 %v5796_v42, %s16115_s28  ;;  %8772 = vmatprep.mubr.msk.f32.mxu0 %vm2925_vm7, %v7098_v62  ;;  %v10710_v48 = vpack.i.bf16 %v5829_v9, %v5828_v54 }
 0x617   : > { %7389 = vmatmul.mubr.f32.gmra.mrb[112].mxu0 %v7002_v15  ;;  %v6415_v38 = vpop.permute.xlu0 %6414 }
 0x618   : > { %v6541_v31 = vpop.permute.xlu1 %6540 }
 0x619   : > { %v7035_v0 = vsel %vm590_vm0, %v6413_v43, %v6541_v31  ;;  %6688 = vrot.lane.b32.xlu0 %v5797_v5, %s16115_s28  ;;  %v6876_v43 = vsel %vm1210_vm1, %v14346_v56, %v10588_v22  ;;  %v5798_v31 = vld [vmem:[#allocation4 + $0x208] sm:$0xff]  ;;  %v10594_v5 = vunpack.i.h.bf16 %v14621_v60 }
 0x61a   : > { %6814 = vrot.lane.b32.xlu1 %v5828_v54, %s16094_s0  ;;  %v7067_v44 = vsel %vm2825_vm4, %v7035_v0, %v6669_v11  ;;  %v6908_v63 = vsel %vm2661_vm2, %v6876_v43, %v10593_v33  ;;  %v5767_v22 = vld [vmem:[#allocation4 + $0x20f] sm:$0xff] }
 0x61b   : > { %v10597_v55 = vpop.permute.xlu0 %10596  ;;  %v6909_v35 = vsel %vm2661_vm2, %v6877_v49, %v10594_v5  ;;  %v5831_v33 = vld [vmem:[#allocation4 + $0x211] sm:$0xff] }
 0x61c   : > { %v6797_v6 = vpop.permute.xlu1 %6796  ;;  %v10598_v1 = vunpack.i.l.bf16 %v10597_v55  ;;  %v10599_v0 = vunpack.i.h.bf16 %v10597_v55 }
 0x61d   : > { %v7099_v40 = vsel %vm2858_vm6, %v7067_v44, %v6797_v6  ;;  %6434 = vrot.lane.b32.xlu0 %v5828_v54, %s16110_s27 }
 0x61e   : > { %6560 = vrot.lane.b32.xlu1 %v14657_v14, %s16114_s19  ;;  %8773 = vmatprep.mubr.msk.f32.mxu0 %vm2925_vm7, %v7099_v40  ;;  %v6940_v11 = vsel %vm2694_vm3, %v6908_v63, %v10598_v1  ;;  %v6941_v55 = vsel %vm2694_vm3, %v6909_v35, %v10599_v0 }
 0x61f   : > { %7394 = vmatmul.mubr.f32.gmra.mrb[114].mxu0 %v7003_v3  ;;  %v10602_v37 = vpop.permute.xlu0 %10601 }
 0x620   : > { %v14664_v58 = vpop.permute.xlu1 %10611  ;;  %v10603_v24 = vunpack.i.l.bf16 %v10602_v37  ;;  %v10604_v13 = vunpack.i.h.bf16 %v10602_v37 }
 0x621   : > { %10696 = vrot.lane.b32.xlu0 %v10695_v28, %s16112_s3 }
 0x622   : > { %6816 = vrot.lane.b32.xlu1 %v5829_v9, %s16094_s0  ;;  %v6972_v15 = vsel %vm2727_vm5, %v6940_v11, %v10603_v24  ;;  %v6973_v28 = vsel %vm2727_vm5, %v6941_v55, %v10604_v13  ;;  %v10613_v11 = vunpack.i.l.bf16 %v14664_v58 }
 0x623   : > { %v6417_v51 = vpop.permute.xlu0 %6416  ;;  %v7004_v54 = vsel %vm2760_vm8, %v6972_v15, %v6415_v38  ;;  %v10715_v15 = vpack.i.bf16 %v5767_v22, %v14677_v8 }
 0x624   : > { %v6543_v21 = vpop.permute.xlu1 %6542 }
 0x625   : > { %10701 = vrot.lane.b32.xlu0 %v10700_v41, %s16095_s18  ;;  %v7036_v56 = vsel %vm590_vm0, %v6415_v38, %v6543_v21  ;;  %v5799_v21 = vld [vmem:[#allocation4 + $0x210] sm:$0xff] }
 0x626   : > { %10711 = vrot.lane.b32.xlu1 %v10710_v48, %s16111_s1  ;;  %v7005_v48 = vsel %vm2760_vm8, %v6973_v28, %v6417_v51  ;;  %s16169_s1 = sshll.u32 %s16171_s25, 8 }
 0x627   : > { %v14675_v50 = vpop.permute.xlu0 %10606  ;;  %s15511_s22 = scalar_lea.vmem %s15727_s17, %s16169_s1 }
 0x628   : > { %v6671_v46 = vpop.permute.xlu1 %6670  ;;  %v10608_v24 = vunpack.i.l.bf16 %v14675_v50 }
 0x629   : > { %6436 = vrot.lane.b32.xlu0 %v5829_v9, %s16110_s27  ;;  %v7068_v42 = vsel %vm2825_vm4, %v7036_v56, %v6671_v46  ;;  %v5769_v46 = vld [vmem:[#allocation4 + $0x22f] sm:$0xff] }
 0x62a   : > { %6562 = vrot.lane.b32.xlu1 %v14677_v8, %s16114_s19  ;;  %v14685_v62 = vpop.f32.mrb[80].mxu0  ;;  %v6878_v56 = vsel %vm1210_vm1, %v14409_v39, %v10608_v24 }
 0x62b   : > { %v7312_v32 = vpop.f32.mrb[81].mxu0  ;;  %v6673_v52 = vpop.permute.xlu0 %6672 }
 0x62c   : > { %v6799_v4 = vpop.permute.xlu1 %6798  ;;  %v14728_v32 = vld [vmem:[%s15716_s6] ss:$0 sm:$0xff] }
 0x62d   : > { %v7100_v61 = vsel %vm2858_vm6, %v7068_v42, %v6799_v4  ;;  %10706 = vrot.lane.b32.xlu0 %v10700_v41, %s16009_s29  ;;  %v5801_v41 = vld [vmem:[#allocation4 + $0x230] sm:$0xff]  ;;  %v3089_v39 = vadd.f32 %v14728_v32, %v13275_v12  ;;  %v3094_v28 = vadd.f32 %v14728_v32, %v13296_v45 }
 0x62e   : > { %6690 = vrot.lane.b32.xlu1 %v5798_v31, %s16115_s28  ;;  %8774 = vmatprep.mubr.msk.f32.mxu0 %vm2925_vm7, %v7100_v61 }
 0x62f   : > { %7399 = vmatmul.mubr.f32.gmra.mrb[116].mxu0 %v7004_v54  ;;  %v6419_v44 = vpop.permute.xlu0 %6418 }
 0x630   : > { %v6545_v26 = vpop.permute.xlu1 %6544 }
 0x631   : > { %v7037_v6 = vsel %vm590_vm0, %v6417_v51, %v6545_v26  ;;  %6310 = vrot.lane.b32.xlu0 %v5798_v31, %s16095_s18  ;;  %v10609_v31 = vunpack.i.h.bf16 %v14675_v50  ;;  %v3247_v26 = vmax.f32 %v3089_v39, 0.0  ;;  %v3099_v50 = vadd.f32 %v14728_v32, %v13301_v25  ;;  %v5833_v25 = vld [vmem:[#allocation4 + $0x231] sm:$0xff] }
 0x632   : > { %6818 = vrot.lane.b32.xlu1 %v5830_v23, %s16094_s0  ;;  %v14702_v40 = vpop.f32.mrb[82].mxu0  ;;  %v7069_v60 = vsel %vm2825_vm4, %v7037_v6, %v6673_v52  ;;  %v6910_v52 = vsel %vm2661_vm2, %v6878_v56, %v10613_v11 }
 0x633   : > { %v7317_v38 = vpop.f32.mrb[83].mxu0  ;;  %v14708_v9 = vpop.permute.xlu0 %10616  ;;  %v6879_v35 = vsel %vm1210_vm1, %v14438_v7, %v10609_v31  ;;  %v3249_v7 = vmax.f32 %v3099_v50, 0.0  ;;  %v3124_v31 = vadd.f32 %v14728_v32, %v13327_v10 }
 0x634   : > { %v6801_v3 = vpop.permute.xlu1 %6800  ;;  %v10618_v51 = vunpack.i.l.bf16 %v14708_v9  ;;  %v10619_v55 = vunpack.i.h.bf16 %v14708_v9  ;;  %v3109_v9 = vadd.f32 %v14728_v32, %v13313_v57  ;;  %v3104_v57 = vadd.f32 %v14728_v32, %v13307_v18 }
 0x635   : > { %v7101_v37 = vsel %vm2858_vm6, %v7069_v60, %v6801_v3  ;;  %6692 = vrot.lane.b32.xlu0 %v5799_v21, %s16115_s28  ;;  %v10614_v3 = vunpack.i.h.bf16 %v14664_v58  ;;  %v3254_v10 = vmax.f32 %v3124_v31, 0.0 }
 0x636   : > { %6564 = vrot.lane.b32.xlu1 %v5767_v22, %s16114_s19  ;;  %8775 = vmatprep.mubr.msk.f32.mxu0 %vm2925_vm7, %v7101_v37  ;;  %v6942_v49 = vsel %vm2694_vm3, %v6910_v52, %v10618_v51  ;;  %v3250_v18 = vmax.f32 %v3104_v57, 0.0  ;;  %v16116_v57 = vld [vmem:[#allocation30_spill] sm:$0xff] }
 0x637   : > { %7404 = vmatmul.mubr.f32.gmra.mrb[118].mxu0 %v7005_v48  ;;  %v10622_v1 = vpop.permute.xlu0 %10621 }
 0x638   : > { %v14714_v43 = vpop.permute.xlu1 %10631  ;;  %v10623_v42 = vunpack.i.l.bf16 %v10622_v1  ;;  %v10624_v60 = vunpack.i.h.bf16 %v10622_v1 }
 0x639   : > { %6696 = vrot.lane.b32.xlu0 %v5801_v41, %s16115_s28  ;;  %v3248_v41 = vmax.f32 %v3094_v28, 0.0 }
 0x63a   : > { %6820 = vrot.lane.b32.xlu1 %v5831_v33, %s16094_s0  ;;  %v6974_v8 = vsel %vm2727_vm5, %v6942_v49, %v10623_v42  ;;  %v3114_v42 = vadd.f32 %v14728_v32, %v13317_v16 }
 0x63b   : > { %v6421_v19 = vpop.permute.xlu0 %6420  ;;  %v7006_v38 = vsel %vm2760_vm8, %v6974_v8, %v6419_v44 }
 0x63c   : > { %v6547_v63 = vpop.permute.xlu1 %6546 }
 0x63d   : > { %6438 = vrot.lane.b32.xlu0 %v5830_v23, %s16110_s27  ;;  %v7038_v0 = vsel %vm590_vm0, %v6419_v44, %v6547_v63  ;;  %v6911_v44 = vsel %vm2661_vm2, %v6879_v35, %v10614_v3  ;;  %v3119_v63 = vadd.f32 %v14728_v32, %v13321_v59 }
 0x63e   : > { %6568 = vrot.lane.b32.xlu1 %v5769_v46, %s16114_s19  ;;  %v6943_v58 = vsel %vm2694_vm3, %v6911_v44, %v10619_v55  ;;  %v3251_v46 = vmax.f32 %v3109_v9, 0.0 }
 0x63f   : > { %v14733_v61 = vpop.permute.xlu0 %10626  ;;  %v6975_v45 = vsel %vm2727_vm5, %v6943_v58, %v10624_v60  ;;  %v3253_v59 = vmax.f32 %v3119_v63, 0.0  ;;  %v3144_v60 = vadd.f32 %v14728_v32, %v13345_v47 }
 0x640   : > { %v6675_v4 = vpop.permute.xlu1 %6674  ;;  %v7007_v11 = vsel %vm2760_vm8, %v6975_v45, %v6421_v19  ;;  %v10628_v52 = vunpack.i.l.bf16 %v14733_v61  ;;  %v10629_v35 = vunpack.i.h.bf16 %v14733_v61  ;;  %v10634_v45 = vunpack.i.h.bf16 %v14714_v43 }
 0x641   : > { %10716 = vrot.lane.b32.xlu0 %v10715_v15, %s16112_s3  ;;  %v7070_v12 = vsel %vm2825_vm4, %v7038_v0, %v6675_v4  ;;  %v3129_v15 = vadd.f32 %v14728_v32, %v13333_v30  ;;  %v3139_v0 = vadd.f32 %v14728_v32, %v13341_v29 }
 0x642   : > { %6312 = vrot.lane.b32.xlu1 %v5799_v21, %s16095_s18  ;;  %v14741_v54 = vpop.f32.mrb[84].mxu0  ;;  %v6880_v30 = vsel %vm1210_vm1, %v14459_v36, %v10628_v52  ;;  %v6881_v44 = vsel %vm1210_vm1, %v14486_v17, %v10629_v35  ;;  %v3154_v17 = vadd.f32 %v14728_v32, %v16116_v57  ;;  %v7828_v57 = vld [vmem:[%s15723_s13 + $0x38] sm:$0xff] }
 0x643   : > { %v7322_v5 = vpop.f32.mrb[85].mxu0  ;;  %v6677_v23 = vpop.permute.xlu0 %6676  ;;  %v3255_v16 = vmax.f32 %v3129_v15, 0.0  ;;  %v3257_v50 = vmax.f32 %v3139_v0, 0.0  ;;  %v16119_v0 = vld [vmem:[#allocation28_spill] sm:$0xff] }
 0x644   : > { %v6803_v13 = vpop.permute.xlu1 %6802  ;;  %v10633_v5 = vunpack.i.l.bf16 %v14714_v43  ;;  %v6913_v43 = vsel %vm2661_vm2, %v6881_v44, %v10634_v45  ;;  %v3260_v15 = vmax.f32 %v3154_v17, 0.0  ;;  %v16123_v44 = vld [vmem:[#allocation41_spill] sm:$0xff] }
 0x645   : > { %v7102_v6 = vsel %vm2858_vm6, %v7070_v12, %v6803_v13  ;;  %6440 = vrot.lane.b32.xlu0 %v5831_v33, %s16110_s27 }
 0x646   : > { %8776 = vmatprep.mubr.msk.f32.mxu0 %vm2925_vm7, %v7102_v6  ;;  %7533 = vrot.lane.b32.xlu1 %v3247_v26, %s16094_s0  ;;  %v3134_v26 = vadd.f32 %v14728_v32, %v13337_v53  ;;  %v3149_v6 = vadd.f32 %v14728_v32, %v13351_v27 }
 0x647   : > { %7409 = vmatmul.mubr.f32.gmra.mrb[120].mxu0 %v7006_v38  ;;  %v14761_v21 = vpop.permute.xlu0 %6422 }
 0x648   : > { %v6549_v37 = vpop.permute.xlu1 %6548  ;;  %v3256_v27 = vmax.f32 %v3134_v26, 0.0  ;;  %v7824_v26 = vld [vmem:[%s15723_s13 + $0x18] sm:$0xff] }
 0x649   : > { %v7039_v22 = vsel %vm590_vm0, %v6421_v19, %v6549_v37  ;;  %6824 = vrot.lane.b32.xlu0 %v5833_v25, %s16094_s0  ;;  %v3252_v19 = vmax.f32 %v3114_v42, 0.0  ;;  %v3259_v37 = vmax.f32 %v3149_v6, 0.0  ;;  %v16120_v6 = vld [vmem:[#allocation31_spill] sm:$0xff] }
 0x64a   : > { %v14766_v48 = vpop.f32.mrb[86].mxu0  ;;  %7537 = vrot.lane.b32.xlu1 %v3249_v7, %s16094_s0  ;;  %v7071_v24 = vsel %vm2825_vm4, %v7039_v22, %v6677_v23  ;;  %v6912_v23 = vsel %vm2661_vm2, %v6880_v30, %v10633_v5  ;;  %v3159_v7 = vadd.f32 %v14728_v32, %v13363_v20  ;;  %v3258_v20 = vmax.f32 %v3144_v60, 0.0  ;;  %v7825_v60 = vld [vmem:[%s15723_s13 + $0x20] sm:$0xff] }
 0x64b   : > { %v7327_v1 = vpop.f32.mrb[87].mxu0  ;;  %v14776_v51 = vpop.permute.xlu0 %10636  ;;  %v3179_v30 = vadd.f32 %v14728_v32, %v16119_v0  ;;  %v16126_v0 = vld [vmem:[#allocation38_spill] sm:$0xff] }
 0x64c   : > { %v6805_v33 = vpop.permute.xlu1 %6804  ;;  %v10638_v12 = vunpack.i.l.bf16 %v14776_v51  ;;  %v10639_v58 = vunpack.i.h.bf16 %v14776_v51  ;;  %v7821_v51 = vld [vmem:[%s15723_s13] sm:$0xff] }
 0x64d   : > { %v7103_v56 = vsel %vm2858_vm6, %v7071_v24, %v6805_v33  ;;  %7535 = vrot.lane.b32.xlu0 %v3248_v41, %s16094_s0  ;;  %v3261_v33 = vmax.f32 %v3159_v7, 0.0  ;;  %v16117_v24 = vld [vmem:[#allocation33_spill] sm:$0xff] }
 0x64e   : > { %8777 = vmatprep.mubr.msk.f32.mxu0 %vm2925_vm7, %v7103_v56  ;;  %7541 = vrot.lane.b32.xlu1 %v3251_v46, %s16094_s0  ;;  %v6944_v55 = vsel %vm2694_vm3, %v6912_v23, %v10638_v12  ;;  %v3169_v46 = vadd.f32 %v14728_v32, %v16117_v24  ;;  %v6945_v56 = vsel %vm2694_vm3, %v6913_v43, %v10639_v58  ;;  %v16124_v24 = vld [vmem:[#allocation51_spill] sm:$0xff]  ;;  %v16125_v43 = vld [vmem:[#allocation21_spill] sm:$0xff] }
 0x64f   : > { %7414 = vmatmul.mubr.f32.gmra.mrb[122].mxu0 %v7007_v11  ;;  %v14788_v39 = vpop.permute.xlu0 %10641  ;;  %v7822_v11 = vld [vmem:[%s15723_s13 + $0x8] sm:$0xff]  ;;  %v3174_v23 = vadd.f32 %v14728_v32, %v16120_v6  ;;  %v3199_v58 = vadd.f32 %v14728_v32, %v16123_v44 }
 0x650   : > { %v14784_v4 = vpop.permute.xlu1 %10651  ;;  %v10643_v13 = vunpack.i.l.bf16 %v14788_v39  ;;  %v10644_v41 = vunpack.i.h.bf16 %v14788_v39  ;;  %v16118_v39 = vld [vmem:[#allocation43_spill] sm:$0xff] }
 0x651   : > { %7539 = vrot.lane.b32.xlu0 %v3250_v18, %s16094_s0  ;;  %v3164_v52 = vadd.f32 %v14728_v32, %v16118_v39  ;;  %v10653_v17 = vunpack.i.l.bf16 %v14784_v4  ;;  %v7829_v39 = vld [vmem:[%s15723_s13 + $0x40] sm:$0xff] }
 0x652   : > { %7545 = vrot.lane.b32.xlu1 %v3253_v59, %s16094_s0  ;;  %v6976_v53 = vsel %vm2727_vm5, %v6944_v55, %v10643_v13  ;;  %v6977_v42 = vsel %vm2727_vm5, %v6945_v56, %v10644_v41  ;;  %v9444_v59 = vpack.c.bf16 %v7822_v11, %v7821_v51  ;;  %v16121_v55 = vld [vmem:[#allocation39_spill] sm:$0xff]  ;;  %v3209_v56 = vadd.f32 %v14728_v32, %v16125_v43 }
 0x653   : > { %v14797_v8 = vpop.permute.xlu0 %6424  ;;  %v7008_v47 = vsel %vm2760_vm8, %v6976_v53, %v14761_v21  ;;  %v3269_v51 = vmax.f32 %v3199_v58, 0.0 }
 0x654   : > { %v6551_v49 = vpop.permute.xlu1 %6550  ;;  %9445 = vmatprep.subr.bf16.mxu1 %v9444_v59  ;;  %v7009_v13 = vsel %vm2760_vm8, %v6977_v42, %v14797_v8 }
 0x655   : > { %7543 = vrot.lane.b32.xlu0 %v3252_v19, %s16094_s0  ;;  %v7040_v38 = vsel %vm590_vm0, %v14761_v21, %v6551_v49  ;;  %9447 = vmatpush3.bf16.msra.mxu1 %v9444_v59 }
 0x656   : > { %7549 = vrot.lane.b32.xlu1 %v3255_v16, %s16094_s0  ;;  %v3263_v16 = vmax.f32 %v3169_v46, 0.0  ;;  %v3194_v46 = vadd.f32 %v14728_v32, %v16124_v24 }
 0x657   : > { %v14810_v36 = vpop.permute.xlu0 %10646 }
 0x658   : > { %v6679_v29 = vpop.permute.xlu1 %6678  ;;  %v10649_v59 = vunpack.i.h.bf16 %v14810_v36 }
 0x659   : > { %7547 = vrot.lane.b32.xlu0 %v3254_v10, %s16094_s0  ;;  %v7072_v25 = vsel %vm2825_vm4, %v7040_v38, %v6679_v29  ;;  %v7823_v10 = vld [vmem:[%s15723_s13 + $0x10] sm:$0xff]  ;;  %v3189_v38 = vadd.f32 %v14728_v32, %v16121_v55 }
 0x65a   : > { %v14818_v3 = vpop.f32.mrb[88].mxu0  ;;  %7553 = vrot.lane.b32.xlu1 %v3257_v50, %s16094_s0  ;;  %v9448_v29 = vpack.c.bf16 %v7824_v26, %v7823_v10  ;;  %v3262_v50 = vmax.f32 %v3164_v52, 0.0  ;;  %v7830_v52 = vld [vmem:[%s15723_s13 + $0x48] sm:$0xff]  ;;  %v3271_v26 = vmax.f32 %v3209_v56, 0.0 }
 0x65b   : > { %v7332_v61 = vpop.f32.mrb[89].mxu0  ;;  %v6681_v22 = vpop.permute.xlu0 %6680  ;;  %v16131_v56 = vld [vmem:[#allocation34_spill] sm:$0xff] }
 0x65c   : > { %v6807_v28 = vpop.permute.xlu1 %6806  ;;  %9449 = vmatprep.subr.bf16.mxu1 %v9448_v29 }
 0x65d   : > { %v7104_v9 = vsel %vm2858_vm6, %v7072_v25, %v6807_v28  ;;  %7551 = vrot.lane.b32.xlu0 %v3256_v27, %s16094_s0  ;;  %v10648_v27 = vunpack.i.l.bf16 %v14810_v36  ;;  %v7826_v25 = vld [vmem:[%s15723_s13 + $0x28] sm:$0xff]  ;;  %v3264_v28 = vmax.f32 %v3174_v23, 0.0  ;;  %9451 = vmatpush3.bf16.msra.mxu1 %v9448_v29  ;;  %v16127_v29 = vld [vmem:[#allocation35_spill] sm:$0xff] }
 0x65e   : > { %8778 = vmatprep.mubr.msk.f32.mxu0 %vm2925_vm7, %v7104_v9  ;;  %7557 = vrot.lane.b32.xlu1 %v3259_v37, %s16094_s0  ;;  %v9452_v61 = vpack.c.bf16 %v7826_v25, %v7825_v60  ;;  %v16122_v37 = vld [vmem:[#allocation37_spill] sm:$0xff]  ;;  %v7832_v60 = vld [vmem:[%s15723_s13 + $0x58] sm:$0xff]  ;;  %v10654_v25 = vunpack.i.h.bf16 %v14784_v4 }
 0x65f   : > { %7419 = vmatmul.mubr.f32.gmra.mrb[124].mxu0 %v7008_v47  ;;  %v14844_v21 = vpop.permute.xlu0 %6426  ;;  %v3184_v7 = vadd.f32 %v14728_v32, %v16122_v37  ;;  %v6882_v45 = vsel %vm1210_vm1, %v14506_v34, %v10648_v27  ;;  %v7831_v27 = vld [vmem:[%s15723_s13 + $0x50] sm:$0xff] }
 0x660   : > { %v6553_v1 = vpop.permute.xlu1 %6552  ;;  %9453 = vmatprep.subr.bf16.mxu1 %v9452_v61  ;;  %v6914_v42 = vsel %vm2661_vm2, %v6882_v45, %v10653_v17  ;;  %v7833_v45 = vld [vmem:[%s15723_s13 + $0x60] sm:$0xff] }
 0x661   : > { %v7041_v63 = vsel %vm590_vm0, %v14797_v8, %v6553_v1  ;;  %7555 = vrot.lane.b32.xlu0 %v3258_v20, %s16094_s0  ;;  %v3265_v8 = vmax.f32 %v3179_v30, 0.0  ;;  %v7827_v20 = vld [vmem:[%s15723_s13 + $0x30] sm:$0xff]  ;;  %v3266_v34 = vmax.f32 %v3184_v7, 0.0  ;;  %9455 = vmatpush3.bf16.msra.mxu1 %v9452_v61  ;;  %v3204_v30 = vadd.f32 %v14728_v32, %v16126_v0  ;;  %v8196_v0 = vld [vmem:[%s15725_s15] sm:$0xff] }
 0x662   : > { %v14855_v18 = vpop.f32.mrb[90].mxu0  ;;  %7561 = vrot.lane.b32.xlu1 %v3261_v33, %s16094_s0  ;;  %v7073_v49 = vsel %vm2825_vm4, %v7041_v63, %v6681_v22  ;;  %v3267_v22 = vmax.f32 %v3189_v38, 0.0  ;;  %v9456_v33 = vpack.c.bf16 %v7828_v57, %v7827_v20  ;;  %v16128_v61 = vld [vmem:[#allocation23_spill] sm:$0xff] }
 0x663   : > { %v7337_v19 = vpop.f32.mrb[91].mxu0  ;;  %v14865_v5 = vpop.permute.xlu0 %10656 }
 0x664   : > { %v6809_v31 = vpop.permute.xlu1 %6808  ;;  %v10658_v41 = vunpack.i.l.bf16 %v14865_v5  ;;  %9457 = vmatprep.subr.bf16.mxu1 %v9456_v33  ;;  %v10659_v55 = vunpack.i.h.bf16 %v14865_v5  ;;  %v9464_v5 = vpack.c.bf16 %v7832_v60, %v7831_v27 }
 0x665   : > { %v7105_v12 = vsel %vm2858_vm6, %v7073_v49, %v6809_v31  ;;  %7559 = vrot.lane.b32.xlu0 %v3260_v15, %s16094_s0  ;;  %v9460_v49 = vpack.c.bf16 %v7830_v52, %v7829_v39  ;;  %9459 = vmatpush3.bf16.msra.mxu1 %v9456_v33  ;;  %v16130_v33 = vld [vmem:[#allocation25_spill] sm:$0xff]  ;;  %v7835_v52 = vld [vmem:[%s15723_s13 + $0x70] sm:$0xff] }
 0x666   : > { %8779 = vmatprep.mubr.msk.f32.mxu0 %vm2925_vm7, %v7105_v12  ;;  %7565 = vrot.lane.b32.xlu1 %v3263_v16, %s16094_s0  ;;  %v6946_v15 = vsel %vm2694_vm3, %v6914_v42, %v10658_v41  ;;  %v3268_v16 = vmax.f32 %v3194_v46, 0.0  ;;  %v7834_v41 = vld [vmem:[%s15723_s13 + $0x68] sm:$0xff] }
 0x667   : > { %7424 = vmatmul.mubr.f32.gmra.mrb[126].mxu0 %v7009_v13  ;;  %v14884_v53 = vpop.permute.xlu0 %10661  ;;  %9461 = vmatprep.subr.bf16.mxu1 %v9460_v49  ;;  %v9468_v17 = vpack.c.bf16 %v7834_v41, %v7833_v45 }
 0x668   : > { %v14880_v35 = vpop.permute.xlu1 %10671  ;;  %v10663_v1 = vunpack.i.l.bf16 %v14884_v53 }
 0x669   : > { %7563 = vrot.lane.b32.xlu0 %v3262_v50, %s16094_s0  ;;  %v3219_v50 = vadd.f32 %v14728_v32, %v16127_v29  ;;  %9463 = vmatpush3.bf16.msra.mxu1 %v9460_v49 }
 0x66a   : > { %7569 = vrot.lane.b32.xlu1 %v3265_v8, %s16094_s0  ;;  %v6978_v36 = vsel %vm2727_vm5, %v6946_v15, %v10663_v1  ;;  %v6883_v8 = vsel %vm1210_vm1, %v14533_v2, %v10649_v59  ;;  %v10664_v2 = vunpack.i.h.bf16 %v14884_v53  ;;  %9465 = vmatprep.subr.bf16.mxu1 %v9464_v5  ;;  %v14990_v15 = vld [vmem:[%s15722_s12] ss:$0 sm:$0xff] }
 0x66b   : > { %v14899_v47 = vpop.permute.xlu0 %6428  ;;  %v7010_v38 = vsel %vm2760_vm8, %v6978_v36, %v14844_v21  ;;  %v3273_v7 = vmax.f32 %v3219_v50, 0.0  ;;  %v6915_v53 = vsel %vm2661_vm2, %v6883_v8, %v10654_v25  ;;  %v16132_v36 = vld [vmem:[#allocation24_spill] sm:$0xff]  ;;  %v10673_v25 = vunpack.i.l.bf16 %v14880_v35 }
 0x66c   : > { %v6555_v9 = vpop.permute.xlu1 %6554  ;;  %v6947_v58 = vsel %vm2694_vm3, %v6915_v53, %v10659_v55  ;;  %v3234_v49 = vadd.f32 %v14728_v32, %v16132_v36  ;;  %v16133_v50 = vld [vmem:[#allocation20_spill] sm:$0xff] }
 0x66d   : > { %7567 = vrot.lane.b32.xlu0 %v3264_v28, %s16094_s0  ;;  %v7042_v19 = vsel %vm590_vm0, %v14844_v21, %v6555_v9  ;;  %v3214_v28 = vadd.f32 %v14728_v32, %v16128_v61  ;;  %v3270_v21 = vmax.f32 %v3204_v30, 0.0  ;;  %v16129_v9 = vld [vmem:[#allocation22_spill] sm:$0xff]  ;;  %v6979_v57 = vsel %vm2727_vm5, %v6947_v58, %v10664_v2  ;;  %9467 = vmatpush3.bf16.msra.mxu1 %v9464_v5 }
 0x66e   : > { %7573 = vrot.lane.b32.xlu1 %v3267_v22, %s16094_s0  ;;  %v3229_v22 = vadd.f32 %v14728_v32, %v16129_v9  ;;  %9469 = vmatprep.subr.bf16.mxu1 %v9468_v17  ;;  %v7011_v39 = vsel %vm2760_vm8, %v6979_v57, %v14899_v47  ;;  %v3276_v29 = vmax.f32 %v3234_v49, 0.0  ;;  %v7316_v5 = vadd.f32 %v14990_v15, %v14702_v40 }
 0x66f   : > { %v14918_v11 = vpop.permute.xlu0 %10666  ;;  %v3272_v1 = vmax.f32 %v3214_v28, 0.0  ;;  %v7331_v28 = vadd.f32 %v14990_v15, %v14818_v3  ;;  %v7326_v3 = vadd.f32 %v14990_v15, %v14766_v48 }
 0x670   : > { %v6683_v63 = vpop.permute.xlu1 %6682  ;;  %v3275_v43 = vmax.f32 %v3229_v22, 0.0  ;;  %v7470_v53 = vmax.f32 %v7316_v5, 0.0 }
 0x671   : > { %7571 = vrot.lane.b32.xlu0 %v3266_v34, %s16094_s0  ;;  %v7074_v12 = vsel %vm2825_vm4, %v7042_v19, %v6683_v63  ;;  %v3224_v34 = vadd.f32 %v14728_v32, %v16130_v33  ;;  %9471 = vmatpush3.bf16.msra.mxu1 %v9468_v17  ;;  %v7473_v41 = vmax.f32 %v7331_v28, 0.0  ;;  %v10779_v33 = vld [vmem:[#allocation4 + $0x1af] sm:$0xff] }
 0x672   : > { %v14932_v31 = vpop.f32.mrb[92].mxu0  ;;  %7577 = vrot.lane.b32.xlu1 %v3269_v51, %s16094_s0  ;;  %v3239_v51 = vadd.f32 %v14728_v32, %v16131_v56  ;;  %9225 = vmatprep.subr.mxu1 %v7835_v52 }
 0x673   : > { %v7342_v13 = vpop.f32.mrb[93].mxu0  ;;  %v6685_v23 = vpop.permute.xlu0 %6684  ;;  %v3274_v19 = vmax.f32 %v3224_v34, 0.0  ;;  %v7341_v57 = vadd.f32 %v14990_v15, %v14932_v31  ;;  %v7472_v31 = vmax.f32 %v7326_v3, 0.0 }
 0x674   : > { %v6811_v10 = vpop.permute.xlu1 %6810  ;;  %v3277_v30 = vmax.f32 %v3239_v51, 0.0 }
 0x675   : > { %v7106_v6 = vsel %vm2858_vm6, %v7074_v12, %v6811_v10  ;;  %7575 = vrot.lane.b32.xlu0 %v3268_v16, %s16094_s0  ;;  %v7311_v12 = vadd.f32 %v14990_v15, %v14685_v62  ;;  %9226 = vmatpush3.msra.mxu1 %v7835_v52  ;;  %v7321_v62 = vadd.f32 %v14990_v15, %v14741_v54  ;;  %v7475_v51 = vmax.f32 %v7341_v57, 0.0 }
 0x676   : > { %8780 = vmatprep.mubr.msk.f32.mxu0 %vm2925_vm7, %v7106_v6  ;;  %7581 = vrot.lane.b32.xlu1 %v3271_v26, %s16094_s0  ;;  %v10668_v26 = vunpack.i.l.bf16 %v14918_v11  ;;  %v3244_v6 = vadd.f32 %v14728_v32, %v16133_v50 }
 0x677   : > { %7429 = vmatmul.mubr.f32.gmra.mrb[128].mxu0 %v7010_v38  ;;  %v14964_v4 = vpop.permute.xlu0 %6430  ;;  %v7469_v8 = vmax.f32 %v7311_v12, 0.0  ;;  %v10778_v38 = vld [vmem:[#allocation4 + $0x1a7] sm:$0xff]  ;;  %v7471_v61 = vmax.f32 %v7321_v62, 0.0 }
 0x678   : > { %v6557_v37 = vpop.permute.xlu1 %6556  ;;  %v6884_v27 = vsel %vm1210_vm1, %v10778_v38, %v10668_v26  ;;  %v3278_v2 = vmax.f32 %v3244_v6, 0.0  ;;  %v10780_v38 = vld [vmem:[#allocation4 + $0x1c7] sm:$0xff] }
 0x679   : > { %v7043_v44 = vsel %vm590_vm0, %v14899_v47, %v6557_v37  ;;  %7579 = vrot.lane.b32.xlu0 %v3270_v21, %s16094_s0  ;;  %v8197_v47 = vld [vmem:[%s15725_s15 + $0x8] sm:$0xff]  ;;  %v6916_v37 = vsel %vm2661_vm2, %v6884_v27, %v10673_v25 }
 0x67a   : > { %v14975_v20 = vpop.f32.mrb[94].mxu0  ;;  %7585 = vrot.lane.b32.xlu1 %v3273_v7, %s16094_s0  ;;  %v7075_v63 = vsel %vm2825_vm4, %v7043_v44, %v6685_v23  ;;  %v9472_v10 = vpack.c.bf16 %v8197_v47, %v8196_v0  ;;  %v10669_v7 = vunpack.i.h.bf16 %v14918_v11 }
 0x67b   : > { %v7347_v24 = vpop.f32.mrb[95].mxu0  ;;  %v14985_v59 = vpop.permute.xlu0 %10676  ;;  %v7346_v36 = vadd.f32 %v14990_v15, %v14975_v20 }
 0x67c   : > { %v6813_v46 = vpop.permute.xlu1 %6812  ;;  %9473 = vmatprep.subr.bf16.mxu0 %v9472_v10  ;;  %v10678_v60 = vunpack.i.l.bf16 %v14985_v59  ;;  %v6885_v34 = vsel %vm1210_vm1, %v10779_v33, %v10669_v7  ;;  %v10679_v24 = vunpack.i.h.bf16 %v14985_v59 }
 0x67d   : > { %v7107_v42 = vsel %vm2858_vm6, %v7075_v63, %v6813_v46  ;;  %7583 = vrot.lane.b32.xlu0 %v3272_v1, %s16094_s0  ;;  %9475 = vmatpush3.bf16.msra.mxu0 %v9472_v10  ;;  %v10674_v46 = vunpack.i.h.bf16 %v14880_v35  ;;  %v7476_v26 = vmax.f32 %v7346_v36, 0.0 }
 0x67e   : > { %8781 = vmatprep.mubr.msk.f32.mxu0 %vm2925_vm7, %v7107_v42  ;;  %7589 = vrot.lane.b32.xlu1 %v3275_v43, %s16094_s0  ;;  %v6948_v9 = vsel %vm2694_vm3, %v6916_v37, %v10678_v60  ;;  %v7336_v43 = vadd.f32 %v14990_v15, %v14855_v18 }
 0x67f   : > { %7434 = vmatmul.mubr.f32.gmra.mrb[130].mxu0 %v7011_v39  ;;  %v15012_v13 = vpop.permute.xlu0 %10681 }
 0x680   : > { %v15002_v16 = vpop.permute.xlu1 %10691  ;;  %v10683_v32 = vunpack.i.l.bf16 %v15012_v13  ;;  %v10684_v63 = vunpack.i.h.bf16 %v15012_v13  ;;  %v7474_v18 = vmax.f32 %v7336_v43, 0.0 }
 0x681   : > { %7587 = vrot.lane.b32.xlu0 %v3274_v19, %s16094_s0  ;;  %v10693_v60 = vunpack.i.l.bf16 %v15002_v16  ;;  %v10694_v57 = vunpack.i.h.bf16 %v15002_v16 }
 0x682   : > { %7593 = vrot.lane.b32.xlu1 %v3277_v30, %s16094_s0  ;;  %v6980_v40 = vsel %vm2727_vm5, %v6948_v9, %v10683_v32 }
 0x683   : > { %v15021_v55 = vpop.permute.xlu0 %6432  ;;  %v7012_v48 = vsel %vm2760_vm8, %v6980_v40, %v14964_v4 }
 0x684   : > { %v6559_v23 = vpop.permute.xlu1 %6558 }
 0x685   : > { %7591 = vrot.lane.b32.xlu0 %v3276_v29, %s16094_s0  ;;  %v7044_v22 = vsel %vm590_vm0, %v14964_v4, %v6559_v23  ;;  %v6917_v4 = vsel %vm2661_vm2, %v6885_v34, %v10674_v46 }
 0x686   : > { %7661 = vrot.lane.b32.xlu1 %v7469_v8, %s16095_s18  ;;  %v6949_v35 = vsel %vm2694_vm3, %v6917_v4, %v10679_v24 }
 0x687   : > { %v15033_v21 = vpop.permute.xlu0 %10686  ;;  %v6981_v19 = vsel %vm2727_vm5, %v6949_v35, %v10684_v63 }
 0x688   : > { %v6687_v54 = vpop.permute.xlu1 %6686  ;;  %v7013_v10 = vsel %vm2760_vm8, %v6981_v19, %v15021_v55  ;;  %v10688_v6 = vunpack.i.l.bf16 %v15033_v21 }
 0x689   : > { %7595 = vrot.lane.b32.xlu0 %v3278_v2, %s16094_s0  ;;  %v7076_v58 = vsel %vm2825_vm4, %v7044_v22, %v6687_v54  ;;  %v10689_v54 = vunpack.i.h.bf16 %v15033_v21 }
 0x68a   : > { %v7350_v44 = vpop.f32.mrb[96].mxu0  ;;  %7665 = vrot.lane.b32.xlu1 %v7471_v61, %s16095_s18  ;;  %v6886_v27 = vsel %vm1210_vm1, %v10780_v38, %v10688_v6  ;;  %v15124_v38 = vld [vmem:[%s15712_s2] ss:$0 sm:$0xff] }
 0x68b   : > { %v7352_v45 = vpop.f32.mrb[97].mxu0  ;;  %v6689_v1 = vpop.permute.xlu0 %6688  ;;  %v7351_v42 = vadd.f32 %v14990_v15, %v7350_v44  ;;  %v6918_v5 = vsel %vm2661_vm2, %v6886_v27, %v10693_v60  ;;  %v16137_v27 = vld [vmem:[#allocation9_spill] sm:$0xff] }
 0x68c   : > { %v6815_v11 = vpop.permute.xlu1 %6814 }
 0x68d   : > { %v7108_v17 = vsel %vm2858_vm6, %v7076_v58, %v6815_v11  ;;  %7663 = vrot.lane.b32.xlu0 %v7470_v53, %s16095_s18  ;;  %v7477_v30 = vmax.f32 %v7351_v42, 0.0  ;;  %v10781_v58 = vld [vmem:[#allocation4 + $0x1cf] sm:$0xff] }
 0x68e   : > { %8782 = vmatprep.mubr.msk.f32.mxu0 %vm2925_vm7, %v7108_v17  ;;  %7669 = vrot.lane.b32.xlu1 %v7473_v41, %s16095_s18  ;;  %v6887_v45 = vsel %vm1210_vm1, %v10781_v58, %v10689_v54 }
 0x68f   : > { %7439 = vmatmul.mubr.f32.gmra.mrb[132].mxu0 %v7012_v48  ;;  %v6435_v39 = vpop.permute.xlu0 %6434  ;;  %v6919_v24 = vsel %vm2661_vm2, %v6887_v45, %v10694_v57  ;;  %v16139_v57 = vld [vmem:[#allocation93_spill] sm:$0xff] }
 0x690   : > { %v6561_v56 = vpop.permute.xlu1 %6560 }
 0x691   : > { %v7045_v59 = vsel %vm590_vm0, %v15021_v55, %v6561_v56  ;;  %7667 = vrot.lane.b32.xlu0 %v7472_v31, %s16095_s18 }
 0x692   : > { %v7355_v52 = vpop.f32.mrb[98].mxu0  ;;  %7673 = vrot.lane.b32.xlu1 %v7475_v51, %s16095_s18  ;;  %v7077_v47 = vsel %vm2825_vm4, %v7045_v59, %v6689_v1 }
 0x693   : > { %v7357_v49 = vpop.f32.mrb[99].mxu0  ;;  %v10697_v13 = vpop.permute.xlu0 %10696  ;;  %v7356_v20 = vadd.f32 %v14990_v15, %v7355_v52 }
 0x694   : > { %v6817_v0 = vpop.permute.xlu1 %6816  ;;  %v10698_v55 = vunpack.i.l.bf16 %v10697_v13  ;;  %v10699_v21 = vunpack.i.h.bf16 %v10697_v13  ;;  %v16135_v49 = vld [vmem:[#allocation29_spill] sm:$0xff]  ;;  %v16136_v13 = vld [vmem:[#allocation42_spill] sm:$0xff] }
 0x695   : > { %v7109_v12 = vsel %vm2858_vm6, %v7077_v47, %v6817_v0  ;;  %7671 = vrot.lane.b32.xlu0 %v7474_v18, %s16095_s18  ;;  %v7478_v23 = vmax.f32 %v7356_v20, 0.0  ;;  %v16134_v18 = vld [vmem:[#allocation32_spill] sm:$0xff]  ;;  %v10782_v47 = vld [vmem:[#allocation4 + $0x1e7] sm:$0xff] }
 0x696   : > { %8783 = vmatprep.mubr.msk.f32.mxu0 %vm2925_vm7, %v7109_v12  ;;  %7677 = vrot.lane.b32.xlu1 %v7477_v30, %s16095_s18  ;;  %v6950_v61 = vsel %vm2694_vm3, %v6918_v5, %v10698_v55  ;;  %v6951_v48 = vsel %vm2694_vm3, %v6919_v24, %v10699_v21  ;;  %v764_v55 = vadd.f32 %v15124_v38, %v16137_v27  ;;  %v10791_v27 = vld [vmem:[%s11395_s20 + $0x38] sm:$0xff] }
 0x697   : > { %7444 = vmatmul.mubr.f32.gmra.mrb[134].mxu0 %v7013_v10  ;;  %v10702_v50 = vpop.permute.xlu0 %10701 }
 0x698   : > { %v15078_v29 = vpop.permute.xlu1 %10711  ;;  %v10703_v25 = vunpack.i.l.bf16 %v10702_v50  ;;  %v10704_v17 = vunpack.i.h.bf16 %v10702_v50 }
 0x699   : > { %7675 = vrot.lane.b32.xlu0 %v7476_v26, %s16095_s18  ;;  %v10713_v26 = vunpack.i.l.bf16 %v15078_v29  ;;  %v10714_v6 = vunpack.i.h.bf16 %v15078_v29 }
 0x69a   : > { %v6982_v7 = vsel %vm2727_vm5, %v6950_v61, %v10703_v25  ;;  %v6983_v63 = vsel %vm2727_vm5, %v6951_v48, %v10704_v17  ;;  %v784_v17 = vadd.f32 %v15124_v38, %v16139_v57 }
 0x69b   : > { %v6437_v62 = vpop.permute.xlu0 %6436  ;;  %v7014_v41 = vsel %vm2760_vm8, %v6982_v7, %v6435_v39 }
 0x69c   : > { %v6563_v8 = vpop.permute.xlu1 %6562 }
 0x69d   : > { %7679 = vrot.lane.b32.xlu0 %v7478_v23, %s16095_s18  ;;  %v7046_v28 = vsel %vm590_vm0, %v6435_v39, %v6563_v8  ;;  %v7015_v39 = vsel %vm2760_vm8, %v6983_v63, %v6437_v62  ;;  %v16140_v63 = vld [vmem:[#allocation13_spill] sm:$0xff] }
 0x69f   : > { %v10707_v2 = vpop.permute.xlu0 %10706 }
 0x6a0   : > { %v6691_v32 = vpop.permute.xlu1 %6690  ;;  %v10708_v4 = vunpack.i.l.bf16 %v10707_v2  ;;  %v10709_v52 = vunpack.i.h.bf16 %v10707_v2 }
 0x6a1   : > { %v7078_v9 = vsel %vm2825_vm4, %v7046_v28, %v6691_v32  ;;  %v914_v28 = vmax.f32 %v764_v55, 0.0 }
 0x6a2   : > { %v7360_v37 = vpop.f32.mrb[100].mxu0  ;;  %v6888_v30 = vsel %vm1210_vm1, %v10782_v47, %v10708_v4  ;;  %v6889_v20 = vsel %vm1210_vm1, %v14657_v14, %v10709_v52  ;;  %v16141_v52 = vld [vmem:[#allocation96_spill] sm:$0xff] }
 0x6a3   : > { %v7361_v22 = vadd.f32 %v14990_v15, %v7360_v37  ;;  %v7362_v44 = vpop.f32.mrb[101].mxu0  ;;  %v6311_v3 = vpop.permute.xlu0 %6310  ;;  %v6921_v14 = vsel %vm2661_vm2, %v6889_v20, %v10714_v6  ;;  %v16138_v37 = vld [vmem:[#allocation11_spill] sm:$0xff] }
 0x6a4   : > { %v6819_v40 = vpop.permute.xlu1 %6818  ;;  %v774_v7 = vadd.f32 %v15124_v38, %v16138_v37  ;;  %v10793_v37 = vld [vmem:[%s11395_s20 + $0x48] sm:$0xff] }
 0x6a5   : > { %v7110_v53 = vsel %vm2858_vm6, %v7078_v9, %v6819_v40  ;;  %v7479_v11 = vmax.f32 %v7361_v22, 0.0 }
 0x6a6   : > { %8784 = vmatprep.mubr.msk.f32.mxu0 %vm2925_vm7, %v7110_v53 }
 0x6a7   : > { %7449 = vmatmul.mubr.f32.gmra.mrb[136].mxu0 %v7014_v41  ;;  %7681 = vrot.lane.b32.xlu1 %v7479_v11, %s16095_s18  ;;  %v6693_v34 = vpop.permute.xlu0 %6692  ;;  %v916_v41 = vmax.f32 %v774_v7, 0.0 }
 0x6a8   : > { %v6565_v1 = vpop.permute.xlu1 %6564 }
 0x6a9   : > { %v7047_v33 = vsel %vm590_vm0, %v6437_v62, %v6565_v1  ;;  %v6920_v62 = vsel %vm2661_vm2, %v6888_v30, %v10713_v26 }
 0x6aa   : > { %v7365_v46 = vpop.f32.mrb[102].mxu0  ;;  %v7079_v31 = vsel %vm2825_vm4, %v7047_v33, %v6693_v34  ;;  %v10784_v34 = vld [vmem:[%s11395_s20] sm:$0xff] }
 0x6ab   : > { %v7366_v43 = vadd.f32 %v14990_v15, %v7365_v46  ;;  %v7367_v16 = vpop.f32.mrb[103].mxu0  ;;  %v6697_v42 = vpop.permute.xlu0 %6696  ;;  %v918_v46 = vmax.f32 %v784_v17, 0.0 }
 0x6ac   : > { %v6821_v56 = vpop.permute.xlu1 %6820 }
 0x6ad   : > { %v7111_v51 = vsel %vm2858_vm6, %v7079_v31, %v6821_v56  ;;  %v7480_v59 = vmax.f32 %v7366_v43, 0.0  ;;  %v794_v31 = vadd.f32 %v15124_v38, %v16140_v63  ;;  %v10785_v56 = vld [vmem:[%s11395_s20 + $0x8] sm:$0xff]  ;;  %v16147_v63 = vld [vmem:[#allocation7_spill] sm:$0xff] }
 0x6ae   : > { %8785 = vmatprep.mubr.msk.f32.mxu0 %vm2925_vm7, %v7111_v51 }
 0x6af   : > { %7454 = vmatmul.mubr.f32.gmra.mrb[138].mxu0 %v7015_v39  ;;  %7683 = vrot.lane.b32.xlu0 %v7480_v59, %s16095_s18  ;;  %v6439_v19 = vpop.permute.xlu0 %6438  ;;  %v10786_v59 = vld [vmem:[%s11395_s20 + $0x10] sm:$0xff] }
 0x6b0   : > { %v6569_v35 = vpop.permute.xlu1 %6568  ;;  %v7048_v36 = vsel %vm590_vm0, %v6439_v19, %v16134_v18  ;;  %v10787_v18 = vld [vmem:[%s11395_s20 + $0x18] sm:$0xff] }
 0x6b1   : > { %v7080_v0 = vsel %vm2825_vm4, %v7048_v36, %v16135_v49 }
 0x6b2   : > { %v7112_v10 = vsel %vm2858_vm6, %v7080_v0, %v16136_v13  ;;  %v10788_v0 = vld [vmem:[%s11395_s20 + $0x20] sm:$0xff] }
 0x6b3   : > { %v10717_v50 = vpop.permute.xlu0 %10716  ;;  %8786 = vmatprep.mubr.msk.f32.mxu0 %vm2925_vm7, %v7112_v10  ;;  %v10789_v10 = vld [vmem:[%s11395_s20 + $0x28] sm:$0xff] }
 0x6b4   : > { %v6313_v12 = vpop.permute.xlu1 %6312  ;;  %v10719_v23 = vunpack.i.h.bf16 %v10717_v50  ;;  %v10718_v8 = vunpack.i.l.bf16 %v10717_v50  ;;  %v10790_v50 = vld [vmem:[%s11395_s20 + $0x30] sm:$0xff] }
 0x6b6   : > { %v6952_v60 = vsel %vm2694_vm3, %v6920_v62, %v10718_v8  ;;  %v6953_v2 = vsel %vm2694_vm3, %v6921_v14, %v10719_v23  ;;  %v16143_v23 = vld [vmem:[#allocation95_spill] sm:$0xff]  ;;  %v10792_v14 = vld [vmem:[%s11395_s20 + $0x40] sm:$0xff] }
 0x6b7   : > { %v6441_v25 = vpop.permute.xlu0 %6440  ;;  %v6984_v29 = vsel %vm2727_vm5, %v6952_v60, %v6311_v3  ;;  %v6985_v44 = vsel %vm2727_vm5, %v6953_v2, %v6313_v12  ;;  %v16142_v12 = vld [vmem:[#allocation99_spill] sm:$0xff]  ;;  %v809_v8 = vadd.f32 %v15124_v38, %v16143_v23  ;;  %v10800_v23 = vld [vmem:[%s11395_s20 + $0x80] sm:$0xff] }
 0x6b8   : > { %v15130_v32 = vpop.permute.xlu1 %7533  ;;  %v7049_v5 = vsel %vm590_vm0, %v6441_v25, %v6569_v35  ;;  %v7016_v54 = vsel %vm2760_vm8, %v6984_v29, %v6439_v19  ;;  %v7017_v11 = vsel %vm2760_vm8, %v6985_v44, %v6441_v25  ;;  %v920_v35 = vmax.f32 %v794_v31, 0.0 }
 0x6b9   : > { %7459 = vmatmul.mubr.f32.gmra.mrb[140].mxu0 %v7016_v54  ;;  %v7081_v40 = vsel %vm2825_vm4, %v7049_v5, %v6697_v42  ;;  %v804_v19 = vadd.f32 %v15124_v38, %v16141_v52  ;;  %v814_v13 = vadd.f32 %v15124_v38, %v16142_v12  ;;  %v923_v2 = vmax.f32 %v809_v8, 0.0  ;;  %v16144_v5 = vld [vmem:[#allocation100_spill] sm:$0xff]  ;;  %v10798_v52 = vld [vmem:[%s11395_s20 + $0x70] sm:$0xff]  ;;  %v16150_v12 = vld [vmem:[#allocation18_spill] sm:$0xff] }
 0x6ba   : > { %v7370_v61 = vpop.f32.mrb[104].mxu0  ;;  %v926_v54 = vmax.f32 %v16144_v5, 0.0  ;;  %v927_v31 = vmax.f32 %v16147_v63, 0.0  ;;  %v16156_v63 = vld [vmem:[#allocation12_spill] sm:$0xff] }
 0x6bb   : > { %v7371_v9 = vadd.f32 %v14990_v15, %v7370_v61  ;;  %v7372_v22 = vpop.f32.mrb[105].mxu0  ;;  %v6825_v53 = vpop.permute.xlu0 %6824  ;;  %v922_v30 = vmax.f32 %v804_v19, 0.0  ;;  %v924_v62 = vmax.f32 %v814_v13, 0.0  ;;  %v932_v13 = vmax.f32 %v16150_v12, 0.0  ;;  %v16158_v12 = vld [vmem:[#allocation26_spill] sm:$0xff] }
 0x6bc   : > { %v7538_v3 = vpop.permute.xlu1 %7537  ;;  %v7113_v45 = vsel %vm2858_vm6, %v7081_v40, %v6825_v53  ;;  %v10794_v22 = vld [vmem:[%s11395_s20 + $0x50] sm:$0xff] }
 0x6bd   : > { %v7481_v58 = vmax.f32 %v7371_v9, 0.0  ;;  %v15143_v21 = vsel %vm2858_vm6, %v914_v28, %v7538_v3  ;;  %8787 = vmatprep.mubr.msk.f32.mxu0 %vm2925_vm7, %v7113_v45  ;;  %v16145_v3 = vld [vmem:[#allocation97_spill] sm:$0xff] }
 0x6be   : > { %7464 = vmatmul.mubr.f32.gmra.mrb[142].mxu0 %v7017_v11  ;;  %v16146_v45 = vld [vmem:[#allocation101_spill] sm:$0xff] }
 0x6bf   : > { %7685 = vrot.lane.b32.xlu1 %v7481_v58, %s16095_s18  ;;  %v15150_v1 = vpop.permute.xlu0 %7535  ;;  %9279 = vmatprep.mubr.msk.f32.mxu0 %vm590_vm0, %v10784_v34  ;;  %v925_v58 = vmax.f32 %v16145_v3, 0.0  ;;  %v928_v11 = vmax.f32 %v16146_v45, 0.0  ;;  %v10803_v3 = vld [vmem:[%s11395_s20 + $0x98] sm:$0xff] }
 0x6c0   : > { %v7542_v33 = vpop.permute.xlu1 %7541 }
 0x6c1   : > { %v15155_v24 = vsel %vm2858_vm6, %v916_v41, %v7542_v33  ;;  %v10795_v41 = vld [vmem:[%s11395_s20 + $0x58] sm:$0xff]  ;;  %v10796_v33 = vld [vmem:[%s11395_s20 + $0x60] sm:$0xff] }
 0x6c2   : > { %v7375_v48 = vpop.f32.mrb[106].mxu0  ;;  %9280 = vmatmul.mubr.msk.f32.vlgmr.msra.gmra.mrb[144].mxu0 %vm590_vm0, %v10785_v56 }
 0x6c3   : > { %v7376_v43 = vadd.f32 %v14990_v15, %v7375_v48  ;;  %v7377_v16 = vpop.f32.mrb[107].mxu0  ;;  %v15162_v51 = vpop.permute.xlu0 %7539  ;;  %9282 = vmatprep.mubr.msk.f32.mxu0 %vm590_vm0, %v10786_v59  ;;  %v10797_v59 = vld [vmem:[%s11395_s20 + $0x68] sm:$0xff] }
 0x6c4   : > { %v7546_v42 = vpop.permute.xlu1 %7545 }
 0x6c5   : > { %v7482_v39 = vmax.f32 %v7376_v43, 0.0  ;;  %v15167_v4 = vsel %vm2858_vm6, %v918_v46, %v7546_v42  ;;  %v16148_v43 = vld [vmem:[#allocation102_spill] sm:$0xff] }
 0x6c6   : > { %9283 = vmatmul.mubr.msk.f32.gmra.mrb[146].mxu0 %vm590_vm0, %v10787_v18  ;;  %v930_v16 = vmax.f32 %v16148_v43, 0.0 }
 0x6c7   : > { %7687 = vrot.lane.b32.xlu0 %v7482_v39, %s16095_s18  ;;  %v15174_v36 = vpop.permute.xlu0 %7543  ;;  %9285 = vmatprep.mubr.msk.f32.mxu0 %vm590_vm0, %v10788_v0  ;;  %v16149_v0 = vld [vmem:[#allocation8_spill] sm:$0xff] }
 0x6c8   : > { %v7550_v49 = vpop.permute.xlu1 %7549 }
 0x6c9   : > { %v15179_v47 = vsel %vm2858_vm6, %v920_v35, %v7550_v49 }
 0x6ca   : > { %9286 = vmatmul.mubr.msk.f32.gmra.mrb[148].mxu0 %vm590_vm0, %v10789_v10  ;;  %v10799_v10 = vld [vmem:[%s11395_s20 + $0x78] sm:$0xff] }
 0x6cb   : > { %v15185_v26 = vpop.permute.xlu0 %7547  ;;  %9288 = vmatprep.mubr.msk.f32.mxu0 %vm590_vm0, %v10790_v50 }
 0x6cc   : > { %v7554_v20 = vpop.permute.xlu1 %7553 }
 0x6cd   : > { %v15190_v6 = vsel %vm2858_vm6, %v922_v30, %v7554_v20  ;;  %v929_v30 = vmax.f32 %v16149_v0, 0.0  ;;  %v16157_v0 = vld [vmem:[#allocation17_spill] sm:$0xff] }
 0x6ce   : > { %9289 = vmatmul.mubr.msk.f32.gmra.mrb[150].mxu0 %vm590_vm0, %v10791_v27  ;;  %v16151_v27 = vld [vmem:[#allocation14_spill] sm:$0xff] }
 0x6cf   : > { %v15196_v55 = vpop.permute.xlu0 %7551  ;;  %9291 = vmatprep.mubr.msk.f32.mxu0 %vm590_vm0, %v10792_v14  ;;  %v16152_v14 = vld [vmem:[#allocation27_spill] sm:$0xff] }
 0x6d0   : > { %v7558_v60 = vpop.permute.xlu1 %7557 }
 0x6d1   : > { %v15201_v25 = vsel %vm2858_vm6, %v924_v62, %v7558_v60  ;;  %v931_v60 = vmax.f32 %v16151_v27, 0.0 }
 0x6d2   : > { %v7380_v29 = vpop.f32.mrb[108].mxu0  ;;  %9292 = vmatmul.mubr.msk.f32.gmra.mrb[152].mxu0 %vm590_vm0, %v10793_v37 }
 0x6d3   : > { %v7381_v61 = vadd.f32 %v14990_v15, %v7380_v29  ;;  %v7382_v28 = vpop.f32.mrb[109].mxu0  ;;  %v7556_v7 = vpop.permute.xlu0 %7555  ;;  %9294 = vmatprep.mubr.msk.f32.mxu0 %vm590_vm0, %v10794_v22  ;;  %v934_v29 = vmax.f32 %v16152_v14, 0.0  ;;  %v16154_v22 = vld [vmem:[#allocation103_spill] sm:$0xff]  ;;  %v16159_v14 = vld [vmem:[#allocation88_spill] sm:$0xff] }
 0x6d4   : > { %v7562_v9 = vpop.permute.xlu1 %7561  ;;  %v15210_v40 = vsel %vm2858_vm6, %v923_v2, %v7556_v7  ;;  %v10801_v2 = vld [vmem:[%s11395_s20 + $0x88] sm:$0xff]  ;;  %v16153_v7 = vld [vmem:[#allocation16_spill] sm:$0xff] }
 0x6d5   : > { %v7483_v44 = vmax.f32 %v7381_v61, 0.0  ;;  %v15213_v53 = vsel %vm2858_vm6, %v926_v54, %v7562_v9  ;;  %v10802_v61 = vld [vmem:[%s11395_s20 + $0x90] sm:$0xff]  ;;  %v933_v9 = vmax.f32 %v16153_v7, 0.0 }
 0x6d6   : > { %9295 = vmatmul.mubr.msk.f32.gmra.mrb[154].mxu0 %vm590_vm0, %v10795_v41 }
 0x6d7   : > { %7689 = vrot.lane.b32.xlu1 %v7483_v44, %s16095_s18  ;;  %v7560_v57 = vpop.permute.xlu0 %7559  ;;  %9297 = vmatprep.mubr.msk.f32.mxu0 %vm590_vm0, %v10796_v33  ;;  %v936_v44 = vmax.f32 %v16154_v22, 0.0  ;;  %v16155_v33 = vld [vmem:[#allocation6_spill] sm:$0xff] }
 0x6d8   : > { %v7566_v17 = vpop.permute.xlu1 %7565  ;;  %v15223_v34 = vsel %vm2858_vm6, %v925_v58, %v7560_v57 }
 0x6d9   : > { %v15226_v48 = vsel %vm2858_vm6, %v928_v11, %v7566_v17  ;;  %v10804_v11 = vld [vmem:[%s11395_s20 + $0xa0] sm:$0xff] }
 0x6da   : > { %v7385_v46 = vpop.f32.mrb[110].mxu0  ;;  %9298 = vmatmul.mubr.msk.f32.gmra.mrb[156].mxu0 %vm590_vm0, %v10797_v59 }
 0x6db   : > { %v7386_v56 = vadd.f32 %v14990_v15, %v7385_v46  ;;  %v7387_v42 = vpop.f32.mrb[111].mxu0  ;;  %v7564_v39 = vpop.permute.xlu0 %7563  ;;  %9300 = vmatprep.mubr.msk.f32.mxu0 %vm590_vm0, %v10798_v52  ;;  %v935_v46 = vmax.f32 %v16155_v33, 0.0 }
 0x6dc   : > { %v7570_v35 = vpop.permute.xlu1 %7569  ;;  %v15236_v18 = vsel %vm2858_vm6, %v927_v31, %v7564_v39  ;;  %v938_v31 = vmax.f32 %v16156_v63, 0.0  ;;  %v10806_v39 = vld [vmem:[%s11395_s20 + $0xb0] sm:$0xff] }
 0x6dd   : > { %v7484_v19 = vmax.f32 %v7386_v56, 0.0  ;;  %v15239_v49 = vsel %vm2858_vm6, %v930_v16, %v7570_v35  ;;  %v10805_v56 = vld [vmem:[%s11395_s20 + $0xa8] sm:$0xff]  ;;  %v16162_v63 = vld [vmem:[#allocation15_spill] sm:$0xff] }
 0x6de   : > { %9301 = vmatmul.mubr.msk.f32.gmra.mrb[158].mxu0 %vm590_vm0, %v10799_v10  ;;  %v10807_v10 = vld [vmem:[%s11395_s20 + $0xb8] sm:$0xff] }
 0x6df   : > { %7691 = vrot.lane.b32.xlu0 %v7484_v19, %s16095_s18  ;;  %v7568_v20 = vpop.permute.xlu0 %7567  ;;  %9303 = vmatprep.mubr.msk.f32.mxu0 %vm590_vm0, %v10800_v23  ;;  %v10808_v23 = vld [vmem:[%s11395_s20 + $0xc0] sm:$0xff] }
 0x6e0   : > { %v7574_v50 = vpop.permute.xlu1 %7573  ;;  %v15249_v8 = vsel %vm2858_vm6, %v929_v30, %v7568_v20  ;;  %v937_v30 = vmax.f32 %v16157_v0, 0.0  ;;  %v16163_v0 = vld [vmem:[#allocation86_spill] sm:$0xff] }
 0x6e1   : > { %v15252_v62 = vsel %vm2858_vm6, %v932_v13, %v7574_v50  ;;  %v940_v13 = vmax.f32 %v16158_v12, 0.0  ;;  %v16164_v12 = vld [vmem:[#allocation10_spill] sm:$0xff] }
 0x6e2   : > { %9304 = vmatmul.mubr.msk.f32.gmra.mrb[160].mxu0 %vm590_vm0, %v10801_v2 }
 0x6e3   : > { %v7572_v5 = vpop.permute.xlu0 %7571  ;;  %9306 = vmatprep.mubr.msk.f32.mxu0 %vm590_vm0, %v10802_v61  ;;  %v16161_v61 = vld [vmem:[#allocation105_spill] sm:$0xff] }
 0x6e4   : > { %v7578_v54 = vpop.permute.xlu1 %7577  ;;  %v15261_v28 = vsel %vm2858_vm6, %v931_v60, %v7572_v5  ;;  %v16160_v5 = vld [vmem:[#allocation104_spill] sm:$0xff]  ;;  %v942_v7 = vmax.f32 %v16161_v61, 0.0 }
 0x6e5   : > { %v15264_v37 = vsel %vm2858_vm6, %v934_v29, %v7578_v54  ;;  %v754_v29 = vadd.f32 %v15124_v38, %v16159_v14  ;;  %v939_v54 = vmax.f32 %v16160_v5, 0.0  ;;  %v10815_v5 = vld [vmem:[%s11395_s20 + $0xf8] sm:$0xff] }
 0x6e6   : > { %9307 = vmatmul.mubr.msk.f32.gmra.mrb[162].mxu0 %vm590_vm0, %v10803_v3 }
 0x6e7   : > { %v7576_v58 = vpop.permute.xlu0 %7575  ;;  %9309 = vmatprep.mubr.msk.f32.mxu0 %vm590_vm0, %v10804_v11 }
 0x6e8   : > { %v7582_v45 = vpop.permute.xlu1 %7581  ;;  %v15273_v41 = vsel %vm2858_vm6, %v933_v9, %v7576_v58 }
 0x6e9   : > { %v15276_v57 = vsel %vm2858_vm6, %v936_v44, %v7582_v45  ;;  %v10809_v44 = vld [vmem:[%s11395_s20 + $0xc8] sm:$0xff]  ;;  %v10810_v45 = vld [vmem:[%s11395_s20 + $0xd0] sm:$0xff] }
 0x6ea   : > { %v7390_v17 = vpop.f32.mrb[112].mxu0  ;;  %9310 = vmatmul.mubr.msk.f32.gmra.mrb[164].mxu0 %vm590_vm0, %v10805_v56 }
 0x6eb   : > { %v7391_v43 = vadd.f32 %v14990_v15, %v7390_v17  ;;  %v7392_v16 = vpop.f32.mrb[113].mxu0  ;;  %v7580_v42 = vpop.permute.xlu0 %7579  ;;  %9312 = vmatprep.mubr.msk.f32.mxu0 %vm590_vm0, %v10806_v39 }
 0x6ec   : > { %v7586_v59 = vpop.permute.xlu1 %7585  ;;  %v15286_v52 = vsel %vm2858_vm6, %v935_v46, %v7580_v42  ;;  %v912_v46 = vmax.f32 %v754_v29, 0.0  ;;  %v16165_v29 = vld [vmem:[#allocation5_spill] sm:$0xff] }
 0x6ed   : > { %v7485_v35 = vmax.f32 %v7391_v43, 0.0  ;;  %v15289_v19 = vsel %vm2858_vm6, %v938_v31, %v7586_v59  ;;  %v941_v31 = vmax.f32 %v16162_v63, 0.0  ;;  %v10811_v43 = vld [vmem:[%s11395_s20 + $0xd8] sm:$0xff]  ;;  %v10812_v59 = vld [vmem:[%s11395_s20 + $0xe0] sm:$0xff] }
 0x6ee   : > { %9313 = vmatmul.mubr.msk.f32.gmra.mrb[166].mxu0 %vm590_vm0, %v10807_v10  ;;  %v7757_v16 = vsel %vm2858_vm6, %v912_v46, %v15130_v32  ;;  %v10813_v10 = vld [vmem:[%s11395_s20 + $0xe8] sm:$0xff] }
 0x6ef   : > { %7693 = vrot.lane.b32.xlu1 %v7485_v35, %s16095_s18  ;;  %v7584_v20 = vpop.permute.xlu0 %7583  ;;  %9315 = vmatprep.mubr.msk.f32.mxu0 %vm590_vm0, %v10808_v23 }
 0x6f0   : > { %v7590_v50 = vpop.permute.xlu1 %7589  ;;  %v15299_v27 = vsel %vm2858_vm6, %v937_v30, %v7584_v20  ;;  %v759_v30 = vadd.f32 %v15124_v38, %v16163_v0 }
 0x6f1   : > { %v15302_v60 = vsel %vm2858_vm6, %v940_v13, %v7590_v50  ;;  %v943_v13 = vmax.f32 %v16164_v12, 0.0  ;;  %v10814_v50 = vld [vmem:[%s11395_s20 + $0xf0] sm:$0xff] }
 0x6f2   : > { %v7395_v2 = vpop.f32.mrb[114].mxu0  ;;  %9316 = vmatmul.mubr.msk.f32.gmra.mrb[168].mxu0 %vm590_vm0, %v10809_v44  ;;  %v913_v14 = vmax.f32 %v759_v30, 0.0  ;;  %v16166_v44 = vld [vmem:[#allocation90_spill] sm:$0xff]  ;;  %v16168_v12 = vld [vmem:[#allocation19_spill] sm:$0xff] }
 0x6f3   : > { %v7396_v9 = vadd.f32 %v14990_v15, %v7395_v2  ;;  %v7397_v22 = vpop.f32.mrb[115].mxu0  ;;  %v7588_v3 = vpop.permute.xlu0 %7587  ;;  %9318 = vmatprep.mubr.msk.f32.mxu0 %vm590_vm0, %v10810_v45  ;;  %v769_v2 = vadd.f32 %v15124_v38, %v16165_v29 }
 0x6f4   : > { %v7594_v58 = vpop.permute.xlu1 %7593  ;;  %v15314_v17 = vsel %vm2858_vm6, %v939_v54, %v7588_v3  ;;  %v7758_v54 = vsel %vm2858_vm6, %v913_v14, %v15150_v1  ;;  %v779_v3 = vadd.f32 %v15124_v38, %v16166_v44 }
 0x6f5   : > { %v7486_v11 = vmax.f32 %v7396_v9, 0.0  ;;  %v15317_v33 = vsel %vm2858_vm6, %v942_v7, %v7594_v58  ;;  %v915_v22 = vmax.f32 %v769_v2, 0.0 }
 0x6f6   : > { %9319 = vmatmul.mubr.msk.f32.gmra.mrb[170].mxu0 %vm590_vm0, %v10811_v43 }
 0x6f7   : > { %7695 = vrot.lane.b32.xlu0 %v7486_v11, %s16095_s18  ;;  %v7592_v56 = vpop.permute.xlu0 %7591  ;;  %9321 = vmatprep.mubr.msk.f32.mxu0 %vm590_vm0, %v10812_v59  ;;  %v7760_v1 = vsel %vm2858_vm6, %v915_v22, %v15162_v51 }
 0x6f8   : > { %v7662_v42 = vpop.permute.xlu1 %7661  ;;  %v15328_v39 = vsel %vm2858_vm6, %v941_v31, %v7592_v56  ;;  %v917_v56 = vmax.f32 %v779_v3, 0.0 }
 0x6f9   : > { %v7789_v35 = vsel %vm2727_vm5, %v7757_v16, %v7662_v42  ;;  %v16167_v42 = vld [vmem:[#allocation92_spill] sm:$0xff] }
 0x6fa   : > { %9227 = vmatprep.mubr.msk.f32.mxu1 %vm2760_vm8, %v7789_v35  ;;  %9322 = vmatmul.mubr.msk.f32.gmra.mrb[172].mxu0 %vm590_vm0, %v10813_v10  ;;  %v7762_v51 = vsel %vm2858_vm6, %v917_v56, %v15174_v36 }
 0x6fb   : > { %v7596_v32 = vpop.permute.xlu0 %7595  ;;  %9324 = vmatprep.mubr.msk.f32.mxu0 %vm590_vm0, %v10814_v50 }
 0x6fc   : > { %v7666_v20 = vpop.permute.xlu1 %7665  ;;  %v15340_v23 = vsel %vm2858_vm6, %v943_v13, %v7596_v32  ;;  %v799_v13 = vadd.f32 %v15124_v38, %v16168_v12 }
 0x6fd   : > { %v7791_v58 = vsel %vm2727_vm5, %v15143_v21, %v7666_v20  ;;  %v789_v21 = vadd.f32 %v15124_v38, %v16167_v42 }
 0x6fe   : > { %9325 = vmatmul.mubr.msk.f32.gmra.mrb[174].mxu0 %vm590_vm0, %v10815_v5  ;;  %v921_v38 = vmax.f32 %v799_v13, 0.0 }
 0x6ff   : > { %v7664_v61 = vpop.permute.xlu0 %7663  ;;  %v919_v30 = vmax.f32 %v789_v21, 0.0 }
 0x700   : > { %v7670_v7 = vpop.permute.xlu1 %7669  ;;  %v7790_v9 = vsel %vm2727_vm5, %v7758_v54, %v7664_v61  ;;  %v7766_v5 = vsel %vm2858_vm6, %v921_v38, %v15196_v55 }
 0x701   : > { %9228 = vmatmul.mubr.msk.f32.vlgmr.msra.gmra.mrb[144].mxu1 %vm2760_vm8, %v7790_v9  ;;  %v7793_v59 = vsel %vm2727_vm5, %v15155_v24, %v7670_v7  ;;  %v7764_v36 = vsel %vm2858_vm6, %v919_v30, %v15185_v26 }
 0x702   : > { %v7400_v45 = vpop.f32.mrb[116].mxu0  ;;  %9230 = vmatprep.mubr.msk.f32.mxu1 %vm2760_vm8, %v7791_v58 }
 0x703   : > { %v7401_v11 = vadd.f32 %v14990_v15, %v7400_v45  ;;  %v7402_v46 = vpop.f32.mrb[117].mxu0  ;;  %v7668_v63 = vpop.permute.xlu0 %7667 }
 0x704   : > { %v7792_v43 = vsel %vm2727_vm5, %v7760_v1, %v7668_v63  ;;  %v7674_v16 = vpop.permute.xlu1 %7673 }
 0x705   : > { %v7487_v31 = vmax.f32 %v7401_v11, 0.0  ;;  %9231 = vmatmul.mubr.msk.f32.gmra.mrb[146].mxu1 %vm2760_vm8, %v7792_v43  ;;  %v7795_v10 = vsel %vm2727_vm5, %v15167_v4, %v7674_v16 }
 0x706   : > { %9233 = vmatprep.mubr.msk.f32.mxu1 %vm2760_vm8, %v7793_v59 }
 0x707   : > { %7697 = vrot.lane.b32.xlu1 %v7487_v31, %s16095_s18  ;;  %v7672_v35 = vpop.permute.xlu0 %7671 }
 0x708   : > { %v7794_v0 = vsel %vm2727_vm5, %v7762_v51, %v7672_v35  ;;  %v7678_v32 = vpop.permute.xlu1 %7677 }
 0x709   : > { %9234 = vmatmul.mubr.msk.f32.gmra.mrb[148].mxu1 %vm2760_vm8, %v7794_v0  ;;  %v7797_v4 = vsel %vm2727_vm5, %v15179_v47, %v7678_v32 }
 0x70a   : > { %v7405_v24 = vpop.f32.mrb[118].mxu0  ;;  %9236 = vmatprep.mubr.msk.f32.mxu1 %vm2760_vm8, %v7795_v10 }
 0x70b   : > { %v7406_v20 = vadd.f32 %v14990_v15, %v7405_v24  ;;  %v7407_v50 = vpop.f32.mrb[119].mxu0  ;;  %v7676_v14 = vpop.permute.xlu0 %7675 }
 0x70c   : > { %v7796_v2 = vsel %vm2727_vm5, %v7764_v36, %v7676_v14 }
 0x70d   : > { %v7488_v29 = vmax.f32 %v7406_v20, 0.0  ;;  %9237 = vmatmul.mubr.msk.f32.gmra.mrb[150].mxu1 %vm2760_vm8, %v7796_v2 }
 0x70e   : > { %9239 = vmatprep.mubr.msk.f32.mxu1 %vm2760_vm8, %v7797_v4 }
 0x70f   : > { %7699 = vrot.lane.b32.xlu0 %v7488_v29, %s16095_s18  ;;  %v7680_v54 = vpop.permute.xlu0 %7679 }
 0x710   : > { %v7798_v26 = vsel %vm2727_vm5, %v7766_v5, %v7680_v54 }
 0x711   : > { %9240 = vmatmul.mubr.msk.f32.gmra.mrb[152].mxu1 %vm2760_vm8, %v7798_v26 }
 0x719   : > { %v7682_v61 = vpop.permute.xlu1 %7681 }
 0x71a   : > { %v7410_v7 = vpop.f32.mrb[120].mxu0  ;;  %v7799_v9 = vsel %vm2727_vm5, %v15190_v6, %v7682_v61 }
 0x71b   : > { %v7411_v47 = vadd.f32 %v14990_v15, %v7410_v7  ;;  %v7412_v22 = vpop.f32.mrb[121].mxu0  ;;  %9242 = vmatprep.mubr.msk.f32.mxu1 %vm2760_vm8, %v7799_v9 }
 0x71d   : > { %v7489_v44 = vmax.f32 %v7411_v47, 0.0 }
 0x71f   : > { %7701 = vrot.lane.b32.xlu1 %v7489_v44, %s16095_s18 }
 0x721   : > { %v7684_v3 = vpop.permute.xlu0 %7683 }
 0x722   : > { %v7415_v55 = vpop.f32.mrb[122].mxu0  ;;  %v7800_v58 = vsel %vm2727_vm5, %v15210_v40, %v7684_v3 }
 0x723   : > { %v7416_v45 = vadd.f32 %v14990_v15, %v7415_v55  ;;  %v7417_v11 = vpop.f32.mrb[123].mxu0  ;;  %9243 = vmatmul.mubr.msk.f32.gmra.mrb[154].mxu1 %vm2760_vm8, %v7800_v58 }
 0x725   : > { %v7490_v46 = vmax.f32 %v7416_v45, 0.0 }
 0x727   : > { %7703 = vrot.lane.b32.xlu0 %v7490_v46, %s16095_s18 }
 0x731   : > { %v7686_v6 = vpop.permute.xlu1 %7685 }
 0x732   : > { %v7420_v1 = vpop.f32.mrb[124].mxu0  ;;  %v7801_v63 = vsel %vm2727_vm5, %v15201_v25, %v7686_v6 }
 0x733   : > { %v7421_v31 = vadd.f32 %v14990_v15, %v7420_v1  ;;  %v7422_v43 = vpop.f32.mrb[125].mxu0  ;;  %9245 = vmatprep.mubr.msk.f32.mxu1 %vm2760_vm8, %v7801_v63 }
 0x735   : > { %v7491_v16 = vmax.f32 %v7421_v31, 0.0 }
 0x737   : > { %7705 = vrot.lane.b32.xlu1 %v7491_v16, %s16095_s18 }
 0x739   : > { %v7688_v40 = vpop.permute.xlu0 %7687 }
 0x73a   : > { %v7425_v56 = vpop.f32.mrb[126].mxu0  ;;  %v7802_v42 = vsel %vm2727_vm5, %v15223_v34, %v7688_v40 }
 0x73b   : > { %v7426_v21 = vadd.f32 %v14990_v15, %v7425_v56  ;;  %v7427_v59 = vpop.f32.mrb[127].mxu0  ;;  %9246 = vmatmul.mubr.msk.f32.gmra.mrb[156].mxu1 %vm2760_vm8, %v7802_v42 }
 0x73d   : > { %v7492_v51 = vmax.f32 %v7426_v21, 0.0 }
 0x73f   : > { %7707 = vrot.lane.b32.xlu0 %v7492_v51, %s16095_s18 }
 0x749   : > { %v7690_v25 = vpop.permute.xlu1 %7689 }
 0x74a   : > { %v7430_v35 = vpop.f32.mrb[128].mxu0  ;;  %v7803_v0 = vsel %vm2727_vm5, %v15213_v53, %v7690_v25 }
 0x74b   : > { %v7431_v30 = vadd.f32 %v14990_v15, %v7430_v35  ;;  %v7432_v12 = vpop.f32.mrb[129].mxu0  ;;  %9248 = vmatprep.mubr.msk.f32.mxu1 %vm2760_vm8, %v7803_v0 }
 0x74d   : > { %v7493_v13 = vmax.f32 %v7431_v30, 0.0 }
 0x74f   : > { %7709 = vrot.lane.b32.xlu1 %v7493_v13, %s16095_s18 }
 0x751   : > { %v7692_v34 = vpop.permute.xlu0 %7691 }
 0x752   : > { %v7435_v10 = vpop.f32.mrb[130].mxu0  ;;  %v7804_v24 = vsel %vm2727_vm5, %v15236_v18, %v7692_v34 }
 0x753   : > { %v7436_v32 = vadd.f32 %v14990_v15, %v7435_v10  ;;  %v7437_v20 = vpop.f32.mrb[131].mxu0  ;;  %9249 = vmatmul.mubr.msk.f32.gmra.mrb[158].mxu1 %vm2760_vm8, %v7804_v24 }
 0x755   : > { %v7494_v50 = vmax.f32 %v7436_v32, 0.0 }
 0x757   : > { %7711 = vrot.lane.b32.xlu0 %v7494_v50, %s16095_s18 }
 0x761   : > { %v7694_v53 = vpop.permute.xlu1 %7693 }
 0x762   : > { %v7440_v36 = vpop.f32.mrb[132].mxu0  ;;  %v7805_v14 = vsel %vm2727_vm5, %v15226_v48, %v7694_v53 }
 0x763   : > { %v7441_v29 = vadd.f32 %v14990_v15, %v7440_v36  ;;  %v7442_v2 = vpop.f32.mrb[133].mxu0  ;;  %9251 = vmatprep.mubr.msk.f32.mxu1 %vm2760_vm8, %v7805_v14 }
 0x765   : > { %v7495_v38 = vmax.f32 %v7441_v29, 0.0 }
 0x767   : > { %7713 = vrot.lane.b32.xlu1 %v7495_v38, %s16095_s18 }
 0x769   : > { %v7696_v18 = vpop.permute.xlu0 %7695 }
 0x76a   : > { %v7445_v4 = vpop.f32.mrb[134].mxu0  ;;  %v7806_v5 = vsel %vm2727_vm5, %v15249_v8, %v7696_v18  ;;  %v15491_v18 = vld [vmem:[%s15724_s14] ss:$0 sm:$0xff] }
 0x76b   : > { %v7446_v54 = vadd.f32 %v14990_v15, %v7445_v4  ;;  %v7447_v26 = vpop.f32.mrb[135].mxu0  ;;  %9252 = vmatmul.mubr.msk.f32.gmra.mrb[160].mxu1 %vm2760_vm8, %v7806_v5 }
 0x76d   : > { %v7496_v61 = vmax.f32 %v7446_v54, 0.0 }
 0x76f   : > { %7715 = vrot.lane.b32.xlu0 %v7496_v61, %s16095_s18 }
 0x779   : > { %v7698_v48 = vpop.permute.xlu1 %7697 }
 0x77a   : > { %v7450_v7 = vpop.f32.mrb[136].mxu0  ;;  %v7807_v9 = vsel %vm2727_vm5, %v15239_v49, %v7698_v48 }
 0x77b   : > { %v7451_v47 = vadd.f32 %v14990_v15, %v7450_v7  ;;  %v7452_v22 = vpop.f32.mrb[137].mxu0  ;;  %9254 = vmatprep.mubr.msk.f32.mxu1 %vm2760_vm8, %v7807_v9 }
 0x77d   : > { %v7497_v44 = vmax.f32 %v7451_v47, 0.0 }
 0x77f   : > { %7717 = vrot.lane.b32.xlu1 %v7497_v44, %s16095_s18 }
 0x781   : > { %v7700_v8 = vpop.permute.xlu0 %7699 }
 0x782   : > { %v7455_v3 = vpop.f32.mrb[138].mxu0  ;;  %v7808_v55 = vsel %vm2727_vm5, %v15261_v28, %v7700_v8 }
 0x783   : > { %v7456_v58 = vadd.f32 %v14990_v15, %v7455_v3  ;;  %v7457_v45 = vpop.f32.mrb[139].mxu0  ;;  %9255 = vmatmul.mubr.msk.f32.gmra.mrb[162].mxu1 %vm2760_vm8, %v7808_v55 }
 0x785   : > { %v7498_v11 = vmax.f32 %v7456_v58, 0.0 }
 0x787   : > { %7719 = vrot.lane.b32.xlu0 %v7498_v11, %s16095_s18 }
 0x78c   : > { %v7460_v49 = vpop.f32.mrb[140].mxu0 }
 0x78d   : > { %v7461_v46 = vadd.f32 %v14990_v15, %v7460_v49  ;;  %v7462_v6 = vpop.f32.mrb[141].mxu0 }
 0x78f   : > { %v7499_v1 = vmax.f32 %v7461_v46, 0.0 }
 0x791   : > { %v7702_v63 = vpop.permute.xlu1 %7701  ;;  %v7465_v43 = vpop.f32.mrb[142].mxu0  ;;  %7721 = vrot.lane.b32.xlu1 %v7499_v1, %s16095_s18 }
 0x792   : > { %v7809_v31 = vsel %vm2727_vm5, %v15252_v62, %v7702_v63  ;;  %v7466_v28 = vadd.f32 %v14990_v15, %v7465_v43  ;;  %v7467_v16 = vpop.f32.mrb[143].mxu0 }
 0x793   : > { %9257 = vmatprep.mubr.msk.f32.mxu1 %vm2760_vm8, %v7809_v31 }
 0x794   : > { %v7500_v40 = vmax.f32 %v7466_v28, 0.0 }
 0x795   : > { %v9281_v56 = vpop.f32.mrb[144].mxu0 }
 0x796   : > { %7723 = vrot.lane.b32.xlu0 %v7500_v40, %s16095_s18  ;;  %v8264_v42 = vpop.f32.mrb[145].mxu0 }
 0x799   : > { %v7704_v21 = vpop.permute.xlu0 %7703  ;;  %v9284_v62 = vpop.f32.mrb[146].mxu0 }
 0x79a   : > { %v7810_v59 = vsel %vm2727_vm5, %v15273_v41, %v7704_v21  ;;  %v8274_v51 = vpop.f32.mrb[147].mxu0 }
 0x79b   : > { %9258 = vmatmul.mubr.msk.f32.gmra.mrb[164].mxu1 %vm2760_vm8, %v7810_v59 }
 0x79d   : > { %v15448_v25 = vpop.f32.mrb[148].mxu0 }
 0x79e   : > { %v15450_v35 = vpop.f32.mrb[149].mxu0 }
 0x7a1   : > { %v15452_v0 = vpop.f32.mrb[150].mxu0 }
 0x7a2   : > { %v15454_v15 = vpop.f32.mrb[151].mxu0 }
 0x7a5   : > { %v15456_v30 = vpop.f32.mrb[152].mxu0 }
 0x7a6   : > { %v15458_v12 = vpop.f32.mrb[153].mxu0 }
 0x7a9   : > { %v7706_v13 = vpop.permute.xlu1 %7705  ;;  %v15463_v34 = vpop.f32.mrb[154].mxu0 }
 0x7aa   : > { %v7811_v41 = vsel %vm2727_vm5, %v15264_v37, %v7706_v13  ;;  %v15465_v10 = vpop.f32.mrb[155].mxu0 }
 0x7ab   : > { %9260 = vmatprep.mubr.msk.f32.mxu1 %vm2760_vm8, %v7811_v41 }
 0x7ad   : > { %v15467_v24 = vpop.f32.mrb[156].mxu0 }
 0x7ae   : > { %v15469_v32 = vpop.f32.mrb[157].mxu0 }
 0x7b1   : > { %v7708_v20 = vpop.permute.xlu0 %7707  ;;  %v15474_v53 = vpop.f32.mrb[158].mxu0 }
 0x7b2   : > { %v7812_v50 = vsel %vm2727_vm5, %v15286_v52, %v7708_v20  ;;  %v15476_v36 = vpop.f32.mrb[159].mxu0 }
 0x7b3   : > { %9261 = vmatmul.mubr.msk.f32.gmra.mrb[166].mxu1 %vm2760_vm8, %v7812_v50 }
 0x7b5   : > { %v15481_v29 = vpop.f32.mrb[160].mxu0 }
 0x7b6   : > { %v15483_v2 = vpop.f32.mrb[161].mxu0 }
 0x7b9   : > { %v15504_v8 = vpop.f32.mrb[162].mxu0 }
 0x7ba   : > { %v15514_v55 = vpop.f32.mrb[163].mxu0 }
 0x7c1   : > { %v7710_v37 = vpop.permute.xlu1 %7709 }
 0x7c2   : > { %v7813_v14 = vsel %vm2727_vm5, %v15276_v57, %v7710_v37 }
 0x7c3   : > { %9263 = vmatprep.mubr.msk.f32.mxu1 %vm2760_vm8, %v7813_v14 }
 0x7c9   : > { %v7712_v38 = vpop.permute.xlu0 %7711 }
 0x7ca   : > { %v7814_v52 = vsel %vm2727_vm5, %v15299_v27, %v7712_v38  ;;  %v15498_v27 = vld [vmem:[%s15726_s16] ss:$0 sm:$0xff] }
 0x7cb   : > { %9264 = vmatmul.mubr.msk.f32.gmra.mrb[168].mxu1 %vm2760_vm8, %v7814_v52 }
 0x7d4   : > { %v9229_v4 = vpop.f32.mrb[144].mxu1 }
 0x7d5   : > { %v8011_v57 = vadd.f32 %v9229_v4, %v15491_v18  ;;  %v8005_v5 = vpop.f32.mrb[145].mxu1 }
 0x7d6   : > { %v8006_v54 = vadd.f32 %v15491_v18, %v8005_v5 }
 0x7d7   : > { %v8165_v26 = vmax.f32 %v8011_v57, 0.0 }
 0x7d8   : > { %v8164_v48 = vmax.f32 %v8006_v54, 0.0  ;;  %v9232_v9 = vpop.f32.mrb[146].mxu1 }
 0x7d9   : > { %v7714_v61 = vpop.permute.xlu1 %7713  ;;  %v8424_v47 = vadd.f32 %v9281_v56, %v8165_v26  ;;  %v8021_v22 = vadd.f32 %v9232_v9, %v15491_v18  ;;  %v8015_v44 = vpop.f32.mrb[147].mxu1 }
 0x7da   : > { %v7815_v7 = vsel %vm2727_vm5, %v15289_v19, %v7714_v61  ;;  %v8016_v3 = vadd.f32 %v15491_v18, %v8015_v44  ;;  %v8423_v19 = vadd.f32 %v8264_v42, %v8164_v48 }
 0x7db   : > { %9266 = vmatprep.mubr.msk.f32.mxu1 %vm2760_vm8, %v7815_v7  ;;  %v8463_v58 = vadd.f32 %v15498_v27, %v8424_v47  ;;  %v8167_v45 = vmax.f32 %v8021_v22, 0.0  ;;  %v15563_v22 = vpop.f32.mrb[164].mxu0 }
 0x7dc   : > { %v8166_v11 = vmax.f32 %v8016_v3, 0.0  ;;  %v8462_v49 = vadd.f32 %v15498_v27, %v8423_v19  ;;  %v9235_v46 = vpop.f32.mrb[148].mxu1 }
 0x7dd   : > { %8495 = vst.msk [vmem:[%s15511_s22 + $0x8] sm:$0xff] %vm2858_vm6, %v8463_v58  ;;  %v8031_v6 = vadd.f32 %v9235_v46, %v15491_v18  ;;  %v8426_v1 = vadd.f32 %v9284_v62, %v8167_v45  ;;  %v8025_v63 = vpop.f32.mrb[149].mxu1 }
 0x7de   : > { %8494 = vst.msk [vmem:[%s15511_s22] sm:$0xff] %vm2858_vm6, %v8462_v49  ;;  %v8026_v31 = vadd.f32 %v15491_v18, %v8025_v63  ;;  %v8425_v43 = vadd.f32 %v8274_v51, %v8166_v11 }
 0x7df   : > { %v8169_v28 = vmax.f32 %v8031_v6, 0.0  ;;  %v8465_v16 = vadd.f32 %v15498_v27, %v8426_v1 }
 0x7e0   : > { %v8168_v56 = vmax.f32 %v8026_v31, 0.0  ;;  %v8464_v42 = vadd.f32 %v15498_v27, %v8425_v43  ;;  %v9238_v59 = vpop.f32.mrb[150].mxu1 }
 0x7e1   : > { %v7716_v40 = vpop.permute.xlu0 %7715  ;;  %8497 = vst.msk [vmem:[%s15511_s22 + $0x18] sm:$0xff] %vm2858_vm6, %v8465_v16  ;;  %v8428_v62 = vadd.f32 %v15448_v25, %v8169_v28  ;;  %v8041_v13 = vadd.f32 %v9238_v59, %v15491_v18  ;;  %v8035_v51 = vpop.f32.mrb[151].mxu1 }
 0x7e2   : > { %v7816_v21 = vsel %vm2727_vm5, %v15314_v17, %v7716_v40  ;;  %8496 = vst.msk [vmem:[%s15511_s22 + $0x10] sm:$0xff] %vm2858_vm6, %v8464_v42  ;;  %v8036_v41 = vadd.f32 %v15491_v18, %v8035_v51  ;;  %v8427_v20 = vadd.f32 %v15450_v35, %v8168_v56 }
 0x7e3   : > { %9267 = vmatmul.mubr.msk.f32.gmra.mrb[170].mxu1 %vm2760_vm8, %v7816_v21  ;;  %v8467_v50 = vadd.f32 %v15498_v27, %v8428_v62  ;;  %v8171_v17 = vmax.f32 %v8041_v13, 0.0 }
 0x7e4   : > { %v8170_v37 = vmax.f32 %v8036_v41, 0.0  ;;  %v8466_v25 = vadd.f32 %v15498_v27, %v8427_v20  ;;  %v9241_v14 = vpop.f32.mrb[152].mxu1 }
 0x7e5   : > { %8499 = vst.msk [vmem:[%s15511_s22 + $0x28] sm:$0xff] %vm2858_vm6, %v8467_v50  ;;  %v8051_v38 = vadd.f32 %v9241_v14, %v15491_v18  ;;  %v8430_v52 = vadd.f32 %v15452_v0, %v8171_v17  ;;  %v8045_v4 = vpop.f32.mrb[153].mxu1 }
 0x7e6   : > { %8498 = vst.msk [vmem:[%s15511_s22 + $0x20] sm:$0xff] %vm2858_vm6, %v8466_v25  ;;  %v8046_v35 = vadd.f32 %v15491_v18, %v8045_v4  ;;  %v8429_v57 = vadd.f32 %v15454_v15, %v8170_v37 }
 0x7e7   : > { %v8173_v5 = vmax.f32 %v8051_v38, 0.0  ;;  %v8469_v54 = vadd.f32 %v15498_v27, %v8430_v52 }
 0x7e8   : > { %v8172_v26 = vmax.f32 %v8046_v35, 0.0  ;;  %v8468_v61 = vadd.f32 %v15498_v27, %v8429_v57 }
 0x7e9   : > { %8501 = vst.msk [vmem:[%s15511_s22 + $0x38] sm:$0xff] %vm2858_vm6, %v8469_v54  ;;  %v8432_v48 = vadd.f32 %v15456_v30, %v8173_v5  ;;  %v15566_v30 = vpop.f32.mrb[165].mxu0 }
 0x7ea   : > { %8500 = vst.msk [vmem:[%s15511_s22 + $0x30] sm:$0xff] %vm2858_vm6, %v8468_v61  ;;  %v8431_v0 = vadd.f32 %v15458_v12, %v8172_v26 }
 0x7eb   : > { %v8471_v7 = vadd.f32 %v15498_v27, %v8432_v48 }
 0x7ec   : > { %v8470_v9 = vadd.f32 %v15498_v27, %v8431_v0 }
 0x7ed   : > { %8503 = vst.msk [vmem:[%s15511_s22 + $0x48] sm:$0xff] %vm2858_vm6, %v8471_v7 }
 0x7ee   : > { %8502 = vst.msk [vmem:[%s15511_s22 + $0x40] sm:$0xff] %vm2858_vm6, %v8470_v9 }
 0x7f1   : > { %v7718_v15 = vpop.permute.xlu1 %7717 }
 0x7f2   : > { %v7817_v47 = vsel %vm2727_vm5, %v15302_v60, %v7718_v15 }
 0x7f3   : > { %9269 = vmatprep.mubr.msk.f32.mxu1 %vm2760_vm8, %v7817_v47 }
 0x7f6   : > { %v9244_v12 = vpop.f32.mrb[154].mxu1 }
 0x7f7   : > { %v8061_v44 = vadd.f32 %v9244_v12, %v15491_v18  ;;  %v8055_v3 = vpop.f32.mrb[155].mxu1 }
 0x7f8   : > { %v8056_v19 = vadd.f32 %v15491_v18, %v8055_v3 }
 0x7f9   : > { %v7720_v58 = vpop.permute.xlu0 %7719  ;;  %v8175_v45 = vmax.f32 %v8061_v44, 0.0 }
 0x7fa   : > { %v7818_v11 = vsel %vm2727_vm5, %v15328_v39, %v7720_v58  ;;  %v8174_v60 = vmax.f32 %v8056_v19, 0.0 }
 0x7fb   : > { %9270 = vmatmul.mubr.msk.f32.gmra.mrb[172].mxu1 %vm2760_vm8, %v7818_v11  ;;  %v8434_v49 = vadd.f32 %v15463_v34, %v8175_v45  ;;  %v15584_v34 = vpop.f32.mrb[166].mxu0 }
 0x7fc   : > { %v8433_v46 = vadd.f32 %v15465_v10, %v8174_v60  ;;  %v15589_v43 = vpop.f32.mrb[167].mxu0 }
 0x7fd   : > { %v8473_v6 = vadd.f32 %v15498_v27, %v8434_v49  ;;  %v15601_v13 = vpop.f32.mrb[168].mxu0 }
 0x7fe   : > { %v8472_v1 = vadd.f32 %v15498_v27, %v8433_v46  ;;  %v15603_v51 = vpop.f32.mrb[169].mxu0 }
 0x7ff   : > { %8505 = vst.msk [vmem:[%s15511_s22 + $0x58] sm:$0xff] %vm2858_vm6, %v8473_v6  ;;  %v15615_v52 = vpop.f32.mrb[170].mxu0 }
 0x800   : > { %8504 = vst.msk [vmem:[%s15511_s22 + $0x50] sm:$0xff] %vm2858_vm6, %v8472_v1  ;;  %v15617_v4 = vpop.f32.mrb[171].mxu0 }
 0x801   : > { %v15629_v7 = vpop.f32.mrb[172].mxu0 }
 0x802   : > { %v15631_v9 = vpop.f32.mrb[173].mxu0 }
 0x803   : > { %v7722_v63 = vpop.permute.xlu1 %7721  ;;  %v15643_v11 = vpop.f32.mrb[174].mxu0 }
 0x804   : > { %v7819_v31 = vsel %vm2727_vm5, %v15317_v33, %v7722_v63  ;;  %v15645_v60 = vpop.f32.mrb[175].mxu0 }
 0x805   : > { %9272 = vmatprep.mubr.msk.f32.mxu1 %vm2760_vm8, %v7819_v31 }
 0x808   : > { %v7724_v39 = vpop.permute.xlu0 %7723 }
 0x809   : > { %v7820_v10 = vsel %vm2727_vm5, %v15340_v23, %v7724_v39 }
 0x80a   : > { %9273 = vmatmul.mubr.msk.f32.gmra.mrb[174].mxu1 %vm2760_vm8, %v7820_v10 }
 0x80e   : > { %v9247_v28 = vpop.f32.mrb[156].mxu1 }
 0x80f   : > { %v8071_v16 = vadd.f32 %v9247_v28, %v15491_v18  ;;  %v8065_v40 = vpop.f32.mrb[157].mxu1 }
 0x810   : > { %v8066_v33 = vadd.f32 %v15491_v18, %v8065_v40 }
 0x811   : > { %v8177_v56 = vmax.f32 %v8071_v16, 0.0 }
 0x812   : > { %v8176_v42 = vmax.f32 %v8066_v33, 0.0 }
 0x813   : > { %v8436_v21 = vadd.f32 %v15467_v24, %v8177_v56 }
 0x814   : > { %v8435_v59 = vadd.f32 %v15469_v32, %v8176_v42 }
 0x815   : > { %v8475_v62 = vadd.f32 %v15498_v27, %v8436_v21 }
 0x816   : > { %v8474_v23 = vadd.f32 %v15498_v27, %v8435_v59 }
 0x817   : > { %8507 = vst.msk [vmem:[%s15511_s22 + $0x68] sm:$0xff] %vm2858_vm6, %v8475_v62 }
 0x818   : > { %8506 = vst.msk [vmem:[%s15511_s22 + $0x60] sm:$0xff] %vm2858_vm6, %v8474_v23 }
 0x826   : > { %v9250_v41 = vpop.f32.mrb[158].mxu1 }
 0x827   : > { %v8081_v20 = vadd.f32 %v9250_v41, %v15491_v18  ;;  %v8075_v24 = vpop.f32.mrb[159].mxu1 }
 0x828   : > { %v8076_v32 = vadd.f32 %v15491_v18, %v8075_v24 }
 0x829   : > { %v8179_v50 = vmax.f32 %v8081_v20, 0.0 }
 0x82a   : > { %v8178_v17 = vmax.f32 %v8076_v32, 0.0 }
 0x82b   : > { %v8438_v37 = vadd.f32 %v15474_v53, %v8179_v50 }
 0x82c   : > { %v8437_v25 = vadd.f32 %v15476_v36, %v8178_v17 }
 0x82d   : > { %v8477_v14 = vadd.f32 %v15498_v27, %v8438_v37 }
 0x82e   : > { %v8476_v38 = vadd.f32 %v15498_v27, %v8437_v25 }
 0x82f   : > { %8509 = vst.msk [vmem:[%s15511_s22 + $0x78] sm:$0xff] %vm2858_vm6, %v8477_v14 }
 0x830   : > { %8508 = vst.msk [vmem:[%s15511_s22 + $0x70] sm:$0xff] %vm2858_vm6, %v8476_v38 }
 0x83e   : > { %v9253_v35 = vpop.f32.mrb[160].mxu1 }
 0x83f   : > { %v8091_v57 = vadd.f32 %v9253_v35, %v15491_v18  ;;  %v8085_v53 = vpop.f32.mrb[161].mxu1 }
 0x840   : > { %v8086_v36 = vadd.f32 %v15491_v18, %v8085_v53 }
 0x841   : > { %v8181_v5 = vmax.f32 %v8091_v57, 0.0 }
 0x842   : > { %v8180_v54 = vmax.f32 %v8086_v36, 0.0 }
 0x843   : > { %v8440_v26 = vadd.f32 %v15481_v29, %v8181_v5 }
 0x844   : > { %v8439_v61 = vadd.f32 %v15483_v2, %v8180_v54 }
 0x845   : > { %v8479_v48 = vadd.f32 %v15498_v27, %v8440_v26 }
 0x846   : > { %v8478_v0 = vadd.f32 %v15498_v27, %v8439_v61 }
 0x847   : > { %8511 = vst.msk [vmem:[%s15511_s22 + $0x88] sm:$0xff] %vm2858_vm6, %v8479_v48 }
 0x848   : > { %8510 = vst.msk [vmem:[%s15511_s22 + $0x80] sm:$0xff] %vm2858_vm6, %v8478_v0 }
 0x856   : > { %v9256_v15 = vpop.f32.mrb[162].mxu1 }
 0x857   : > { %v8101_v47 = vadd.f32 %v9256_v15, %v15491_v18  ;;  %v8095_v29 = vpop.f32.mrb[163].mxu1 }
 0x858   : > { %v8096_v2 = vadd.f32 %v15491_v18, %v8095_v29 }
 0x859   : > { %v8183_v12 = vmax.f32 %v8101_v47, 0.0 }
 0x85a   : > { %v8182_v44 = vmax.f32 %v8096_v2, 0.0 }
 0x85b   : > { %v8442_v3 = vadd.f32 %v15504_v8, %v8183_v12 }
 0x85c   : > { %v8441_v19 = vadd.f32 %v15514_v55, %v8182_v44 }
 0x85d   : > { %v8481_v58 = vadd.f32 %v15498_v27, %v8442_v3 }
 0x85e   : > { %v8480_v45 = vadd.f32 %v15498_v27, %v8441_v19 }
 0x85f   : > { %8513 = vst.msk [vmem:[%s15511_s22 + $0x98] sm:$0xff] %vm2858_vm6, %v8481_v58 }
 0x860   : > { %8512 = vst.msk [vmem:[%s15511_s22 + $0x90] sm:$0xff] %vm2858_vm6, %v8480_v45 }
 0x86e   : > { %v9259_v49 = vpop.f32.mrb[164].mxu1 }
 0x86f   : > { %v8111_v46 = vadd.f32 %v9259_v49, %v15491_v18  ;;  %v8105_v8 = vpop.f32.mrb[165].mxu1 }
 0x870   : > { %v8106_v55 = vadd.f32 %v15491_v18, %v8105_v8 }
 0x871   : > { %v8185_v6 = vmax.f32 %v8111_v46, 0.0 }
 0x872   : > { %v8184_v1 = vmax.f32 %v8106_v55, 0.0 }
 0x873   : > { %v8444_v63 = vadd.f32 %v15563_v22, %v8185_v6 }
 0x874   : > { %v8443_v31 = vadd.f32 %v15566_v30, %v8184_v1 }
 0x875   : > { %v8483_v39 = vadd.f32 %v15498_v27, %v8444_v63 }
 0x876   : > { %v8482_v10 = vadd.f32 %v15498_v27, %v8443_v31 }
 0x877   : > { %8515 = vst.msk [vmem:[%s15511_s22 + $0xa8] sm:$0xff] %vm2858_vm6, %v8483_v39 }
 0x878   : > { %8514 = vst.msk [vmem:[%s15511_s22 + $0xa0] sm:$0xff] %vm2858_vm6, %v8482_v10 }
 0x886   : > { %v9262_v28 = vpop.f32.mrb[166].mxu1 }
 0x887   : > { %v8121_v16 = vadd.f32 %v9262_v28, %v15491_v18  ;;  %v8115_v40 = vpop.f32.mrb[167].mxu1 }
 0x888   : > { %v8116_v33 = vadd.f32 %v15491_v18, %v8115_v40 }
 0x889   : > { %v8187_v56 = vmax.f32 %v8121_v16, 0.0 }
 0x88a   : > { %v8186_v22 = vmax.f32 %v8116_v33, 0.0 }
 0x88b   : > { %v8446_v42 = vadd.f32 %v15584_v34, %v8187_v56 }
 0x88c   : > { %v8445_v30 = vadd.f32 %v15589_v43, %v8186_v22 }
 0x88d   : > { %v8485_v21 = vadd.f32 %v15498_v27, %v8446_v42 }
 0x88e   : > { %v8484_v59 = vadd.f32 %v15498_v27, %v8445_v30 }
 0x88f   : > { %8517 = vst.msk [vmem:[%s15511_s22 + $0xb8] sm:$0xff] %vm2858_vm6, %v8485_v21 }
 0x890   : > { %8516 = vst.msk [vmem:[%s15511_s22 + $0xb0] sm:$0xff] %vm2858_vm6, %v8484_v59 }
 0x89e   : > { %v9265_v62 = vpop.f32.mrb[168].mxu1 }
 0x89f   : > { %v8131_v23 = vadd.f32 %v9265_v62, %v15491_v18  ;;  %v8125_v41 = vpop.f32.mrb[169].mxu1 }
 0x8a0   : > { %v8126_v20 = vadd.f32 %v15491_v18, %v8125_v41 }
 0x8a1   : > { %v8189_v24 = vmax.f32 %v8131_v23, 0.0 }
 0x8a2   : > { %v8188_v34 = vmax.f32 %v8126_v20, 0.0 }
 0x8a3   : > { %v8448_v32 = vadd.f32 %v15601_v13, %v8189_v24 }
 0x8a4   : > { %v8447_v43 = vadd.f32 %v15603_v51, %v8188_v34 }
 0x8a5   : > { %v8487_v50 = vadd.f32 %v15498_v27, %v8448_v32 }
 0x8a6   : > { %v8486_v17 = vadd.f32 %v15498_v27, %v8447_v43 }
 0x8a7   : > { %8519 = vst.msk [vmem:[%s15511_s22 + $0xc8] sm:$0xff] %vm2858_vm6, %v8487_v50 }
 0x8a8   : > { %8518 = vst.msk [vmem:[%s15511_s22 + $0xc0] sm:$0xff] %vm2858_vm6, %v8486_v17 }
 0x8b6   : > { %v9268_v37 = vpop.f32.mrb[170].mxu1 }
 0x8b7   : > { %v8141_v25 = vadd.f32 %v9268_v37, %v15491_v18  ;;  %v8135_v14 = vpop.f32.mrb[171].mxu1 }
 0x8b8   : > { %v8136_v38 = vadd.f32 %v15491_v18, %v8135_v14 }
 0x8b9   : > { %v8191_v35 = vmax.f32 %v8141_v25, 0.0 }
 0x8ba   : > { %v8190_v13 = vmax.f32 %v8136_v38, 0.0 }
 0x8bb   : > { %v8450_v57 = vadd.f32 %v15615_v52, %v8191_v35 }
 0x8bc   : > { %v8449_v51 = vadd.f32 %v15617_v4, %v8190_v13 }
 0x8bd   : > { %v8489_v53 = vadd.f32 %v15498_v27, %v8450_v57 }
 0x8be   : > { %v8488_v36 = vadd.f32 %v15498_v27, %v8449_v51 }
 0x8bf   : > { %8521 = vst.msk [vmem:[%s15511_s22 + $0xd8] sm:$0xff] %vm2858_vm6, %v8489_v53 }
 0x8c0   : > { %8520 = vst.msk [vmem:[%s15511_s22 + $0xd0] sm:$0xff] %vm2858_vm6, %v8488_v36 }
 0x8ce   : > { %v9271_v5 = vpop.f32.mrb[172].mxu1 }
 0x8cf   : > { %v8151_v54 = vadd.f32 %v9271_v5, %v15491_v18  ;;  %v8145_v26 = vpop.f32.mrb[173].mxu1 }
 0x8d0   : > { %v8146_v61 = vadd.f32 %v15491_v18, %v8145_v26 }
 0x8d1   : > { %v8193_v48 = vmax.f32 %v8151_v54, 0.0 }
 0x8d2   : > { %v8192_v52 = vmax.f32 %v8146_v61, 0.0 }
 0x8d3   : > { %v8452_v0 = vadd.f32 %v15629_v7, %v8193_v48 }
 0x8d4   : > { %v8451_v4 = vadd.f32 %v15631_v9, %v8192_v52 }
 0x8d5   : > { %v8491_v15 = vadd.f32 %v15498_v27, %v8452_v0 }
 0x8d6   : > { %v8490_v47 = vadd.f32 %v15498_v27, %v8451_v4 }
 0x8d7   : > { %8523 = vst.msk [vmem:[%s15511_s22 + $0xe8] sm:$0xff] %vm2858_vm6, %v8491_v15 }
 0x8d8   : > { %8522 = vst.msk [vmem:[%s15511_s22 + $0xe0] sm:$0xff] %vm2858_vm6, %v8490_v47 }
 0x8dd   : > { %v9274_v29 = vpop.f32.mrb[174].mxu1 }
 0x8de   : > { %v8161_v2 = vadd.f32 %v9274_v29, %v15491_v18  ;;  %v8155_v12 = vpop.f32.mrb[175].mxu1 }
 0x8df   : > { %v8156_v44 = vadd.f32 %v15491_v18, %v8155_v12 }
 0x8e0   : > { %v8195_v3 = vmax.f32 %v8161_v2, 0.0 }
 0x8e1   : > { %v8194_v7 = vmax.f32 %v8156_v44, 0.0 }
 0x8e2   : > { %v8454_v19 = vadd.f32 %v15643_v11, %v8195_v3 }
 0x8e3   : > { %v8453_v9 = vadd.f32 %v15645_v60, %v8194_v7 }
 0x8e4   : > { %v8493_v58 = vadd.f32 %v15498_v27, %v8454_v19 }
 0x8e5   : > { %v8492_v45 = vadd.f32 %v15498_v27, %v8453_v9 }
 0x8e6   : > { %8525 = vst.msk [vmem:[%s15511_s22 + $0xf8] sm:$0xff] %vm2858_vm6, %v8493_v58 }
 0x8e7   : > { %8524 = vst.msk [vmem:[%s15511_s22 + $0xf0] sm:$0xff] %vm2858_vm6, %v8492_v45 }
 0x8e8 PF: > { %s27_s24 = sadd.s32 1, %s10822_s24  }
 0x8e9   : > { %p24_p4 = scmp.ge.s32.totalorder %s27_s24, 4  }
 0x8eb   :  { %26 = sbr.rel (!%p24_p4) target bundleno = 4 (0x4), region = 124 }

</bundles_post_ra>
